<compile_context>
chip_gen: v5e
topology: v5e:2x2
jax: 0.10.0
libtpu: 0.0.40
codegen_flags: <defaults>
</compile_context>

<pallas_src>
import jax
import jax.numpy as jnp
from jax import lax
from jax.experimental import pallas as pl
from jax.experimental.pallas import tpu as pltpu

EMB = 48          # self.emb_dim
HID = 24          # Graphormer config1.hidden_size
HEADS = 3         # config1.num_attention_heads
HEAD_DIM = HID // HEADS
FFN = 64          # config1.intermediate_size
POSE_DIM = 15     # pose_dim

# Synthetic HEM hierarchy (fine -> coarse), analogous to the real [6890, 3679, 1946, ..., 24]
GRAPH_SIZES = [144, 120, 96, 48, 24]
NUM_VERTS = GRAPH_SIZES[::-1]          # coarse -> fine, as used in forward(): [24,48,96,120,144]
N_P2M = len(GRAPH_SIZES) - 3           # number of p2m_ Graphormer layers (= 2 here)
N_GBLOCKS = N_P2M + 1                  # p2m_ layers + mesh_layer

# Lane-aligned packing of (pose + every decoder output) in channel-major [3, PACK_W]:
#   slot sizes:  [15, 24, 48, 96, 120, 144]   slot lane offsets (128-aligned):
PACK_SIZES = [POSE_DIM] + NUM_VERTS
PACK_OFF = [0, 128, 256, 384, 512, 640]
PACK_W = 896                                   # multiple of 128 -> unmasked writeback

WEIGHT_ORDER = ('w_pose', 'b_pose', 'w_fc', 'b_fc', 'a0', 'a1', 'a2',
                'wg', 'bg', 'wqkv', 'wo', 'bo', 'w1', 'b1', 'w2', 'b2',
                'dec_w', 'dec_b', 'up1_wt', 'up1_bc', 'up2_wt', 'up2_bc')


# --------------------------------------------------------------------------------------
# Fused Pallas kernel: backbone stand-in + fc + both p2m blocks + mesh_layer + up1/up2
# + every location_decoder, all VMEM-resident, one grid step per batch element.
# --------------------------------------------------------------------------------------

def _fused_kernel(pcd_ref, wp_ref, bp_ref, wfc_ref, bfc_ref,
                  a0_ref, a1_ref, a2_ref,
                  wg_ref, bg_ref, wqkv_ref, wo_ref, bo_ref,
                  w1_ref, b1_ref, w2_ref, b2_ref,
                  dec_w_ref, dec_b_ref,
                  up1_wt_ref, up1_bc_ref, up2_wt_ref, up2_bc_ref,
                  pack_ref, vf_ref):
    f32 = jnp.float32
    scale = 1.0 / (HEAD_DIM ** 0.5)

    # ---- stem: point-cloud backbone stand-in + folded fc, fused into the pipeline ----
    # TODO(synk): PCTv2_SegReg backbone not translated; deterministic mean-point linear.
    mean_p = jnp.mean(pcd_ref[0], axis=0, keepdims=True)                         # [1, 3]
    pose = jnp.dot(mean_p, wp_ref[...],
                   preferred_element_type=f32) + bp_ref[...]                     # [1, 45]
    feat = jnp.dot(pose, wfc_ref[...],
                   preferred_element_type=f32) + bfc_ref[...]                    # [1, 1152]
    # [1, 24*EMB] -> [24, EMB] via static lane slices + sublane concat (robust relayout,
    # avoids an arbitrary in-kernel reshape).
    x0 = jnp.concatenate(
        [feat[:, v * EMB:(v + 1) * EMB] for v in range(NUM_VERTS[0])], axis=0)   # [24, 48]

    dec_w = dec_w_ref[...]       # [EMB, 3]  (folded Linear(48,16) o Linear(16,3))
    dec_b = dec_b_ref[...]       # [1, 3]

    # one lane-dense packed output for the pose and every location_decoder level
    pack_ref[...] = jnp.zeros_like(pack_ref)
    pose_j3 = jnp.concatenate(
        [pose[:, 3 * j:3 * j + 3] for j in range(POSE_DIM)], axis=0)             # [15, 3]
    pack_ref[0, :, PACK_OFF[0]:PACK_OFF[0] + POSE_DIM] = jnp.transpose(pose_j3)  # [3, 15]

    def store_decoded(x, slot):
        d = jnp.dot(x, dec_w, preferred_element_type=f32) + dec_b                # [V, 3]
        off = PACK_OFF[slot]
        pack_ref[0, :, off:off + x.shape[0]] = jnp.transpose(d)                  # [3, V]

    def gblock(x, a, li):
        # graph convolution into hidden size (nearest upsample already folded into `a`)
        h = jnp.dot(x, wg_ref[li], preferred_element_type=f32)                   # [Vin, HID]
        h = jnp.dot(a, h, preferred_element_type=f32) + bg_ref[li]               # [Vout, HID]
        h = jnp.maximum(h, 0.0)
        # multi-head self-attention: single fused QKV matmul, per-head lane slices,
        # per-head contexts concatenated through ONE output projection.
        qkv = jnp.dot(h, wqkv_ref[li], preferred_element_type=f32)               # [V, 3*HID]
        ctx = []
        for hh in range(HEADS):
            lo = hh * HEAD_DIM
            q = qkv[:, lo:lo + HEAD_DIM]
            k = qkv[:, HID + lo:HID + lo + HEAD_DIM]
            v = qkv[:, 2 * HID + lo:2 * HID + lo + HEAD_DIM]
            s = lax.dot_general(q, k, (((1,), (1,)), ((), ())),
                                preferred_element_type=f32) * scale              # q @ k^T
            s = s - jnp.max(s, axis=-1, keepdims=True)
            p = jnp.exp(s)
            p = p * pl.reciprocal(jnp.sum(p, axis=-1, keepdims=True), approx=True)
            ctx.append(jnp.dot(p, v, preferred_element_type=f32))                # [V, HD]
        att = jnp.dot(jnp.concatenate(ctx, axis=1), wo_ref[li],
                      preferred_element_type=f32)                                # [V, HID]
        h2 = h + att + bo_ref[li]
        # feed-forward back to the embedding dim
        f = jnp.maximum(
            jnp.dot(h2, w1_ref[li], preferred_element_type=f32) + b1_ref[li], 0.0)
        return jnp.dot(f, w2_ref[li], preferred_element_type=f32) + b2_ref[li]   # [Vout, EMB]

    f24 = gblock(x0, a0_ref[...], 0)               # p2m_[0]
    store_decoded(f24, 1)
    f48 = gblock(f24, a1_ref[...], 1)              # p2m_[1]; a1 = adj48 @ upsample(24->48)
    store_decoded(f48, 2)
    f96 = gblock(f48, a2_ref[...], 2)              # mesh_layer; a2 = adj96 @ upsample(48->96)
    store_decoded(f96, 3)

    # up1/up2 act along the vertex dim; weights pre-transposed so activations stay
    # vertex-major (no permute(0,2,1) round-trips).
    f120 = jnp.dot(up1_wt_ref[...], f96, preferred_element_type=f32) + up1_bc_ref[...]
    store_decoded(f120, 4)
    f144 = jnp.dot(up2_wt_ref[...], f120, preferred_element_type=f32) + up2_bc_ref[...]
    store_decoded(f144, 5)
    vf_ref[0] = f144


# --------------------------------------------------------------------------------------
# Parameters (deterministic synthetic init, original nn.Module layout) + one-time folding
# --------------------------------------------------------------------------------------

def ring_adj(v):
    a = jnp.eye(v, dtype=jnp.float32)
    idx = jnp.arange(v)
    a = a.at[idx, (idx + 1) % v].set(1.0)
    a = a.at[idx, (idx - 1) % v].set(1.0)
    return a / jnp.sum(a, axis=1, keepdims=True)


def make_params(key):
    keys = iter(jax.random.split(key, 64))

    def dense(fan_in, fan_out, scale=0.05):
        return jax.random.normal(next(keys), (fan_in, fan_out), jnp.float32) * scale

    def gblock():
        return {
            'wg': dense(EMB, HID), 'bg': jnp.zeros((HID,), jnp.float32),
            'wq': dense(HID, HID), 'wk': dense(HID, HID), 'wv': dense(HID, HID),
            'wo': dense(HID, HID), 'bo': jnp.zeros((HID,), jnp.float32),
            'w1': dense(HID, FFN), 'b1': jnp.zeros((FFN,), jnp.float32),
            'w2': dense(FFN, EMB), 'b2': jnp.zeros((EMB,), jnp.float32),
        }

    return {
        'w_pose': dense(3, POSE_DIM * 3), 'b_pose': jnp.zeros((POSE_DIM * 3,), jnp.float32),
        'fc_w1': dense(POSE_DIM * 3, 1024), 'fc_b1': jnp.zeros((1024,), jnp.float32),
        'fc_w2': dense(1024, 24 * EMB), 'fc_b2': jnp.zeros((24 * EMB,), jnp.float32),
        'dec_w1': dense(EMB, 16), 'dec_b1': jnp.zeros((16,), jnp.float32),
        'dec_w2': dense(16, 3), 'dec_b2': jnp.zeros((3,), jnp.float32),
        'p2m': [gblock() for _ in range(N_P2M)],
        'mesh_layer': gblock(),
        'up1_w': dense(GRAPH_SIZES[2], GRAPH_SIZES[1]),
        'up1_b': jnp.zeros((GRAPH_SIZES[1],), jnp.float32),
        'up2_w': dense(GRAPH_SIZES[1], GRAPH_SIZES[0]),
        'up2_b': jnp.zeros((GRAPH_SIZES[0],), jnp.float32),
        'adjs': [ring_adj(NUM_VERTS[i]) for i in range(N_P2M + 1)],
    }


def fold_params(p):
    """One-time, exact algebraic folding + re-layout into the fused-kernel format."""
    blocks = list(p['p2m']) + [p['mesh_layer']]
    row = lambda b: b.reshape(1, -1)

    def stack(fn):
        return jnp.stack([fn(blk) for blk in blocks], axis=0)

    # nearest-neighbour graph_upsample as a selection matrix, folded into the next adjacency
    up_a = jnp.repeat(jnp.eye(NUM_VERTS[0], dtype=jnp.float32),
                      NUM_VERTS[1] // NUM_VERTS[0], axis=0)            # [48, 24]
    up_b = jnp.repeat(jnp.eye(NUM_VERTS[1], dtype=jnp.float32),
                      NUM_VERTS[2] // NUM_VERTS[1], axis=0)            # [96, 48]

    return {
        'w_pose': p['w_pose'], 'b_pose': row(p['b_pose']),
        # fc: two Linears with no nonlinearity -> single 45x1152 matmul
        'w_fc': p['fc_w1'] @ p['fc_w2'],
        'b_fc': row(p['fc_b1'] @ p['fc_w2'] + p['fc_b2']),
        # location_decoder: Linear(48,16) o Linear(16,3), no nonlinearity -> one matmul
        'dec_w': p['dec_w1'] @ p['dec_w2'],
        'dec_b': row(p['dec_b1'] @ p['dec_w2'] + p['dec_b2']),
        'a0': p['adjs'][0],
        'a1': p['adjs'][1] @ up_a,
        'a2': p['adjs'][2] @ up_b,
        'wg': stack(lambda b: b['wg']),
        'bg': stack(lambda b: row(b['bg'])),
        # fused QKV weight: one [HID, 3*HID] matmul per block instead of 3 (or 9 per-head)
        'wqkv': stack(lambda b: jnp.concatenate([b['wq'], b['wk'], b['wv']], axis=1)),
        'wo': stack(lambda b: b['wo']),
        'bo': stack(lambda b: row(b['bo'])),
        'w1': stack(lambda b: b['w1']),
        'b1': stack(lambda b: row(b['b1'])),
        'w2': stack(lambda b: b['w2']),
        'b2': stack(lambda b: row(b['b2'])),
        'up1_wt': p['up1_w'].T, 'up1_bc': p['up1_b'].reshape(-1, 1),
        'up2_wt': p['up2_w'].T, 'up2_bc': p['up2_b'].reshape(-1, 1),
    }


# --------------------------------------------------------------------------------------
# Forward: one pallas_call, grid over the batch (parallel over TensorCores on v7x)
# --------------------------------------------------------------------------------------

def forward(kp, pcd):
    B, N, _ = pcd.shape
    weights = [kp[k] for k in WEIGHT_ORDER]

    def const_spec(a):
        zeros = (0,) * a.ndim
        return pl.BlockSpec(a.shape, lambda i, z=zeros: z)

    V4 = NUM_VERTS[-1]
    cost = pl.CostEstimate(flops=B * 7_200_000,
                           transcendentals=B * 37_000,
                           bytes_accessed=600_000 + B * 50_000)

    packed, vert_feat = pl.pallas_call(
        _fused_kernel,
        out_shape=(jax.ShapeDtypeStruct((B, 3, PACK_W), jnp.float32),
                   jax.ShapeDtypeStruct((B, V4, EMB), jnp.float32)),
        grid=(B,),
        in_specs=[pl.BlockSpec((1, N, 3), lambda i: (i, 0, 0))]
                 + [const_spec(a) for a in weights],
        out_specs=(pl.BlockSpec((1, 3, PACK_W), lambda i: (i, 0, 0)),
                   pl.BlockSpec((1, V4, EMB), lambda i: (i, 0, 0))),
        compiler_params=pltpu.CompilerParams(dimension_semantics=("parallel",)),
        cost_estimate=cost,
    )(pcd, *weights)

    def unpack(slot, v):
        off = PACK_OFF[slot]
        return jnp.transpose(packed[:, :, off:off + v], (0, 2, 1))   # [B, v, 3]

    pose = unpack(0, POSE_DIM)
    pose_lister = [pose] + [unpack(s + 1, v) for s, v in enumerate(NUM_VERTS)]
    return {
        'pose': pose,
        'pose_lister': pose_lister,
        'mesh_out': pose_lister[-1],
        'vert_feat': vert_feat,
    }


if __name__ == "__main__":
    key = jax.random.PRNGKey(0)
    k_params, k_data = jax.random.split(key)
    params = make_params(k_params)            # original nn.Module-shaped weights
    kp = fold_params(params)                  # one-time exact folding / re-layout
    pcd = jax.random.normal(k_data, (2, 8, 3), dtype=jnp.float32)   # [B, N, 3] point cloud

    ret = jax.jit(forward)(kp, pcd)
    jax.block_until_ready(ret)

    assert ret['pose'].shape == (2, POSE_DIM, 3)
    assert ret['mesh_out'].shape == (2, GRAPH_SIZES[0], 3)
    assert ret['vert_feat'].shape == (2, GRAPH_SIZES[0], EMB)
    assert len(ret['pose_lister']) == 1 + N_P2M + 1 + 2
    print("KERNEL_OK")
</pallas_src>

<mosaic_0001>
module attributes {stable_mosaic.version = 11 : i64} {
  func.func @_fused_kernel(%arg0: i32, %arg1: memref<1x8x3xf32, #tpu.memory_space<vmem>>, %arg2: memref<3x45xf32, #tpu.memory_space<vmem>>, %arg3: memref<1x45xf32, #tpu.memory_space<vmem>>, %arg4: memref<45x1152xf32, #tpu.memory_space<vmem>>, %arg5: memref<1x1152xf32, #tpu.memory_space<vmem>>, %arg6: memref<24x24xf32, #tpu.memory_space<vmem>>, %arg7: memref<48x24xf32, #tpu.memory_space<vmem>>, %arg8: memref<96x48xf32, #tpu.memory_space<vmem>>, %arg9: memref<3x48x24xf32, #tpu.memory_space<vmem>>, %arg10: memref<3x1x24xf32, #tpu.memory_space<vmem>>, %arg11: memref<3x24x72xf32, #tpu.memory_space<vmem>>, %arg12: memref<3x24x24xf32, #tpu.memory_space<vmem>>, %arg13: memref<3x1x24xf32, #tpu.memory_space<vmem>>, %arg14: memref<3x24x64xf32, #tpu.memory_space<vmem>>, %arg15: memref<3x1x64xf32, #tpu.memory_space<vmem>>, %arg16: memref<3x64x48xf32, #tpu.memory_space<vmem>>, %arg17: memref<3x1x48xf32, #tpu.memory_space<vmem>>, %arg18: memref<48x3xf32, #tpu.memory_space<vmem>>, %arg19: memref<1x3xf32, #tpu.memory_space<vmem>>, %arg20: memref<120x96xf32, #tpu.memory_space<vmem>>, %arg21: memref<120x1xf32, #tpu.memory_space<vmem>>, %arg22: memref<144x120xf32, #tpu.memory_space<vmem>>, %arg23: memref<144x1xf32, #tpu.memory_space<vmem>>, %arg24: memref<1x3x896xf32, #tpu.memory_space<vmem>>, %arg25: memref<1x144x48xf32, #tpu.memory_space<vmem>>) attributes {dimension_semantics = [#tpu.dimension_semantics<parallel>], iteration_bounds = array<i64: 2>, scalar_prefetch = 0 : i64, scratch_operands = 0 : i64, tpu.core_type = #tpu.core_type<tc>, window_params = [{transform_indices = @transform_0, window_bounds = array<i64: 1, 8, 3>}, {pipeline_mode = #tpu.pipeline_mode<synchronous>, transform_indices = @transform_1, window_bounds = array<i64: 3, 45>}, {pipeline_mode = #tpu.pipeline_mode<synchronous>, transform_indices = @transform_2, window_bounds = array<i64: 1, 45>}, {pipeline_mode = #tpu.pipeline_mode<synchronous>, transform_indices = @transform_3, window_bounds = array<i64: 45, 1152>}, {pipeline_mode = #tpu.pipeline_mode<synchronous>, transform_indices = @transform_4, window_bounds = array<i64: 1, 1152>}, {pipeline_mode = #tpu.pipeline_mode<synchronous>, transform_indices = @transform_5, window_bounds = array<i64: 24, 24>}, {pipeline_mode = #tpu.pipeline_mode<synchronous>, transform_indices = @transform_6, window_bounds = array<i64: 48, 24>}, {pipeline_mode = #tpu.pipeline_mode<synchronous>, transform_indices = @transform_7, window_bounds = array<i64: 96, 48>}, {pipeline_mode = #tpu.pipeline_mode<synchronous>, transform_indices = @transform_8, window_bounds = array<i64: 3, 48, 24>}, {pipeline_mode = #tpu.pipeline_mode<synchronous>, transform_indices = @transform_9, window_bounds = array<i64: 3, 1, 24>}, {pipeline_mode = #tpu.pipeline_mode<synchronous>, transform_indices = @transform_10, window_bounds = array<i64: 3, 24, 72>}, {pipeline_mode = #tpu.pipeline_mode<synchronous>, transform_indices = @transform_11, window_bounds = array<i64: 3, 24, 24>}, {pipeline_mode = #tpu.pipeline_mode<synchronous>, transform_indices = @transform_12, window_bounds = array<i64: 3, 1, 24>}, {pipeline_mode = #tpu.pipeline_mode<synchronous>, transform_indices = @transform_13, window_bounds = array<i64: 3, 24, 64>}, {pipeline_mode = #tpu.pipeline_mode<synchronous>, transform_indices = @transform_14, window_bounds = array<i64: 3, 1, 64>}, {pipeline_mode = #tpu.pipeline_mode<synchronous>, transform_indices = @transform_15, window_bounds = array<i64: 3, 64, 48>}, {pipeline_mode = #tpu.pipeline_mode<synchronous>, transform_indices = @transform_16, window_bounds = array<i64: 3, 1, 48>}, {pipeline_mode = #tpu.pipeline_mode<synchronous>, transform_indices = @transform_17, window_bounds = array<i64: 48, 3>}, {pipeline_mode = #tpu.pipeline_mode<synchronous>, transform_indices = @transform_18, window_bounds = array<i64: 1, 3>}, {pipeline_mode = #tpu.pipeline_mode<synchronous>, transform_indices = @transform_19, window_bounds = array<i64: 120, 96>}, {pipeline_mode = #tpu.pipeline_mode<synchronous>, transform_indices = @transform_20, window_bounds = array<i64: 120, 1>}, {pipeline_mode = #tpu.pipeline_mode<synchronous>, transform_indices = @transform_21, window_bounds = array<i64: 144, 120>}, {pipeline_mode = #tpu.pipeline_mode<synchronous>, transform_indices = @transform_22, window_bounds = array<i64: 144, 1>}, {transform_indices = @transform_23, window_bounds = array<i64: 1, 3, 896>}, {transform_indices = @transform_24, window_bounds = array<i64: 1, 144, 48>}]} {
    %c0 = arith.constant 0 : index
    %c0_0 = arith.constant 0 : index
    %c0_1 = arith.constant 0 : index
    %0 = vector.load %arg1[%c0, %c0_0, %c0_1] : memref<1x8x3xf32, #tpu.memory_space<vmem>>, vector<1x8x3xf32>
    %1 = vector.shape_cast %0 : vector<1x8x3xf32> to vector<8x3xf32>
    %cst = arith.constant dense<0.000000e+00> : vector<3xf32>
    %2 = vector.multi_reduction <add>, %1, %cst [0] : vector<8x3xf32> to vector<3xf32>
    %3 = vector.shape_cast %2 : vector<3xf32> to vector<1x3xf32>
    %cst_2 = arith.constant 8.000000e+00 : f32
    %4 = vector.broadcast %cst_2 : f32 to vector<1x3xf32>
    %5 = arith.divf %3, %4 : vector<1x3xf32>
    %c0_3 = arith.constant 0 : index
    %c0_4 = arith.constant 0 : index
    %6 = vector.load %arg2[%c0_3, %c0_4] : memref<3x45xf32, #tpu.memory_space<vmem>>, vector<3x45xf32>
    %cst_5 = arith.constant dense<0.000000e+00> : vector<1x45xf32>
    %7 = tpu.matmul %5, %6, %cst_5 {dimension_numbers = #tpu.dot_dimension_numbers<[1], [0], [0], [1], [0, 0, 1, 1], [], []>} : vector<1x3xf32>, vector<3x45xf32>, vector<1x45xf32> -> vector<1x45xf32>
    %c0_6 = arith.constant 0 : index
    %c0_7 = arith.constant 0 : index
    %8 = vector.load %arg3[%c0_6, %c0_7] : memref<1x45xf32, #tpu.memory_space<vmem>>, vector<1x45xf32>
    %9 = arith.addf %7, %8 : vector<1x45xf32>
    %c0_8 = arith.constant 0 : index
    %c0_9 = arith.constant 0 : index
    %10 = vector.load %arg4[%c0_8, %c0_9] : memref<45x1152xf32, #tpu.memory_space<vmem>>, vector<45x1152xf32>
    %cst_10 = arith.constant dense<0.000000e+00> : vector<1x1152xf32>
    %11 = tpu.matmul %9, %10, %cst_10 {dimension_numbers = #tpu.dot_dimension_numbers<[1], [0], [0], [1], [0, 0, 1, 1], [], []>} : vector<1x45xf32>, vector<45x1152xf32>, vector<1x1152xf32> -> vector<1x1152xf32>
    %c0_11 = arith.constant 0 : index
    %c0_12 = arith.constant 0 : index
    %12 = vector.load %arg5[%c0_11, %c0_12] : memref<1x1152xf32, #tpu.memory_space<vmem>>, vector<1x1152xf32>
    %13 = arith.addf %11, %12 : vector<1x1152xf32>
    %14 = vector.extract_strided_slice %13 {offsets = [0, 0], sizes = [1, 48], strides = [1, 1]} : vector<1x1152xf32> to vector<1x48xf32>
    %15 = vector.extract_strided_slice %13 {offsets = [0, 48], sizes = [1, 48], strides = [1, 1]} : vector<1x1152xf32> to vector<1x48xf32>
    %16 = vector.extract_strided_slice %13 {offsets = [0, 96], sizes = [1, 48], strides = [1, 1]} : vector<1x1152xf32> to vector<1x48xf32>
    %17 = vector.extract_strided_slice %13 {offsets = [0, 144], sizes = [1, 48], strides = [1, 1]} : vector<1x1152xf32> to vector<1x48xf32>
    %18 = vector.extract_strided_slice %13 {offsets = [0, 192], sizes = [1, 48], strides = [1, 1]} : vector<1x1152xf32> to vector<1x48xf32>
    %19 = vector.extract_strided_slice %13 {offsets = [0, 240], sizes = [1, 48], strides = [1, 1]} : vector<1x1152xf32> to vector<1x48xf32>
    %20 = vector.extract_strided_slice %13 {offsets = [0, 288], sizes = [1, 48], strides = [1, 1]} : vector<1x1152xf32> to vector<1x48xf32>
    %21 = vector.extract_strided_slice %13 {offsets = [0, 336], sizes = [1, 48], strides = [1, 1]} : vector<1x1152xf32> to vector<1x48xf32>
    %22 = vector.extract_strided_slice %13 {offsets = [0, 384], sizes = [1, 48], strides = [1, 1]} : vector<1x1152xf32> to vector<1x48xf32>
    %23 = vector.extract_strided_slice %13 {offsets = [0, 432], sizes = [1, 48], strides = [1, 1]} : vector<1x1152xf32> to vector<1x48xf32>
    %24 = vector.extract_strided_slice %13 {offsets = [0, 480], sizes = [1, 48], strides = [1, 1]} : vector<1x1152xf32> to vector<1x48xf32>
    %25 = vector.extract_strided_slice %13 {offsets = [0, 528], sizes = [1, 48], strides = [1, 1]} : vector<1x1152xf32> to vector<1x48xf32>
    %26 = vector.extract_strided_slice %13 {offsets = [0, 576], sizes = [1, 48], strides = [1, 1]} : vector<1x1152xf32> to vector<1x48xf32>
    %27 = vector.extract_strided_slice %13 {offsets = [0, 624], sizes = [1, 48], strides = [1, 1]} : vector<1x1152xf32> to vector<1x48xf32>
    %28 = vector.extract_strided_slice %13 {offsets = [0, 672], sizes = [1, 48], strides = [1, 1]} : vector<1x1152xf32> to vector<1x48xf32>
    %29 = vector.extract_strided_slice %13 {offsets = [0, 720], sizes = [1, 48], strides = [1, 1]} : vector<1x1152xf32> to vector<1x48xf32>
    %30 = vector.extract_strided_slice %13 {offsets = [0, 768], sizes = [1, 48], strides = [1, 1]} : vector<1x1152xf32> to vector<1x48xf32>
    %31 = vector.extract_strided_slice %13 {offsets = [0, 816], sizes = [1, 48], strides = [1, 1]} : vector<1x1152xf32> to vector<1x48xf32>
    %32 = vector.extract_strided_slice %13 {offsets = [0, 864], sizes = [1, 48], strides = [1, 1]} : vector<1x1152xf32> to vector<1x48xf32>
    %33 = vector.extract_strided_slice %13 {offsets = [0, 912], sizes = [1, 48], strides = [1, 1]} : vector<1x1152xf32> to vector<1x48xf32>
    %34 = vector.extract_strided_slice %13 {offsets = [0, 960], sizes = [1, 48], strides = [1, 1]} : vector<1x1152xf32> to vector<1x48xf32>
    %35 = vector.extract_strided_slice %13 {offsets = [0, 1008], sizes = [1, 48], strides = [1, 1]} : vector<1x1152xf32> to vector<1x48xf32>
    %36 = vector.extract_strided_slice %13 {offsets = [0, 1056], sizes = [1, 48], strides = [1, 1]} : vector<1x1152xf32> to vector<1x48xf32>
    %37 = vector.extract_strided_slice %13 {offsets = [0, 1104], sizes = [1, 48], strides = [1, 1]} : vector<1x1152xf32> to vector<1x48xf32>
    %38 = tpu.concatenate %14, %15, %16, %17, %18, %19, %20, %21, %22, %23, %24, %25, %26, %27, %28, %29 in 0 : vector<1x48xf32>, vector<1x48xf32>, vector<1x48xf32>, vector<1x48xf32>, vector<1x48xf32>, vector<1x48xf32>, vector<1x48xf32>, vector<1x48xf32>, vector<1x48xf32>, vector<1x48xf32>, vector<1x48xf32>, vector<1x48xf32>, vector<1x48xf32>, vector<1x48xf32>, vector<1x48xf32>, vector<1x48xf32> -> vector<16x48xf32>
    %39 = tpu.concatenate %30, %31, %32, %33, %34, %35, %36, %37 in 0 : vector<1x48xf32>, vector<1x48xf32>, vector<1x48xf32>, vector<1x48xf32>, vector<1x48xf32>, vector<1x48xf32>, vector<1x48xf32>, vector<1x48xf32> -> vector<8x48xf32>
    %40 = tpu.concatenate %38, %39 in 0 : vector<16x48xf32>, vector<8x48xf32> -> vector<24x48xf32>
    %c0_13 = arith.constant 0 : index
    %c0_14 = arith.constant 0 : index
    %41 = vector.load %arg18[%c0_13, %c0_14] : memref<48x3xf32, #tpu.memory_space<vmem>>, vector<48x3xf32>
    %c0_15 = arith.constant 0 : index
    %c0_16 = arith.constant 0 : index
    %42 = vector.load %arg19[%c0_15, %c0_16] : memref<1x3xf32, #tpu.memory_space<vmem>>, vector<1x3xf32>
    %cst_17 = arith.constant 0.000000e+00 : f32
    %43 = vector.broadcast %cst_17 : f32 to vector<1x3x896xf32>
    %c0_18 = arith.constant 0 : index
    %c0_19 = arith.constant 0 : index
    %c0_20 = arith.constant 0 : index
    %44 = vector.load %arg24[%c0_18, %c0_19, %c0_20] : memref<1x3x896xf32, #tpu.memory_space<vmem>>, vector<1x3x896xf32>
    tpu.vector_store %arg24[%c0_18, %c0_19, %c0_20], %43 {strides = array<i32>} : memref<1x3x896xf32, #tpu.memory_space<vmem>>, vector<1x3x896xf32>,
    %45 = vector.extract_strided_slice %9 {offsets = [0, 0], sizes = [1, 3], strides = [1, 1]} : vector<1x45xf32> to vector<1x3xf32>
    %46 = vector.extract_strided_slice %9 {offsets = [0, 3], sizes = [1, 3], strides = [1, 1]} : vector<1x45xf32> to vector<1x3xf32>
    %47 = vector.extract_strided_slice %9 {offsets = [0, 6], sizes = [1, 3], strides = [1, 1]} : vector<1x45xf32> to vector<1x3xf32>
    %48 = vector.extract_strided_slice %9 {offsets = [0, 9], sizes = [1, 3], strides = [1, 1]} : vector<1x45xf32> to vector<1x3xf32>
    %49 = vector.extract_strided_slice %9 {offsets = [0, 12], sizes = [1, 3], strides = [1, 1]} : vector<1x45xf32> to vector<1x3xf32>
    %50 = vector.extract_strided_slice %9 {offsets = [0, 15], sizes = [1, 3], strides = [1, 1]} : vector<1x45xf32> to vector<1x3xf32>
    %51 = vector.extract_strided_slice %9 {offsets = [0, 18], sizes = [1, 3], strides = [1, 1]} : vector<1x45xf32> to vector<1x3xf32>
    %52 = vector.extract_strided_slice %9 {offsets = [0, 21], sizes = [1, 3], strides = [1, 1]} : vector<1x45xf32> to vector<1x3xf32>
    %53 = vector.extract_strided_slice %9 {offsets = [0, 24], sizes = [1, 3], strides = [1, 1]} : vector<1x45xf32> to vector<1x3xf32>
    %54 = vector.extract_strided_slice %9 {offsets = [0, 27], sizes = [1, 3], strides = [1, 1]} : vector<1x45xf32> to vector<1x3xf32>
    %55 = vector.extract_strided_slice %9 {offsets = [0, 30], sizes = [1, 3], strides = [1, 1]} : vector<1x45xf32> to vector<1x3xf32>
    %56 = vector.extract_strided_slice %9 {offsets = [0, 33], sizes = [1, 3], strides = [1, 1]} : vector<1x45xf32> to vector<1x3xf32>
    %57 = vector.extract_strided_slice %9 {offsets = [0, 36], sizes = [1, 3], strides = [1, 1]} : vector<1x45xf32> to vector<1x3xf32>
    %58 = vector.extract_strided_slice %9 {offsets = [0, 39], sizes = [1, 3], strides = [1, 1]} : vector<1x45xf32> to vector<1x3xf32>
    %59 = vector.extract_strided_slice %9 {offsets = [0, 42], sizes = [1, 3], strides = [1, 1]} : vector<1x45xf32> to vector<1x3xf32>
    %60 = tpu.concatenate %45, %46, %47, %48, %49, %50, %51, %52, %53, %54, %55, %56, %57, %58, %59 in 0 : vector<1x3xf32>, vector<1x3xf32>, vector<1x3xf32>, vector<1x3xf32>, vector<1x3xf32>, vector<1x3xf32>, vector<1x3xf32>, vector<1x3xf32>, vector<1x3xf32>, vector<1x3xf32>, vector<1x3xf32>, vector<1x3xf32>, vector<1x3xf32>, vector<1x3xf32>, vector<1x3xf32> -> vector<15x3xf32>
    %61 = tpu.transpose %60, [1, 0] : vector<15x3xf32> -> vector<3x15xf32>
    %c0_21 = arith.constant 0 : index
    %c0_22 = arith.constant 0 : index
    %c0_23 = arith.constant 0 : index
    %62 = vector.load %arg24[%c0_21, %c0_22, %c0_23] : memref<1x3x896xf32, #tpu.memory_space<vmem>>, vector<1x3x15xf32>
    %63 = vector.shape_cast %62 : vector<1x3x15xf32> to vector<3x15xf32>
    %64 = vector.shape_cast %61 : vector<3x15xf32> to vector<1x3x15xf32>
    tpu.vector_store %arg24[%c0_21, %c0_22, %c0_23], %64 {strides = array<i32>} : memref<1x3x896xf32, #tpu.memory_space<vmem>>, vector<1x3x15xf32>,
    %c0_24 = arith.constant 0 : index
    %c0_25 = arith.constant 0 : index
    %65 = vector.load %arg6[%c0_24, %c0_25] : memref<24x24xf32, #tpu.memory_space<vmem>>, vector<24x24xf32>
    %c0_26 = arith.constant 0 : index
    %c0_27 = arith.constant 0 : index
    %c0_28 = arith.constant 0 : index
    %66 = vector.load %arg9[%c0_26, %c0_27, %c0_28] : memref<3x48x24xf32, #tpu.memory_space<vmem>>, vector<1x48x24xf32>
    %67 = vector.shape_cast %66 : vector<1x48x24xf32> to vector<48x24xf32>
    %cst_29 = arith.constant dense<0.000000e+00> : vector<24x24xf32>
    %68 = tpu.matmul %40, %67, %cst_29 {dimension_numbers = #tpu.dot_dimension_numbers<[1], [0], [0], [1], [0, 0, 1, 1], [], []>} : vector<24x48xf32>, vector<48x24xf32>, vector<24x24xf32> -> vector<24x24xf32>
    %cst_30 = arith.constant dense<0.000000e+00> : vector<24x24xf32>
    %69 = tpu.matmul %65, %68, %cst_30 {dimension_numbers = #tpu.dot_dimension_numbers<[1], [0], [0], [1], [0, 0, 1, 1], [], []>} : vector<24x24xf32>, vector<24x24xf32>, vector<24x24xf32> -> vector<24x24xf32>
    %c0_31 = arith.constant 0 : index
    %c0_32 = arith.constant 0 : index
    %c0_33 = arith.constant 0 : index
    %70 = vector.load %arg10[%c0_31, %c0_32, %c0_33] : memref<3x1x24xf32, #tpu.memory_space<vmem>>, vector<1x1x24xf32>
    %71 = vector.shape_cast %70 : vector<1x1x24xf32> to vector<1x24xf32>
    %72 = vector.broadcast %71 : vector<1x24xf32> to vector<24x24xf32>
    %73 = arith.addf %69, %72 : vector<24x24xf32>
    %cst_34 = arith.constant 0.000000e+00 : f32
    %74 = vector.broadcast %cst_34 : f32 to vector<24x24xf32>
    %75 = arith.maximumf %73, %74 : vector<24x24xf32>
    %c0_35 = arith.constant 0 : index
    %c0_36 = arith.constant 0 : index
    %c0_37 = arith.constant 0 : index
    %76 = vector.load %arg11[%c0_35, %c0_36, %c0_37] : memref<3x24x72xf32, #tpu.memory_space<vmem>>, vector<1x24x72xf32>
    %77 = vector.shape_cast %76 : vector<1x24x72xf32> to vector<24x72xf32>
    %cst_38 = arith.constant dense<0.000000e+00> : vector<24x72xf32>
    %78 = tpu.matmul %75, %77, %cst_38 {dimension_numbers = #tpu.dot_dimension_numbers<[1], [0], [0], [1], [0, 0, 1, 1], [], []>} : vector<24x24xf32>, vector<24x72xf32>, vector<24x72xf32> -> vector<24x72xf32>
    %79 = vector.extract_strided_slice %78 {offsets = [0, 0], sizes = [24, 8], strides = [1, 1]} : vector<24x72xf32> to vector<24x8xf32>
    %80 = vector.extract_strided_slice %78 {offsets = [0, 24], sizes = [24, 8], strides = [1, 1]} : vector<24x72xf32> to vector<24x8xf32>
    %81 = vector.extract_strided_slice %78 {offsets = [0, 48], sizes = [24, 8], strides = [1, 1]} : vector<24x72xf32> to vector<24x8xf32>
    %cst_39 = arith.constant dense<0.000000e+00> : vector<24x24xf32>
    %82 = tpu.matmul %79, %80, %cst_39 {dimension_numbers = #tpu.dot_dimension_numbers<[1], [1], [0], [0], [0, 0, 1, 0], [], []>} : vector<24x8xf32>, vector<24x8xf32>, vector<24x24xf32> -> vector<24x24xf32>
    %cst_40 = arith.constant 0.353553385 : f32
    %83 = vector.broadcast %cst_40 : f32 to vector<24x24xf32>
    %84 = arith.mulf %82, %83 : vector<24x24xf32>
    %cst_41 = arith.constant dense<0xFF800000> : vector<24xf32>
    %85 = vector.multi_reduction <maximumf>, %84, %cst_41 [1] : vector<24x24xf32> to vector<24xf32>
    %86 = vector.shape_cast %85 : vector<24xf32> to vector<24x1xf32>
    %87 = vector.broadcast %86 : vector<24x1xf32> to vector<24x24xf32>
    %88 = arith.subf %84, %87 : vector<24x24xf32>
    %89 = math.exp %88 : vector<24x24xf32>
    %cst_42 = arith.constant dense<0.000000e+00> : vector<24xf32>
    %90 = vector.multi_reduction <add>, %89, %cst_42 [1] : vector<24x24xf32> to vector<24xf32>
    %91 = vector.shape_cast %90 : vector<24xf32> to vector<24x1xf32>
    %92 = tpu.reciprocal %91 {approx = true} : vector<24x1xf32> -> vector<24x1xf32>
    %93 = vector.broadcast %92 : vector<24x1xf32> to vector<24x24xf32>
    %94 = arith.mulf %89, %93 : vector<24x24xf32>
    %cst_43 = arith.constant dense<0.000000e+00> : vector<24x8xf32>
    %95 = tpu.matmul %94, %81, %cst_43 {dimension_numbers = #tpu.dot_dimension_numbers<[1], [0], [0], [1], [0, 0, 1, 1], [], []>} : vector<24x24xf32>, vector<24x8xf32>, vector<24x8xf32> -> vector<24x8xf32>
    %96 = vector.extract_strided_slice %78 {offsets = [0, 8], sizes = [24, 8], strides = [1, 1]} : vector<24x72xf32> to vector<24x8xf32>
    %97 = vector.extract_strided_slice %78 {offsets = [0, 32], sizes = [24, 8], strides = [1, 1]} : vector<24x72xf32> to vector<24x8xf32>
    %98 = vector.extract_strided_slice %78 {offsets = [0, 56], sizes = [24, 8], strides = [1, 1]} : vector<24x72xf32> to vector<24x8xf32>
    %cst_44 = arith.constant dense<0.000000e+00> : vector<24x24xf32>
    %99 = tpu.matmul %96, %97, %cst_44 {dimension_numbers = #tpu.dot_dimension_numbers<[1], [1], [0], [0], [0, 0, 1, 0], [], []>} : vector<24x8xf32>, vector<24x8xf32>, vector<24x24xf32> -> vector<24x24xf32>
    %cst_45 = arith.constant 0.353553385 : f32
    %100 = vector.broadcast %cst_45 : f32 to vector<24x24xf32>
    %101 = arith.mulf %99, %100 : vector<24x24xf32>
    %cst_46 = arith.constant dense<0xFF800000> : vector<24xf32>
    %102 = vector.multi_reduction <maximumf>, %101, %cst_46 [1] : vector<24x24xf32> to vector<24xf32>
    %103 = vector.shape_cast %102 : vector<24xf32> to vector<24x1xf32>
    %104 = vector.broadcast %103 : vector<24x1xf32> to vector<24x24xf32>
    %105 = arith.subf %101, %104 : vector<24x24xf32>
    %106 = math.exp %105 : vector<24x24xf32>
    %cst_47 = arith.constant dense<0.000000e+00> : vector<24xf32>
    %107 = vector.multi_reduction <add>, %106, %cst_47 [1] : vector<24x24xf32> to vector<24xf32>
    %108 = vector.shape_cast %107 : vector<24xf32> to vector<24x1xf32>
    %109 = tpu.reciprocal %108 {approx = true} : vector<24x1xf32> -> vector<24x1xf32>
    %110 = vector.broadcast %109 : vector<24x1xf32> to vector<24x24xf32>
    %111 = arith.mulf %106, %110 : vector<24x24xf32>
    %cst_48 = arith.constant dense<0.000000e+00> : vector<24x8xf32>
    %112 = tpu.matmul %111, %98, %cst_48 {dimension_numbers = #tpu.dot_dimension_numbers<[1], [0], [0], [1], [0, 0, 1, 1], [], []>} : vector<24x24xf32>, vector<24x8xf32>, vector<24x8xf32> -> vector<24x8xf32>
    %113 = vector.extract_strided_slice %78 {offsets = [0, 16], sizes = [24, 8], strides = [1, 1]} : vector<24x72xf32> to vector<24x8xf32>
    %114 = vector.extract_strided_slice %78 {offsets = [0, 40], sizes = [24, 8], strides = [1, 1]} : vector<24x72xf32> to vector<24x8xf32>
    %115 = vector.extract_strided_slice %78 {offsets = [0, 64], sizes = [24, 8], strides = [1, 1]} : vector<24x72xf32> to vector<24x8xf32>
    %cst_49 = arith.constant dense<0.000000e+00> : vector<24x24xf32>
    %116 = tpu.matmul %113, %114, %cst_49 {dimension_numbers = #tpu.dot_dimension_numbers<[1], [1], [0], [0], [0, 0, 1, 0], [], []>} : vector<24x8xf32>, vector<24x8xf32>, vector<24x24xf32> -> vector<24x24xf32>
    %cst_50 = arith.constant 0.353553385 : f32
    %117 = vector.broadcast %cst_50 : f32 to vector<24x24xf32>
    %118 = arith.mulf %116, %117 : vector<24x24xf32>
    %cst_51 = arith.constant dense<0xFF800000> : vector<24xf32>
    %119 = vector.multi_reduction <maximumf>, %118, %cst_51 [1] : vector<24x24xf32> to vector<24xf32>
    %120 = vector.shape_cast %119 : vector<24xf32> to vector<24x1xf32>
    %121 = vector.broadcast %120 : vector<24x1xf32> to vector<24x24xf32>
    %122 = arith.subf %118, %121 : vector<24x24xf32>
    %123 = math.exp %122 : vector<24x24xf32>
    %cst_52 = arith.constant dense<0.000000e+00> : vector<24xf32>
    %124 = vector.multi_reduction <add>, %123, %cst_52 [1] : vector<24x24xf32> to vector<24xf32>
    %125 = vector.shape_cast %124 : vector<24xf32> to vector<24x1xf32>
    %126 = tpu.reciprocal %125 {approx = true} : vector<24x1xf32> -> vector<24x1xf32>
    %127 = vector.broadcast %126 : vector<24x1xf32> to vector<24x24xf32>
    %128 = arith.mulf %123, %127 : vector<24x24xf32>
    %cst_53 = arith.constant dense<0.000000e+00> : vector<24x8xf32>
    %129 = tpu.matmul %128, %115, %cst_53 {dimension_numbers = #tpu.dot_dimension_numbers<[1], [0], [0], [1], [0, 0, 1, 1], [], []>} : vector<24x24xf32>, vector<24x8xf32>, vector<24x8xf32> -> vector<24x8xf32>
    %130 = tpu.concatenate %95, %112, %129 in 1 : vector<24x8xf32>, vector<24x8xf32>, vector<24x8xf32> -> vector<24x24xf32>
    %c0_54 = arith.constant 0 : index
    %c0_55 = arith.constant 0 : index
    %c0_56 = arith.constant 0 : index
    %131 = vector.load %arg12[%c0_54, %c0_55, %c0_56] : memref<3x24x24xf32, #tpu.memory_space<vmem>>, vector<1x24x24xf32>
    %132 = vector.shape_cast %131 : vector<1x24x24xf32> to vector<24x24xf32>
    %cst_57 = arith.constant dense<0.000000e+00> : vector<24x24xf32>
    %133 = tpu.matmul %130, %132, %cst_57 {dimension_numbers = #tpu.dot_dimension_numbers<[1], [0], [0], [1], [0, 0, 1, 1], [], []>} : vector<24x24xf32>, vector<24x24xf32>, vector<24x24xf32> -> vector<24x24xf32>
    %134 = arith.addf %75, %133 : vector<24x24xf32>
    %c0_58 = arith.constant 0 : index
    %c0_59 = arith.constant 0 : index
    %c0_60 = arith.constant 0 : index
    %135 = vector.load %arg13[%c0_58, %c0_59, %c0_60] : memref<3x1x24xf32, #tpu.memory_space<vmem>>, vector<1x1x24xf32>
    %136 = vector.shape_cast %135 : vector<1x1x24xf32> to vector<1x24xf32>
    %137 = vector.broadcast %136 : vector<1x24xf32> to vector<24x24xf32>
    %138 = arith.addf %134, %137 : vector<24x24xf32>
    %c0_61 = arith.constant 0 : index
    %c0_62 = arith.constant 0 : index
    %c0_63 = arith.constant 0 : index
    %139 = vector.load %arg14[%c0_61, %c0_62, %c0_63] : memref<3x24x64xf32, #tpu.memory_space<vmem>>, vector<1x24x64xf32>
    %140 = vector.shape_cast %139 : vector<1x24x64xf32> to vector<24x64xf32>
    %cst_64 = arith.constant dense<0.000000e+00> : vector<24x64xf32>
    %141 = tpu.matmul %138, %140, %cst_64 {dimension_numbers = #tpu.dot_dimension_numbers<[1], [0], [0], [1], [0, 0, 1, 1], [], []>} : vector<24x24xf32>, vector<24x64xf32>, vector<24x64xf32> -> vector<24x64xf32>
    %c0_65 = arith.constant 0 : index
    %c0_66 = arith.constant 0 : index
    %c0_67 = arith.constant 0 : index
    %142 = vector.load %arg15[%c0_65, %c0_66, %c0_67] : memref<3x1x64xf32, #tpu.memory_space<vmem>>, vector<1x1x64xf32>
    %143 = vector.shape_cast %142 : vector<1x1x64xf32> to vector<1x64xf32>
    %144 = vector.broadcast %143 : vector<1x64xf32> to vector<24x64xf32>
    %145 = arith.addf %141, %144 : vector<24x64xf32>
    %cst_68 = arith.constant 0.000000e+00 : f32
    %146 = vector.broadcast %cst_68 : f32 to vector<24x64xf32>
    %147 = arith.maximumf %145, %146 : vector<24x64xf32>
    %c0_69 = arith.constant 0 : index
    %c0_70 = arith.constant 0 : index
    %c0_71 = arith.constant 0 : index
    %148 = vector.load %arg16[%c0_69, %c0_70, %c0_71] : memref<3x64x48xf32, #tpu.memory_space<vmem>>, vector<1x64x48xf32>
    %149 = vector.shape_cast %148 : vector<1x64x48xf32> to vector<64x48xf32>
    %cst_72 = arith.constant dense<0.000000e+00> : vector<24x48xf32>
    %150 = tpu.matmul %147, %149, %cst_72 {dimension_numbers = #tpu.dot_dimension_numbers<[1], [0], [0], [1], [0, 0, 1, 1], [], []>} : vector<24x64xf32>, vector<64x48xf32>, vector<24x48xf32> -> vector<24x48xf32>
    %c0_73 = arith.constant 0 : index
    %c0_74 = arith.constant 0 : index
    %c0_75 = arith.constant 0 : index
    %151 = vector.load %arg17[%c0_73, %c0_74, %c0_75] : memref<3x1x48xf32, #tpu.memory_space<vmem>>, vector<1x1x48xf32>
    %152 = vector.shape_cast %151 : vector<1x1x48xf32> to vector<1x48xf32>
    %153 = vector.broadcast %152 : vector<1x48xf32> to vector<24x48xf32>
    %154 = arith.addf %150, %153 : vector<24x48xf32>
    %cst_76 = arith.constant dense<0.000000e+00> : vector<24x3xf32>
    %155 = tpu.matmul %154, %41, %cst_76 {dimension_numbers = #tpu.dot_dimension_numbers<[1], [0], [0], [1], [0, 0, 1, 1], [], []>} : vector<24x48xf32>, vector<48x3xf32>, vector<24x3xf32> -> vector<24x3xf32>
    %156 = vector.broadcast %42 : vector<1x3xf32> to vector<24x3xf32>
    %157 = arith.addf %155, %156 : vector<24x3xf32>
    %158 = tpu.transpose %157, [1, 0] : vector<24x3xf32> -> vector<3x24xf32>
    %c0_77 = arith.constant 0 : index
    %c0_78 = arith.constant 0 : index
    %c128 = arith.constant 128 : index
    %159 = vector.load %arg24[%c0_77, %c0_78, %c128] : memref<1x3x896xf32, #tpu.memory_space<vmem>>, vector<1x3x24xf32>
    %160 = vector.shape_cast %159 : vector<1x3x24xf32> to vector<3x24xf32>
    %161 = vector.shape_cast %158 : vector<3x24xf32> to vector<1x3x24xf32>
    tpu.vector_store %arg24[%c0_77, %c0_78, %c128], %161 {strides = array<i32>} : memref<1x3x896xf32, #tpu.memory_space<vmem>>, vector<1x3x24xf32>,
    %c0_79 = arith.constant 0 : index
    %c0_80 = arith.constant 0 : index
    %162 = vector.load %arg7[%c0_79, %c0_80] : memref<48x24xf32, #tpu.memory_space<vmem>>, vector<48x24xf32>
    %c1 = arith.constant 1 : index
    %c0_81 = arith.constant 0 : index
    %c0_82 = arith.constant 0 : index
    %163 = vector.load %arg9[%c1, %c0_81, %c0_82] : memref<3x48x24xf32, #tpu.memory_space<vmem>>, vector<1x48x24xf32>
    %164 = vector.shape_cast %163 : vector<1x48x24xf32> to vector<48x24xf32>
    %cst_83 = arith.constant dense<0.000000e+00> : vector<24x24xf32>
    %165 = tpu.matmul %154, %164, %cst_83 {dimension_numbers = #tpu.dot_dimension_numbers<[1], [0], [0], [1], [0, 0, 1, 1], [], []>} : vector<24x48xf32>, vector<48x24xf32>, vector<24x24xf32> -> vector<24x24xf32>
    %cst_84 = arith.constant dense<0.000000e+00> : vector<48x24xf32>
    %166 = tpu.matmul %162, %165, %cst_84 {dimension_numbers = #tpu.dot_dimension_numbers<[1], [0], [0], [1], [0, 0, 1, 1], [], []>} : vector<48x24xf32>, vector<24x24xf32>, vector<48x24xf32> -> vector<48x24xf32>
    %c1_85 = arith.constant 1 : index
    %c0_86 = arith.constant 0 : index
    %c0_87 = arith.constant 0 : index
    %167 = vector.load %arg10[%c1_85, %c0_86, %c0_87] : memref<3x1x24xf32, #tpu.memory_space<vmem>>, vector<1x1x24xf32>
    %168 = vector.shape_cast %167 : vector<1x1x24xf32> to vector<1x24xf32>
    %169 = vector.broadcast %168 : vector<1x24xf32> to vector<48x24xf32>
    %170 = arith.addf %166, %169 : vector<48x24xf32>
    %cst_88 = arith.constant 0.000000e+00 : f32
    %171 = vector.broadcast %cst_88 : f32 to vector<48x24xf32>
    %172 = arith.maximumf %170, %171 : vector<48x24xf32>
    %c1_89 = arith.constant 1 : index
    %c0_90 = arith.constant 0 : index
    %c0_91 = arith.constant 0 : index
    %173 = vector.load %arg11[%c1_89, %c0_90, %c0_91] : memref<3x24x72xf32, #tpu.memory_space<vmem>>, vector<1x24x72xf32>
    %174 = vector.shape_cast %173 : vector<1x24x72xf32> to vector<24x72xf32>
    %cst_92 = arith.constant dense<0.000000e+00> : vector<48x72xf32>
    %175 = tpu.matmul %172, %174, %cst_92 {dimension_numbers = #tpu.dot_dimension_numbers<[1], [0], [0], [1], [0, 0, 1, 1], [], []>} : vector<48x24xf32>, vector<24x72xf32>, vector<48x72xf32> -> vector<48x72xf32>
    %176 = vector.extract_strided_slice %175 {offsets = [0, 0], sizes = [48, 8], strides = [1, 1]} : vector<48x72xf32> to vector<48x8xf32>
    %177 = vector.extract_strided_slice %175 {offsets = [0, 24], sizes = [48, 8], strides = [1, 1]} : vector<48x72xf32> to vector<48x8xf32>
    %178 = vector.extract_strided_slice %175 {offsets = [0, 48], sizes = [48, 8], strides = [1, 1]} : vector<48x72xf32> to vector<48x8xf32>
    %cst_93 = arith.constant dense<0.000000e+00> : vector<48x48xf32>
    %179 = tpu.matmul %176, %177, %cst_93 {dimension_numbers = #tpu.dot_dimension_numbers<[1], [1], [0], [0], [0, 0, 1, 0], [], []>} : vector<48x8xf32>, vector<48x8xf32>, vector<48x48xf32> -> vector<48x48xf32>
    %cst_94 = arith.constant 0.353553385 : f32
    %180 = vector.broadcast %cst_94 : f32 to vector<48x48xf32>
    %181 = arith.mulf %179, %180 : vector<48x48xf32>
    %cst_95 = arith.constant dense<0xFF800000> : vector<48xf32>
    %182 = vector.multi_reduction <maximumf>, %181, %cst_95 [1] : vector<48x48xf32> to vector<48xf32>
    %183 = vector.shape_cast %182 : vector<48xf32> to vector<48x1xf32>
    %184 = vector.broadcast %183 : vector<48x1xf32> to vector<48x48xf32>
    %185 = arith.subf %181, %184 : vector<48x48xf32>
    %186 = math.exp %185 : vector<48x48xf32>
    %cst_96 = arith.constant dense<0.000000e+00> : vector<48xf32>
    %187 = vector.multi_reduction <add>, %186, %cst_96 [1] : vector<48x48xf32> to vector<48xf32>
    %188 = vector.shape_cast %187 : vector<48xf32> to vector<48x1xf32>
    %189 = tpu.reciprocal %188 {approx = true} : vector<48x1xf32> -> vector<48x1xf32>
    %190 = vector.broadcast %189 : vector<48x1xf32> to vector<48x48xf32>
    %191 = arith.mulf %186, %190 : vector<48x48xf32>
    %cst_97 = arith.constant dense<0.000000e+00> : vector<48x8xf32>
    %192 = tpu.matmul %191, %178, %cst_97 {dimension_numbers = #tpu.dot_dimension_numbers<[1], [0], [0], [1], [0, 0, 1, 1], [], []>} : vector<48x48xf32>, vector<48x8xf32>, vector<48x8xf32> -> vector<48x8xf32>
    %193 = vector.extract_strided_slice %175 {offsets = [0, 8], sizes = [48, 8], strides = [1, 1]} : vector<48x72xf32> to vector<48x8xf32>
    %194 = vector.extract_strided_slice %175 {offsets = [0, 32], sizes = [48, 8], strides = [1, 1]} : vector<48x72xf32> to vector<48x8xf32>
    %195 = vector.extract_strided_slice %175 {offsets = [0, 56], sizes = [48, 8], strides = [1, 1]} : vector<48x72xf32> to vector<48x8xf32>
    %cst_98 = arith.constant dense<0.000000e+00> : vector<48x48xf32>
    %196 = tpu.matmul %193, %194, %cst_98 {dimension_numbers = #tpu.dot_dimension_numbers<[1], [1], [0], [0], [0, 0, 1, 0], [], []>} : vector<48x8xf32>, vector<48x8xf32>, vector<48x48xf32> -> vector<48x48xf32>
    %cst_99 = arith.constant 0.353553385 : f32
    %197 = vector.broadcast %cst_99 : f32 to vector<48x48xf32>
    %198 = arith.mulf %196, %197 : vector<48x48xf32>
    %cst_100 = arith.constant dense<0xFF800000> : vector<48xf32>
    %199 = vector.multi_reduction <maximumf>, %198, %cst_100 [1] : vector<48x48xf32> to vector<48xf32>
    %200 = vector.shape_cast %199 : vector<48xf32> to vector<48x1xf32>
    %201 = vector.broadcast %200 : vector<48x1xf32> to vector<48x48xf32>
    %202 = arith.subf %198, %201 : vector<48x48xf32>
    %203 = math.exp %202 : vector<48x48xf32>
    %cst_101 = arith.constant dense<0.000000e+00> : vector<48xf32>
    %204 = vector.multi_reduction <add>, %203, %cst_101 [1] : vector<48x48xf32> to vector<48xf32>
    %205 = vector.shape_cast %204 : vector<48xf32> to vector<48x1xf32>
    %206 = tpu.reciprocal %205 {approx = true} : vector<48x1xf32> -> vector<48x1xf32>
    %207 = vector.broadcast %206 : vector<48x1xf32> to vector<48x48xf32>
    %208 = arith.mulf %203, %207 : vector<48x48xf32>
    %cst_102 = arith.constant dense<0.000000e+00> : vector<48x8xf32>
    %209 = tpu.matmul %208, %195, %cst_102 {dimension_numbers = #tpu.dot_dimension_numbers<[1], [0], [0], [1], [0, 0, 1, 1], [], []>} : vector<48x48xf32>, vector<48x8xf32>, vector<48x8xf32> -> vector<48x8xf32>
    %210 = vector.extract_strided_slice %175 {offsets = [0, 16], sizes = [48, 8], strides = [1, 1]} : vector<48x72xf32> to vector<48x8xf32>
    %211 = vector.extract_strided_slice %175 {offsets = [0, 40], sizes = [48, 8], strides = [1, 1]} : vector<48x72xf32> to vector<48x8xf32>
    %212 = vector.extract_strided_slice %175 {offsets = [0, 64], sizes = [48, 8], strides = [1, 1]} : vector<48x72xf32> to vector<48x8xf32>
    %cst_103 = arith.constant dense<0.000000e+00> : vector<48x48xf32>
    %213 = tpu.matmul %210, %211, %cst_103 {dimension_numbers = #tpu.dot_dimension_numbers<[1], [1], [0], [0], [0, 0, 1, 0], [], []>} : vector<48x8xf32>, vector<48x8xf32>, vector<48x48xf32> -> vector<48x48xf32>
    %cst_104 = arith.constant 0.353553385 : f32
    %214 = vector.broadcast %cst_104 : f32 to vector<48x48xf32>
    %215 = arith.mulf %213, %214 : vector<48x48xf32>
    %cst_105 = arith.constant dense<0xFF800000> : vector<48xf32>
    %216 = vector.multi_reduction <maximumf>, %215, %cst_105 [1] : vector<48x48xf32> to vector<48xf32>
    %217 = vector.shape_cast %216 : vector<48xf32> to vector<48x1xf32>
    %218 = vector.broadcast %217 : vector<48x1xf32> to vector<48x48xf32>
    %219 = arith.subf %215, %218 : vector<48x48xf32>
    %220 = math.exp %219 : vector<48x48xf32>
    %cst_106 = arith.constant dense<0.000000e+00> : vector<48xf32>
    %221 = vector.multi_reduction <add>, %220, %cst_106 [1] : vector<48x48xf32> to vector<48xf32>
    %222 = vector.shape_cast %221 : vector<48xf32> to vector<48x1xf32>
    %223 = tpu.reciprocal %222 {approx = true} : vector<48x1xf32> -> vector<48x1xf32>
    %224 = vector.broadcast %223 : vector<48x1xf32> to vector<48x48xf32>
    %225 = arith.mulf %220, %224 : vector<48x48xf32>
    %cst_107 = arith.constant dense<0.000000e+00> : vector<48x8xf32>
    %226 = tpu.matmul %225, %212, %cst_107 {dimension_numbers = #tpu.dot_dimension_numbers<[1], [0], [0], [1], [0, 0, 1, 1], [], []>} : vector<48x48xf32>, vector<48x8xf32>, vector<48x8xf32> -> vector<48x8xf32>
    %227 = tpu.concatenate %192, %209, %226 in 1 : vector<48x8xf32>, vector<48x8xf32>, vector<48x8xf32> -> vector<48x24xf32>
    %c1_108 = arith.constant 1 : index
    %c0_109 = arith.constant 0 : index
    %c0_110 = arith.constant 0 : index
    %228 = vector.load %arg12[%c1_108, %c0_109, %c0_110] : memref<3x24x24xf32, #tpu.memory_space<vmem>>, vector<1x24x24xf32>
    %229 = vector.shape_cast %228 : vector<1x24x24xf32> to vector<24x24xf32>
    %cst_111 = arith.constant dense<0.000000e+00> : vector<48x24xf32>
    %230 = tpu.matmul %227, %229, %cst_111 {dimension_numbers = #tpu.dot_dimension_numbers<[1], [0], [0], [1], [0, 0, 1, 1], [], []>} : vector<48x24xf32>, vector<24x24xf32>, vector<48x24xf32> -> vector<48x24xf32>
    %231 = arith.addf %172, %230 : vector<48x24xf32>
    %c1_112 = arith.constant 1 : index
    %c0_113 = arith.constant 0 : index
    %c0_114 = arith.constant 0 : index
    %232 = vector.load %arg13[%c1_112, %c0_113, %c0_114] : memref<3x1x24xf32, #tpu.memory_space<vmem>>, vector<1x1x24xf32>
    %233 = vector.shape_cast %232 : vector<1x1x24xf32> to vector<1x24xf32>
    %234 = vector.broadcast %233 : vector<1x24xf32> to vector<48x24xf32>
    %235 = arith.addf %231, %234 : vector<48x24xf32>
    %c1_115 = arith.constant 1 : index
    %c0_116 = arith.constant 0 : index
    %c0_117 = arith.constant 0 : index
    %236 = vector.load %arg14[%c1_115, %c0_116, %c0_117] : memref<3x24x64xf32, #tpu.memory_space<vmem>>, vector<1x24x64xf32>
    %237 = vector.shape_cast %236 : vector<1x24x64xf32> to vector<24x64xf32>
    %cst_118 = arith.constant dense<0.000000e+00> : vector<48x64xf32>
    %238 = tpu.matmul %235, %237, %cst_118 {dimension_numbers = #tpu.dot_dimension_numbers<[1], [0], [0], [1], [0, 0, 1, 1], [], []>} : vector<48x24xf32>, vector<24x64xf32>, vector<48x64xf32> -> vector<48x64xf32>
    %c1_119 = arith.constant 1 : index
    %c0_120 = arith.constant 0 : index
    %c0_121 = arith.constant 0 : index
    %239 = vector.load %arg15[%c1_119, %c0_120, %c0_121] : memref<3x1x64xf32, #tpu.memory_space<vmem>>, vector<1x1x64xf32>
    %240 = vector.shape_cast %239 : vector<1x1x64xf32> to vector<1x64xf32>
    %241 = vector.broadcast %240 : vector<1x64xf32> to vector<48x64xf32>
    %242 = arith.addf %238, %241 : vector<48x64xf32>
    %cst_122 = arith.constant 0.000000e+00 : f32
    %243 = vector.broadcast %cst_122 : f32 to vector<48x64xf32>
    %244 = arith.maximumf %242, %243 : vector<48x64xf32>
    %c1_123 = arith.constant 1 : index
    %c0_124 = arith.constant 0 : index
    %c0_125 = arith.constant 0 : index
    %245 = vector.load %arg16[%c1_123, %c0_124, %c0_125] : memref<3x64x48xf32, #tpu.memory_space<vmem>>, vector<1x64x48xf32>
    %246 = vector.shape_cast %245 : vector<1x64x48xf32> to vector<64x48xf32>
    %cst_126 = arith.constant dense<0.000000e+00> : vector<48x48xf32>
    %247 = tpu.matmul %244, %246, %cst_126 {dimension_numbers = #tpu.dot_dimension_numbers<[1], [0], [0], [1], [0, 0, 1, 1], [], []>} : vector<48x64xf32>, vector<64x48xf32>, vector<48x48xf32> -> vector<48x48xf32>
    %c1_127 = arith.constant 1 : index
    %c0_128 = arith.constant 0 : index
    %c0_129 = arith.constant 0 : index
    %248 = vector.load %arg17[%c1_127, %c0_128, %c0_129] : memref<3x1x48xf32, #tpu.memory_space<vmem>>, vector<1x1x48xf32>
    %249 = vector.shape_cast %248 : vector<1x1x48xf32> to vector<1x48xf32>
    %250 = vector.broadcast %249 : vector<1x48xf32> to vector<48x48xf32>
    %251 = arith.addf %247, %250 : vector<48x48xf32>
    %cst_130 = arith.constant dense<0.000000e+00> : vector<48x3xf32>
    %252 = tpu.matmul %251, %41, %cst_130 {dimension_numbers = #tpu.dot_dimension_numbers<[1], [0], [0], [1], [0, 0, 1, 1], [], []>} : vector<48x48xf32>, vector<48x3xf32>, vector<48x3xf32> -> vector<48x3xf32>
    %253 = vector.broadcast %42 : vector<1x3xf32> to vector<48x3xf32>
    %254 = arith.addf %252, %253 : vector<48x3xf32>
    %255 = tpu.transpose %254, [1, 0] : vector<48x3xf32> -> vector<3x48xf32>
    %c0_131 = arith.constant 0 : index
    %c0_132 = arith.constant 0 : index
    %c256 = arith.constant 256 : index
    %256 = vector.load %arg24[%c0_131, %c0_132, %c256] : memref<1x3x896xf32, #tpu.memory_space<vmem>>, vector<1x3x48xf32>
    %257 = vector.shape_cast %256 : vector<1x3x48xf32> to vector<3x48xf32>
    %258 = vector.shape_cast %255 : vector<3x48xf32> to vector<1x3x48xf32>
    tpu.vector_store %arg24[%c0_131, %c0_132, %c256], %258 {strides = array<i32>} : memref<1x3x896xf32, #tpu.memory_space<vmem>>, vector<1x3x48xf32>,
    %c0_133 = arith.constant 0 : index
    %c0_134 = arith.constant 0 : index
    %259 = vector.load %arg8[%c0_133, %c0_134] : memref<96x48xf32, #tpu.memory_space<vmem>>, vector<96x48xf32>
    %c2 = arith.constant 2 : index
    %c0_135 = arith.constant 0 : index
    %c0_136 = arith.constant 0 : index
    %260 = vector.load %arg9[%c2, %c0_135, %c0_136] : memref<3x48x24xf32, #tpu.memory_space<vmem>>, vector<1x48x24xf32>
    %261 = vector.shape_cast %260 : vector<1x48x24xf32> to vector<48x24xf32>
    %cst_137 = arith.constant dense<0.000000e+00> : vector<48x24xf32>
    %262 = tpu.matmul %251, %261, %cst_137 {dimension_numbers = #tpu.dot_dimension_numbers<[1], [0], [0], [1], [0, 0, 1, 1], [], []>} : vector<48x48xf32>, vector<48x24xf32>, vector<48x24xf32> -> vector<48x24xf32>
    %cst_138 = arith.constant dense<0.000000e+00> : vector<96x24xf32>
    %263 = tpu.matmul %259, %262, %cst_138 {dimension_numbers = #tpu.dot_dimension_numbers<[1], [0], [0], [1], [0, 0, 1, 1], [], []>} : vector<96x48xf32>, vector<48x24xf32>, vector<96x24xf32> -> vector<96x24xf32>
    %c2_139 = arith.constant 2 : index
    %c0_140 = arith.constant 0 : index
    %c0_141 = arith.constant 0 : index
    %264 = vector.load %arg10[%c2_139, %c0_140, %c0_141] : memref<3x1x24xf32, #tpu.memory_space<vmem>>, vector<1x1x24xf32>
    %265 = vector.shape_cast %264 : vector<1x1x24xf32> to vector<1x24xf32>
    %266 = vector.broadcast %265 : vector<1x24xf32> to vector<96x24xf32>
    %267 = arith.addf %263, %266 : vector<96x24xf32>
    %cst_142 = arith.constant 0.000000e+00 : f32
    %268 = vector.broadcast %cst_142 : f32 to vector<96x24xf32>
    %269 = arith.maximumf %267, %268 : vector<96x24xf32>
    %c2_143 = arith.constant 2 : index
    %c0_144 = arith.constant 0 : index
    %c0_145 = arith.constant 0 : index
    %270 = vector.load %arg11[%c2_143, %c0_144, %c0_145] : memref<3x24x72xf32, #tpu.memory_space<vmem>>, vector<1x24x72xf32>
    %271 = vector.shape_cast %270 : vector<1x24x72xf32> to vector<24x72xf32>
    %cst_146 = arith.constant dense<0.000000e+00> : vector<96x72xf32>
    %272 = tpu.matmul %269, %271, %cst_146 {dimension_numbers = #tpu.dot_dimension_numbers<[1], [0], [0], [1], [0, 0, 1, 1], [], []>} : vector<96x24xf32>, vector<24x72xf32>, vector<96x72xf32> -> vector<96x72xf32>
    %273 = vector.extract_strided_slice %272 {offsets = [0, 0], sizes = [96, 8], strides = [1, 1]} : vector<96x72xf32> to vector<96x8xf32>
    %274 = vector.extract_strided_slice %272 {offsets = [0, 24], sizes = [96, 8], strides = [1, 1]} : vector<96x72xf32> to vector<96x8xf32>
    %275 = vector.extract_strided_slice %272 {offsets = [0, 48], sizes = [96, 8], strides = [1, 1]} : vector<96x72xf32> to vector<96x8xf32>
    %cst_147 = arith.constant dense<0.000000e+00> : vector<96x96xf32>
    %276 = tpu.matmul %273, %274, %cst_147 {dimension_numbers = #tpu.dot_dimension_numbers<[1], [1], [0], [0], [0, 0, 1, 0], [], []>} : vector<96x8xf32>, vector<96x8xf32>, vector<96x96xf32> -> vector<96x96xf32>
    %cst_148 = arith.constant 0.353553385 : f32
    %277 = vector.broadcast %cst_148 : f32 to vector<96x96xf32>
    %278 = arith.mulf %276, %277 : vector<96x96xf32>
    %cst_149 = arith.constant dense<0xFF800000> : vector<96xf32>
    %279 = vector.multi_reduction <maximumf>, %278, %cst_149 [1] : vector<96x96xf32> to vector<96xf32>
    %280 = vector.shape_cast %279 : vector<96xf32> to vector<96x1xf32>
    %281 = vector.broadcast %280 : vector<96x1xf32> to vector<96x96xf32>
    %282 = arith.subf %278, %281 : vector<96x96xf32>
    %283 = math.exp %282 : vector<96x96xf32>
    %cst_150 = arith.constant dense<0.000000e+00> : vector<96xf32>
    %284 = vector.multi_reduction <add>, %283, %cst_150 [1] : vector<96x96xf32> to vector<96xf32>
    %285 = vector.shape_cast %284 : vector<96xf32> to vector<96x1xf32>
    %286 = tpu.reciprocal %285 {approx = true} : vector<96x1xf32> -> vector<96x1xf32>
    %287 = vector.broadcast %286 : vector<96x1xf32> to vector<96x96xf32>
    %288 = arith.mulf %283, %287 : vector<96x96xf32>
    %cst_151 = arith.constant dense<0.000000e+00> : vector<96x8xf32>
    %289 = tpu.matmul %288, %275, %cst_151 {dimension_numbers = #tpu.dot_dimension_numbers<[1], [0], [0], [1], [0, 0, 1, 1], [], []>} : vector<96x96xf32>, vector<96x8xf32>, vector<96x8xf32> -> vector<96x8xf32>
    %290 = vector.extract_strided_slice %272 {offsets = [0, 8], sizes = [96, 8], strides = [1, 1]} : vector<96x72xf32> to vector<96x8xf32>
    %291 = vector.extract_strided_slice %272 {offsets = [0, 32], sizes = [96, 8], strides = [1, 1]} : vector<96x72xf32> to vector<96x8xf32>
    %292 = vector.extract_strided_slice %272 {offsets = [0, 56], sizes = [96, 8], strides = [1, 1]} : vector<96x72xf32> to vector<96x8xf32>
    %cst_152 = arith.constant dense<0.000000e+00> : vector<96x96xf32>
    %293 = tpu.matmul %290, %291, %cst_152 {dimension_numbers = #tpu.dot_dimension_numbers<[1], [1], [0], [0], [0, 0, 1, 0], [], []>} : vector<96x8xf32>, vector<96x8xf32>, vector<96x96xf32> -> vector<96x96xf32>
    %cst_153 = arith.constant 0.353553385 : f32
    %294 = vector.broadcast %cst_153 : f32 to vector<96x96xf32>
    %295 = arith.mulf %293, %294 : vector<96x96xf32>
    %cst_154 = arith.constant dense<0xFF800000> : vector<96xf32>
    %296 = vector.multi_reduction <maximumf>, %295, %cst_154 [1] : vector<96x96xf32> to vector<96xf32>
    %297 = vector.shape_cast %296 : vector<96xf32> to vector<96x1xf32>
    %298 = vector.broadcast %297 : vector<96x1xf32> to vector<96x96xf32>
    %299 = arith.subf %295, %298 : vector<96x96xf32>
    %300 = math.exp %299 : vector<96x96xf32>
    %cst_155 = arith.constant dense<0.000000e+00> : vector<96xf32>
    %301 = vector.multi_reduction <add>, %300, %cst_155 [1] : vector<96x96xf32> to vector<96xf32>
    %302 = vector.shape_cast %301 : vector<96xf32> to vector<96x1xf32>
    %303 = tpu.reciprocal %302 {approx = true} : vector<96x1xf32> -> vector<96x1xf32>
    %304 = vector.broadcast %303 : vector<96x1xf32> to vector<96x96xf32>
    %305 = arith.mulf %300, %304 : vector<96x96xf32>
    %cst_156 = arith.constant dense<0.000000e+00> : vector<96x8xf32>
    %306 = tpu.matmul %305, %292, %cst_156 {dimension_numbers = #tpu.dot_dimension_numbers<[1], [0], [0], [1], [0, 0, 1, 1], [], []>} : vector<96x96xf32>, vector<96x8xf32>, vector<96x8xf32> -> vector<96x8xf32>
    %307 = vector.extract_strided_slice %272 {offsets = [0, 16], sizes = [96, 8], strides = [1, 1]} : vector<96x72xf32> to vector<96x8xf32>
    %308 = vector.extract_strided_slice %272 {offsets = [0, 40], sizes = [96, 8], strides = [1, 1]} : vector<96x72xf32> to vector<96x8xf32>
    %309 = vector.extract_strided_slice %272 {offsets = [0, 64], sizes = [96, 8], strides = [1, 1]} : vector<96x72xf32> to vector<96x8xf32>
    %cst_157 = arith.constant dense<0.000000e+00> : vector<96x96xf32>
    %310 = tpu.matmul %307, %308, %cst_157 {dimension_numbers = #tpu.dot_dimension_numbers<[1], [1], [0], [0], [0, 0, 1, 0], [], []>} : vector<96x8xf32>, vector<96x8xf32>, vector<96x96xf32> -> vector<96x96xf32>
    %cst_158 = arith.constant 0.353553385 : f32
    %311 = vector.broadcast %cst_158 : f32 to vector<96x96xf32>
    %312 = arith.mulf %310, %311 : vector<96x96xf32>
    %cst_159 = arith.constant dense<0xFF800000> : vector<96xf32>
    %313 = vector.multi_reduction <maximumf>, %312, %cst_159 [1] : vector<96x96xf32> to vector<96xf32>
    %314 = vector.shape_cast %313 : vector<96xf32> to vector<96x1xf32>
    %315 = vector.broadcast %314 : vector<96x1xf32> to vector<96x96xf32>
    %316 = arith.subf %312, %315 : vector<96x96xf32>
    %317 = math.exp %316 : vector<96x96xf32>
    %cst_160 = arith.constant dense<0.000000e+00> : vector<96xf32>
    %318 = vector.multi_reduction <add>, %317, %cst_160 [1] : vector<96x96xf32> to vector<96xf32>
    %319 = vector.shape_cast %318 : vector<96xf32> to vector<96x1xf32>
    %320 = tpu.reciprocal %319 {approx = true} : vector<96x1xf32> -> vector<96x1xf32>
    %321 = vector.broadcast %320 : vector<96x1xf32> to vector<96x96xf32>
    %322 = arith.mulf %317, %321 : vector<96x96xf32>
    %cst_161 = arith.constant dense<0.000000e+00> : vector<96x8xf32>
    %323 = tpu.matmul %322, %309, %cst_161 {dimension_numbers = #tpu.dot_dimension_numbers<[1], [0], [0], [1], [0, 0, 1, 1], [], []>} : vector<96x96xf32>, vector<96x8xf32>, vector<96x8xf32> -> vector<96x8xf32>
    %324 = tpu.concatenate %289, %306, %323 in 1 : vector<96x8xf32>, vector<96x8xf32>, vector<96x8xf32> -> vector<96x24xf32>
    %c2_162 = arith.constant 2 : index
    %c0_163 = arith.constant 0 : index
    %c0_164 = arith.constant 0 : index
    %325 = vector.load %arg12[%c2_162, %c0_163, %c0_164] : memref<3x24x24xf32, #tpu.memory_space<vmem>>, vector<1x24x24xf32>
    %326 = vector.shape_cast %325 : vector<1x24x24xf32> to vector<24x24xf32>
    %cst_165 = arith.constant dense<0.000000e+00> : vector<96x24xf32>
    %327 = tpu.matmul %324, %326, %cst_165 {dimension_numbers = #tpu.dot_dimension_numbers<[1], [0], [0], [1], [0, 0, 1, 1], [], []>} : vector<96x24xf32>, vector<24x24xf32>, vector<96x24xf32> -> vector<96x24xf32>
    %328 = arith.addf %269, %327 : vector<96x24xf32>
    %c2_166 = arith.constant 2 : index
    %c0_167 = arith.constant 0 : index
    %c0_168 = arith.constant 0 : index
    %329 = vector.load %arg13[%c2_166, %c0_167, %c0_168] : memref<3x1x24xf32, #tpu.memory_space<vmem>>, vector<1x1x24xf32>
    %330 = vector.shape_cast %329 : vector<1x1x24xf32> to vector<1x24xf32>
    %331 = vector.broadcast %330 : vector<1x24xf32> to vector<96x24xf32>
    %332 = arith.addf %328, %331 : vector<96x24xf32>
    %c2_169 = arith.constant 2 : index
    %c0_170 = arith.constant 0 : index
    %c0_171 = arith.constant 0 : index
    %333 = vector.load %arg14[%c2_169, %c0_170, %c0_171] : memref<3x24x64xf32, #tpu.memory_space<vmem>>, vector<1x24x64xf32>
    %334 = vector.shape_cast %333 : vector<1x24x64xf32> to vector<24x64xf32>
    %cst_172 = arith.constant dense<0.000000e+00> : vector<96x64xf32>
    %335 = tpu.matmul %332, %334, %cst_172 {dimension_numbers = #tpu.dot_dimension_numbers<[1], [0], [0], [1], [0, 0, 1, 1], [], []>} : vector<96x24xf32>, vector<24x64xf32>, vector<96x64xf32> -> vector<96x64xf32>
    %c2_173 = arith.constant 2 : index
    %c0_174 = arith.constant 0 : index
    %c0_175 = arith.constant 0 : index
    %336 = vector.load %arg15[%c2_173, %c0_174, %c0_175] : memref<3x1x64xf32, #tpu.memory_space<vmem>>, vector<1x1x64xf32>
    %337 = vector.shape_cast %336 : vector<1x1x64xf32> to vector<1x64xf32>
    %338 = vector.broadcast %337 : vector<1x64xf32> to vector<96x64xf32>
    %339 = arith.addf %335, %338 : vector<96x64xf32>
    %cst_176 = arith.constant 0.000000e+00 : f32
    %340 = vector.broadcast %cst_176 : f32 to vector<96x64xf32>
    %341 = arith.maximumf %339, %340 : vector<96x64xf32>
    %c2_177 = arith.constant 2 : index
    %c0_178 = arith.constant 0 : index
    %c0_179 = arith.constant 0 : index
    %342 = vector.load %arg16[%c2_177, %c0_178, %c0_179] : memref<3x64x48xf32, #tpu.memory_space<vmem>>, vector<1x64x48xf32>
    %343 = vector.shape_cast %342 : vector<1x64x48xf32> to vector<64x48xf32>
    %cst_180 = arith.constant dense<0.000000e+00> : vector<96x48xf32>
    %344 = tpu.matmul %341, %343, %cst_180 {dimension_numbers = #tpu.dot_dimension_numbers<[1], [0], [0], [1], [0, 0, 1, 1], [], []>} : vector<96x64xf32>, vector<64x48xf32>, vector<96x48xf32> -> vector<96x48xf32>
    %c2_181 = arith.constant 2 : index
    %c0_182 = arith.constant 0 : index
    %c0_183 = arith.constant 0 : index
    %345 = vector.load %arg17[%c2_181, %c0_182, %c0_183] : memref<3x1x48xf32, #tpu.memory_space<vmem>>, vector<1x1x48xf32>
    %346 = vector.shape_cast %345 : vector<1x1x48xf32> to vector<1x48xf32>
    %347 = vector.broadcast %346 : vector<1x48xf32> to vector<96x48xf32>
    %348 = arith.addf %344, %347 : vector<96x48xf32>
    %cst_184 = arith.constant dense<0.000000e+00> : vector<96x3xf32>
    %349 = tpu.matmul %348, %41, %cst_184 {dimension_numbers = #tpu.dot_dimension_numbers<[1], [0], [0], [1], [0, 0, 1, 1], [], []>} : vector<96x48xf32>, vector<48x3xf32>, vector<96x3xf32> -> vector<96x3xf32>
    %350 = vector.broadcast %42 : vector<1x3xf32> to vector<96x3xf32>
    %351 = arith.addf %349, %350 : vector<96x3xf32>
    %352 = tpu.transpose %351, [1, 0] : vector<96x3xf32> -> vector<3x96xf32>
    %c0_185 = arith.constant 0 : index
    %c0_186 = arith.constant 0 : index
    %c384 = arith.constant 384 : index
    %353 = vector.load %arg24[%c0_185, %c0_186, %c384] : memref<1x3x896xf32, #tpu.memory_space<vmem>>, vector<1x3x96xf32>
    %354 = vector.shape_cast %353 : vector<1x3x96xf32> to vector<3x96xf32>
    %355 = vector.shape_cast %352 : vector<3x96xf32> to vector<1x3x96xf32>
    tpu.vector_store %arg24[%c0_185, %c0_186, %c384], %355 {strides = array<i32>} : memref<1x3x896xf32, #tpu.memory_space<vmem>>, vector<1x3x96xf32>,
    %c0_187 = arith.constant 0 : index
    %c0_188 = arith.constant 0 : index
    %356 = vector.load %arg20[%c0_187, %c0_188] : memref<120x96xf32, #tpu.memory_space<vmem>>, vector<120x96xf32>
    %cst_189 = arith.constant dense<0.000000e+00> : vector<120x48xf32>
    %357 = tpu.matmul %356, %348, %cst_189 {dimension_numbers = #tpu.dot_dimension_numbers<[1], [0], [0], [1], [0, 0, 1, 1], [], []>} : vector<120x96xf32>, vector<96x48xf32>, vector<120x48xf32> -> vector<120x48xf32>
    %c0_190 = arith.constant 0 : index
    %c0_191 = arith.constant 0 : index
    %358 = vector.load %arg21[%c0_190, %c0_191] : memref<120x1xf32, #tpu.memory_space<vmem>>, vector<120x1xf32>
    %359 = vector.broadcast %358 : vector<120x1xf32> to vector<120x48xf32>
    %360 = arith.addf %357, %359 : vector<120x48xf32>
    %cst_192 = arith.constant dense<0.000000e+00> : vector<120x3xf32>
    %361 = tpu.matmul %360, %41, %cst_192 {dimension_numbers = #tpu.dot_dimension_numbers<[1], [0], [0], [1], [0, 0, 1, 1], [], []>} : vector<120x48xf32>, vector<48x3xf32>, vector<120x3xf32> -> vector<120x3xf32>
    %362 = vector.broadcast %42 : vector<1x3xf32> to vector<120x3xf32>
    %363 = arith.addf %361, %362 : vector<120x3xf32>
    %364 = tpu.transpose %363, [1, 0] : vector<120x3xf32> -> vector<3x120xf32>
    %c0_193 = arith.constant 0 : index
    %c0_194 = arith.constant 0 : index
    %c512 = arith.constant 512 : index
    %365 = vector.load %arg24[%c0_193, %c0_194, %c512] : memref<1x3x896xf32, #tpu.memory_space<vmem>>, vector<1x3x120xf32>
    %366 = vector.shape_cast %365 : vector<1x3x120xf32> to vector<3x120xf32>
    %367 = vector.shape_cast %364 : vector<3x120xf32> to vector<1x3x120xf32>
    tpu.vector_store %arg24[%c0_193, %c0_194, %c512], %367 {strides = array<i32>} : memref<1x3x896xf32, #tpu.memory_space<vmem>>, vector<1x3x120xf32>,
    %c0_195 = arith.constant 0 : index
    %c0_196 = arith.constant 0 : index
    %368 = vector.load %arg22[%c0_195, %c0_196] : memref<144x120xf32, #tpu.memory_space<vmem>>, vector<144x120xf32>
    %cst_197 = arith.constant dense<0.000000e+00> : vector<144x48xf32>
    %369 = tpu.matmul %368, %360, %cst_197 {dimension_numbers = #tpu.dot_dimension_numbers<[1], [0], [0], [1], [0, 0, 1, 1], [], []>} : vector<144x120xf32>, vector<120x48xf32>, vector<144x48xf32> -> vector<144x48xf32>
    %c0_198 = arith.constant 0 : index
    %c0_199 = arith.constant 0 : index
    %370 = vector.load %arg23[%c0_198, %c0_199] : memref<144x1xf32, #tpu.memory_space<vmem>>, vector<144x1xf32>
    %371 = vector.broadcast %370 : vector<144x1xf32> to vector<144x48xf32>
    %372 = arith.addf %369, %371 : vector<144x48xf32>
    %cst_200 = arith.constant dense<0.000000e+00> : vector<144x3xf32>
    %373 = tpu.matmul %372, %41, %cst_200 {dimension_numbers = #tpu.dot_dimension_numbers<[1], [0], [0], [1], [0, 0, 1, 1], [], []>} : vector<144x48xf32>, vector<48x3xf32>, vector<144x3xf32> -> vector<144x3xf32>
    %374 = vector.broadcast %42 : vector<1x3xf32> to vector<144x3xf32>
    %375 = arith.addf %373, %374 : vector<144x3xf32>
    %376 = tpu.transpose %375, [1, 0] : vector<144x3xf32> -> vector<3x144xf32>
    %c0_201 = arith.constant 0 : index
    %c0_202 = arith.constant 0 : index
    %c640 = arith.constant 640 : index
    %377 = vector.load %arg24[%c0_201, %c0_202, %c640] : memref<1x3x896xf32, #tpu.memory_space<vmem>>, vector<1x3x144xf32>
    %378 = vector.shape_cast %377 : vector<1x3x144xf32> to vector<3x144xf32>
    %379 = vector.shape_cast %376 : vector<3x144xf32> to vector<1x3x144xf32>
    tpu.vector_store %arg24[%c0_201, %c0_202, %c640], %379 {strides = array<i32>} : memref<1x3x896xf32, #tpu.memory_space<vmem>>, vector<1x3x144xf32>,
    %c0_203 = arith.constant 0 : index
    %c0_204 = arith.constant 0 : index
    %c0_205 = arith.constant 0 : index
    %380 = vector.load %arg25[%c0_203, %c0_204, %c0_205] : memref<1x144x48xf32, #tpu.memory_space<vmem>>, vector<1x144x48xf32>
    %381 = vector.shape_cast %380 : vector<1x144x48xf32> to vector<144x48xf32>
    %382 = vector.shape_cast %372 : vector<144x48xf32> to vector<1x144x48xf32>
    tpu.vector_store %arg25[%c0_203, %c0_204, %c0_205], %382 {strides = array<i32>} : memref<1x144x48xf32, #tpu.memory_space<vmem>>, vector<1x144x48xf32>,
    return
  }
  func.func @transform_0(%arg0: i32) -> (i32, i32, i32) {
    %c0_i32 = arith.constant 0 : i32
    %c0_i32_0 = arith.constant 0 : i32
    %c0_i32_1 = arith.constant 0 : i32
    return %arg0, %c0_i32, %c0_i32_0 : i32, i32, i32
  }
  func.func @transform_1(%arg0: i32) -> (i32, i32) {
    %c0_i32 = arith.constant 0 : i32
    %c0_i32_0 = arith.constant 0 : i32
    %c0_i32_1 = arith.constant 0 : i32
    return %c0_i32, %c0_i32_0 : i32, i32
  }
  func.func @transform_2(%arg0: i32) -> (i32, i32) {
    %c0_i32 = arith.constant 0 : i32
    %c0_i32_0 = arith.constant 0 : i32
    %c0_i32_1 = arith.constant 0 : i32
    return %c0_i32, %c0_i32_0 : i32, i32
  }
  func.func @transform_3(%arg0: i32) -> (i32, i32) {
    %c0_i32 = arith.constant 0 : i32
    %c0_i32_0 = arith.constant 0 : i32
    %c0_i32_1 = arith.constant 0 : i32
    return %c0_i32, %c0_i32_0 : i32, i32
  }
  func.func @transform_4(%arg0: i32) -> (i32, i32) {
    %c0_i32 = arith.constant 0 : i32
    %c0_i32_0 = arith.constant 0 : i32
    %c0_i32_1 = arith.constant 0 : i32
    return %c0_i32, %c0_i32_0 : i32, i32
  }
  func.func @transform_5(%arg0: i32) -> (i32, i32) {
    %c0_i32 = arith.constant 0 : i32
    %c0_i32_0 = arith.constant 0 : i32
    %c0_i32_1 = arith.constant 0 : i32
    return %c0_i32, %c0_i32_0 : i32, i32
  }
  func.func @transform_6(%arg0: i32) -> (i32, i32) {
    %c0_i32 = arith.constant 0 : i32
    %c0_i32_0 = arith.constant 0 : i32
    %c0_i32_1 = arith.constant 0 : i32
    return %c0_i32, %c0_i32_0 : i32, i32
  }
  func.func @transform_7(%arg0: i32) -> (i32, i32) {
    %c0_i32 = arith.constant 0 : i32
    %c0_i32_0 = arith.constant 0 : i32
    %c0_i32_1 = arith.constant 0 : i32
    return %c0_i32, %c0_i32_0 : i32, i32
  }
  func.func @transform_8(%arg0: i32) -> (i32, i32, i32) {
    %c0_i32 = arith.constant 0 : i32
    %c0_i32_0 = arith.constant 0 : i32
    %c0_i32_1 = arith.constant 0 : i32
    %c0_i32_2 = arith.constant 0 : i32
    return %c0_i32, %c0_i32_0, %c0_i32_1 : i32, i32, i32
  }
  func.func @transform_9(%arg0: i32) -> (i32, i32, i32) {
    %c0_i32 = arith.constant 0 : i32
    %c0_i32_0 = arith.constant 0 : i32
    %c0_i32_1 = arith.constant 0 : i32
    %c0_i32_2 = arith.constant 0 : i32
    return %c0_i32, %c0_i32_0, %c0_i32_1 : i32, i32, i32
  }
  func.func @transform_10(%arg0: i32) -> (i32, i32, i32) {
    %c0_i32 = arith.constant 0 : i32
    %c0_i32_0 = arith.constant 0 : i32
    %c0_i32_1 = arith.constant 0 : i32
    %c0_i32_2 = arith.constant 0 : i32
    return %c0_i32, %c0_i32_0, %c0_i32_1 : i32, i32, i32
  }
  func.func @transform_11(%arg0: i32) -> (i32, i32, i32) {
    %c0_i32 = arith.constant 0 : i32
    %c0_i32_0 = arith.constant 0 : i32
    %c0_i32_1 = arith.constant 0 : i32
    %c0_i32_2 = arith.constant 0 : i32
    return %c0_i32, %c0_i32_0, %c0_i32_1 : i32, i32, i32
  }
  func.func @transform_12(%arg0: i32) -> (i32, i32, i32) {
    %c0_i32 = arith.constant 0 : i32
    %c0_i32_0 = arith.constant 0 : i32
    %c0_i32_1 = arith.constant 0 : i32
    %c0_i32_2 = arith.constant 0 : i32
    return %c0_i32, %c0_i32_0, %c0_i32_1 : i32, i32, i32
  }
  func.func @transform_13(%arg0: i32) -> (i32, i32, i32) {
    %c0_i32 = arith.constant 0 : i32
    %c0_i32_0 = arith.constant 0 : i32
    %c0_i32_1 = arith.constant 0 : i32
    %c0_i32_2 = arith.constant 0 : i32
    return %c0_i32, %c0_i32_0, %c0_i32_1 : i32, i32, i32
  }
  func.func @transform_14(%arg0: i32) -> (i32, i32, i32) {
    %c0_i32 = arith.constant 0 : i32
    %c0_i32_0 = arith.constant 0 : i32
    %c0_i32_1 = arith.constant 0 : i32
    %c0_i32_2 = arith.constant 0 : i32
    return %c0_i32, %c0_i32_0, %c0_i32_1 : i32, i32, i32
  }
  func.func @transform_15(%arg0: i32) -> (i32, i32, i32) {
    %c0_i32 = arith.constant 0 : i32
    %c0_i32_0 = arith.constant 0 : i32
    %c0_i32_1 = arith.constant 0 : i32
    %c0_i32_2 = arith.constant 0 : i32
    return %c0_i32, %c0_i32_0, %c0_i32_1 : i32, i32, i32
  }
  func.func @transform_16(%arg0: i32) -> (i32, i32, i32) {
    %c0_i32 = arith.constant 0 : i32
    %c0_i32_0 = arith.constant 0 : i32
    %c0_i32_1 = arith.constant 0 : i32
    %c0_i32_2 = arith.constant 0 : i32
    return %c0_i32, %c0_i32_0, %c0_i32_1 : i32, i32, i32
  }
  func.func @transform_17(%arg0: i32) -> (i32, i32) {
    %c0_i32 = arith.constant 0 : i32
    %c0_i32_0 = arith.constant 0 : i32
    %c0_i32_1 = arith.constant 0 : i32
    return %c0_i32, %c0_i32_0 : i32, i32
  }
  func.func @transform_18(%arg0: i32) -> (i32, i32) {
    %c0_i32 = arith.constant 0 : i32
    %c0_i32_0 = arith.constant 0 : i32
    %c0_i32_1 = arith.constant 0 : i32
    return %c0_i32, %c0_i32_0 : i32, i32
  }
  func.func @transform_19(%arg0: i32) -> (i32, i32) {
    %c0_i32 = arith.constant 0 : i32
    %c0_i32_0 = arith.constant 0 : i32
    %c0_i32_1 = arith.constant 0 : i32
    return %c0_i32, %c0_i32_0 : i32, i32
  }
  func.func @transform_20(%arg0: i32) -> (i32, i32) {
    %c0_i32 = arith.constant 0 : i32
    %c0_i32_0 = arith.constant 0 : i32
    %c0_i32_1 = arith.constant 0 : i32
    return %c0_i32, %c0_i32_0 : i32, i32
  }
  func.func @transform_21(%arg0: i32) -> (i32, i32) {
    %c0_i32 = arith.constant 0 : i32
    %c0_i32_0 = arith.constant 0 : i32
    %c0_i32_1 = arith.constant 0 : i32
    return %c0_i32, %c0_i32_0 : i32, i32
  }
  func.func @transform_22(%arg0: i32) -> (i32, i32) {
    %c0_i32 = arith.constant 0 : i32
    %c0_i32_0 = arith.constant 0 : i32
    %c0_i32_1 = arith.constant 0 : i32
    return %c0_i32, %c0_i32_0 : i32, i32
  }
  func.func @transform_23(%arg0: i32) -> (i32, i32, i32) {
    %c0_i32 = arith.constant 0 : i32
    %c0_i32_0 = arith.constant 0 : i32
    %c0_i32_1 = arith.constant 0 : i32
    return %arg0, %c0_i32, %c0_i32_0 : i32, i32, i32
  }
  func.func @transform_24(%arg0: i32) -> (i32, i32, i32) {
    %c0_i32 = arith.constant 0 : i32
    %c0_i32_0 = arith.constant 0 : i32
    %c0_i32_1 = arith.constant 0 : i32
    return %arg0, %c0_i32, %c0_i32_0 : i32, i32, i32
  }
}

</mosaic_0001>

<bundles_post_ra>
// kernel: forward.1
= control target key start
LH: loop header
LB: loop body
LE: loop exit
PB: predicated region body
PF: predicated region fallthrough
CT: control target
= control target key end

     0   :  { %s10415_s0 = inlined_call_operand.vmem [shape: f32[2,8,3], index: 0, kind: input, shape index: {}]   ;;  %s10416_s1 = inlined_call_operand.vmem [shape: f32[3,45], index: 1, kind: input, shape index: {}]   ;;  %s10417_s2 = inlined_call_operand.vmem [shape: f32[1,45], index: 2, kind: input, shape index: {}]   ;;  %s10418_s3 = inlined_call_operand.vmem [shape: f32[45,1152], index: 3, kind: input, shape index: {}]   ;;  %s10419_s4 = inlined_call_operand.vmem [shape: f32[1,1152], index: 4, kind: input, shape index: {}]   ;;  %s10420_s5 = inlined_call_operand.vmem [shape: f32[24,24], index: 5, kind: input, shape index: {}]   ;;  %s10421_s6 = inlined_call_operand.vmem [shape: f32[48,24], index: 6, kind: input, shape index: {}]   ;;  %s10422_s7 = inlined_call_operand.vmem [shape: f32[96,48], index: 7, kind: input, shape index: {}]   ;;  %s10423_s8 = inlined_call_operand.vmem [shape: f32[3,48,24], index: 8, kind: input, shape index: {}]   ;;  %s10424_s9 = inlined_call_operand.vmem [shape: f32[3,1,24], index: 9, kind: input, shape index: {}]   ;;  %s10425_s10 = inlined_call_operand.vmem [shape: f32[3,24,72], index: 10, kind: input, shape index: {}]   ;;  %s10426_s11 = inlined_call_operand.vmem [shape: f32[3,24,24], index: 11, kind: input, shape index: {}]   ;;  %s10427_s12 = inlined_call_operand.vmem [shape: f32[3,1,24], index: 12, kind: input, shape index: {}]   ;;  %s10428_s13 = inlined_call_operand.vmem [shape: f32[3,24,64], index: 13, kind: input, shape index: {}]   ;;  %s10429_s14 = inlined_call_operand.vmem [shape: f32[3,1,64], index: 14, kind: input, shape index: {}]   ;;  %s10430_s15 = inlined_call_operand.vmem [shape: f32[3,64,48], index: 15, kind: input, shape index: {}]   ;;  %s10431_s16 = inlined_call_operand.vmem [shape: f32[3,1,48], index: 16, kind: input, shape index: {}]   ;;  %s10432_s17 = inlined_call_operand.vmem [shape: f32[48,3], index: 17, kind: input, shape index: {}]   ;;  %s10433_s18 = inlined_call_operand.vmem [shape: f32[1,3], index: 18, kind: input, shape index: {}]   ;;  %s10434_s19 = inlined_call_operand.vmem [shape: f32[120,96], index: 19, kind: input, shape index: {}]   ;;  %s10435_s20 = inlined_call_operand.vmem [shape: f32[120,1], index: 20, kind: input, shape index: {}]   ;;  %s10436_s21 = inlined_call_operand.vmem [shape: f32[144,120], index: 21, kind: input, shape index: {}]   ;;  %s10437_s22 = inlined_call_operand.vmem [shape: f32[144,1], index: 22, kind: input, shape index: {}]   ;;  %s10438_s23 = inlined_call_operand.vmem [shape: f32[2,3,896], index: 23, kind: output, shape index: {0}]   ;;  %s10439_s24 = inlined_call_operand.vmem [shape: f32[2,144,48], index: 24, kind: output, shape index: {1}]  }
   0x1   :  { %10504 = sst [smem:[#allocation21_spill]] %s10415_s0 }
   0x2   :  { %10505 = sst [smem:[#allocation22_spill]] %s10416_s1 }
   0x3   :  { %10506 = sst [smem:[#allocation23_spill]] %s10417_s2 }
   0x4   :  { %10507 = sst [smem:[#allocation24_spill]] %s10418_s3 }
   0x5   :  { %10508 = sst [smem:[#allocation25_spill]] %s10419_s4 }
   0x6   :  { %10509 = sst [smem:[#allocation26_spill]] %s10420_s5  ;;  %s7368_s5 = smov 0  }
   0x7   :  { %10510 = sst [smem:[#allocation27_spill]] %s10421_s6 }
   0x8   :  { %10511 = sst [smem:[#allocation28_spill]] %s10422_s7 }
   0x9   :  { %10512 = sst [smem:[#allocation29_spill]] %s10423_s8 }
   0xa   :  { %10513 = sst [smem:[#allocation30_spill]] %s10431_s16 }
   0xb   :  { %10514 = sst [smem:[#allocation31_spill]] %s10434_s19 }
   0xc   :  { %10515 = sst [smem:[#allocation32_spill]] %s10436_s21 }
   0xd   :  { %10516 = sst [smem:[#allocation33_spill]] %s10438_s23 }
   0xe   :  { %10517 = sst [smem:[#allocation34_spill]] %s10439_s24 }
   0xf LB: > { %10518 = sst [smem:[#allocation2_spill]] %s7213_s5  ;;  %s6261_s26 = sadd.s32 4294967295, %s7213_s5   ;;  %s7213_s5 = sphi %s7368_s5, %s35_s5  }
  0x10   : > { %p6265_p0 = scmp.ge.s32.totalorder %s7213_s5, 1  ;;  %p664_p1 = scmp.lt.s32.totalorder %s7213_s5, 3 }
  0x12   : > { %p665_p2 = pnand %p6265_p0, %p664_p1 }
  0x14   : > { %668 = sbr.rel (%p665_p2) target bundleno = 6898 (0x1af2), region = 112 }
  0x19   : > { %s10519_s6 = sld [smem:[#allocation22_spill]]  ;;  %vm770_vm0 = vcmask 1042432   ;;  %p734_p3 = scmp.lt.s32.totalorder %s6261_s26, 1  ;;  %v7215_v1 = vmov 8.0   ;;  %vm874_vm1 = vcmask 1044480   ;;  %vm749_vm2 = vcmask 23552  }
  0x1a   : > { %6946 = vrcp.f32 %v7215_v1  ;;  %s10520_s0 = sld [smem:[#allocation24_spill]]  ;;  %vm870_vm4 = vcmask 367616   ;;  %s10451_s30 = smov 80   ;;  %vm1094_vm5 = vcmask 261120   ;;  %vm1162_vm6 = vcmask 1040384  }
  0x1b   : > { %s10594_s26 = smov (!%p734_p3, %s6261_s26), 1  ;;  %s10523_s29 = sld [smem:[#allocation23_spill]]  ;;  %vm1164_vm7 = vcmask 1041408   ;;  %vm1167_vm8 = vcmask 1043456   ;;  %vm1112_vm9 = vcmask 130048   ;;  %vm1170_vm10 = vcmask 1045504  }
  0x1c   : > { %10521 = sst [smem:[#allocation3_spill]] %s10594_s26  ;;  %s6266_s3 = sshll.u32 %s10594_s26, 3  ;;  %vm1172_vm11 = vcmask 1046528   ;;  %vm1343_vm12 = vcmask 392192   ;;  %vm1383_vm13 = vcmask 195584   ;;  %vm1469_vm14 = vcmask 64512  }
  0x1d   : > { %s10525_s7 = sld [smem:[#allocation25_spill]]  ;;  %s10447_s25 = smov 64   ;;  %vm1983_vm15 = vcmask 523264  }
  0x1e   : > { %s7218_s8 = smov 32   ;;  %s10449_s4 = smov 16  }
  0x1f   : > { %v765_v0 = vld [vmem:[%s10519_s6] sm:$0x7]  ;;  %s10522_s6 = sld [smem:[#allocation21_spill]]  ;;  %s10459_s1 = smov 96  }
  0x20   : > { %6269 = vmatpush.msk.msra.mxu0 %vm770_vm0, %v765_v0  ;;  %v839_v2 = vld [vmem:[%s10520_s0 + $0x168] sm:$0x1f]  ;;  %v841_v3 = vld [vmem:[%s10520_s0 + $0x178] sm:$0x1f]  ;;  %v830_v4 = vld [vmem:[%s10520_s0 + $0x120] sm:$0xff]  ;;  %v6947_v17 = vpop.eup %6946  ;;  %s7222_s5 = smov 48  }
  0x21   : > { %6271 = vmatpush.msk.msra.mxu1 %vm874_vm1, %v839_v2  ;;  %6275 = vmatpush.msk.msra.mxu3 %vm874_vm1, %v841_v3  ;;  %v832_v5 = vld [vmem:[%s10520_s0 + $0x130] sm:$0xff]  ;;  %v821_v7 = vld [vmem:[%s10520_s0 + $0xd8] sm:$0xff]  ;;  %v823_v8 = vld [vmem:[%s10520_s0 + $0xe8] sm:$0xff]  ;;  %v758_v23 = vmul.f32 8.0, %v6947_v17  ;;  %vm762_vm3 = vweird.f32 %v6947_v17  ;;  %s10527_s28 = sld [smem:[#allocation26_spill]]  ;;  %s10528_s27 = smov 112  }
  0x22   : > { %v840_v6 = vld [vmem:[%s10520_s0 + $0x170] sm:$0x1f]  ;;  %v831_v9 = vld [vmem:[%s10520_s0 + $0x128] sm:$0xff]  ;;  %v846_v10 = vld [vmem:[%s10520_s0 + $0x1a0] sm:$0x1f]  ;;  %s10532_s16 = sld [smem:[#allocation30_spill]] }
  0x23   : > { %6273 = vmatpush.msk.msra.mxu2 %vm874_vm1, %v840_v6  ;;  %913 = vmatpush.msra.mxu1 %v830_v4  ;;  %v822_v11 = vld [vmem:[%s10520_s0 + $0xe0] sm:$0xff]  ;;  %v812_v12 = vld [vmem:[%s10520_s0 + $0x90] sm:$0xff]  ;;  %v837_v14 = vld [vmem:[%s10520_s0 + $0x158] sm:$0xff]  ;;  %v759_v31 = vsub.f32 1.0, %v758_v23  ;;  %s10542_s23 = smov 8   ;;  %s10543_s19 = sld [smem:[#allocation28_spill]] }
  0x24   : > { %953 = vmatpush.msra.mxu3 %v832_v5  ;;  %v814_v13 = vld [vmem:[%s10520_s0 + $0xa0] sm:$0xff]  ;;  %6285 = vmatpush.msk.msrb.mxu0 %vm874_vm1, %v846_v10  ;;  %v813_v16 = vld [vmem:[%s10520_s0 + $0x98] sm:$0xff]  ;;  %v803_v19 = vld [vmem:[%s10520_s0 + $0x48] sm:$0xff]  ;;  %s7235_s24 = smov 113   ;;  %s7237_s26 = smov 92  }
  0x25   : > { %s737_s2 = scalar_lea.vmem %s10522_s6, %s6266_s3  ;;  %933 = vmatpush.msra.mxu2 %v831_v9  ;;  %914 = vmatpush.msra.mxu1 %v821_v7  ;;  %v805_v20 = vld [vmem:[%s10520_s0 + $0x58] sm:$0xff]  ;;  %v828_v21 = vld [vmem:[%s10520_s0 + $0x110] sm:$0xff]  ;;  %v794_v24 = vld [vmem:[%s10520_s0] sm:$0xff]  ;;  %v760_v35 = vmul.f32 %v6947_v17, %v759_v31  ;;  %s10453_s3 = smov 112  }
  0x26   : > { %v748_v15 = vld [vmem:[%s737_s2] sm:$0xff]  ;;  %954 = vmatpush.msra.mxu3 %v823_v8  ;;  %1053 = vmatpush.msrb.mxu0 %v837_v14  ;;  %v796_v25 = vld [vmem:[%s10520_s0 + $0x10] sm:$0xff]  ;;  %v843_v28 = vld [vmem:[%s10520_s0 + $0x188] sm:$0x1f]  ;;  %s10466_s6 = smov 8   ;;  %s10531_s2 = smov 16  }
  0x27   : > { %v750_v18 = vsel %vm749_vm2, %v748_v15, 0.0  ;;  %934 = vmatpush.msra.mxu2 %v822_v11  ;;  %915 = vmatpush.msra.mxu1 %v812_v12  ;;  %v804_v26 = vld [vmem:[%s10520_s0 + $0x50] sm:$0xff]  ;;  %v842_v27 = vld [vmem:[%s10520_s0 + $0x180] sm:$0x1f]  ;;  %v819_v29 = vld [vmem:[%s10520_s0 + $0xc8] sm:$0xff]  ;;  %v761_v38 = vadd.f32 %v6947_v17, %v760_v35  ;;  %s7239_s21 = smov 89  }
  0x28   : > { %v751_v22 = vrot.slane %v750_v18, 4  ;;  %955 = vmatpush.msra.mxu3 %v814_v13  ;;  %1054 = vmatpush.msrb.mxu0 %v828_v21  ;;  %v795_v32 = vld [vmem:[%s10520_s0 + $0x8] sm:$0xff]  ;;  %v833_v33 = vld [vmem:[%s10520_s0 + $0x138] sm:$0xff]  ;;  %v834_v36 = vld [vmem:[%s10520_s0 + $0x140] sm:$0xff] }
  0x29   : > { %935 = vmatpush.msra.mxu2 %v813_v16  ;;  %916 = vmatpush.msra.mxu1 %v803_v19  ;;  %v763_v40 = vsel %vm762_vm3, %v6947_v17, %v761_v38  ;;  %v844_v43 = vld [vmem:[%s10520_s0 + $0x190] sm:$0x1f]  ;;  %v810_v44 = vld [vmem:[%s10520_s0 + $0x80] sm:$0xff]  ;;  %v825_v46 = vld [vmem:[%s10520_s0 + $0xf8] sm:$0xff]  ;;  %vm1332_vm3 = vcmask 116736  }
  0x2a   : > { %v752_v30 = vadd.f32 %v751_v22, %v750_v18  ;;  %956 = vmatpush.msra.mxu3 %v805_v20  ;;  %1055 = vmatpush.msrb.mxu0 %v819_v29  ;;  %v824_v45 = vld [vmem:[%s10520_s0 + $0xf0] sm:$0xff]  ;;  %v835_v47 = vld [vmem:[%s10520_s0 + $0x148] sm:$0xff]  ;;  %v801_v48 = vld [vmem:[%s10520_s0 + $0x38] sm:$0xff] }
  0x2b   : > { %936 = vmatpush.msra.mxu2 %v804_v26  ;;  %917 = vmatpush.msra.mxu1 %v794_v24  ;;  %v815_v49 = vld [vmem:[%s10520_s0 + $0xa8] sm:$0xff]  ;;  %v816_v50 = vld [vmem:[%s10520_s0 + $0xb0] sm:$0xff]  ;;  %v826_v51 = vld [vmem:[%s10520_s0 + $0x100] sm:$0xff] }
  0x2c   : > { %v753_v34 = vrot.slane %v752_v30, 2  ;;  %957 = vmatpush.msra.mxu3 %v796_v25  ;;  %1056 = vmatpush.msrb.mxu0 %v810_v44  ;;  %v806_v52 = vld [vmem:[%s10520_s0 + $0x60] sm:$0xff]  ;;  %v807_v53 = vld [vmem:[%s10520_s0 + $0x68] sm:$0xff]  ;;  %v817_v54 = vld [vmem:[%s10520_s0 + $0xb8] sm:$0xff] }
  0x2d   : > { %6279 = vmatpush.msk.msrb.mxu1 %vm874_vm1, %v843_v28  ;;  %937 = vmatpush.msra.mxu2 %v795_v32  ;;  %v797_v55 = vld [vmem:[%s10520_s0 + $0x18] sm:$0xff]  ;;  %v798_v56 = vld [vmem:[%s10520_s0 + $0x20] sm:$0xff]  ;;  %v808_v57 = vld [vmem:[%s10520_s0 + $0x70] sm:$0xff] }
  0x2e   : > { %6277 = vmatpush.msk.msrb.mxu3 %vm874_vm1, %v842_v27  ;;  %v754_v37 = vadd.f32 %v753_v34, %v752_v30  ;;  %1057 = vmatpush.msrb.mxu0 %v801_v48  ;;  %v799_v58 = vld [vmem:[%s10520_s0 + $0x28] sm:$0xff]  ;;  %v766_v59 = vld [vmem:[%s10523_s29] sm:$0x1]  ;;  %v845_v62 = vld [vmem:[%s10520_s0 + $0x198] sm:$0x1f]  ;;  %s10526_s29 = sld [smem:[#allocation29_spill]] }
  0x2f   : > { %993 = vmatpush.msrb.mxu1 %v834_v36  ;;  %6281 = vmatpush.msk.msrb.mxu2 %vm874_vm1, %v844_v43  ;;  %v847_v63 = vld [vmem:[%s10520_s0 + $0x1a8] sm:$0x1f]  ;;  %v836_v0 = vld [vmem:[%s10520_s0 + $0x150] sm:$0xff]  ;;  %v838_v1 = vld [vmem:[%s10520_s0 + $0x160] sm:$0xff] }
  0x30   : > { %973 = vmatpush.msrb.mxu3 %v833_v33  ;;  %v755_v39 = vrot.slane %v754_v37, 1  ;;  %v827_v2 = vld [vmem:[%s10520_s0 + $0x108] sm:$0xff]  ;;  %v829_v3 = vld [vmem:[%s10520_s0 + $0x118] sm:$0xff]  ;;  %v820_v4 = vld [vmem:[%s10520_s0 + $0xd0] sm:$0xff] }
  0x31   : > { %994 = vmatpush.msrb.mxu1 %v825_v46  ;;  %1013 = vmatpush.msrb.mxu2 %v835_v47  ;;  %v818_v5 = vld [vmem:[%s10520_s0 + $0xc0] sm:$0xff]  ;;  %v811_v6 = vld [vmem:[%s10520_s0 + $0x88] sm:$0xff]  ;;  %v809_v7 = vld [vmem:[%s10520_s0 + $0x78] sm:$0xff] }
  0x32   : > { %v756_v41 = vadd.f32 %v755_v39, %v754_v37  ;;  %974 = vmatpush.msrb.mxu3 %v824_v45  ;;  %v802_v8 = vld [vmem:[%s10520_s0 + $0x40] sm:$0xff]  ;;  %v800_v9 = vld [vmem:[%s10520_s0 + $0x30] sm:$0xff]  ;;  %s10537_s0 = smov 120  }
  0x33   : > { %995 = vmatpush.msrb.mxu1 %v816_v50  ;;  %1014 = vmatpush.msrb.mxu2 %v826_v51  ;;  %v7585_v10 = vld [vmem:[%s10525_s7] sm:$0xff] }
  0x34   : > { %v764_v42 = vmul.f32 %v763_v40, %v756_v41  ;;  %975 = vmatpush.msrb.mxu3 %v815_v49  ;;  %v852_v11 = vperm.slane %v7585_v10, 0  ;;  %v859_v12 = vperm.slane %v7585_v10, 7  ;;  %v853_v20 = vperm.slane %v7585_v10, 1 }
  0x35   : > { %996 = vmatpush.msrb.mxu1 %v807_v53  ;;  %1015 = vmatpush.msrb.mxu2 %v817_v54  ;;  %v854_v26 = vperm.slane %v7585_v10, 2  ;;  %v856_v32 = vperm.slane %v7585_v10, 4  ;;  %v855_v38 = vperm.slane %v7585_v10, 3  ;;  %v857_v44 = vperm.slane %v7585_v10, 5 }
  0x36   : > { %6270 = vmatmul.msk.f32.vlgmr.msra.gmra.mxu0 %vm749_vm2, %v764_v42  ;;  %976 = vmatpush.msrb.mxu3 %v806_v52  ;;  %v858_v50 = vperm.slane %v7585_v10, 6  ;;  %vm3681_vm2 = vcmask 785408  }
  0x37   : > { %997 = vmatpush.msrb.mxu1 %v798_v56  ;;  %1016 = vmatpush.msrb.mxu2 %v808_v57  ;;  %v6932_v56 = vld [vmem:[%s10525_s7 + $0x8] ss:$0 sm:$0xff]  ;;  %s10535_s7 = smov 88  }
  0x38   : > { %977 = vmatpush.msrb.mxu3 %v797_v55 }
  0x39   : > { %1017 = vmatpush.msrb.mxu2 %v799_v58 }
  0xb3   : > { %v791_v60 = vpop.f32.mrf.mxu0 }
  0xb4   : > { %v7524_v61 = vadd.f32 %v791_v60, %v766_v59 }
  0xb6   : > { %10524 = vst [vmem:[#allocation4_spill] sm:$0xff] %v7524_v61  ;;  %6272 = vmatmul.msk.f32.vlgmr.msra.gmra.mxu1 %vm870_vm4, %v7524_v61  ;;  %6274 = vmatmul.msk.f32.vlgmr.msra.gmra.mxu2 %vm870_vm4, %v7524_v61 }
  0xb7   : > { %6276 = vmatmul.msk.f32.vlgmr.msra.gmra.mxu3 %vm870_vm4, %v7524_v61  ;;  %6286 = vmatmul.msk.f32.vlgmr.msrb.gmra.mxu0 %vm870_vm4, %v7524_v61 }
  0xb8   : > { %6283 = vmatpush.msk.msra.mxu3 %vm874_vm1, %v845_v62  ;;  %6287 = vmatpush.msk.msra.mxu1 %vm874_vm1, %v847_v63 }
  0xba   : > { %1033 = vmatpush.msra.mxu3 %v836_v0  ;;  %1073 = vmatpush.msra.mxu1 %v838_v1 }
  0xbc   : > { %1034 = vmatpush.msra.mxu3 %v827_v2  ;;  %1074 = vmatpush.msra.mxu1 %v829_v3  ;;  %v1342_v3 = vld [vmem:[%s10526_s29 + $0x28] sm:$0xff] }
  0xbe   : > { %6280 = vmatmul.msk.f32.vlgmr.msrb.gmra.mxu1 %vm870_vm4, %v7524_v61  ;;  %6282 = vmatmul.msk.f32.vlgmr.msrb.gmra.mxu2 %vm870_vm4, %v7524_v61 }
  0xbf   : > { %6278 = vmatmul.msk.f32.vlgmr.msrb.gmra.mxu3 %vm870_vm4, %v7524_v61  ;;  %1075 = vmatpush.msra.mxu1 %v820_v4  ;;  %v1341_v4 = vld [vmem:[%s10526_s29 + $0x20] sm:$0xff] }
  0xc0   : > { %1035 = vmatpush.msra.mxu3 %v818_v5  ;;  %v1340_v5 = vld [vmem:[%s10526_s29 + $0x18] sm:$0xff] }
  0xc1   : > { %1076 = vmatpush.msra.mxu1 %v811_v6 }
  0xc2   : > { %1036 = vmatpush.msra.mxu3 %v809_v7  ;;  %v1339_v7 = vld [vmem:[%s10526_s29 + $0x10] sm:$0xff] }
  0xc3   : > { %1077 = vmatpush.msra.mxu1 %v802_v8  ;;  %v1338_v8 = vld [vmem:[%s10526_s29 + $0x8] sm:$0xff] }
  0xc4   : > { %1037 = vmatpush.msra.mxu3 %v800_v9  ;;  %v1337_v9 = vld [vmem:[%s10526_s29] sm:$0xff] }
  0xc5   : > { %1363 = vmatpush.msrb.mxu1 %v1342_v3  ;;  %v1335_v3 = vld [vmem:[%s10527_s28 + $0x8] sm:$0xff] }
  0xc6   : > { %6288 = vmatmul.msk.f32.vlgmr.msra.gmra.mxu1 %vm870_vm4, %v7524_v61 }
  0xc7   : > { %6284 = vmatmul.msk.f32.vlgmr.msra.gmra.mxu3 %vm870_vm4, %v7524_v61  ;;  %1364 = vmatpush.msrb.mxu1 %v1341_v4  ;;  %v1336_v4 = vld [vmem:[%s10527_s28 + $0x10] sm:$0xff]  ;;  %vm3277_vm4 = vcmask 387072  }
  0xc9   : > { %1365 = vmatpush.msrb.mxu1 %v1340_v5  ;;  %v1424_v5 = vld [vmem:[%s10425_s10 + $0x10] sm:$0xff] }
  0xca   : > { %1447 = vmatpush.msra.mxu0 %v1424_v5 }
  0xcb   : > { %1366 = vmatpush.msrb.mxu1 %v1339_v7  ;;  %v1422_v7 = vld [vmem:[%s10425_s10] sm:$0xff] }
  0xcd   : > { %1367 = vmatpush.msrb.mxu1 %v1338_v8  ;;  %v6933_v8 = vld [vmem:[%s10424_s9] ss:$0 sm:$0xff] }
  0xcf   : > { %1368 = vmatpush.msrb.mxu1 %v1337_v9 }
 0x133   : > { %v919_v13 = vpop.f32.mrf.mxu1 }
 0x134   : > { %v7589_v14 = vadd.f32 %v919_v13, %v852_v11  ;;  %v1059_v15 = vpop.f32.mrf.mxu0 }
 0x135   : > { %v1060_v16 = vadd.f32 %v1059_v15, %v859_v12 }
 0x136   : > { %v1083_v17 = vrot.slane %v7589_v14, 7  ;;  %v1088_v23 = vrot.slane %v7589_v14, 6 }
 0x137   : > { %v1199_v18 = vrot.slane %v1060_v16, 4  ;;  %v1188_v19 = vrot.slane %v1060_v16, 6  ;;  %v1204_v24 = vrot.slane %v1060_v16, 3  ;;  %v1195_v27 = vrot.slane %v1060_v16, 5 }
 0x138   : > { %1084 = vrot.lane.b32.xlu0 %v1083_v17, %s10451_s30 }
 0x139   : > { %1200 = vrot.lane.b32.xlu1 %v1199_v18, %s10447_s25  ;;  %1191 = vrot.lane.b32.xlu2 %v1188_v19, %s7218_s8  ;;  %v939_v21 = vpop.f32.mrf.mxu2 }
 0x13a   : > { %v940_v22 = vadd.f32 %v939_v21, %v853_v20  ;;  %v959_v28 = vpop.f32.mrf.mxu3 }
 0x13b   : > { %v960_v31 = vadd.f32 %v959_v28, %v854_v26  ;;  %v999_v34 = vpop.f32.mrf.mxu1 }
 0x13c   : > { %v1089_v25 = vrot.slane %v940_v22, 6  ;;  %v1101_v29 = vrot.slane %v940_v22, 4  ;;  %v1097_v30 = vrot.slane %v940_v22, 5  ;;  %v1106_v35 = vrot.slane %v940_v22, 3 }
 0x13d   : > { %v1107_v33 = vrot.slane %v960_v31, 3  ;;  %v1115_v36 = vrot.slane %v960_v31, 2  ;;  %v1000_v37 = vadd.f32 %v999_v34, %v856_v32  ;;  %v1119_v41 = vrot.slane %v960_v31, 1 }
 0x13f   : > { %v1137_v39 = vrot.slane %v1000_v37, 5  ;;  %v1141_v42 = vrot.slane %v1000_v37, 4  ;;  %v1130_v48 = vrot.slane %v1000_v37, 6  ;;  %v1146_v54 = vrot.slane %v1000_v37, 3 }
 0x140   : > { %1090 = vrot.lane.b32.xlu0 %v1088_v23, %s7218_s8 }
 0x141   : > { %1206 = vrot.lane.b32.xlu2 %v1204_v24, %s10449_s4  ;;  %1092 = vrot.lane.b32.xlu1 %v1089_v25, %s7218_s8  ;;  %v1019_v46 = vpop.f32.mrf.mxu2 }
 0x142   : > { %v979_v40 = vpop.f32.mrf.mxu3  ;;  %v1020_v49 = vadd.f32 %v1019_v46, %v857_v44 }
 0x143   : > { %v7612_v43 = vadd.f32 %v979_v40, %v855_v38  ;;  %v1079_v58 = vpop.f32.mrf.mxu1 }
 0x144   : > { %v1147_v51 = vrot.slane %v1020_v49, 3  ;;  %v1154_v53 = vrot.slane %v1020_v49, 2  ;;  %v1158_v60 = vrot.slane %v1020_v49, 1  ;;  %v1080_v62 = vadd.f32 %v6932_v56, %v1079_v58 }
 0x145   : > { %v1124_v45 = vrot.slane %v7612_v43, 7  ;;  %v1129_v47 = vrot.slane %v7612_v43, 6 }
 0x146   : > { %v1205_v63 = vrot.slane %v1080_v62, 3  ;;  %v1212_v0 = vrot.slane %v1080_v62, 2  ;;  %v1216_v1 = vrot.slane %v1080_v62, 1 }
 0x148   : > { %1196 = vrot.lane.b32.xlu0 %v1195_v27, %s10453_s3 }
 0x149   : > { %1102 = vrot.lane.b32.xlu2 %v1101_v29, %s10447_s25  ;;  %1098 = vrot.lane.b32.xlu1 %v1097_v30, %s10453_s3 }
 0x14a   : > { %v1039_v52 = vpop.f32.mrf.mxu3 }
 0x14b   : > { %v7624_v55 = vadd.f32 %v1039_v52, %v858_v50 }
 0x14d   : > { %v1182_v57 = vrot.slane %v7624_v55, 7  ;;  %v1187_v59 = vrot.slane %v7624_v55, 6 }
 0x150   : > { %1110 = vrot.lane.b32.xlu0 %v1107_v33, %s10449_s4 }
 0x151   : > { %1108 = vrot.lane.b32.xlu2 %v1106_v35, %s10449_s4  ;;  %1116 = vrot.lane.b32.xlu1 %v1115_v36, %s10459_s1 }
 0x158   : > { %1138 = vrot.lane.b32.xlu0 %v1137_v39, %s10453_s3  ;;  %s10461_s3 = smov 88  }
 0x159   : > { %1120 = vrot.lane.b32.xlu2 %v1119_v41, %s7222_s5  ;;  %1142 = vrot.lane.b32.xlu1 %v1141_v42, %s10447_s25  ;;  %s10529_s25 = smov 80  }
 0x160   : > { %1125 = vrot.lane.b32.xlu0 %v1124_v45, %s10451_s30 }
 0x161   : > { %1131 = vrot.lane.b32.xlu1 %v1129_v47, %s7218_s8  ;;  %1133 = vrot.lane.b32.xlu2 %v1130_v48, %s7218_s8 }
 0x168   : > { %1150 = vrot.lane.b32.xlu0 %v1147_v51, %s10449_s4 }
 0x169   : > { %1155 = vrot.lane.b32.xlu1 %v1154_v53, %s10459_s1  ;;  %1148 = vrot.lane.b32.xlu2 %v1146_v54, %s10449_s4 }
 0x170   : > { %1183 = vrot.lane.b32.xlu0 %v1182_v57, %s10451_s30  ;;  %s10463_s30 = smov 104  }
 0x171   : > { %1189 = vrot.lane.b32.xlu1 %v1187_v59, %s7218_s8  ;;  %1159 = vrot.lane.b32.xlu2 %v1158_v60, %s7222_s5  ;;  %s10457_s8 = smov 120  }
 0x178   : > { %1208 = vrot.lane.b32.xlu0 %v1205_v63, %s10449_s4  ;;  %s10455_s4 = smov 72  }
 0x179   : > { %1213 = vrot.lane.b32.xlu1 %v1212_v0, %s10459_s1  ;;  %1217 = vrot.lane.b32.xlu2 %v1216_v1, %s7222_s5  ;;  %s10530_s5 = smov 64  }
 0x193   : > { %v7637_v2 = vpop.permute.xlu2 %1191 }
 0x19b   : > { %v7648_v6 = vpop.permute.xlu2 %1206 }
 0x1a3   : > { %v1103_v11 = vpop.permute.xlu2 %1102 }
 0x1aa   : > { %v1085_v10 = vpop.permute.xlu0 %1084 }
 0x1ab   : > { %v1201_v12 = vpop.permute.xlu1 %1200  ;;  %v1109_v16 = vpop.permute.xlu2 %1108  ;;  %v1163_v20 = vsel %vm1162_vm6, %v7589_v14, %v1085_v10 }
 0x1b2   : > { %v1091_v13 = vpop.permute.xlu0 %1090 }
 0x1b3   : > { %v1093_v15 = vpop.permute.xlu1 %1092  ;;  %v1121_v21 = vpop.permute.xlu2 %1120 }
 0x1b4   : > { %v1095_v19 = vsel %vm1094_vm5, %v1091_v13, %v1093_v15 }
 0x1b5   : > { %v1165_v22 = vsel %vm1164_vm7, %v1163_v20, %v1095_v19 }
 0x1ba   : > { %v1197_v17 = vpop.permute.xlu0 %1196 }
 0x1bb   : > { %v1099_v18 = vpop.permute.xlu1 %1098  ;;  %v1134_v30 = vpop.permute.xlu2 %1133 }
 0x1bc   : > { %v1166_v23 = vsel %vm770_vm0, %v1165_v22, %v1099_v18 }
 0x1bd   : > { %v1168_v25 = vsel %vm1167_vm8, %v1166_v23, %v1103_v11 }
 0x1c2   : > { %v1111_v24 = vpop.permute.xlu0 %1110 }
 0x1c3   : > { %v1117_v26 = vpop.permute.xlu1 %1116  ;;  %v1113_v27 = vsel %vm1112_vm9, %v1109_v16, %v1111_v24  ;;  %v1149_v34 = vpop.permute.xlu2 %1148 }
 0x1c4   : > { %v1169_v28 = vsel %vm874_vm1, %v1168_v25, %v1113_v27 }
 0x1c5   : > { %v1171_v14 = vsel %vm1170_vm10, %v1169_v28, %v1117_v26 }
 0x1c6   : > { %v1173_v29 = vsel %vm1172_vm11, %v1171_v14, %v1121_v21 }
 0x1c7   : > { %6289 = vmatmul.msk.f32.vlgmr.msrb.gmra.mxu1 %vm1343_vm12, %v1173_v29 }
 0x1ca   : > { %v1139_v31 = vpop.permute.xlu0 %1138 }
 0x1cb   : > { %v1143_v32 = vpop.permute.xlu1 %1142  ;;  %v1160_v46 = vpop.permute.xlu2 %1159 }
 0x1d2   : > { %v1126_v33 = vpop.permute.xlu0 %1125 }
 0x1d3   : > { %v1132_v35 = vpop.permute.xlu1 %1131  ;;  %v1174_v36 = vsel %vm1162_vm6, %v7612_v43, %v1126_v33  ;;  %v1218_v60 = vpop.permute.xlu2 %1217 }
 0x1d4   : > { %v1135_v37 = vsel %vm1094_vm5, %v1132_v35, %v1134_v30 }
 0x1d5   : > { %v1175_v38 = vsel %vm1164_vm7, %v1174_v36, %v1135_v37 }
 0x1d6   : > { %v1176_v39 = vsel %vm770_vm0, %v1175_v38, %v1139_v31 }
 0x1d7   : > { %v1177_v42 = vsel %vm1167_vm8, %v1176_v39, %v1143_v32 }
 0x1da   : > { %v1151_v40 = vpop.permute.xlu0 %1150 }
 0x1db   : > { %v1156_v41 = vpop.permute.xlu1 %1155  ;;  %v1152_v44 = vsel %vm1112_vm9, %v1149_v34, %v1151_v40 }
 0x1dc   : > { %v1178_v45 = vsel %vm874_vm1, %v1177_v42, %v1152_v44 }
 0x1dd   : > { %v1179_v47 = vsel %vm1170_vm10, %v1178_v45, %v1156_v41 }
 0x1de   : > { %v1180_v48 = vsel %vm1172_vm11, %v1179_v47, %v1160_v46 }
 0x1df   : > { %6290 = vmatmul.msk.f32.gmra.mxu1 %vm1343_vm12, %v1180_v48 }
 0x1e2   : > { %v1184_v43 = vpop.permute.xlu0 %1183 }
 0x1e3   : > { %v1190_v49 = vpop.permute.xlu1 %1189  ;;  %v1220_v50 = vsel %vm1162_vm6, %v7624_v55, %v1184_v43 }
 0x1e4   : > { %v1193_v51 = vsel %vm1094_vm5, %v1190_v49, %v7637_v2  ;;  %v1334_v2 = vld [vmem:[%s10527_s28] sm:$0xff]  ;;  %s7234_s28 = smov 98   ;;  %vm2089_vm5 = vcmask 190464  }
 0x1e5   : > { %v1221_v52 = vsel %vm1164_vm7, %v1220_v50, %v1193_v51 }
 0x1e6   : > { %v1222_v53 = vsel %vm770_vm0, %v1221_v52, %v1197_v17 }
 0x1e7   : > { %v1223_v56 = vsel %vm1167_vm8, %v1222_v53, %v1201_v12 }
 0x1ea   : > { %v1209_v54 = vpop.permute.xlu0 %1208 }
 0x1eb   : > { %v1210_v57 = vsel %vm1112_vm9, %v7648_v6, %v1209_v54  ;;  %v1214_v58 = vpop.permute.xlu1 %1213  ;;  %v1423_v6 = vld [vmem:[%s10425_s10 + $0x8] sm:$0xff] }
 0x1ec   : > { %v1224_v59 = vsel %vm874_vm1, %v1223_v56, %v1210_v57  ;;  %1448 = vmatpush.msra.mxu0 %v1423_v6 }
 0x1ed   : > { %v1225_v62 = vsel %vm1170_vm10, %v1224_v59, %v1214_v58 }
 0x1ee   : > { %v1226_v55 = vsel %vm1172_vm11, %v1225_v62, %v1218_v60  ;;  %1449 = vmatpush.msra.mxu0 %v1422_v7 }
 0x1ef   : > { %6291 = vmatmul.msk.f32.gmra.mxu1 %vm1343_vm12, %v1226_v55 }
 0x244   : > { %v1370_v63 = vpop.f32.mrf.mxu1 }
 0x25c   : > { %v1373_v0 = vpop.f32.mrf.mxu1 }
 0x26c   : > { %v1376_v1 = vpop.f32.mrf.mxu1 }
 0x26d   : > { %1406 = vmatpush.msrb.mxu3 %v1376_v1 }
 0x26f   : > { %1407 = vmatpush.msrb.mxu3 %v1373_v0 }
 0x271   : > { %1408 = vmatpush.msrb.mxu3 %v1370_v63 }
 0x272   : > { %6292 = vmatmul.msk.f32.vlgmr.msrb.gmra.mxu3 %vm1383_vm13, %v1334_v2 }
 0x27a   : > { %6293 = vmatmul.msk.f32.gmra.mxu3 %vm1383_vm13, %v1335_v3 }
 0x282   : > { %6294 = vmatmul.msk.f32.gmra.mxu3 %vm1383_vm13, %v1336_v4 }
 0x2f5   : > { %v1410_v9 = vpop.f32.mrf.mxu3 }
 0x2f6   : > { %v7718_v10 = vadd.f32 %v6933_v8, %v1410_v9 }
 0x2f8   : > { %v1419_v11 = vmax.f32 %v7718_v10, 0.0  ;;  %v1975_v10 = vld [vmem:[%s10430_s15 + $0x20] sm:$0xff] }
 0x2fa   : > { %6295 = vmatmul.msk.f32.vlgmr.msra.gmra.mxu0 %vm1383_vm13, %v1419_v11 }
 0x2fd   : > { %v1413_v12 = vpop.f32.mrf.mxu3 }
 0x2fe   : > { %v7724_v13 = vadd.f32 %v6933_v8, %v1413_v12 }
 0x300   : > { %v1420_v15 = vmax.f32 %v7724_v13, 0.0  ;;  %v1972_v13 = vld [vmem:[%s10430_s15 + $0x8] sm:$0xff] }
 0x302   : > { %6296 = vmatmul.msk.f32.gmra.mxu0 %vm1383_vm13, %v1420_v15 }
 0x305   : > { %v1416_v16 = vpop.f32.mrf.mxu3 }
 0x306   : > { %v7730_v17 = vadd.f32 %v6933_v8, %v1416_v16 }
 0x308   : > { %v1421_v18 = vmax.f32 %v7730_v17, 0.0  ;;  %v6935_v17 = vld [vmem:[%s10429_s14] ss:$0 sm:$0xff] }
 0x30a   : > { %6297 = vmatmul.msk.f32.gmra.mxu0 %vm1383_vm13, %v1421_v18 }
 0x377   : > { %v7736_v19 = vpop.f32.mrf.mxu0 }
 0x378   : > { %1463 = vrot.lane.b32.xlu2 %v7736_v19, %s10463_s30 }
 0x37f   : > { %v1454_v20 = vpop.f32.mrf.mxu0 }
 0x380   : > { %1594 = vrot.lane.b32.xlu2 %v7736_v19, %s10459_s1  ;;  %1465 = vrot.lane.b32.xlu1 %v1454_v20, %s10463_s30 }
 0x387   : > { %v1457_v21 = vpop.f32.mrf.mxu0 }
 0x388   : > { %1596 = vrot.lane.b32.xlu1 %v1454_v20, %s10459_s1  ;;  %1728 = vrot.lane.b32.xlu2 %v1457_v21, %s10461_s3  ;;  %v7760_v22 = vpack.i.bf16 %v1454_v20, %v1457_v21 }
 0x389   : > { %1467 = vrot.lane.b32.xlu0 %v1457_v21, %s10463_s30  ;;  %s7240_s30 = smov 95  }
 0x390   : > { %1590 = vrot.lane.b32.xlu1 %v1454_v20, %s10457_s8  ;;  %1724 = vrot.lane.b32.xlu2 %v7736_v19, %s10461_s3 }
 0x391   : > { %1598 = vrot.lane.b32.xlu0 %v1457_v21, %s10459_s1  ;;  %s10538_s1 = smov 72  }
 0x398   : > { %1726 = vrot.lane.b32.xlu1 %v1454_v20, %s10461_s3  ;;  %1722 = vrot.lane.b32.xlu2 %v1457_v21, %s10528_s27  ;;  %s7241_s3 = smov 86  }
 0x399   : > { %1588 = vrot.lane.b32.xlu0 %v7736_v19, %s10457_s8 }
 0x3a0   : > { %1720 = vrot.lane.b32.xlu1 %v1454_v20, %s10528_s27  ;;  %1544 = vrot.lane.b32.xlu2 %v7736_v19, %s10529_s25 }
 0x3a1   : > { %1592 = vrot.lane.b32.xlu0 %v1457_v21, %s10457_s8  ;;  %s10533_s8 = sld [smem:[#allocation27_spill]] }
 0x3a9   : > { %1718 = vrot.lane.b32.xlu0 %v7736_v19, %s10528_s27 }
 0x3b1   : > { %6780 = vrot.lane.b32.xlu0 %v7760_v22, %s10529_s25 }
 0x3d2   : > { %v1464_v23 = vpop.permute.xlu2 %1463 }
 0x3da   : > { %v1595_v25 = vpop.permute.xlu2 %1594 }
 0x3e2   : > { %v1729_v29 = vpop.permute.xlu2 %1728 }
 0x3ea   : > { %v1725_v32 = vpop.permute.xlu2 %1724 }
 0x3f2   : > { %v1466_v24 = vpop.permute.xlu1 %1465  ;;  %v1723_v35 = vpop.permute.xlu2 %1722 }
 0x3fa   : > { %v1597_v26 = vpop.permute.xlu1 %1596  ;;  %v1545_v40 = vpop.permute.xlu2 %1544 }
 0x3fb   : > { %v1468_v27 = vpop.permute.xlu0 %1467 }
 0x3fc   : > { %6298 = vmatpush.xpose.msk.msra.mxu1 %vm1469_vm14, %v1468_v27 }
 0x400   : > { %6299 = vmatpush.xpose.msk.msra.mxu1 %vm1469_vm14, %v1466_v24 }
 0x402   : > { %v1591_v28 = vpop.permute.xlu1 %1590 }
 0x403   : > { %v1599_v14 = vpop.permute.xlu0 %1598 }
 0x404   : > { %6300 = vmatpush.xpose.msk.msra.mxu1 %vm1469_vm14, %v1464_v23  ;;  %6307 = vmatpush.xpose.msk.msrb.mxu0 %vm1469_vm14, %v1599_v14 }
 0x407   : > { %6301 = vmatmul.msk.f32.vlgmr.msra.gmra.mxu1 %vm1469_vm14, %v7736_v19 }
 0x408   : > { %6316 = vmatpush.xpose.msk.msrb.mxu1 %vm1469_vm14, %v1729_v29  ;;  %6308 = vmatpush.xpose.msk.msrb.mxu0 %vm1469_vm14, %v1597_v26 }
 0x40a   : > { %v1727_v30 = vpop.permute.xlu1 %1726 }
 0x40b   : > { %v1589_v31 = vpop.permute.xlu0 %1588 }
 0x40c   : > { %6317 = vmatpush.xpose.msk.msrb.mxu1 %vm1469_vm14, %v1727_v30  ;;  %6309 = vmatpush.xpose.msk.msrb.mxu0 %vm1469_vm14, %v1595_v25 }
 0x40f   : > { %6302 = vmatmul.msk.f32.gmra.mxu1 %vm1469_vm14, %v1454_v20  ;;  %6310 = vmatmul.msk.f32.vlgmr.msrb.gmra.mxu0 %vm1469_vm14, %v1589_v31 }
 0x410   : > { %6318 = vmatpush.xpose.msk.msrb.mxu1 %vm1469_vm14, %v1725_v32 }
 0x412   : > { %v1721_v38 = vpop.permute.xlu1 %1720 }
 0x413   : > { %v1593_v33 = vpop.permute.xlu0 %1592 }
 0x417   : > { %6303 = vmatmul.msk.f32.gmra.mxu1 %vm1469_vm14, %v1457_v21  ;;  %6311 = vmatmul.msk.f32.gmra.mxu0 %vm1469_vm14, %v1591_v28 }
 0x41b   : > { %v1719_v34 = vpop.permute.xlu0 %1718 }
 0x41f   : > { %6312 = vmatmul.msk.f32.gmra.mxu0 %vm1469_vm14, %v1593_v33  ;;  %6319 = vmatmul.msk.f32.vlgmr.msrb.gmra.mxu1 %vm1469_vm14, %v1719_v34 }
 0x423   : > { %v6781_v36 = vpop.permute.xlu0 %6780 }
 0x424   : > { %v6782_v37 = vunpack.i.l.bf16 %v6781_v36  ;;  %v6783_v39 = vunpack.i.h.bf16 %v6781_v36 }
 0x426   : > { %1575 = vmatpush.msra.mxu3 %v6782_v37 }
 0x427   : > { %6320 = vmatmul.msk.f32.gmra.mxu1 %vm1469_vm14, %v1721_v38 }
 0x428   : > { %1576 = vmatpush.msra.mxu3 %v6783_v39 }
 0x42a   : > { %1577 = vmatpush.msra.mxu3 %v1545_v40 }
 0x42f   : > { %6321 = vmatmul.msk.f32.gmra.mxu1 %vm1469_vm14, %v1723_v35 }
 0x484   : > { %v1499_v41 = vpop.f32.mrf.mxu1 }
 0x485   : > { %v1508_v42 = vmul.f32 0.35355338, %v1499_v41 }
 0x487   : > { %v1511_v44 = vsel %vm1383_vm13, %v1508_v42, -inf }
 0x488   : > { %1512 = vmax.xlane.f32.xlu0 %v1511_v44 }
 0x48c   : > { %v1502_v45 = vpop.f32.mrf.mxu1  ;;  %v1629_v46 = vpop.f32.mrf.mxu0 }
 0x48d   : > { %v1509_v47 = vmul.f32 0.35355338, %v1502_v45  ;;  %v1638_v48 = vmul.f32 0.35355338, %v1629_v46 }
 0x48f   : > { %v1514_v43 = vsel %vm1383_vm13, %v1509_v47, -inf  ;;  %v1641_v49 = vsel %vm1383_vm13, %v1638_v48, -inf }
 0x490   : > { %1515 = vmax.xlane.f32.xlu1 %v1514_v43  ;;  %1642 = vmax.xlane.f32.xlu0 %v1641_v49 }
 0x494   : > { %v1505_v50 = vpop.f32.mrf.mxu1  ;;  %v1632_v51 = vpop.f32.mrf.mxu0 }
 0x495   : > { %v7786_v52 = vmul.f32 0.35355338, %v1632_v51  ;;  %v1510_v54 = vmul.f32 0.35355338, %v1505_v50 }
 0x497   : > { %v1644_v53 = vsel %vm1383_vm13, %v7786_v52, -inf  ;;  %v1517_v58 = vsel %vm1383_vm13, %v1510_v54, -inf }
 0x498   : > { %1645 = vmax.xlane.f32.xlu2 %v1644_v53 }
 0x49c   : > { %v1759_v56 = vpop.f32.mrf.mxu1  ;;  %v1635_v60 = vpop.f32.mrf.mxu0 }
 0x49d   : > { %v1768_v57 = vmul.f32 0.35355338, %v1759_v56  ;;  %v1640_v62 = vmul.f32 0.35355338, %v1635_v60 }
 0x49f   : > { %v1771_v59 = vsel %vm1383_vm13, %v1768_v57, -inf  ;;  %v1647_v0 = vsel %vm1383_vm13, %v1640_v62, -inf }
 0x4a0   : > { %1518 = vmax.xlane.f32.xlu2 %v1517_v58  ;;  %1772 = vmax.xlane.f32.xlu1 %v1771_v59 }
 0x4a4   : > { %v1762_v55 = vpop.f32.mrf.mxu1 }
 0x4a5   : > { %v7792_v63 = vmul.f32 0.35355338, %v1762_v55 }
 0x4a7   : > { %v1774_v1 = vsel %vm1383_vm13, %v7792_v63, -inf }
 0x4a8   : > { %1648 = vmax.xlane.f32.xlu2 %v1647_v0  ;;  %1775 = vmax.xlane.f32.xlu0 %v1774_v1 }
 0x4ac   : > { %v1765_v2 = vpop.f32.mrf.mxu1 }
 0x4ad   : > { %v7797_v3 = vmul.f32 0.35355338, %v1765_v2 }
 0x4af   : > { %v1777_v4 = vsel %vm1383_vm13, %v7797_v3, -inf }
 0x4b0   : > { %1778 = vmax.xlane.f32.xlu1 %v1777_v4 }
 0x4bc   : > { %6785 = vrot.lane.b32.xlu0 %v7760_v22, %s10455_s4 }
 0x4fb   : > { %v1513_v5 = vpop.xlane.xlu0 %1512 }
 0x4fc   : > { %v1520_v6 = vsub.f32 %v1508_v42, %v1513_v5 }
 0x4fe   : > { %v1523_v7 = vmul.f32 1.442695, %v1520_v6 }
 0x500   : > { %6948 = vpow2.f32 %v1523_v7 }
 0x503   : > { %v1643_v8 = vpop.xlane.xlu0 %1642  ;;  %v1516_v9 = vpop.xlane.xlu1 %1515 }
 0x504   : > { %v1650_v12 = vsub.f32 %v1638_v48, %v1643_v8  ;;  %v1521_v21 = vsub.f32 %v1509_v47, %v1516_v9 }
 0x506   : > { %v7803_v16 = vpop.eup %6948  ;;  %v1653_v20 = vmul.f32 1.442695, %v1650_v12  ;;  %v1525_v24 = vmul.f32 1.442695, %v1521_v21 }
 0x507   : > { %v1529_v23 = vsel %vm1383_vm13, %v7803_v16, 0.0 }
 0x508   : > { %1530 = vadd.xlane.f32.xlu2 %v1529_v23  ;;  %6950 = vpow2.f32 %v1653_v20 }
 0x509   : > { %6952 = vpow2.f32 %v1525_v24 }
 0x50b   : > { %v1646_v25 = vpop.xlane.xlu2 %1645 }
 0x50c   : > { %v1651_v43 = vsub.f32 %v7786_v52, %v1646_v25 }
 0x50e   : > { %v7807_v26 = vpop.eup %6950  ;;  %v1655_v49 = vmul.f32 1.442695, %v1651_v43 }
 0x50f   : > { %v1659_v27 = vsel %vm1383_vm13, %v7807_v26, 0.0  ;;  %v7811_v31 = vpop.eup %6952 }
 0x510   : > { %1660 = vadd.xlane.f32.xlu1 %v1659_v27  ;;  %v1532_v34 = vsel %vm1383_vm13, %v7811_v31, 0.0 }
 0x513   : > { %v1519_v28 = vpop.xlane.xlu2 %1518  ;;  %v1773_v14 = vpop.xlane.xlu1 %1772 }
 0x514   : > { %v1522_v29 = vsub.f32 %v1510_v54, %v1519_v28  ;;  %v1780_v30 = vsub.f32 %v1768_v57, %v1773_v14 }
 0x516   : > { %v1527_v32 = vmul.f32 1.442695, %v1522_v29  ;;  %v1783_v33 = vmul.f32 1.442695, %v1780_v30 }
 0x518   : > { %6954 = vpow2.f32 %v1527_v32  ;;  %1533 = vadd.xlane.f32.xlu1 %v1532_v34 }
 0x519   : > { %6956 = vpow2.f32 %v1783_v33 }
 0x51b   : > { %v1649_v35 = vpop.xlane.xlu2 %1648  ;;  %v1776_v44 = vpop.xlane.xlu0 %1775 }
 0x51c   : > { %v1652_v36 = vsub.f32 %v1640_v62, %v1649_v35 }
 0x51e   : > { %v7815_v37 = vpop.eup %6954  ;;  %v1657_v38 = vmul.f32 1.442695, %v1652_v36 }
 0x51f   : > { %v7817_v39 = vpop.eup %6956  ;;  %v1535_v40 = vsel %vm1383_vm13, %v7815_v37, 0.0 }
 0x520   : > { %6958 = vpow2.f32 %v1657_v38  ;;  %v1789_v41 = vsel %vm1383_vm13, %v7817_v39, 0.0  ;;  %1674 = vrot.lane.b32.xlu2 %v7736_v19, %s10455_s4  ;;  %1536 = vadd.xlane.f32.xlu1 %v1535_v40  ;;  %s10534_s4 = smov 104  }
 0x521   : > { %1790 = vadd.xlane.f32.xlu0 %v1789_v41  ;;  %6960 = vpow2.f32 %v1655_v49 }
 0x523   : > { %v1779_v50 = vpop.xlane.xlu1 %1778 }
 0x524   : > { %v1782_v51 = vsub.f32 %v7797_v3, %v1779_v50 }
 0x526   : > { %v6959_v42 = vpop.eup %6958  ;;  %v1787_v53 = vmul.f32 1.442695, %v1782_v51 }
 0x527   : > { %v1665_v45 = vsel %vm1383_vm13, %v6959_v42, 0.0  ;;  %v6961_v54 = vpop.eup %6960 }
 0x528   : > { %1666 = vadd.xlane.f32.xlu1 %v1665_v45  ;;  %6962 = vpow2.f32 %v1787_v53  ;;  %v1662_v56 = vsel %vm1383_vm13, %v6961_v54, 0.0  ;;  %v1879_v45 = vld [vmem:[%s10426_s11 + $0x8] sm:$0xff] }
 0x52e   : > { %v6786_v46 = vpop.permute.xlu0 %6785  ;;  %v6963_v57 = vpop.eup %6962 }
 0x52f   : > { %v6787_v47 = vunpack.i.l.bf16 %v6786_v46  ;;  %v6788_v48 = vunpack.i.h.bf16 %v6786_v46  ;;  %v1795_v58 = vsel %vm1383_vm13, %v6963_v57, 0.0 }
 0x531   : > { %1705 = vmatpush.msra.mxu2 %v6787_v47  ;;  %6738 = vmatpush.msrb.mxu3 %v6787_v47 }
 0x533   : > { %1706 = vmatpush.msra.mxu2 %v6788_v48  ;;  %6739 = vmatpush.msrb.mxu3 %v6788_v48  ;;  %v1878_v48 = vld [vmem:[%s10426_s11] sm:$0xff] }
 0x535   : > { %1804 = vrot.lane.b32.xlu0 %v7736_v19, %s10530_s5  ;;  %v1781_v19 = vsub.f32 %v7792_v63, %v1776_v44  ;;  %v1880_v44 = vld [vmem:[%s10426_s11 + $0x10] sm:$0xff] }
 0x536   : > { %1903 = vmatpush.msra.mxu0 %v1880_v44 }
 0x537   : > { %v1785_v52 = vmul.f32 1.442695, %v1781_v19 }
 0x538   : > { %1904 = vmatpush.msra.mxu0 %v1879_v45 }
 0x539   : > { %6964 = vpow2.f32 %v1785_v52 }
 0x53a   : > { %1905 = vmatpush.msra.mxu0 %v1878_v48 }
 0x53f   : > { %v6965_v59 = vpop.eup %6964 }
 0x540   : > { %v1792_v60 = vsel %vm1383_vm13, %v6965_v59, 0.0 }
 0x541   : > { %6790 = vrot.lane.b32.xlu1 %v7760_v22, %s10530_s5 }
 0x549   : > { %1663 = vadd.xlane.f32.xlu2 %v1662_v56 }
 0x551   : > { %1796 = vadd.xlane.f32.xlu2 %v1795_v58 }
 0x56b   : > { %1793 = vadd.xlane.f32.xlu1 %v1792_v60  ;;  %v1928_v60 = vld [vmem:[%s10428_s13 + $0x10] sm:$0xff] }
 0x57b   : > { %v1531_v62 = vpop.xlane.xlu2 %1530 }
 0x57c   : > { %6966 = vrcp.f32 %v1531_v62  ;;  %v1927_v62 = vld [vmem:[%s10428_s13 + $0x8] sm:$0xff] }
 0x582   : > { %v6967_v22 = vpop.eup %6966 }
 0x583   : > { %v1541_v55 = vmul.f32 %v6967_v22, %v7803_v16  ;;  %v1675_v0 = vpop.permute.xlu2 %1674  ;;  %v1661_v1 = vpop.xlane.xlu1 %1660  ;;  %v1926_v22 = vld [vmem:[%s10428_s13] sm:$0xff] }
 0x584   : > { %1707 = vmatpush.msra.mxu2 %v1675_v0  ;;  %6740 = vmatpush.msrb.mxu3 %v1675_v0  ;;  %6968 = vrcp.f32 %v1661_v1 }
 0x585   : > { %6304 = vmatmul.msk.f32.vlgmr.msra.gmra.mxu3 %vm1383_vm13, %v1541_v55  ;;  %v6934_v55 = vld [vmem:[%s10427_s12] ss:$0 sm:$0xff] }
 0x586   : > { %1955 = vmatpush.msrb.mxu2 %v1928_v60 }
 0x588   : > { %1956 = vmatpush.msrb.mxu2 %v1927_v62 }
 0x58a   : > { %v6969_v2 = vpop.eup %6968  ;;  %1957 = vmatpush.msrb.mxu2 %v1926_v22 }
 0x58b   : > { %v1671_v63 = vmul.f32 %v6969_v2, %v7807_v26  ;;  %v1534_v3 = vpop.xlane.xlu1 %1533 }
 0x58c   : > { %6970 = vrcp.f32 %v1534_v3  ;;  %v1977_v3 = vld [vmem:[%s10430_s15 + $0x30] sm:$0xff] }
 0x58d   : > { %6313 = vmatmul.msk.f32.vlgmr.msra.gmra.mxu2 %vm1383_vm13, %v1671_v63  ;;  %v1978_v63 = vld [vmem:[%s10430_s15 + $0x38] sm:$0xff] }
 0x58e   : > { %2001 = vmatpush.msra.mxu1 %v1978_v63 }
 0x590   : > { %2002 = vmatpush.msra.mxu1 %v1977_v3 }
 0x592   : > { %v6971_v4 = vpop.eup %6970 }
 0x593   : > { %v1537_v5 = vpop.xlane.xlu1 %1536  ;;  %v1542_v6 = vmul.f32 %v6971_v4, %v7811_v31  ;;  %v1976_v4 = vld [vmem:[%s10430_s15 + $0x28] sm:$0xff] }
 0x594   : > { %6972 = vrcp.f32 %v1537_v5  ;;  %v1791_v20 = vpop.xlane.xlu0 %1790  ;;  %2003 = vmatpush.msra.mxu1 %v1976_v4 }
 0x595   : > { %6305 = vmatmul.msk.f32.gmra.mxu3 %vm1383_vm13, %v1542_v6 }
 0x596   : > { %2004 = vmatpush.msra.mxu1 %v1975_v10 }
 0x59a   : > { %v6973_v7 = vpop.eup %6972 }
 0x59b   : > { %v1667_v8 = vpop.xlane.xlu1 %1666  ;;  %v1543_v9 = vmul.f32 %v6973_v7, %v7815_v37 }
 0x59c   : > { %6974 = vrcp.f32 %v1667_v8 }
 0x59d   : > { %6306 = vmatmul.msk.f32.gmra.mxu3 %vm1383_vm13, %v1543_v9  ;;  %6976 = vrcp.f32 %v1791_v20 }
 0x5a2   : > { %v6975_v12 = vpop.eup %6974 }
 0x5a3   : > { %v1673_v16 = vmul.f32 %v6975_v12, %v6959_v42  ;;  %v6977_v24 = vpop.eup %6976 }
 0x5a4   : > { %v1801_v26 = vmul.f32 %v6977_v24, %v7817_v39  ;;  %v6342_v24 = vld [vmem:[%s10526_s29 + $0x58] sm:$0xff] }
 0x5a5   : > { %6315 = vmatmul.msk.f32.vlgmr.msrb.gmra.mxu3 %vm1383_vm13, %v1673_v16  ;;  %v1973_v16 = vld [vmem:[%s10430_s15 + $0x10] sm:$0xff]  ;;  %2114 = vmatpush.msrb.mxu0 %v6342_v24 }
 0x5a7   : > { %v1805_v27 = vpop.permute.xlu0 %1804 }
 0x5b3   : > { %v6791_v21 = vpop.permute.xlu1 %6790 }
 0x5b4   : > { %v6792_v23 = vunpack.i.l.bf16 %v6791_v21  ;;  %v6793_v25 = vunpack.i.h.bf16 %v6791_v21 }
 0x5b6   : > { %1835 = vmatpush.msra.mxu3 %v6792_v23  ;;  %v7926_v23 = vld [vmem:[%s10432_s17 + $0x28] sm:$0xff] }
 0x5b8   : > { %1836 = vmatpush.msra.mxu3 %v6793_v25  ;;  %v7934_v25 = vld [vmem:[%s10432_s17 + $0x20] sm:$0xff] }
 0x5ba   : > { %1837 = vmatpush.msra.mxu3 %v1805_v27  ;;  %v7943_v27 = vld [vmem:[%s10432_s17 + $0x18] sm:$0xff] }
 0x5bb   : > { %6322 = vmatmul.msk.f32.vlgmr.msra.gmra.mxu3 %vm1383_vm13, %v1801_v26  ;;  %v6341_v26 = vld [vmem:[%s10526_s29 + $0x50] sm:$0xff] }
 0x5bc   : > { %v1664_v28 = vpop.xlane.xlu2 %1663  ;;  %2041 = vmatpush.msrb.mxu3 %v7926_v23  ;;  %2115 = vmatpush.msrb.mxu0 %v6341_v26 }
 0x5bd   : > { %6978 = vrcp.f32 %v1664_v28  ;;  %v6340_v28 = vld [vmem:[%s10526_s29 + $0x48] sm:$0xff] }
 0x5be   : > { %2042 = vmatpush.msrb.mxu3 %v7934_v25  ;;  %2116 = vmatpush.msrb.mxu0 %v6340_v28 }
 0x5c0   : > { %2043 = vmatpush.msrb.mxu3 %v7943_v27 }
 0x5c3   : > { %v6979_v14 = vpop.eup %6978 }
 0x5c4   : > { %v1672_v29 = vmul.f32 %v6979_v14, %v6961_v54  ;;  %v1797_v31 = vpop.xlane.xlu2 %1796  ;;  %v7952_v14 = vld [vmem:[%s10432_s17 + $0x10] sm:$0xff] }
 0x5c5   : > { %2044 = vmatpush.msrb.mxu3 %v7952_v14 }
 0x5c6   : > { %6314 = vmatmul.msk.f32.gmra.mxu2 %vm1383_vm13, %v1672_v29  ;;  %v6339_v29 = vld [vmem:[%s10526_s29 + $0x40] sm:$0xff] }
 0x5c7   : > { %2117 = vmatpush.msrb.mxu0 %v6339_v29 }
 0x5de   : > { %v1794_v30 = vpop.xlane.xlu1 %1793 }
 0x5df   : > { %6980 = vrcp.f32 %v1794_v30 }
 0x5e0   : > { %6982 = vrcp.f32 %v1797_v31 }
 0x5e5   : > { %v6981_v32 = vpop.eup %6980 }
 0x5e6   : > { %v1802_v33 = vmul.f32 %v6981_v32, %v6965_v59  ;;  %v6983_v34 = vpop.eup %6982 }
 0x5e7   : > { %v1803_v35 = vmul.f32 %v6983_v34, %v6963_v57 }
 0x5e8   : > { %6323 = vmatmul.msk.f32.gmra.mxu3 %vm1383_vm13, %v1802_v33 }
 0x5f0   : > { %6324 = vmatmul.msk.f32.gmra.mxu3 %vm1383_vm13, %v1803_v35 }
 0x608   : > { %v1579_v37 = vpop.f32.mrf.mxu3 }
 0x610   : > { %v1709_v36 = vpop.f32.mrf.mxu2 }
 0x611   : > { %1851 = vrot.lane.b32.xlu2 %v1709_v36, %s10466_s6  ;;  %v7964_v36 = vld [vmem:[%s10432_s17 + $0x8] sm:$0xff] }
 0x612   : > { %2045 = vmatpush.msrb.mxu3 %v7964_v36 }
 0x618   : > { %v1582_v38 = vpop.f32.mrf.mxu3 }
 0x620   : > { %v1585_v39 = vpop.f32.mrf.mxu3 }
 0x628   : > { %v1715_v40 = vpop.f32.mrf.mxu3 }
 0x63e   : > { %v1839_v41 = vpop.f32.mrf.mxu3 }
 0x63f   : > { %1863 = vrot.lane.b32.xlu0 %v1839_v41, %s10531_s2 }
 0x649   : > { %v1712_v42 = vpop.f32.mrf.mxu2 }
 0x64a   : > { %1853 = vrot.lane.b32.xlu0 %v1712_v42, %s10466_s6 }
 0x652   : > { %1855 = vrot.lane.b32.xlu0 %v1715_v40, %s10466_s6  ;;  %v6936_v40 = vld [vmem:[%s10532_s16] ss:$0 sm:$0xff]  ;;  %s10536_s6 = smov 96  }
 0x66b   : > { %v1842_v46 = vpop.f32.mrf.mxu3  ;;  %v1852_v43 = vpop.permute.xlu2 %1851 }
 0x66c   : > { %1865 = vrot.lane.b32.xlu1 %v1842_v46, %s10531_s2  ;;  %v1872_v49 = vsel %vm1469_vm14, %v1579_v37, %v1852_v43  ;;  %v6338_v37 = vld [vmem:[%s10526_s29 + $0x38] sm:$0xff] }
 0x66d   : > { %2118 = vmatpush.msrb.mxu0 %v6338_v37 }
 0x673   : > { %v1845_v47 = vpop.f32.mrf.mxu3 }
 0x674   : > { %1867 = vrot.lane.b32.xlu2 %v1845_v47, %s10531_s2 }
 0x6b1   : > { %v1864_v50 = vpop.permute.xlu0 %1863 }
 0x6b2   : > { %v1875_v51 = vsel %vm1112_vm9, %v1872_v49, %v1864_v50  ;;  %v2091_v50 = vld [vmem:[%s10533_s8] sm:$0xff] }
 0x6b3   : > { %6325 = vmatmul.msk.f32.vlgmr.msra.gmra.mxu0 %vm1383_vm13, %v1875_v51  ;;  %v2092_v51 = vld [vmem:[%s10533_s8 + $0x8] sm:$0xff] }
 0x6bc   : > { %v1854_v53 = vpop.permute.xlu0 %1853 }
 0x6bd   : > { %v1873_v54 = vsel %vm1469_vm14, %v1582_v38, %v1854_v53  ;;  %v7973_v38 = vld [vmem:[%s10432_s17] sm:$0xff]  ;;  %v2093_v53 = vld [vmem:[%s10533_s8 + $0x10] sm:$0xff] }
 0x6be   : > { %2046 = vmatpush.msrb.mxu3 %v7973_v38 }
 0x6c4   : > { %v1856_v58 = vpop.permute.xlu0 %1855 }
 0x6c5   : > { %v1874_v52 = vsel %vm1469_vm14, %v1585_v39, %v1856_v58  ;;  %v6337_v39 = vld [vmem:[%s10526_s29 + $0x30] sm:$0xff]  ;;  %v6355_v58 = vld [vmem:[%s10425_s10 + $0x28] sm:$0xff] }
 0x6c6   : > { %2119 = vmatpush.msrb.mxu0 %v6337_v39 }
 0x6ce   : > { %v1868_v19 = vpop.permute.xlu2 %1867 }
 0x6cf   : > { %v1877_v59 = vsel %vm1112_vm9, %v1874_v52, %v1868_v19  ;;  %v6354_v19 = vld [vmem:[%s10425_s10 + $0x20] sm:$0xff]  ;;  %v6353_v52 = vld [vmem:[%s10425_s10 + $0x18] sm:$0xff] }
 0x6de   : > { %v1866_v56 = vpop.permute.xlu1 %1865 }
 0x6df   : > { %v1876_v57 = vsel %vm1112_vm9, %v1873_v54, %v1866_v56  ;;  %v2094_v54 = vld [vmem:[%s10533_s8 + $0x18] sm:$0xff]  ;;  %v2095_v56 = vld [vmem:[%s10533_s8 + $0x20] sm:$0xff] }
 0x6e0   : > { %6326 = vmatmul.msk.f32.gmra.mxu0 %vm1383_vm13, %v1876_v57  ;;  %v2096_v57 = vld [vmem:[%s10533_s8 + $0x28] sm:$0xff]  ;;  %s10588_s8 = sld [smem:[#allocation32_spill]] }
 0x6e8   : > { %6327 = vmatmul.msk.f32.gmra.mxu0 %vm1383_vm13, %v1877_v59  ;;  %v6938_v59 = vld [vmem:[%s10424_s9 + $0x1] ss:$0 sm:$0xff] }
 0x730   : > { %v1907_v0 = vpop.f32.mrf.mxu0 }
 0x731   : > { %v1916_v1 = vadd.f32 %v1907_v0, %v1419_v11  ;;  %v1974_v11 = vld [vmem:[%s10430_s15 + $0x18] sm:$0xff] }
 0x732   : > { %2005 = vmatpush.msra.mxu1 %v1974_v11 }
 0x733   : > { %v1923_v2 = vadd.f32 %v6934_v55, %v1916_v1 }
 0x734   : > { %2006 = vmatpush.msra.mxu1 %v1973_v16 }
 0x735   : > { %6328 = vmatmul.msk.f32.vlgmr.msrb.gmra.mxu2 %vm1383_vm13, %v1923_v2 }
 0x736   : > { %2007 = vmatpush.msra.mxu1 %v1972_v13 }
 0x75d   : > { %v1910_v5 = vpop.f32.mrf.mxu0 }
 0x75e   : > { %v1917_v6 = vadd.f32 %v1910_v5, %v1420_v15  ;;  %v1971_v15 = vld [vmem:[%s10430_s15] sm:$0xff] }
 0x75f   : > { %2008 = vmatpush.msra.mxu1 %v1971_v15 }
 0x760   : > { %v1924_v7 = vadd.f32 %v6934_v55, %v1917_v6 }
 0x761   : > { %2229 = vmatpush.msrb.mxu1 %v6355_v58 }
 0x762   : > { %6329 = vmatmul.msk.f32.gmra.mxu2 %vm1383_vm13, %v1924_v7 }
 0x763   : > { %2230 = vmatpush.msrb.mxu1 %v6354_v19 }
 0x765   : > { %v1913_v8 = vpop.f32.mrf.mxu0  ;;  %2231 = vmatpush.msrb.mxu1 %v6353_v52 }
 0x766   : > { %v1918_v9 = vadd.f32 %v1913_v8, %v1421_v18 }
 0x768   : > { %v1925_v12 = vadd.f32 %v6934_v55, %v1918_v9 }
 0x76a   : > { %6330 = vmatmul.msk.f32.gmra.mxu2 %vm1383_vm13, %v1925_v12 }
 0x7b8   : > { %v1959_v18 = vpop.f32.mrf.mxu2 }
 0x7b9   : > { %v1960_v20 = vadd.f32 %v6935_v17, %v1959_v18 }
 0x7bb   : > { %v1968_v21 = vmax.f32 %v1960_v20, 0.0 }
 0x7bd   : > { %6331 = vmatmul.msk.f32.vlgmr.msra.gmra.mxu1 %vm1983_vm15, %v1968_v21 }
 0x7e5   : > { %v1962_v30 = vpop.f32.mrf.mxu2 }
 0x7e6   : > { %v1963_v31 = vadd.f32 %v6935_v17, %v1962_v30 }
 0x7e8   : > { %v1969_v32 = vmax.f32 %v1963_v31, 0.0 }
 0x7ea   : > { %6332 = vmatmul.msk.f32.gmra.mxu1 %vm1983_vm15, %v1969_v32 }
 0x7ed   : > { %v1965_v33 = vpop.f32.mrf.mxu2 }
 0x7ee   : > { %v1966_v34 = vadd.f32 %v6935_v17, %v1965_v33 }
 0x7f0   : > { %v1970_v35 = vmax.f32 %v1966_v34, 0.0 }
 0x7f2   : > { %6333 = vmatmul.msk.f32.gmra.mxu1 %vm1983_vm15, %v1970_v35 }
 0x83a   : > { %v2010_v41 = vpop.f32.mrf.mxu1 }
 0x83b   : > { %v2011_v42 = vadd.f32 %v6936_v40, %v2010_v41 }
 0x83d   : > { %6334 = vmatmul.msk.f32.vlgmr.msrb.gmra.mxu3 %vm1343_vm12, %v2011_v42  ;;  %6343 = vmatmul.msk.f32.vlgmr.msrb.gmra.mxu0 %vm1343_vm12, %v2011_v42 }
 0x867   : > { %v2013_v44 = vpop.f32.mrf.mxu1 }
 0x868   : > { %v2014_v45 = vadd.f32 %v6936_v40, %v2013_v44 }
 0x86a   : > { %6335 = vmatmul.msk.f32.gmra.mxu3 %vm1343_vm12, %v2014_v45  ;;  %6344 = vmatmul.msk.f32.gmra.mxu0 %vm1343_vm12, %v2014_v45 }
 0x86f   : > { %v2016_v46 = vpop.f32.mrf.mxu1 }
 0x870   : > { %v2017_v47 = vadd.f32 %v6936_v40, %v2016_v46 }
 0x872   : > { %6336 = vmatmul.msk.f32.gmra.mxu3 %vm1343_vm12, %v2017_v47  ;;  %6345 = vmatmul.msk.f32.gmra.mxu0 %vm1343_vm12, %v2017_v47 }
 0x8ba   : > { %v2121_v48 = vpop.f32.mrf.mxu0 }
 0x8e7   : > { %v2124_v43 = vpop.f32.mrf.mxu0 }
 0x8ef   : > { %v2127_v49 = vpop.f32.mrf.mxu0 }
 0x8f0   : > { %2166 = vmatpush.msra.mxu2 %v2127_v49 }
 0x8f2   : > { %2167 = vmatpush.msra.mxu2 %v2124_v43 }
 0x8f4   : > { %2168 = vmatpush.msra.mxu2 %v2121_v48 }
 0x8f5   : > { %6347 = vmatmul.msk.f32.vlgmr.msra.gmra.mxu2 %vm1383_vm13, %v2091_v50 }
 0x8fd   : > { %6348 = vmatmul.msk.f32.gmra.mxu2 %vm1383_vm13, %v2092_v51 }
 0x905   : > { %6349 = vmatmul.msk.f32.gmra.mxu2 %vm1383_vm13, %v2093_v53 }
 0x90d   : > { %6350 = vmatmul.msk.f32.gmra.mxu2 %vm1383_vm13, %v2094_v54 }
 0x915   : > { %6351 = vmatmul.msk.f32.gmra.mxu2 %vm1383_vm13, %v2095_v56 }
 0x91d   : > { %6352 = vmatmul.msk.f32.gmra.mxu2 %vm1383_vm13, %v2096_v57 }
 0x978   : > { %v2170_v60 = vpop.f32.mrf.mxu2 }
 0x979   : > { %v8024_v62 = vadd.f32 %v6938_v59, %v2170_v60 }
 0x97b   : > { %v2188_v22 = vmax.f32 %v8024_v62, 0.0  ;;  %v6441_v62 = vld [vmem:[%s10430_s15 + $0x68] sm:$0xff] }
 0x97d   : > { %6356 = vmatmul.msk.f32.vlgmr.msrb.gmra.mxu1 %vm1383_vm13, %v2188_v22 }
 0x980   : > { %v2173_v55 = vpop.f32.mrf.mxu2 }
 0x981   : > { %v8030_v0 = vadd.f32 %v6938_v59, %v2173_v55 }
 0x983   : > { %v2189_v1 = vmax.f32 %v8030_v0, 0.0 }
 0x985   : > { %6357 = vmatmul.msk.f32.gmra.mxu1 %vm1383_vm13, %v2189_v1 }
 0x988   : > { %v2176_v2 = vpop.f32.mrf.mxu2 }
 0x989   : > { %v8036_v63 = vadd.f32 %v6938_v59, %v2176_v2 }
 0x98b   : > { %v2190_v3 = vmax.f32 %v8036_v63, 0.0 }
 0x98d   : > { %6358 = vmatmul.msk.f32.gmra.mxu1 %vm1383_vm13, %v2190_v3 }
 0x990   : > { %v2179_v4 = vpop.f32.mrf.mxu2 }
 0x991   : > { %v8042_v10 = vadd.f32 %v6938_v59, %v2179_v4 }
 0x993   : > { %v2191_v11 = vmax.f32 %v8042_v10, 0.0  ;;  %v6438_v10 = vld [vmem:[%s10430_s15 + $0x50] sm:$0xff] }
 0x995   : > { %6359 = vmatmul.msk.f32.gmra.mxu1 %vm1383_vm13, %v2191_v11 }
 0x998   : > { %v2182_v5 = vpop.f32.mrf.mxu2 }
 0x999   : > { %v8048_v6 = vadd.f32 %v6938_v59, %v2182_v5 }
 0x99b   : > { %v2192_v7 = vmax.f32 %v8048_v6, 0.0  ;;  %v6436_v6 = vld [vmem:[%s10430_s15 + $0x40] sm:$0xff] }
 0x99d   : > { %6360 = vmatmul.msk.f32.gmra.mxu1 %vm1383_vm13, %v2192_v7 }
 0x9a0   : > { %v2185_v8 = vpop.f32.mrf.mxu2 }
 0x9a1   : > { %v8054_v9 = vadd.f32 %v6938_v59, %v2185_v8 }
 0x9a3   : > { %v2193_v12 = vmax.f32 %v8054_v9, 0.0 }
 0x9a5   : > { %6361 = vmatmul.msk.f32.gmra.mxu1 %vm1383_vm13, %v2193_v12 }
 0x9fa   : > { %v8060_v16 = vpop.f32.mrf.mxu1 }
 0xa02   : > { %v8062_v13 = vpop.f32.mrf.mxu1 }
 0xa03   : > { %v8144_v26 = vpack.i.bf16 %v8060_v16, %v8062_v13 }
 0xa0a   : > { %v8064_v15 = vpop.f32.mrf.mxu1 }
 0xa0b   : > { %2261 = vrot.lane.b32.xlu1 %v8064_v15, %s10534_s4 }
 0xa12   : > { %v8068_v17 = vpop.f32.mrf.mxu1 }
 0xa13   : > { %v8133_v24 = vpack.i.bf16 %v8064_v15, %v8068_v17 }
 0xa1a   : > { %v8070_v18 = vpop.f32.mrf.mxu1 }
 0xa1b   : > { %2717 = vrot.lane.b32.xlu1 %v8070_v18, %s10535_s7  ;;  %2265 = vrot.lane.b32.xlu2 %v8070_v18, %s10534_s4 }
 0xa22   : > { %v8076_v20 = vpop.f32.mrf.mxu1 }
 0xa23   : > { %2259 = vrot.lane.b32.xlu2 %v8062_v13, %s10534_s4  ;;  %2493 = vrot.lane.b32.xlu1 %v8076_v20, %s10536_s6  ;;  %v6809_v21 = vpack.i.bf16 %v8070_v18, %v8076_v20 }
 0xa24   : > { %2267 = vrot.lane.b32.xlu0 %v8076_v20, %s10534_s4 }
 0xa2b   : > { %2489 = vrot.lane.b32.xlu2 %v8068_v17, %s10536_s6  ;;  %2487 = vrot.lane.b32.xlu1 %v8064_v15, %s10536_s6 }
 0xa2c   : > { %2263 = vrot.lane.b32.xlu0 %v8068_v17, %s10534_s4 }
 0xa33   : > { %2719 = vrot.lane.b32.xlu2 %v8076_v20, %s10535_s7  ;;  %2711 = vrot.lane.b32.xlu1 %v8062_v13, %s10535_s7 }
 0xa34   : > { %2257 = vrot.lane.b32.xlu0 %v8060_v16, %s10534_s4 }
 0xa3b   : > { %2713 = vrot.lane.b32.xlu2 %v8064_v15, %s10535_s7  ;;  %2471 = vrot.lane.b32.xlu1 %v8060_v16, %s10537_s0 }
 0xa3c   : > { %2491 = vrot.lane.b32.xlu0 %v8070_v18, %s10536_s6 }
 0xa43   : > { %2483 = vrot.lane.b32.xlu2 %v8060_v16, %s10536_s6  ;;  %2699 = vrot.lane.b32.xlu1 %v8062_v13, %s10528_s27 }
 0xa44   : > { %2715 = vrot.lane.b32.xlu0 %v8068_v17, %s10535_s7 }
 0xa4b   : > { %2697 = vrot.lane.b32.xlu2 %v8060_v16, %s10528_s27  ;;  %2477 = vrot.lane.b32.xlu1 %v8068_v17, %s10537_s0 }
 0xa4c   : > { %2485 = vrot.lane.b32.xlu0 %v8062_v13, %s10536_s6 }
 0xa53   : > { %2475 = vrot.lane.b32.xlu2 %v8064_v15, %s10537_s0  ;;  %2705 = vrot.lane.b32.xlu1 %v8070_v18, %s10528_s27 }
 0xa54   : > { %2709 = vrot.lane.b32.xlu0 %v8060_v16, %s10535_s7 }
 0xa5b   : > { %2703 = vrot.lane.b32.xlu2 %v8068_v17, %s10528_s27  ;;  %6810 = vrot.lane.b32.xlu1 %v6809_v21, %s10538_s1 }
 0xa5c   : > { %2473 = vrot.lane.b32.xlu0 %v8062_v13, %s10537_s0 }
 0xa63   : > { %2481 = vrot.lane.b32.xlu2 %v8076_v20, %s10537_s0 }
 0xa64   : > { %2701 = vrot.lane.b32.xlu0 %v8064_v15, %s10528_s27 }
 0xa6b   : > { %6795 = vrot.lane.b32.xlu2 %v8133_v24, %s10529_s25 }
 0xa6c   : > { %2479 = vrot.lane.b32.xlu0 %v8070_v18, %s10537_s0 }
 0xa73   : > { %6815 = vrot.lane.b32.xlu2 %v6809_v21, %s10530_s5 }
 0xa74   : > { %2707 = vrot.lane.b32.xlu0 %v8076_v20, %s10528_s27 }
 0xa75   : > { %v2266_v29 = vpop.permute.xlu2 %2265 }
 0xa7c   : > { %6800 = vrot.lane.b32.xlu0 %v8144_v26, %s10529_s25 }
 0xa7d   : > { %v2262_v28 = vpop.permute.xlu1 %2261  ;;  %v2260_v33 = vpop.permute.xlu2 %2259 }
 0xa84   : > { %6805 = vrot.lane.b32.xlu0 %v6809_v21, %s10529_s25 }
 0xa85   : > { %v2490_v37 = vpop.permute.xlu2 %2489 }
 0xa8d   : > { %v2718_v30 = vpop.permute.xlu1 %2717  ;;  %v2720_v41 = vpop.permute.xlu2 %2719 }
 0xa95   : > { %v2494_v31 = vpop.permute.xlu1 %2493  ;;  %v2714_v47 = vpop.permute.xlu2 %2713 }
 0xa96   : > { %v2268_v32 = vpop.permute.xlu0 %2267  ;;  %6380 = vmatpush.xpose.msk.msrb.mxu2 %vm1469_vm14, %v2494_v31 }
 0xa97   : > { %6362 = vmatpush.xpose.msk.msra.mxu3 %vm1469_vm14, %v2268_v32 }
 0xa9b   : > { %6363 = vmatpush.xpose.msk.msra.mxu3 %vm1469_vm14, %v2266_v29 }
 0xa9d   : > { %v2488_v34 = vpop.permute.xlu1 %2487  ;;  %v2484_v49 = vpop.permute.xlu2 %2483 }
 0xa9e   : > { %v2264_v35 = vpop.permute.xlu0 %2263 }
 0xa9f   : > { %6364 = vmatpush.xpose.msk.msra.mxu3 %vm1469_vm14, %v2264_v35 }
 0xaa3   : > { %6365 = vmatpush.xpose.msk.msra.mxu3 %vm1469_vm14, %v2262_v28 }
 0xaa5   : > { %v2712_v39 = vpop.permute.xlu1 %2711  ;;  %v2698_v53 = vpop.permute.xlu2 %2697 }
 0xaa6   : > { %v2258_v40 = vpop.permute.xlu0 %2257 }
 0xaa7   : > { %6366 = vmatpush.xpose.msk.msra.mxu3 %vm1469_vm14, %v2260_v33 }
 0xaab   : > { %6367 = vmatpush.xpose.msk.msra.mxu3 %vm1469_vm14, %v2258_v40 }
 0xaad   : > { %v2472_v42 = vpop.permute.xlu1 %2471  ;;  %v2476_v19 = vpop.permute.xlu2 %2475 }
 0xaae   : > { %v2492_v44 = vpop.permute.xlu0 %2491  ;;  %6368 = vmatmul.msk.f32.vlgmr.msra.gmra.mxu3 %vm1469_vm14, %v8060_v16 }
 0xaaf   : > { %6398 = vmatpush.xpose.msk.msrb.mxu3 %vm1469_vm14, %v2720_v41  ;;  %6381 = vmatpush.xpose.msk.msrb.mxu2 %vm1469_vm14, %v2492_v44 }
 0xab3   : > { %6399 = vmatpush.xpose.msk.msrb.mxu3 %vm1469_vm14, %v2718_v30  ;;  %6382 = vmatpush.xpose.msk.msrb.mxu2 %vm1469_vm14, %v2490_v37  ;;  %v8191_v30 = vpop.f32.mrf.mxu3 }
 0xab4   : > { %10539 = vst [vmem:[#allocation5_spill] sm:$0xff] %v8191_v30 }
 0xab5   : > { %v2700_v45 = vpop.permute.xlu1 %2699  ;;  %v2704_v60 = vpop.permute.xlu2 %2703 }
 0xab6   : > { %v2716_v46 = vpop.permute.xlu0 %2715  ;;  %6369 = vmatmul.msk.f32.gmra.mxu3 %vm1469_vm14, %v8062_v13 }
 0xab7   : > { %6383 = vmatpush.xpose.msk.msrb.mxu2 %vm1469_vm14, %v2488_v34  ;;  %6400 = vmatpush.xpose.msk.msrb.mxu3 %vm1469_vm14, %v2716_v46 }
 0xabb   : > { %6401 = vmatpush.xpose.msk.msrb.mxu3 %vm1469_vm14, %v2714_v47  ;;  %v8193_v31 = vpop.f32.mrf.mxu3 }
 0xabc   : > { %10540 = vst [vmem:[#allocation6_spill] sm:$0xff] %v8193_v31 }
 0xabd   : > { %v2478_v48 = vpop.permute.xlu1 %2477  ;;  %v2482_v2 = vpop.permute.xlu2 %2481 }
 0xabe   : > { %v2486_v43 = vpop.permute.xlu0 %2485  ;;  %6370 = vmatmul.msk.f32.gmra.mxu3 %vm1469_vm14, %v8064_v15 }
 0xabf   : > { %6384 = vmatpush.xpose.msk.msrb.mxu2 %vm1469_vm14, %v2486_v43  ;;  %6402 = vmatpush.xpose.msk.msrb.mxu3 %vm1469_vm14, %v2712_v39 }
 0xac3   : > { %6385 = vmatpush.xpose.msk.msrb.mxu2 %vm1469_vm14, %v2484_v49  ;;  %v8195_v32 = vpop.f32.mrf.mxu3 }
 0xac4   : > { %10541 = vst [vmem:[#allocation7_spill] sm:$0xff] %v8195_v32 }
 0xac5   : > { %v2706_v50 = vpop.permute.xlu1 %2705  ;;  %v6796_v5 = vpop.permute.xlu2 %6795 }
 0xac6   : > { %6386 = vmatmul.msk.f32.vlgmr.msrb.gmra.mxu2 %vm1469_vm14, %v2472_v42  ;;  %v2710_v51 = vpop.permute.xlu0 %2709  ;;  %6371 = vmatmul.msk.f32.gmra.mxu3 %vm1469_vm14, %v8068_v17  ;;  %v6797_v15 = vunpack.i.l.bf16 %v6796_v5  ;;  %v6798_v17 = vunpack.i.h.bf16 %v6796_v5 }
 0xac7   : > { %6403 = vmatpush.xpose.msk.msrb.mxu3 %vm1469_vm14, %v2710_v51 }
 0xacd   : > { %v6811_v54 = vpop.permute.xlu1 %6810 }
 0xace   : > { %v6812_v56 = vunpack.i.l.bf16 %v6811_v54  ;;  %v2474_v57 = vpop.permute.xlu0 %2473  ;;  %6372 = vmatmul.msk.f32.gmra.mxu3 %vm1469_vm14, %v8070_v18  ;;  %v6813_v58 = vunpack.i.h.bf16 %v6811_v54  ;;  %v6816_v18 = vpop.permute.xlu2 %6815 }
 0xacf   : > { %6387 = vmatmul.msk.f32.gmra.mxu2 %vm1469_vm14, %v2474_v57  ;;  %v6817_v28 = vunpack.i.l.bf16 %v6816_v18  ;;  %v6818_v29 = vunpack.i.h.bf16 %v6816_v18 }
 0xad0   : > { %2672 = vmatpush.msra.mxu1 %v6812_v56 }
 0xad2   : > { %2673 = vmatpush.msra.mxu1 %v6813_v58 }
 0xad6   : > { %v2702_v52 = vpop.permute.xlu0 %2701  ;;  %6373 = vmatmul.msk.f32.gmra.mxu3 %vm1469_vm14, %v8076_v20 }
 0xad7   : > { %6388 = vmatmul.msk.f32.gmra.mxu2 %vm1469_vm14, %v2476_v19 }
 0xade   : > { %v2480_v59 = vpop.permute.xlu0 %2479  ;;  %6404 = vmatmul.msk.f32.vlgmr.msrb.gmra.mxu3 %vm1469_vm14, %v2698_v53 }
 0xadf   : > { %6389 = vmatmul.msk.f32.gmra.mxu2 %vm1469_vm14, %v2478_v48 }
 0xae6   : > { %v2708_v55 = vpop.permute.xlu0 %2707  ;;  %6405 = vmatmul.msk.f32.gmra.mxu3 %vm1469_vm14, %v2700_v45 }
 0xae7   : > { %6390 = vmatmul.msk.f32.gmra.mxu2 %vm1469_vm14, %v2480_v59 }
 0xaee   : > { %v6801_v4 = vpop.permute.xlu0 %6800  ;;  %6406 = vmatmul.msk.f32.gmra.mxu3 %vm1469_vm14, %v2702_v52 }
 0xaef   : > { %6391 = vmatmul.msk.f32.gmra.mxu2 %vm1469_vm14, %v2482_v2  ;;  %v6802_v20 = vunpack.i.l.bf16 %v6801_v4  ;;  %v6803_v21 = vunpack.i.h.bf16 %v6801_v4 }
 0xaf6   : > { %v6806_v8 = vpop.permute.xlu0 %6805  ;;  %6407 = vmatmul.msk.f32.gmra.mxu3 %vm1469_vm14, %v2704_v60 }
 0xaf7   : > { %v6807_v16 = vunpack.i.l.bf16 %v6806_v8  ;;  %v6808_v13 = vunpack.i.h.bf16 %v6806_v8 }
 0xaf9   : > { %2446 = vmatpush.msra.mxu0 %v6807_v16 }
 0xafb   : > { %2447 = vmatpush.msra.mxu0 %v6808_v13 }
 0xafd   : > { %2448 = vmatpush.msra.mxu0 %v6797_v15 }
 0xafe   : > { %6408 = vmatmul.msk.f32.gmra.mxu3 %vm1469_vm14, %v2706_v50 }
 0xaff   : > { %2449 = vmatpush.msra.mxu0 %v6798_v17 }
 0xb01   : > { %2450 = vmatpush.msra.mxu0 %v6802_v20 }
 0xb03   : > { %2451 = vmatpush.msra.mxu0 %v6803_v21 }
 0xb05   : > { %2898 = vmatpush.msrb.mxu0 %v6817_v28 }
 0xb06   : > { %6409 = vmatmul.msk.f32.gmra.mxu3 %vm1469_vm14, %v2708_v55 }
 0xb07   : > { %2899 = vmatpush.msrb.mxu0 %v6818_v29 }
 0xb31   : > { %v2310_v33 = vpop.f32.mrf.mxu3 }
 0xb32   : > { %v8197_v34 = vmul.f32 0.35355338, %v2310_v33 }
 0xb34   : > { %v2334_v35 = vsel %vm1343_vm12, %v8197_v34, -inf }
 0xb35   : > { %2335 = vmax.xlane.f32.xlu1 %v2334_v35 }
 0xb39   : > { %v2313_v37 = vpop.f32.mrf.mxu3 }
 0xb3a   : > { %v8201_v39 = vmul.f32 0.35355338, %v2313_v37 }
 0xb3c   : > { %v2337_v40 = vsel %vm1343_vm12, %v8201_v39, -inf }
 0xb3d   : > { %2338 = vmax.xlane.f32.xlu2 %v2337_v40 }
 0xb41   : > { %v2316_v41 = vpop.f32.mrf.mxu3 }
 0xb42   : > { %v8205_v42 = vmul.f32 0.35355338, %v2316_v41 }
 0xb44   : > { %v2340_v44 = vsel %vm1343_vm12, %v8205_v42, -inf }
 0xb45   : > { %2341 = vmax.xlane.f32.xlu0 %v2340_v44 }
 0xb49   : > { %v2319_v45 = vpop.f32.mrf.mxu3  ;;  %v2536_v46 = vpop.f32.mrf.mxu2 }
 0xb4a   : > { %v8209_v47 = vmul.f32 0.35355338, %v2536_v46  ;;  %v8221_v56 = vmul.f32 0.35355338, %v2319_v45 }
 0xb4c   : > { %v2560_v48 = vsel %vm1343_vm12, %v8209_v47, -inf  ;;  %v2343_v59 = vsel %vm1343_vm12, %v8221_v56, -inf }
 0xb4d   : > { %2561 = vmax.xlane.f32.xlu1 %v2560_v48 }
 0xb51   : > { %v2322_v43 = vpop.f32.mrf.mxu3 }
 0xb52   : > { %v8213_v49 = vmul.f32 0.35355338, %v2322_v43  ;;  %v2539_v50 = vpop.f32.mrf.mxu2 }
 0xb53   : > { %v8215_v51 = vmul.f32 0.35355338, %v2539_v50 }
 0xb54   : > { %v2346_v53 = vsel %vm1343_vm12, %v8213_v49, -inf }
 0xb55   : > { %2347 = vmax.xlane.f32.xlu2 %v2346_v53  ;;  %v2563_v54 = vsel %vm1343_vm12, %v8215_v51, -inf }
 0xb56   : > { %2564 = vmax.xlane.f32.xlu1 %v2563_v54 }
 0xb59   : > { %v2325_v57 = vpop.f32.mrf.mxu3 }
 0xb5a   : > { %v2542_v58 = vpop.f32.mrf.mxu2  ;;  %v8229_v60 = vmul.f32 0.35355338, %v2325_v57 }
 0xb5b   : > { %v8223_v19 = vmul.f32 0.35355338, %v2542_v58 }
 0xb5c   : > { %v2349_v13 = vsel %vm1343_vm12, %v8229_v60, -inf }
 0xb5d   : > { %v2566_v52 = vsel %vm1343_vm12, %v8223_v19, -inf }
 0xb5e   : > { %2567 = vmax.xlane.f32.xlu0 %v2566_v52  ;;  %2344 = vmax.xlane.f32.xlu1 %v2343_v59 }
 0xb61   : > { %v2762_v55 = vpop.f32.mrf.mxu3 }
 0xb62   : > { %v8231_v2 = vmul.f32 0.35355338, %v2762_v55  ;;  %v2545_v4 = vpop.f32.mrf.mxu2 }
 0xb63   : > { %v8233_v5 = vmul.f32 0.35355338, %v2545_v4 }
 0xb64   : > { %v2786_v8 = vsel %vm1343_vm12, %v8231_v2, -inf }
 0xb65   : > { %2787 = vmax.xlane.f32.xlu2 %v2786_v8  ;;  %v2569_v16 = vsel %vm1343_vm12, %v8233_v5, -inf }
 0xb66   : > { %2570 = vmax.xlane.f32.xlu1 %v2569_v16  ;;  %2350 = vmax.xlane.f32.xlu0 %v2349_v13 }
 0xb69   : > { %v2765_v15 = vpop.f32.mrf.mxu3 }
 0xb6a   : > { %v2548_v17 = vpop.f32.mrf.mxu2  ;;  %v8253_v40 = vmul.f32 0.35355338, %v2765_v15 }
 0xb6b   : > { %v8241_v18 = vmul.f32 0.35355338, %v2548_v17 }
 0xb6c   : > { %v2789_v41 = vsel %vm1343_vm12, %v8253_v40, -inf }
 0xb6d   : > { %v2572_v20 = vsel %vm1343_vm12, %v8241_v18, -inf }
 0xb6e   : > { %2573 = vmax.xlane.f32.xlu1 %v2572_v20 }
 0xb71   : > { %v2768_v21 = vpop.f32.mrf.mxu3 }
 0xb72   : > { %v8245_v28 = vmul.f32 0.35355338, %v2768_v21  ;;  %v2551_v29 = vpop.f32.mrf.mxu2 }
 0xb73   : > { %v8247_v33 = vmul.f32 0.35355338, %v2551_v29 }
 0xb74   : > { %v2792_v35 = vsel %vm1343_vm12, %v8245_v28, -inf }
 0xb75   : > { %2793 = vmax.xlane.f32.xlu2 %v2792_v35  ;;  %v2575_v37 = vsel %vm1343_vm12, %v8247_v33, -inf }
 0xb76   : > { %2576 = vmax.xlane.f32.xlu1 %v2575_v37 }
 0xb79   : > { %v2771_v44 = vpop.f32.mrf.mxu3 }
 0xb7a   : > { %6820 = vrot.lane.b32.xlu0 %v8133_v24, %s10538_s1  ;;  %v8259_v45 = vmul.f32 0.35355338, %v2771_v44 }
 0xb7c   : > { %v2795_v46 = vsel %vm1343_vm12, %v8259_v45, -inf }
 0xb7e   : > { %2790 = vmax.xlane.f32.xlu1 %v2789_v41 }
 0xb81   : > { %v2774_v48 = vpop.f32.mrf.mxu3 }
 0xb82   : > { %v8265_v43 = vmul.f32 0.35355338, %v2774_v48 }
 0xb84   : > { %v2798_v50 = vsel %vm1343_vm12, %v8265_v43, -inf }
 0xb86   : > { %2796 = vmax.xlane.f32.xlu1 %v2795_v46 }
 0xb89   : > { %v2777_v53 = vpop.f32.mrf.mxu3 }
 0xb8a   : > { %v8269_v54 = vmul.f32 0.35355338, %v2777_v53 }
 0xb8c   : > { %v2801_v59 = vsel %vm1343_vm12, %v8269_v54, -inf }
 0xb8d   : > { %6830 = vrot.lane.b32.xlu2 %v8144_v26, %s10538_s1 }
 0xba4   : > { %2799 = vmax.xlane.f32.xlu0 %v2798_v50 }
 0xba8   : > { %v2336_v57 = vpop.xlane.xlu1 %2335 }
 0xba9   : > { %v2352_v58 = vsub.f32 %v8197_v34, %v2336_v57 }
 0xbab   : > { %v2358_v52 = vmul.f32 1.442695, %v2352_v58 }
 0xbac   : > { %2802 = vmax.xlane.f32.xlu0 %v2801_v59 }
 0xbad   : > { %6984 = vpow2.f32 %v2358_v52 }
 0xbb0   : > { %v2339_v55 = vpop.xlane.xlu2 %2338 }
 0xbb1   : > { %v2353_v4 = vsub.f32 %v8201_v39, %v2339_v55 }
 0xbb3   : > { %v8275_v8 = vpop.eup %6984  ;;  %v2360_v16 = vmul.f32 1.442695, %v2353_v4 }
 0xbb4   : > { %v2370_v13 = vsel %vm1343_vm12, %v8275_v8, 0.0 }
 0xbb5   : > { %6986 = vpow2.f32 %v2360_v16  ;;  %2371 = vadd.xlane.f32.xlu1 %v2370_v13 }
 0xbb8   : > { %v2342_v15 = vpop.xlane.xlu0 %2341 }
 0xbb9   : > { %v2354_v34 = vsub.f32 %v8205_v42, %v2342_v15 }
 0xbbb   : > { %v8280_v17 = vpop.eup %6986  ;;  %v2362_v20 = vmul.f32 1.442695, %v2354_v34 }
 0xbbc   : > { %v2373_v21 = vsel %vm1343_vm12, %v8280_v17, 0.0 }
 0xbbd   : > { %6988 = vpow2.f32 %v2362_v20  ;;  %2374 = vadd.xlane.f32.xlu1 %v2373_v21 }
 0xbc0   : > { %v2562_v39 = vpop.xlane.xlu1 %2561 }
 0xbc1   : > { %v2578_v29 = vsub.f32 %v8209_v47, %v2562_v39 }
 0xbc3   : > { %v8285_v35 = vpop.eup %6988  ;;  %v2584_v37 = vmul.f32 1.442695, %v2578_v29 }
 0xbc4   : > { %v2376_v41 = vsel %vm1343_vm12, %v8285_v35, 0.0 }
 0xbc5   : > { %6990 = vpow2.f32 %v2584_v37  ;;  %2377 = vadd.xlane.f32.xlu1 %v2376_v41 }
 0xbc8   : > { %v2348_v42 = vpop.xlane.xlu2 %2347 }
 0xbc9   : > { %v2356_v44 = vsub.f32 %v8213_v49, %v2348_v42  ;;  %v2565_v46 = vpop.xlane.xlu1 %2564 }
 0xbcb   : > { %v8290_v48 = vpop.eup %6990  ;;  %v2366_v50 = vmul.f32 1.442695, %v2356_v44 }
 0xbcc   : > { %v2596_v53 = vsel %vm1343_vm12, %v8290_v48, 0.0 }
 0xbcd   : > { %6992 = vpow2.f32 %v2366_v50  ;;  %2597 = vadd.xlane.f32.xlu0 %v2596_v53 }
 0xbd1   : > { %v2568_v47 = vpop.xlane.xlu0 %2567  ;;  %v2345_v57 = vpop.xlane.xlu1 %2344 }
 0xbd2   : > { %v2355_v58 = vsub.f32 %v8221_v56, %v2345_v57 }
 0xbd3   : > { %v8295_v52 = vpop.eup %6992 }
 0xbd4   : > { %v2364_v59 = vmul.f32 1.442695, %v2355_v58  ;;  %v2382_v55 = vsel %vm1343_vm12, %v8295_v52, 0.0 }
 0xbd5   : > { %2383 = vadd.xlane.f32.xlu2 %v2382_v55 }
 0xbd6   : > { %6994 = vpow2.f32 %v2364_v59 }
 0xbd8   : > { %v2788_v49 = vpop.xlane.xlu2 %2787 }
 0xbd9   : > { %v2804_v4 = vsub.f32 %v8231_v2, %v2788_v49  ;;  %v2571_v16 = vpop.xlane.xlu1 %2570  ;;  %v2351_v13 = vpop.xlane.xlu0 %2350 }
 0xbda   : > { %v2357_v15 = vsub.f32 %v8229_v60, %v2351_v13 }
 0xbdb   : > { %v2810_v34 = vmul.f32 1.442695, %v2804_v4  ;;  %v2581_v4 = vsub.f32 %v8233_v5, %v2571_v16  ;;  %v2579_v16 = vsub.f32 %v8215_v51, %v2565_v46 }
 0xbdc   : > { %v2368_v20 = vmul.f32 1.442695, %v2357_v15  ;;  %v8301_v21 = vpop.eup %6994 }
 0xbdd   : > { %6996 = vpow2.f32 %v2810_v34  ;;  %v2379_v56 = vsel %vm1343_vm12, %v8301_v21, 0.0  ;;  %v2590_v15 = vmul.f32 1.442695, %v2581_v4 }
 0xbde   : > { %6998 = vpow2.f32 %v2368_v20  ;;  %2380 = vadd.xlane.f32.xlu1 %v2379_v56  ;;  %v2586_v56 = vmul.f32 1.442695, %v2579_v16 }
 0xbe1   : > { %v2574_v39 = vpop.xlane.xlu1 %2573 }
 0xbe3   : > { %v8305_v29 = vpop.eup %6996 }
 0xbe4   : > { %v2822_v2 = vsel %vm1343_vm12, %v8305_v29, 0.0  ;;  %v8309_v37 = vpop.eup %6998 }
 0xbe5   : > { %2823 = vadd.xlane.f32.xlu0 %v2822_v2  ;;  %v2385_v60 = vsel %vm1343_vm12, %v8309_v37, 0.0 }
 0xbe6   : > { %2386 = vadd.xlane.f32.xlu2 %v2385_v60 }
 0xbe8   : > { %v2794_v41 = vpop.xlane.xlu2 %2793 }
 0xbe9   : > { %v8313_v42 = vpop.xlane.xlu1 %2576  ;;  %v2806_v60 = vsub.f32 %v8245_v28, %v2794_v41 }
 0xbec   : > { %v6821_v44 = vpop.permute.xlu0 %6820 }
 0xbed   : > { %v6822_v50 = vunpack.i.l.bf16 %v6821_v44  ;;  %v6823_v53 = vunpack.i.h.bf16 %v6821_v44 }
 0xbef   : > { %2674 = vmatpush.msra.mxu1 %v6822_v50 }
 0xbf0   : > { %v6831_v57 = vpop.permute.xlu2 %6830 }
 0xbf1   : > { %v6832_v58 = vunpack.i.l.bf16 %v6831_v57  ;;  %v2791_v59 = vpop.xlane.xlu1 %2790  ;;  %2675 = vmatpush.msra.mxu1 %v6823_v53  ;;  %v6833_v49 = vunpack.i.h.bf16 %v6831_v57 }
 0xbf2   : > { %v2805_v55 = vsub.f32 %v8253_v40, %v2791_v59  ;;  %v2582_v59 = vsub.f32 %v8241_v18, %v2574_v39  ;;  %v2583_v39 = vsub.f32 %v8247_v33, %v8313_v42 }
 0xbf3   : > { %2676 = vmatpush.msra.mxu1 %v6832_v58 }
 0xbf4   : > { %v2812_v13 = vmul.f32 1.442695, %v2805_v55  ;;  %v2592_v28 = vmul.f32 1.442695, %v2582_v59 }
 0xbf5   : > { %2677 = vmatpush.msra.mxu1 %v6833_v49 }
 0xbf6   : > { %7000 = vpow2.f32 %v2812_v13 }
 0xbf7   : > { %6825 = vrot.lane.b32.xlu1 %v8133_v24, %s10530_s5  ;;  %7002 = vpow2.f32 %v2590_v15  ;;  %v2580_v24 = vsub.f32 %v8223_v19, %v2568_v47 }
 0xbf8   : > { %7004 = vpow2.f32 %v2586_v56 }
 0xbf9   : > { %v2588_v50 = vmul.f32 1.442695, %v2580_v24  ;;  %v2797_v57 = vpop.xlane.xlu1 %2796 }
 0xbfa   : > { %v2807_v51 = vsub.f32 %v8259_v45, %v2797_v57 }
 0xbfc   : > { %v8319_v34 = vpop.eup %7000  ;;  %v2816_v55 = vmul.f32 1.442695, %v2807_v51 }
 0xbfd   : > { %v2825_v20 = vsel %vm1343_vm12, %v8319_v34, 0.0  ;;  %v8325_v40 = vpop.eup %7002 }
 0xbfe   : > { %2826 = vadd.xlane.f32.xlu0 %v2825_v20  ;;  %6835 = vrot.lane.b32.xlu2 %v8144_v26, %s10530_s5  ;;  %v2605_v5 = vsel %vm1343_vm12, %v8325_v40, 0.0  ;;  %v2814_v26 = vmul.f32 1.442695, %v2806_v60  ;;  %v8333_v58 = vpop.eup %7004 }
 0xbff   : > { %v2599_v19 = vsel %vm1343_vm12, %v8333_v58, 0.0 }
 0xc06   : > { %2606 = vadd.xlane.f32.xlu0 %v2605_v5  ;;  %v2594_v5 = vmul.f32 1.442695, %v2583_v39 }
 0xc17   : > { %v2800_v2 = vpop.xlane.xlu0 %2799 }
 0xc18   : > { %v2808_v44 = vsub.f32 %v8265_v43, %v2800_v2 }
 0xc1a   : > { %v2818_v53 = vmul.f32 1.442695, %v2808_v44 }
 0xc1c   : > { %7006 = vpow2.f32 %v2818_v53 }
 0xc1d   : > { %7008 = vpow2.f32 %v2588_v50 }
 0xc1e   : > { %7010 = vpow2.f32 %v2814_v26 }
 0xc1f   : > { %v2803_v43 = vpop.xlane.xlu0 %2802  ;;  %7012 = vpow2.f32 %v2592_v28 }
 0xc20   : > { %v2809_v18 = vsub.f32 %v8269_v54, %v2803_v43  ;;  %7014 = vpow2.f32 %v2816_v55 }
 0xc21   : > { %2600 = vadd.xlane.f32.xlu1 %v2599_v19 }
 0xc22   : > { %v8339_v46 = vpop.eup %7006  ;;  %v2820_v15 = vmul.f32 1.442695, %v2809_v18 }
 0xc23   : > { %v2834_v47 = vsel %vm1343_vm12, %v8339_v46, 0.0  ;;  %v8343_v41 = vpop.eup %7008 }
 0xc24   : > { %2835 = vadd.xlane.f32.xlu0 %v2834_v47  ;;  %v8345_v49 = vpop.eup %7010  ;;  %v2602_v45 = vsel %vm1343_vm12, %v8343_v41, 0.0 }
 0xc25   : > { %v2828_v13 = vsel %vm1343_vm12, %v8345_v49, 0.0  ;;  %v8354_v20 = vpop.eup %7012 }
 0xc26   : > { %v8356_v16 = vpop.eup %7014  ;;  %v2608_v56 = vsel %vm1343_vm12, %v8354_v20, 0.0 }
 0xc27   : > { %2603 = vadd.xlane.f32.xlu2 %v2602_v45  ;;  %v2831_v24 = vsel %vm1343_vm12, %v8356_v16, 0.0 }
 0xc28   : > { %v2372_v4 = vpop.xlane.xlu1 %2371 }
 0xc29   : > { %7016 = vrcp.f32 %v2372_v4  ;;  %2829 = vadd.xlane.f32.xlu1 %v2828_v13 }
 0xc2a   : > { %7018 = vpow2.f32 %v2820_v15 }
 0xc2b   : > { %7020 = vpow2.f32 %v2594_v5 }
 0xc2f   : > { %v7017_v54 = vpop.eup %7016  ;;  %2609 = vadd.xlane.f32.xlu2 %v2608_v56 }
 0xc30   : > { %v2394_v33 = vmul.f32 %v7017_v54, %v8275_v8  ;;  %v2375_v42 = vpop.xlane.xlu1 %2374  ;;  %v8364_v2 = vpop.eup %7018 }
 0xc31   : > { %7022 = vrcp.f32 %v2375_v42  ;;  %2832 = vadd.xlane.f32.xlu1 %v2831_v24  ;;  %v8366_v60 = vpop.eup %7020  ;;  %v2837_v50 = vsel %vm1343_vm12, %v8364_v2, 0.0 }
 0xc32   : > { %6374 = vmatmul.msk.f32.vlgmr.msra.gmra.mxu0 %vm1343_vm12, %v2394_v33  ;;  %v2611_v26 = vsel %vm1343_vm12, %v8366_v60, 0.0 }
 0xc37   : > { %v7023_v44 = vpop.eup %7022  ;;  %2838 = vadd.xlane.f32.xlu2 %v2837_v50 }
 0xc38   : > { %v2378_v53 = vpop.xlane.xlu1 %2377  ;;  %v2395_v8 = vmul.f32 %v7023_v44, %v8280_v17 }
 0xc39   : > { %7024 = vrcp.f32 %v2378_v53  ;;  %2612 = vadd.xlane.f32.xlu1 %v2611_v26 }
 0xc3a   : > { %6375 = vmatmul.msk.f32.gmra.mxu0 %vm1343_vm12, %v2395_v8 }
 0xc3f   : > { %v7025_v57 = vpop.eup %7024 }
 0xc40   : > { %v2598_v59 = vpop.xlane.xlu0 %2597  ;;  %v2396_v51 = vmul.f32 %v7025_v57, %v8285_v35 }
 0xc41   : > { %7026 = vrcp.f32 %v2598_v59 }
 0xc42   : > { %6376 = vmatmul.msk.f32.gmra.mxu0 %vm1343_vm12, %v2396_v51 }
 0xc47   : > { %v7027_v19 = vpop.eup %7026 }
 0xc48   : > { %v2620_v28 = vmul.f32 %v7027_v19, %v8290_v48  ;;  %v2384_v43 = vpop.xlane.xlu2 %2383 }
 0xc4a   : > { %6392 = vmatmul.msk.f32.vlgmr.msra.gmra.mxu1 %vm1343_vm12, %v2620_v28 }
 0xc51   : > { %v2381_v17 = vpop.xlane.xlu1 %2380 }
 0xc52   : > { %7028 = vrcp.f32 %v2381_v17 }
 0xc53   : > { %7030 = vrcp.f32 %v2384_v43 }
 0xc58   : > { %v7029_v47 = vpop.eup %7028  ;;  %v2824_v39 = vpop.xlane.xlu0 %2823 }
 0xc59   : > { %v2397_v55 = vmul.f32 %v7029_v47, %v8301_v21  ;;  %v2387_v18 = vpop.xlane.xlu2 %2386  ;;  %v7031_v45 = vpop.eup %7030 }
 0xc5a   : > { %7032 = vrcp.f32 %v2387_v18  ;;  %v2398_v35 = vmul.f32 %v7031_v45, %v8295_v52 }
 0xc5b   : > { %6377 = vmatmul.msk.f32.gmra.mxu0 %vm1343_vm12, %v2397_v55  ;;  %7034 = vrcp.f32 %v2824_v39 }
 0xc60   : > { %v7033_v48 = vpop.eup %7032 }
 0xc61   : > { %v2399_v13 = vmul.f32 %v7033_v48, %v8309_v37  ;;  %v6836_v5 = vpop.permute.xlu2 %6835  ;;  %v7035_v54 = vpop.eup %7034 }
 0xc62   : > { %v6837_v56 = vunpack.i.l.bf16 %v6836_v5  ;;  %v6838_v33 = vunpack.i.h.bf16 %v6836_v5  ;;  %v2846_v42 = vmul.f32 %v7035_v54, %v8305_v29 }
 0xc63   : > { %6378 = vmatmul.msk.f32.gmra.mxu0 %vm1343_vm12, %v2398_v35 }
 0xc69   : > { %v6826_v4 = vpop.permute.xlu1 %6825 }
 0xc6a   : > { %v6827_v15 = vunpack.i.l.bf16 %v6826_v4  ;;  %v6828_v21 = vunpack.i.h.bf16 %v6826_v4 }
 0xc6b   : > { %6379 = vmatmul.msk.f32.gmra.mxu0 %vm1343_vm12, %v2399_v13 }
 0xc6c   : > { %2900 = vmatpush.msrb.mxu0 %v6827_v15  ;;  %v6417_v15 = vld [vmem:[%s10426_s11 + $0x20] sm:$0xff] }
 0xc6e   : > { %2901 = vmatpush.msrb.mxu0 %v6828_v21 }
 0xc70   : > { %2902 = vmatpush.msrb.mxu0 %v6837_v56 }
 0xc71   : > { %v2827_v52 = vpop.xlane.xlu0 %2826 }
 0xc72   : > { %7036 = vrcp.f32 %v2827_v52  ;;  %2903 = vmatpush.msrb.mxu0 %v6838_v33 }
 0xc73   : > { %6410 = vmatmul.msk.f32.vlgmr.msrb.gmra.mxu0 %vm1343_vm12, %v2846_v42 }
 0xc74   : > { %3220 = vmatpush.msra.mxu0 %v7926_v23 }
 0xc76   : > { %3221 = vmatpush.msra.mxu0 %v7934_v25 }
 0xc78   : > { %v7037_v37 = vpop.eup %7036  ;;  %3222 = vmatpush.msra.mxu0 %v7943_v27 }
 0xc79   : > { %v2847_v24 = vmul.f32 %v7037_v37, %v8319_v34  ;;  %v2607_v27 = vpop.xlane.xlu0 %2606 }
 0xc7a   : > { %3223 = vmatpush.msra.mxu0 %v7952_v14 }
 0xc7b   : > { %6411 = vmatmul.msk.f32.gmra.mxu0 %vm1343_vm12, %v2847_v24  ;;  %v6416_v24 = vld [vmem:[%s10426_s11 + $0x18] sm:$0xff] }
 0xc7c   : > { %3224 = vmatpush.msra.mxu0 %v7964_v36 }
 0xc7e   : > { %3225 = vmatpush.msra.mxu0 %v7973_v38 }
 0xc94   : > { %v2601_v29 = vpop.xlane.xlu1 %2600 }
 0xc95   : > { %7038 = vrcp.f32 %v2601_v29 }
 0xc97   : > { %v2836_v26 = vpop.xlane.xlu0 %2835 }
 0xc9a   : > { %v2604_v44 = vpop.xlane.xlu2 %2603 }
 0xc9b   : > { %v7039_v50 = vpop.eup %7038  ;;  %7040 = vrcp.f32 %v2604_v44 }
 0xc9c   : > { %v2830_v23 = vpop.xlane.xlu1 %2829  ;;  %v2621_v25 = vmul.f32 %v7039_v50, %v8333_v58 }
 0xc9d   : > { %7042 = vrcp.f32 %v2830_v23 }
 0xc9e   : > { %6393 = vmatmul.msk.f32.gmra.mxu1 %vm1343_vm12, %v2621_v25  ;;  %7044 = vrcp.f32 %v2607_v27 }
 0xca1   : > { %v7041_v34 = vpop.eup %7040 }
 0xca2   : > { %v2622_v36 = vmul.f32 %v7041_v34, %v8343_v41  ;;  %v2610_v8 = vpop.xlane.xlu2 %2609 }
 0xca3   : > { %v7043_v14 = vpop.eup %7042 }
 0xca4   : > { %v2833_v53 = vpop.xlane.xlu1 %2832  ;;  %v2848_v38 = vmul.f32 %v7043_v14, %v8345_v49  ;;  %v7045_v58 = vpop.eup %7044 }
 0xca5   : > { %7046 = vrcp.f32 %v2833_v53  ;;  %v2623_v59 = vmul.f32 %v7045_v58, %v8325_v40 }
 0xca6   : > { %6394 = vmatmul.msk.f32.gmra.mxu1 %vm1343_vm12, %v2622_v36  ;;  %6412 = vmatmul.msk.f32.gmra.mxu0 %vm1343_vm12, %v2848_v38  ;;  %7048 = vrcp.f32 %v2836_v26 }
 0xca7   : > { %7050 = vrcp.f32 %v2610_v8 }
 0xcaa   : > { %v2839_v41 = vpop.xlane.xlu2 %2838 }
 0xcab   : > { %v7047_v57 = vpop.eup %7046  ;;  %7052 = vrcp.f32 %v2839_v41 }
 0xcac   : > { %v2849_v51 = vmul.f32 %v7047_v57, %v8356_v16  ;;  %v7049_v49 = vpop.eup %7048  ;;  %v2613_v19 = vpop.xlane.xlu1 %2612 }
 0xcad   : > { %v7051_v28 = vpop.eup %7050  ;;  %7054 = vrcp.f32 %v2613_v19  ;;  %v2850_v43 = vmul.f32 %v7049_v49, %v8339_v46 }
 0xcae   : > { %6395 = vmatmul.msk.f32.gmra.mxu1 %vm1343_vm12, %v2623_v59  ;;  %6413 = vmatmul.msk.f32.gmra.mxu0 %vm1343_vm12, %v2849_v51  ;;  %v2624_v17 = vmul.f32 %v7051_v28, %v8354_v20 }
 0xcaf   : > { %v2453_v47 = vpop.f32.mrf.mxu0 }
 0xcb1   : > { %v7053_v40 = vpop.eup %7052 }
 0xcb2   : > { %v2851_v18 = vmul.f32 %v7053_v40, %v8364_v2  ;;  %v6418_v2 = vld [vmem:[%s10426_s11 + $0x28] sm:$0xff] }
 0xcb3   : > { %v7055_v16 = vpop.eup %7054  ;;  %3018 = vmatpush.msra.mxu2 %v6418_v2  ;;  %v6439_v2 = vld [vmem:[%s10430_s15 + $0x58] sm:$0xff] }
 0xcb4   : > { %v2625_v55 = vmul.f32 %v7055_v16, %v8366_v60  ;;  %v6428_v16 = vld [vmem:[%s10428_s13 + $0x28] sm:$0xff] }
 0xcb5   : > { %3019 = vmatpush.msra.mxu2 %v6417_v15  ;;  %3097 = vmatpush.msrb.mxu1 %v6428_v16 }
 0xcb6   : > { %6396 = vmatmul.msk.f32.gmra.mxu1 %vm1343_vm12, %v2624_v17  ;;  %6414 = vmatmul.msk.f32.gmra.mxu0 %vm1343_vm12, %v2850_v43 }
 0xcb7   : > { %v2456_v45 = vpop.f32.mrf.mxu0  ;;  %3020 = vmatpush.msra.mxu2 %v6416_v24 }
 0xcbe   : > { %6397 = vmatmul.msk.f32.gmra.mxu1 %vm1343_vm12, %v2625_v55  ;;  %6415 = vmatmul.msk.f32.gmra.mxu0 %vm1343_vm12, %v2851_v18  ;;  %v6426_v55 = vld [vmem:[%s10428_s13 + $0x18] sm:$0xff]  ;;  %v6939_v18 = vld [vmem:[%s10427_s12 + $0x1] ss:$0 sm:$0xff] }
 0xcbf   : > { %v2459_v46 = vpop.f32.mrf.mxu0 }
 0xcc7   : > { %v2679_v35 = vpop.f32.mrf.mxu1 }
 0xcc8   : > { %2929 = vrot.lane.b32.xlu0 %v2679_v35, %s10542_s23 }
 0xcd8   : > { %v2462_v20 = vpop.f32.mrf.mxu0 }
 0xce0   : > { %v2465_v39 = vpop.f32.mrf.mxu0 }
 0xce8   : > { %v2468_v48 = vpop.f32.mrf.mxu0 }
 0xcf0   : > { %v2905_v4 = vpop.f32.mrf.mxu0 }
 0xcf1   : > { %2953 = vrot.lane.b32.xlu1 %v2905_v4, %s10531_s2  ;;  %v6443_v4 = vld [vmem:[%s10430_s15 + $0x78] sm:$0xff] }
 0xcf2   : > { %3165 = vmatpush.msra.mxu3 %v6443_v4 }
 0xcf8   : > { %v2908_v13 = vpop.f32.mrf.mxu0 }
 0xcf9   : > { %2955 = vrot.lane.b32.xlu0 %v2908_v13, %s10531_s2  ;;  %v6442_v13 = vld [vmem:[%s10430_s15 + $0x70] sm:$0xff] }
 0xcfa   : > { %3166 = vmatpush.msra.mxu3 %v6442_v13 }
 0xcfc   : > { %3167 = vmatpush.msra.mxu3 %v6441_v62 }
 0xd1b   : > { %v2682_v60 = vpop.f32.mrf.mxu1 }
 0xd1c   : > { %2931 = vrot.lane.b32.xlu2 %v2682_v60, %s10542_s23 }
 0xd23   : > { %v2685_v5 = vpop.f32.mrf.mxu1  ;;  %v2911_v21 = vpop.f32.mrf.mxu0 }
 0xd24   : > { %2957 = vrot.lane.b32.xlu2 %v2911_v21, %s10531_s2  ;;  %2933 = vrot.lane.b32.xlu1 %v2685_v5, %s10542_s23 }
 0xd2b   : > { %v2688_v54 = vpop.f32.mrf.mxu1  ;;  %v2914_v56 = vpop.f32.mrf.mxu0 }
 0xd2c   : > { %2959 = vrot.lane.b32.xlu1 %v2914_v56, %s10531_s2  ;;  %2935 = vrot.lane.b32.xlu0 %v2688_v54, %s10542_s23 }
 0xd33   : > { %v2691_v33 = vpop.f32.mrf.mxu1  ;;  %v2917_v52 = vpop.f32.mrf.mxu0 }
 0xd34   : > { %2961 = vrot.lane.b32.xlu0 %v2917_v52, %s10531_s2  ;;  %2937 = vrot.lane.b32.xlu2 %v2691_v33, %s10542_s23 }
 0xd3a   : > { %v2930_v29 = vpop.permute.xlu0 %2929 }
 0xd3b   : > { %v2694_v42 = vpop.f32.mrf.mxu1  ;;  %v2920_v37 = vpop.f32.mrf.mxu0  ;;  %v2971_v44 = vsel %vm1469_vm14, %v2453_v47, %v2930_v29  ;;  %v6427_v47 = vld [vmem:[%s10428_s13 + $0x20] sm:$0xff] }
 0xd3c   : > { %2963 = vrot.lane.b32.xlu2 %v2920_v37, %s10531_s2  ;;  %2939 = vrot.lane.b32.xlu1 %v2694_v42, %s10542_s23 }
 0xd3d   : > { %3098 = vmatpush.msrb.mxu1 %v6427_v47 }
 0xd3f   : > { %3099 = vmatpush.msrb.mxu1 %v6426_v55 }
 0xd63   : > { %v2954_v50 = vpop.permute.xlu1 %2953 }
 0xd64   : > { %v2977_v23 = vsel %vm1112_vm9, %v2971_v44, %v2954_v50  ;;  %v6462_v44 = vld [vmem:[%s10526_s29 + $0x88] sm:$0xff]  ;;  %v6461_v50 = vld [vmem:[%s10526_s29 + $0x80] sm:$0xff] }
 0xd65   : > { %6419 = vmatmul.msk.f32.vlgmr.msra.gmra.mxu2 %vm1383_vm13, %v2977_v23  ;;  %v6460_v23 = vld [vmem:[%s10526_s29 + $0x78] sm:$0xff] }
 0xd66   : > { %3308 = vmatpush.msrb.mxu2 %v6462_v44 }
 0xd68   : > { %3309 = vmatpush.msrb.mxu2 %v6461_v50 }
 0xd6a   : > { %3310 = vmatpush.msrb.mxu2 %v6460_v23 }
 0xd6b   : > { %v2956_v27 = vpop.permute.xlu0 %2955 }
 0xd76   : > { %v2932_v25 = vpop.permute.xlu2 %2931 }
 0xd77   : > { %v2972_v34 = vsel %vm1469_vm14, %v2456_v45, %v2932_v25 }
 0xd78   : > { %v2978_v14 = vsel %vm1112_vm9, %v2972_v34, %v2956_v27  ;;  %v6459_v34 = vld [vmem:[%s10526_s29 + $0x70] sm:$0xff] }
 0xd79   : > { %6420 = vmatmul.msk.f32.gmra.mxu2 %vm1383_vm13, %v2978_v14 }
 0xd7a   : > { %3311 = vmatpush.msrb.mxu2 %v6459_v34 }
 0xd7e   : > { %v2958_v36 = vpop.permute.xlu2 %2957 }
 0xd8e   : > { %v2938_v51 = vpop.permute.xlu2 %2937 }
 0xd8f   : > { %v2975_v41 = vsel %vm1469_vm14, %v2465_v39, %v2938_v51 }
 0xd96   : > { %v2934_v53 = vpop.permute.xlu1 %2933  ;;  %v2964_v17 = vpop.permute.xlu2 %2963 }
 0xd97   : > { %v2973_v38 = vsel %vm1469_vm14, %v2459_v46, %v2934_v53 }
 0xd98   : > { %v2979_v8 = vsel %vm1112_vm9, %v2973_v38, %v2958_v36 }
 0xd99   : > { %6421 = vmatmul.msk.f32.gmra.mxu2 %vm1383_vm13, %v2979_v8 }
 0xd9e   : > { %v2960_v26 = vpop.permute.xlu1 %2959  ;;  %v2936_v58 = vpop.permute.xlu0 %2935 }
 0xd9f   : > { %v2974_v57 = vsel %vm1469_vm14, %v2462_v20, %v2936_v58 }
 0xda0   : > { %v2980_v59 = vsel %vm1112_vm9, %v2974_v57, %v2960_v26 }
 0xda1   : > { %6422 = vmatmul.msk.f32.gmra.mxu2 %vm1383_vm13, %v2980_v59 }
 0xda6   : > { %v2962_v49 = vpop.permute.xlu0 %2961 }
 0xda7   : > { %v2981_v19 = vsel %vm1112_vm9, %v2975_v41, %v2962_v49  ;;  %v6458_v41 = vld [vmem:[%s10526_s29 + $0x68] sm:$0xff]  ;;  %v6457_v49 = vld [vmem:[%s10526_s29 + $0x60] sm:$0xff] }
 0xda8   : > { %3312 = vmatpush.msrb.mxu2 %v6458_v41 }
 0xda9   : > { %6423 = vmatmul.msk.f32.gmra.mxu2 %vm1383_vm13, %v2981_v19  ;;  %v6941_v19 = vld [vmem:[%s10532_s16 + $0x1] ss:$0 sm:$0xff]  ;;  %s10590_s16 = sld [smem:[#allocation34_spill]] }
 0xdaa   : > { %3313 = vmatpush.msrb.mxu2 %v6457_v49 }
 0xdae   : > { %v2940_v28 = vpop.permute.xlu1 %2939 }
 0xdaf   : > { %v2976_v43 = vsel %vm1469_vm14, %v2468_v48, %v2940_v28 }
 0xdb0   : > { %v2982_v40 = vsel %vm1112_vm9, %v2976_v43, %v2964_v17 }
 0xdb1   : > { %6424 = vmatmul.msk.f32.gmra.mxu2 %vm1383_vm13, %v2982_v40 }
 0xde8   : > { %v3022_v45 = vpop.f32.mrf.mxu2 }
 0xde9   : > { %v3040_v35 = vadd.f32 %v3022_v45, %v2188_v22 }
 0xdeb   : > { %v3051_v46 = vadd.f32 %v6939_v18, %v3040_v35 }
 0xded   : > { %6430 = vmatmul.msk.f32.vlgmr.msrb.gmra.mxu1 %vm1383_vm13, %v3051_v46 }
 0xdfc   : > { %v3025_v20 = vpop.f32.mrf.mxu2 }
 0xdfd   : > { %v3041_v39 = vadd.f32 %v3025_v20, %v2189_v1  ;;  %v6440_v1 = vld [vmem:[%s10430_s15 + $0x60] sm:$0xff] }
 0xdfe   : > { %3168 = vmatpush.msra.mxu3 %v6440_v1  ;;  %v3280_v1 = vld [vmem:[%s10543_s19 + $0x8] sm:$0xff] }
 0xdff   : > { %v3052_v48 = vadd.f32 %v6939_v18, %v3041_v39 }
 0xe00   : > { %3169 = vmatpush.msra.mxu3 %v6439_v2  ;;  %v3282_v2 = vld [vmem:[%s10543_s19 + $0x18] sm:$0xff] }
 0xe01   : > { %6431 = vmatmul.msk.f32.gmra.mxu1 %vm1383_vm13, %v3052_v48 }
 0xe02   : > { %3170 = vmatpush.msra.mxu3 %v6438_v10  ;;  %v6483_v10 = vld [vmem:[%s10425_s10 + $0x38] sm:$0xff] }
 0xe1c   : > { %v3028_v22 = vpop.f32.mrf.mxu2 }
 0xe1d   : > { %v3042_v0 = vadd.f32 %v3028_v22, %v2190_v3 }
 0xe1f   : > { %v3053_v60 = vadd.f32 %v6939_v18, %v3042_v0  ;;  %v3279_v0 = vld [vmem:[%s10543_s19] sm:$0xff] }
 0xe21   : > { %6432 = vmatmul.msk.f32.gmra.mxu1 %vm1383_vm13, %v3053_v60  ;;  %v3281_v60 = vld [vmem:[%s10543_s19 + $0x10] sm:$0xff] }
 0xe24   : > { %v3031_v15 = vpop.f32.mrf.mxu2 }
 0xe25   : > { %v3043_v5 = vadd.f32 %v3031_v15, %v2191_v11  ;;  %v6437_v11 = vld [vmem:[%s10430_s15 + $0x48] sm:$0xff]  ;;  %v3283_v15 = vld [vmem:[%s10543_s19 + $0x20] sm:$0xff] }
 0xe26   : > { %3171 = vmatpush.msra.mxu3 %v6437_v11  ;;  %v6482_v11 = vld [vmem:[%s10425_s10 + $0x30] sm:$0xff] }
 0xe27   : > { %v3054_v63 = vadd.f32 %v6939_v18, %v3043_v5  ;;  %v3284_v5 = vld [vmem:[%s10543_s19 + $0x28] sm:$0xff] }
 0xe28   : > { %3172 = vmatpush.msra.mxu3 %v6436_v6  ;;  %v6942_v6 = vld [vmem:[%s10424_s9 + $0x2] ss:$0 sm:$0xff] }
 0xe29   : > { %6433 = vmatmul.msk.f32.gmra.mxu1 %vm1383_vm13, %v3054_v63  ;;  %v3285_v63 = vld [vmem:[%s10543_s19 + $0x30] sm:$0xff] }
 0xe2c   : > { %v3034_v3 = vpop.f32.mrf.mxu2 }
 0xe2d   : > { %v3044_v21 = vadd.f32 %v3034_v3, %v2192_v7  ;;  %v6940_v7 = vld [vmem:[%s10429_s14 + $0x1] ss:$0 sm:$0xff]  ;;  %v3286_v3 = vld [vmem:[%s10543_s19 + $0x38] sm:$0xff] }
 0xe2f   : > { %v3055_v54 = vadd.f32 %v6939_v18, %v3044_v21  ;;  %v3287_v21 = vld [vmem:[%s10543_s19 + $0x40] sm:$0xff] }
 0xe31   : > { %6434 = vmatmul.msk.f32.gmra.mxu1 %vm1383_vm13, %v3055_v54  ;;  %v3288_v54 = vld [vmem:[%s10543_s19 + $0x48] sm:$0xff] }
 0xe34   : > { %v3037_v56 = vpop.f32.mrf.mxu2 }
 0xe35   : > { %v3045_v33 = vadd.f32 %v3037_v56, %v2193_v12  ;;  %v3289_v56 = vld [vmem:[%s10543_s19 + $0x50] sm:$0xff] }
 0xe37   : > { %v3056_v52 = vadd.f32 %v6939_v18, %v3045_v33  ;;  %v3290_v33 = vld [vmem:[%s10543_s19 + $0x58] sm:$0xff] }
 0xe39   : > { %6435 = vmatmul.msk.f32.gmra.mxu1 %vm1383_vm13, %v3056_v52  ;;  %v6484_v52 = vld [vmem:[%s10425_s10 + $0x40] sm:$0xff] }
 0xe3a   : > { %3492 = vmatpush.msrb.mxu3 %v6484_v52 }
 0xe3c   : > { %3493 = vmatpush.msrb.mxu3 %v6483_v10 }
 0xe3e   : > { %3494 = vmatpush.msrb.mxu3 %v6482_v11 }
 0xe6a   : > { %v3101_v9 = vpop.f32.mrf.mxu1 }
 0xe6b   : > { %v3102_v12 = vadd.f32 %v6940_v7, %v3101_v9 }
 0xe6d   : > { %v3119_v42 = vmax.f32 %v3102_v12, 0.0 }
 0xe6f   : > { %6445 = vmatmul.msk.f32.vlgmr.msra.gmra.mxu3 %vm1983_vm15, %v3119_v42 }
 0xe7e   : > { %v3104_v37 = vpop.f32.mrf.mxu1 }
 0xe7f   : > { %v3105_v24 = vadd.f32 %v6940_v7, %v3104_v37 }
 0xe81   : > { %v3120_v29 = vmax.f32 %v3105_v24, 0.0 }
 0xe83   : > { %6446 = vmatmul.msk.f32.gmra.mxu3 %vm1983_vm15, %v3120_v29 }
 0xe9e   : > { %v3107_v25 = vpop.f32.mrf.mxu1 }
 0xe9f   : > { %v3108_v27 = vadd.f32 %v6940_v7, %v3107_v25 }
 0xea1   : > { %v3121_v14 = vmax.f32 %v3108_v27, 0.0 }
 0xea3   : > { %6447 = vmatmul.msk.f32.gmra.mxu3 %vm1983_vm15, %v3121_v14 }
 0xea6   : > { %v3110_v53 = vpop.f32.mrf.mxu1 }
 0xea7   : > { %v3111_v36 = vadd.f32 %v6940_v7, %v3110_v53 }
 0xea9   : > { %v3122_v38 = vmax.f32 %v3111_v36, 0.0 }
 0xeab   : > { %6448 = vmatmul.msk.f32.gmra.mxu3 %vm1983_vm15, %v3122_v38 }
 0xeae   : > { %v3113_v8 = vpop.f32.mrf.mxu1 }
 0xeaf   : > { %v3114_v26 = vadd.f32 %v6940_v7, %v3113_v8 }
 0xeb1   : > { %v3123_v58 = vmax.f32 %v3114_v26, 0.0 }
 0xeb3   : > { %6449 = vmatmul.msk.f32.gmra.mxu3 %vm1983_vm15, %v3123_v58 }
 0xeb6   : > { %v3116_v57 = vpop.f32.mrf.mxu1 }
 0xeb7   : > { %v3117_v59 = vadd.f32 %v6940_v7, %v3116_v57 }
 0xeb9   : > { %v3124_v51 = vmax.f32 %v3117_v59, 0.0 }
 0xebb   : > { %6450 = vmatmul.msk.f32.gmra.mxu3 %vm1983_vm15, %v3124_v51 }
 0xef2   : > { %v3174_v28 = vpop.f32.mrf.mxu3 }
 0xef3   : > { %v3175_v17 = vadd.f32 %v6941_v19, %v3174_v28 }
 0xef5   : > { %6451 = vmatmul.msk.f32.vlgmr.msra.gmra.mxu0 %vm1343_vm12, %v3175_v17  ;;  %6463 = vmatmul.msk.f32.vlgmr.msrb.gmra.mxu2 %vm1343_vm12, %v3175_v17 }
 0xf06   : > { %v3177_v43 = vpop.f32.mrf.mxu3 }
 0xf07   : > { %v3178_v40 = vadd.f32 %v6941_v19, %v3177_v43 }
 0xf09   : > { %6452 = vmatmul.msk.f32.gmra.mxu0 %vm1343_vm12, %v3178_v40  ;;  %6464 = vmatmul.msk.f32.gmra.mxu2 %vm1343_vm12, %v3178_v40 }
 0xf26   : > { %v3180_v16 = vpop.f32.mrf.mxu3 }
 0xf27   : > { %v3181_v47 = vadd.f32 %v6941_v19, %v3180_v16 }
 0xf29   : > { %6453 = vmatmul.msk.f32.gmra.mxu0 %vm1343_vm12, %v3181_v47  ;;  %6465 = vmatmul.msk.f32.gmra.mxu2 %vm1343_vm12, %v3181_v47 }
 0xf2e   : > { %v3183_v55 = vpop.f32.mrf.mxu3 }
 0xf2f   : > { %v3184_v18 = vadd.f32 %v6941_v19, %v3183_v55 }
 0xf31   : > { %6454 = vmatmul.msk.f32.gmra.mxu0 %vm1343_vm12, %v3184_v18  ;;  %6466 = vmatmul.msk.f32.gmra.mxu2 %vm1343_vm12, %v3184_v18 }
 0xf36   : > { %v3186_v45 = vpop.f32.mrf.mxu3 }
 0xf37   : > { %v3187_v35 = vadd.f32 %v6941_v19, %v3186_v45 }
 0xf39   : > { %6455 = vmatmul.msk.f32.gmra.mxu0 %vm1343_vm12, %v3187_v35  ;;  %6467 = vmatmul.msk.f32.gmra.mxu2 %vm1343_vm12, %v3187_v35 }
 0xf3e   : > { %v3189_v46 = vpop.f32.mrf.mxu3 }
 0xf3f   : > { %v3190_v20 = vadd.f32 %v6941_v19, %v3189_v46 }
 0xf41   : > { %6456 = vmatmul.msk.f32.gmra.mxu0 %vm1343_vm12, %v3190_v20  ;;  %6468 = vmatmul.msk.f32.gmra.mxu2 %vm1343_vm12, %v3190_v20 }
 0xf78   : > { %v3315_v39 = vpop.f32.mrf.mxu2 }
 0xf8c   : > { %v3318_v48 = vpop.f32.mrf.mxu2 }
 0xfac   : > { %v3321_v4 = vpop.f32.mrf.mxu2 }
 0xfb4   : > { %v3324_v13 = vpop.f32.mrf.mxu2 }
 0xfbc   : > { %v3327_v62 = vpop.f32.mrf.mxu2 }
 0xfc4   : > { %v3330_v22 = vpop.f32.mrf.mxu2 }
 0xfc5   : > { %3384 = vmatpush.msra.mxu1 %v3330_v22 }
 0xfc7   : > { %3385 = vmatpush.msra.mxu1 %v3327_v62 }
 0xfc9   : > { %3386 = vmatpush.msra.mxu1 %v3324_v13 }
 0xfcb   : > { %3387 = vmatpush.msra.mxu1 %v3321_v4 }
 0xfcd   : > { %3388 = vmatpush.msra.mxu1 %v3318_v48 }
 0xfcf   : > { %3389 = vmatpush.msra.mxu1 %v3315_v39 }
 0xfd0   : > { %6470 = vmatmul.msk.f32.vlgmr.msra.gmra.mxu1 %vm1343_vm12, %v3279_v0 }
 0xfd8   : > { %6471 = vmatmul.msk.f32.gmra.mxu1 %vm1343_vm12, %v3280_v1 }
 0xfe0   : > { %6472 = vmatmul.msk.f32.gmra.mxu1 %vm1343_vm12, %v3281_v60 }
 0xfe8   : > { %6473 = vmatmul.msk.f32.gmra.mxu1 %vm1343_vm12, %v3282_v2 }
 0xff0   : > { %6474 = vmatmul.msk.f32.gmra.mxu1 %vm1343_vm12, %v3283_v15 }
 0xff8   : > { %6475 = vmatmul.msk.f32.gmra.mxu1 %vm1343_vm12, %v3284_v5 }
0x1000   : > { %6476 = vmatmul.msk.f32.gmra.mxu1 %vm1343_vm12, %v3285_v63 }
0x1008   : > { %6477 = vmatmul.msk.f32.gmra.mxu1 %vm1343_vm12, %v3286_v3 }
0x1010   : > { %6478 = vmatmul.msk.f32.gmra.mxu1 %vm1343_vm12, %v3287_v21 }
0x1018   : > { %6479 = vmatmul.msk.f32.gmra.mxu1 %vm1343_vm12, %v3288_v54 }
0x1020   : > { %6480 = vmatmul.msk.f32.gmra.mxu1 %vm1343_vm12, %v3289_v56 }
0x1028   : > { %6481 = vmatmul.msk.f32.gmra.mxu1 %vm1343_vm12, %v3290_v33 }
0x104d   : > { %v3391_v7 = vpop.f32.mrf.mxu1 }
0x104e   : > { %v8607_v9 = vadd.f32 %v6942_v6, %v3391_v7 }
0x1050   : > { %10544 = vst [vmem:[#allocation8_spill] sm:$0xff] %v8607_v9  ;;  %v10487_v12 = vmax.f32 %v8607_v9, 0.0 }
0x1052   : > { %6485 = vmatmul.msk.f32.vlgmr.msrb.gmra.mxu3 %vm1383_vm13, %v10487_v12 }
0x1055   : > { %v3394_v42 = vpop.f32.mrf.mxu1 }
0x1056   : > { %v8613_v37 = vadd.f32 %v6942_v6, %v3394_v42 }
0x1058   : > { %10545 = vst [vmem:[#allocation9_spill] sm:$0xff] %v8613_v37  ;;  %v10486_v24 = vmax.f32 %v8613_v37, 0.0 }
0x105a   : > { %6486 = vmatmul.msk.f32.gmra.mxu3 %vm1383_vm13, %v10486_v24 }
0x105d   : > { %v3397_v29 = vpop.f32.mrf.mxu1 }
0x105e   : > { %v8619_v44 = vadd.f32 %v6942_v6, %v3397_v29 }
0x1060   : > { %10546 = vst [vmem:[#allocation10_spill] sm:$0xff] %v8619_v44  ;;  %v10485_v50 = vmax.f32 %v8619_v44, 0.0 }
0x1062   : > { %6487 = vmatmul.msk.f32.gmra.mxu3 %vm1383_vm13, %v10485_v50 }
0x1065   : > { %v3400_v23 = vpop.f32.mrf.mxu1 }
0x1066   : > { %v8625_v25 = vadd.f32 %v6942_v6, %v3400_v23 }
0x1068   : > { %10547 = vst [vmem:[#allocation11_spill] sm:$0xff] %v8625_v25  ;;  %v10484_v27 = vmax.f32 %v8625_v25, 0.0 }
0x106a   : > { %6488 = vmatmul.msk.f32.gmra.mxu3 %vm1383_vm13, %v10484_v27 }
0x106d   : > { %v3403_v34 = vpop.f32.mrf.mxu1 }
0x106e   : > { %v8631_v14 = vadd.f32 %v6942_v6, %v3403_v34 }
0x1070   : > { %10548 = vst [vmem:[#allocation12_spill] sm:$0xff] %v8631_v14  ;;  %v10483_v53 = vmax.f32 %v8631_v14, 0.0 }
0x1072   : > { %6489 = vmatmul.msk.f32.gmra.mxu3 %vm1383_vm13, %v10483_v53 }
0x1075   : > { %v3406_v36 = vpop.f32.mrf.mxu1 }
0x1076   : > { %v8637_v38 = vadd.f32 %v6942_v6, %v3406_v36 }
0x1078   : > { %10549 = vst [vmem:[#allocation13_spill] sm:$0xff] %v8637_v38  ;;  %v10482_v8 = vmax.f32 %v8637_v38, 0.0 }
0x107a   : > { %6490 = vmatmul.msk.f32.gmra.mxu3 %vm1383_vm13, %v10482_v8 }
0x107d   : > { %v3409_v26 = vpop.f32.mrf.mxu1 }
0x107e   : > { %v8643_v58 = vadd.f32 %v6942_v6, %v3409_v26 }
0x1080   : > { %10550 = vst [vmem:[#allocation14_spill] sm:$0xff] %v8643_v58  ;;  %v10481_v57 = vmax.f32 %v8643_v58, 0.0 }
0x1082   : > { %6491 = vmatmul.msk.f32.gmra.mxu3 %vm1383_vm13, %v10481_v57 }
0x1085   : > { %v3412_v59 = vpop.f32.mrf.mxu1 }
0x1086   : > { %v8649_v51 = vadd.f32 %v6942_v6, %v3412_v59 }
0x1088   : > { %10551 = vst [vmem:[#allocation15_spill] sm:$0xff] %v8649_v51  ;;  %v10480_v41 = vmax.f32 %v8649_v51, 0.0 }
0x108a   : > { %6492 = vmatmul.msk.f32.gmra.mxu3 %vm1383_vm13, %v10480_v41 }
0x108d   : > { %v3415_v49 = vpop.f32.mrf.mxu1 }
0x108e   : > { %v8655_v19 = vadd.f32 %v6942_v6, %v3415_v49 }
0x1090   : > { %10552 = vst [vmem:[#allocation16_spill] sm:$0xff] %v8655_v19  ;;  %v10479_v28 = vmax.f32 %v8655_v19, 0.0 }
0x1092   : > { %6493 = vmatmul.msk.f32.gmra.mxu3 %vm1383_vm13, %v10479_v28 }
0x1095   : > { %v3418_v17 = vpop.f32.mrf.mxu1 }
0x1096   : > { %v8661_v43 = vadd.f32 %v6942_v6, %v3418_v17 }
0x1098   : > { %10553 = vst [vmem:[#allocation17_spill] sm:$0xff] %v8661_v43  ;;  %v10478_v40 = vmax.f32 %v8661_v43, 0.0 }
0x109a   : > { %6494 = vmatmul.msk.f32.gmra.mxu3 %vm1383_vm13, %v10478_v40 }
0x109d   : > { %v3421_v16 = vpop.f32.mrf.mxu1 }
0x109e   : > { %v8667_v47 = vadd.f32 %v6942_v6, %v3421_v16 }
0x10a0   : > { %10554 = vst [vmem:[#allocation18_spill] sm:$0xff] %v8667_v47  ;;  %v10477_v55 = vmax.f32 %v8667_v47, 0.0 }
0x10a2   : > { %6495 = vmatmul.msk.f32.gmra.mxu3 %vm1383_vm13, %v10477_v55 }
0x10a5   : > { %v3424_v18 = vpop.f32.mrf.mxu1 }
0x10a6   : > { %v8673_v45 = vadd.f32 %v6942_v6, %v3424_v18 }
0x10a8   : > { %10555 = vst [vmem:[#allocation19_spill] sm:$0xff] %v8673_v45  ;;  %v10476_v35 = vmax.f32 %v8673_v45, 0.0 }
0x10aa   : > { %6496 = vmatmul.msk.f32.gmra.mxu3 %vm1383_vm13, %v10476_v35 }
0x10d5   : > { %v8679_v46 = vpop.f32.mrf.mxu3 }
0x10d6   : > { %3544 = vrot.lane.b32.xlu2 %v8679_v46, %s10534_s4 }
0x10dd   : > { %v8683_v20 = vpop.f32.mrf.mxu3 }
0x10de   : > { %3546 = vrot.lane.b32.xlu1 %v8683_v20, %s10534_s4  ;;  %v8859_v49 = vpack.i.bf16 %v8679_v46, %v8683_v20 }
0x10e0   : > { %10556 = vst [vmem:[#allocation20_spill] sm:$0xff] %v8859_v49 }
0x10e5   : > { %v8687_v39 = vpop.f32.mrf.mxu3 }
0x10e6   : > { %3548 = vrot.lane.b32.xlu0 %v8687_v39, %s10534_s4 }
0x10ed   : > { %v8691_v48 = vpop.f32.mrf.mxu3 }
0x10ee   : > { %3550 = vrot.lane.b32.xlu2 %v8691_v48, %s10534_s4  ;;  %v8841_v23 = vpack.i.bf16 %v8687_v39, %v8691_v48 }
0x10f5   : > { %v8695_v4 = vpop.f32.mrf.mxu3 }
0x10f6   : > { %3552 = vrot.lane.b32.xlu1 %v8695_v4, %s10534_s4 }
0x10fd   : > { %v8699_v13 = vpop.f32.mrf.mxu3 }
0x10fe   : > { %3554 = vrot.lane.b32.xlu0 %v8699_v13, %s10534_s4  ;;  %v8897_v27 = vpack.i.bf16 %v8695_v4, %v8699_v13 }
0x1105   : > { %v8703_v62 = vpop.f32.mrf.mxu3 }
0x1106   : > { %3556 = vrot.lane.b32.xlu2 %v8703_v62, %s10534_s4 }
0x110d   : > { %v8707_v22 = vpop.f32.mrf.mxu3 }
0x110e   : > { %4395 = vrot.lane.b32.xlu0 %v8707_v22, %s10535_s7  ;;  %3977 = vrot.lane.b32.xlu2 %v8707_v22, %s10536_s6  ;;  %v8883_v41 = vpack.i.bf16 %v8703_v62, %v8707_v22 }
0x110f   : > { %3558 = vrot.lane.b32.xlu1 %v8707_v22, %s10534_s4 }
0x1115   : > { %v8715_v0 = vpop.f32.mrf.mxu3 }
0x1116   : > { %3560 = vrot.lane.b32.xlu0 %v8715_v0, %s10534_s4 }
0x1117   : > { %4397 = vrot.lane.b32.xlu1 %v8715_v0, %s10535_s7 }
0x111d   : > { %v8721_v1 = vpop.f32.mrf.mxu3 }
0x111e   : > { %3979 = vrot.lane.b32.xlu0 %v8715_v0, %s10536_s6  ;;  %3562 = vrot.lane.b32.xlu2 %v8721_v1, %s10534_s4  ;;  %v6839_v35 = vpack.i.bf16 %v8715_v0, %v8721_v1 }
0x111f   : > { %3981 = vrot.lane.b32.xlu1 %v8721_v1, %s10536_s6 }
0x1125   : > { %v8729_v60 = vpop.f32.mrf.mxu3 }
0x1126   : > { %3973 = vrot.lane.b32.xlu0 %v8699_v13, %s10536_s6  ;;  %4399 = vrot.lane.b32.xlu2 %v8721_v1, %s10535_s7 }
0x1127   : > { %3564 = vrot.lane.b32.xlu1 %v8729_v60, %s10534_s4 }
0x112d   : > { %v8767_v2 = vpop.f32.mrf.mxu3 }
0x112e   : > { %4389 = vrot.lane.b32.xlu0 %v8695_v4, %s10535_s7  ;;  %4393 = vrot.lane.b32.xlu2 %v8703_v62, %s10535_s7  ;;  %v6879_v59 = vpack.i.bf16 %v8729_v60, %v8767_v2 }
0x112f   : > { %3975 = vrot.lane.b32.xlu1 %v8703_v62, %s10536_s6 }
0x1130   : > { %v8769_v15 = vpop.permute.xlu2 %3544 }
0x1136   : > { %3967 = vrot.lane.b32.xlu0 %v8687_v39, %s10536_s6  ;;  %3971 = vrot.lane.b32.xlu2 %v8695_v4, %s10536_s6 }
0x1137   : > { %4391 = vrot.lane.b32.xlu1 %v8699_v13, %s10535_s7 }
0x113e   : > { %4383 = vrot.lane.b32.xlu0 %v8683_v20, %s10535_s7  ;;  %4387 = vrot.lane.b32.xlu2 %v8691_v48, %s10535_s7 }
0x113f   : > { %3969 = vrot.lane.b32.xlu1 %v8691_v48, %s10536_s6 }
0x1146   : > { %3939 = vrot.lane.b32.xlu0 %v8679_v46, %s10537_s0  ;;  %3965 = vrot.lane.b32.xlu2 %v8683_v20, %s10536_s6 }
0x1147   : > { %4385 = vrot.lane.b32.xlu1 %v8687_v39, %s10535_s7 }
0x1148   : > { %v8777_v5 = vpop.permute.xlu2 %3550 }
0x114e   : > { %4381 = vrot.lane.b32.xlu2 %v8679_v46, %s10535_s7  ;;  %4401 = vrot.lane.b32.xlu0 %v8729_v60, %s10535_s7 }
0x114f   : > { %3963 = vrot.lane.b32.xlu1 %v8679_v46, %s10536_s6 }
0x1150   : > { %v8803_v54 = vpop.permute.xlu1 %3546 }
0x1156   : > { %3941 = vrot.lane.b32.xlu2 %v8683_v20, %s10537_s0  ;;  %3566 = vrot.lane.b32.xlu0 %v8767_v2, %s10534_s4 }
0x1157   : > { %4357 = vrot.lane.b32.xlu1 %v8679_v46, %s10528_s27 }
0x1158   : > { %v8799_v3 = vpop.permute.xlu0 %3548 }
0x115e   : > { %3983 = vrot.lane.b32.xlu2 %v8729_v60, %s10536_s6  ;;  %4359 = vrot.lane.b32.xlu0 %v8683_v20, %s10528_s27 }
0x115f   : > { %3943 = vrot.lane.b32.xlu1 %v8687_v39, %s10537_s0 }
0x1160   : > { %v8785_v63 = vpop.permute.xlu2 %3556 }
0x1166   : > { %4361 = vrot.lane.b32.xlu2 %v8687_v39, %s10528_s27  ;;  %3945 = vrot.lane.b32.xlu0 %v8691_v48, %s10537_s0 }
0x1167   : > { %4363 = vrot.lane.b32.xlu1 %v8691_v48, %s10528_s27 }
0x1168   : > { %v8801_v21 = vpop.permute.xlu2 %3977  ;;  %v8815_v52 = vpop.permute.xlu1 %3552 }
0x116e   : > { %3947 = vrot.lane.b32.xlu2 %v8695_v4, %s10537_s0  ;;  %4365 = vrot.lane.b32.xlu0 %v8695_v4, %s10528_s27 }
0x116f   : > { %3949 = vrot.lane.b32.xlu1 %v8699_v13, %s10537_s0 }
0x1170   : > { %v8811_v56 = vpop.permute.xlu0 %3554 }
0x1176   : > { %4367 = vrot.lane.b32.xlu2 %v8699_v13, %s10528_s27  ;;  %3951 = vrot.lane.b32.xlu0 %v8703_v62, %s10537_s0 }
0x1177   : > { %4369 = vrot.lane.b32.xlu1 %v8703_v62, %s10528_s27 }
0x1178   : > { %v8813_v33 = vpop.permute.xlu2 %3562 }
0x117e   : > { %3953 = vrot.lane.b32.xlu2 %v8707_v22, %s10537_s0  ;;  %4371 = vrot.lane.b32.xlu0 %v8707_v22, %s10528_s27 }
0x117f   : > { %3955 = vrot.lane.b32.xlu1 %v8715_v0, %s10537_s0 }
0x1180   : > { %v8823_v10 = vpop.permute.xlu0 %4395  ;;  %v8825_v11 = vpop.permute.xlu2 %4399 }
0x1181   : > { %v8827_v6 = vpop.permute.xlu1 %3558 }
0x1186   : > { %4373 = vrot.lane.b32.xlu2 %v8715_v0, %s10528_s27  ;;  %3957 = vrot.lane.b32.xlu0 %v8721_v1, %s10537_s0 }
0x1187   : > { %4403 = vrot.lane.b32.xlu1 %v8767_v2, %s10535_s7  ;;  %s7229_s7 = smov 125  }
0x1188   : > { %v3561_v7 = vpop.permute.xlu0 %3560  ;;  %v8835_v42 = vpop.permute.xlu2 %4393 }
0x1189   : > { %v8837_v29 = vpop.permute.xlu1 %4397 }
0x118e   : > { %4375 = vrot.lane.b32.xlu2 %v8721_v1, %s10528_s27  ;;  %3959 = vrot.lane.b32.xlu0 %v8729_v60, %s10537_s0 }
0x118f   : > { %6855 = vrot.lane.b32.xlu1 %v8841_v23, %s10529_s25 }
0x1190   : > { %v8849_v34 = vpop.permute.xlu0 %3979  ;;  %v8851_v36 = vpop.permute.xlu2 %3971 }
0x1191   : > { %v8853_v26 = vpop.permute.xlu1 %3981 }
0x1196   : > { %6880 = vrot.lane.b32.xlu2 %v6879_v59, %s10529_s25  ;;  %4377 = vrot.lane.b32.xlu0 %v8729_v60, %s10528_s27 }
0x1197   : > { %6860 = vrot.lane.b32.xlu1 %v8859_v49, %s10529_s25 }
0x1198   : > { %v8866_v17 = vpop.permute.xlu0 %3973  ;;  %v8868_v16 = vpop.permute.xlu2 %4387 }
0x1199   : > { %v3565_v18 = vpop.permute.xlu1 %3564 }
0x119e   : > { %6890 = vrot.lane.b32.xlu2 %v6879_v59, %s10530_s5  ;;  %6840 = vrot.lane.b32.xlu0 %v6839_v35, %s10529_s25 }
0x119f   : > { %6870 = vrot.lane.b32.xlu1 %v6839_v35, %s10530_s5 }
0x11a0   : > { %v8875_v55 = vpop.permute.xlu0 %4389  ;;  %v8877_v40 = vpop.permute.xlu2 %3965 }
0x11a1   : > { %v8879_v28 = vpop.permute.xlu1 %3975 }
0x11a6   : > { %6845 = vrot.lane.b32.xlu0 %v8883_v41, %s10529_s25 }
0x11a7   : > { %6875 = vrot.lane.b32.xlu1 %v8883_v41, %s10538_s1 }
0x11a8   : > { %v8889_v57 = vpop.permute.xlu0 %3967  ;;  %v8891_v8 = vpop.permute.xlu2 %4381 }
0x11a9   : > { %v8893_v53 = vpop.permute.xlu1 %4391 }
0x11ae   : > { %6850 = vrot.lane.b32.xlu0 %v8897_v27, %s10529_s25 }
0x11af   : > { %4379 = vrot.lane.b32.xlu1 %v8767_v2, %s10528_s27  ;;  %s10586_s27 = sld [smem:[#allocation30_spill]] }
0x11b0   : > { %v8903_v50 = vpop.permute.xlu0 %4383  ;;  %v8905_v24 = vpop.permute.xlu2 %3941 }
0x11b1   : > { %v8907_v12 = vpop.permute.xlu1 %3969 }
0x11b6   : > { %3985 = vrot.lane.b32.xlu0 %v8767_v2, %s10536_s6  ;;  %s7230_s6 = smov 119  }
0x11b7   : > { %6885 = vrot.lane.b32.xlu1 %v6879_v59, %s10538_s1 }
0x11b8   : > { %v8912_v32 = vpop.permute.xlu0 %3939  ;;  %v8914_v31 = vpop.permute.xlu2 %3983 }
0x11b9   : > { %v8916_v45 = vpop.permute.xlu1 %4385 }
0x11be   : > { %6865 = vrot.lane.b32.xlu0 %v6839_v35, %s10538_s1 }
0x11c0   : > { %v4402_v30 = vpop.permute.xlu0 %4401  ;;  %v8919_v47 = vpop.permute.xlu2 %4361 }
0x11c1   : > { %v8921_v43 = vpop.permute.xlu1 %3963 }
0x11c6   : > { %3961 = vrot.lane.b32.xlu0 %v8767_v2, %s10537_s0  ;;  %s7231_s0 = smov 116  }
0x11c8   : > { %v8925_v19 = vpop.permute.xlu2 %3947  ;;  %v3567_v51 = vpop.permute.xlu0 %3566 }
0x11c9   : > { %v8927_v59 = vpop.permute.xlu1 %4357  ;;  %6497 = vmatpush.xpose.msk.msrb.mxu0 %vm1469_vm14, %v3567_v51 }
0x11cd   : > { %6498 = vmatpush.xpose.msk.msrb.mxu0 %vm1469_vm14, %v3565_v18 }
0x11d0   : > { %v8931_v58 = vpop.permute.xlu2 %4367  ;;  %v8933_v35 = vpop.permute.xlu0 %4359 }
0x11d1   : > { %v8935_v38 = vpop.permute.xlu1 %3943  ;;  %6499 = vmatpush.xpose.msk.msrb.mxu0 %vm1469_vm14, %v8813_v33 }
0x11d5   : > { %6500 = vmatpush.xpose.msk.msrb.mxu0 %vm1469_vm14, %v3561_v7 }
0x11d8   : > { %v8940_v14 = vpop.permute.xlu2 %3953  ;;  %v8942_v25 = vpop.permute.xlu0 %3945 }
0x11d9   : > { %v8944_v44 = vpop.permute.xlu1 %4363  ;;  %6501 = vmatpush.xpose.msk.msrb.mxu0 %vm1469_vm14, %v8827_v6 }
0x11dd   : > { %6502 = vmatpush.xpose.msk.msrb.mxu0 %vm1469_vm14, %v8785_v63 }
0x11e0   : > { %v8950_v51 = vpop.permute.xlu2 %4373  ;;  %v8952_v18 = vpop.permute.xlu0 %4365 }
0x11e1   : > { %v8954_v61 = vpop.permute.xlu1 %3949  ;;  %6503 = vmatpush.xpose.msk.msrb.mxu0 %vm1469_vm14, %v8811_v56 }
0x11e5   : > { %6504 = vmatpush.xpose.msk.msrb.mxu0 %vm1469_vm14, %v8815_v52 }
0x11e8   : > { %v8960_v33 = vpop.permute.xlu2 %4375  ;;  %v8962_v7 = vpop.permute.xlu0 %3951 }
0x11e9   : > { %v8964_v6 = vpop.permute.xlu1 %4369  ;;  %6505 = vmatpush.xpose.msk.msrb.mxu0 %vm1469_vm14, %v8777_v5 }
0x11ed   : > { %6506 = vmatpush.xpose.msk.msrb.mxu0 %vm1469_vm14, %v8799_v3 }
0x11f0   : > { %v6881_v63 = vpop.permute.xlu2 %6880  ;;  %v8970_v37 = vpop.permute.xlu0 %4371 }
0x11f1   : > { %v8972_v9 = vpop.permute.xlu1 %3955  ;;  %v6882_v56 = vunpack.i.l.bf16 %v6881_v63  ;;  %6507 = vmatpush.xpose.msk.msrb.mxu0 %vm1469_vm14, %v8803_v54  ;;  %v6883_v52 = vunpack.i.h.bf16 %v6881_v63 }
0x11f3   : > { %3890 = vmatpush.msra.mxu2 %v6882_v56 }
0x11f5   : > { %6508 = vmatpush.xpose.msk.msrb.mxu0 %vm1469_vm14, %v8769_v15  ;;  %3891 = vmatpush.msra.mxu2 %v6883_v52 }
0x11f8   : > { %v8978_v49 = vpop.permute.xlu0 %3957  ;;  %6509 = vmatmul.msk.f32.vlgmr.msrb.gmra.mxu0 %vm1469_vm14, %v8679_v46 }
0x11f9   : > { %v4404_v5 = vpop.permute.xlu1 %4403 }
0x11fa   : > { %6569 = vmatpush.xpose.msk.msra.mxu0 %vm1469_vm14, %v4404_v5 }
0x11fe   : > { %6570 = vmatpush.xpose.msk.msra.mxu0 %vm1469_vm14, %v4402_v30 }
0x1200   : > { %v8984_v3 = vpop.permute.xlu0 %3959  ;;  %6510 = vmatmul.msk.f32.gmra.mxu0 %vm1469_vm14, %v8683_v20 }
0x1201   : > { %v6856_v54 = vpop.permute.xlu1 %6855 }
0x1202   : > { %6571 = vmatpush.xpose.msk.msra.mxu0 %vm1469_vm14, %v8825_v11  ;;  %v6857_v56 = vunpack.i.l.bf16 %v6856_v54 }
0x1206   : > { %6572 = vmatpush.xpose.msk.msra.mxu0 %vm1469_vm14, %v8837_v29 }
0x1208   : > { %v8992_v15 = vpop.permute.xlu0 %4377  ;;  %6511 = vmatmul.msk.f32.gmra.mxu0 %vm1469_vm14, %v8687_v39 }
0x1209   : > { %v6861_v46 = vpop.permute.xlu1 %6860 }
0x120a   : > { %6573 = vmatpush.xpose.msk.msra.mxu0 %vm1469_vm14, %v8823_v10  ;;  %v6862_v52 = vunpack.i.l.bf16 %v6861_v46 }
0x120e   : > { %6574 = vmatpush.xpose.msk.msra.mxu0 %vm1469_vm14, %v8835_v42 }
0x1210   : > { %v6841_v30 = vpop.permute.xlu0 %6840  ;;  %6512 = vmatmul.msk.f32.gmra.mxu0 %vm1469_vm14, %v8691_v48 }
0x1211   : > { %v6871_v20 = vpop.permute.xlu1 %6870  ;;  %v6842_v11 = vunpack.i.l.bf16 %v6841_v30  ;;  %v6843_v29 = vunpack.i.h.bf16 %v6841_v30  ;;  %v6863_v30 = vunpack.i.h.bf16 %v6861_v46 }
0x1212   : > { %6575 = vmatpush.xpose.msk.msra.mxu0 %vm1469_vm14, %v8893_v53  ;;  %v6873_v46 = vunpack.i.h.bf16 %v6871_v20 }
0x1213   : > { %3892 = vmatpush.msra.mxu2 %v6842_v11 }
0x1215   : > { %3893 = vmatpush.msra.mxu2 %v6843_v29 }
0x1216   : > { %6576 = vmatpush.xpose.msk.msra.mxu0 %vm1469_vm14, %v8875_v55 }
0x1218   : > { %v6846_v39 = vpop.permute.xlu0 %6845  ;;  %6513 = vmatmul.msk.f32.gmra.mxu0 %vm1469_vm14, %v8695_v4 }
0x1219   : > { %v6876_v10 = vpop.permute.xlu1 %6875  ;;  %v6847_v42 = vunpack.i.l.bf16 %v6846_v39  ;;  %v6848_v48 = vunpack.i.h.bf16 %v6846_v39 }
0x121a   : > { %6577 = vmatpush.xpose.msk.msra.mxu0 %vm1469_vm14, %v8868_v16  ;;  %v6858_v16 = vunpack.i.h.bf16 %v6856_v54 }
0x121b   : > { %3894 = vmatpush.msra.mxu2 %v6847_v42 }
0x121d   : > { %3895 = vmatpush.msra.mxu2 %v6848_v48  ;;  %v6877_v48 = vunpack.i.l.bf16 %v6876_v10 }
0x121e   : > { %6578 = vmatpush.xpose.msk.msra.mxu0 %vm1469_vm14, %v8916_v45 }
0x1220   : > { %v6851_v53 = vpop.permute.xlu0 %6850  ;;  %6514 = vmatmul.msk.f32.gmra.mxu0 %vm1469_vm14, %v8699_v13  ;;  %v6891_v13 = vpop.permute.xlu2 %6890 }
0x1221   : > { %v9014_v55 = vpop.permute.xlu1 %4379  ;;  %v6852_v63 = vunpack.i.l.bf16 %v6851_v53  ;;  %v6853_v4 = vunpack.i.h.bf16 %v6851_v53  ;;  %v6892_v11 = vunpack.i.l.bf16 %v6891_v13 }
0x1222   : > { %6579 = vmatpush.xpose.msk.msra.mxu0 %vm1469_vm14, %v8903_v50 }
0x1223   : > { %3896 = vmatpush.msra.mxu2 %v6852_v63 }
0x1225   : > { %3897 = vmatpush.msra.mxu2 %v6853_v4 }
0x1226   : > { %6580 = vmatpush.xpose.msk.msra.mxu0 %vm1469_vm14, %v8891_v8  ;;  %v6893_v8 = vunpack.i.h.bf16 %v6891_v13 }
0x1227   : > { %3898 = vmatpush.msra.mxu2 %v6857_v56 }
0x1228   : > { %v3986_v45 = vpop.permute.xlu0 %3985  ;;  %6515 = vmatmul.msk.f32.gmra.mxu0 %vm1469_vm14, %v8703_v62  ;;  %v6872_v62 = vunpack.i.l.bf16 %v6871_v20 }
0x1229   : > { %v6886_v5 = vpop.permute.xlu1 %6885  ;;  %3899 = vmatpush.msra.mxu2 %v6858_v16  ;;  %6533 = vmatpush.xpose.msk.msrb.mxu1 %vm1469_vm14, %v3986_v45 }
0x122a   : > { %v6887_v50 = vunpack.i.l.bf16 %v6886_v5  ;;  %v6888_v29 = vunpack.i.h.bf16 %v6886_v5 }
0x122b   : > { %3900 = vmatpush.msra.mxu2 %v6862_v52 }
0x122c   : > { %4308 = vmatpush.msra.mxu3 %v6887_v50 }
0x122d   : > { %3901 = vmatpush.msra.mxu2 %v6863_v30  ;;  %6534 = vmatpush.xpose.msk.msrb.mxu1 %vm1469_vm14, %v8914_v31  ;;  %v6878_v31 = vunpack.i.h.bf16 %v6876_v10 }
0x122e   : > { %4309 = vmatpush.msra.mxu3 %v6888_v29 }
0x122f   : > { %4726 = vmatpush.msrb.mxu2 %v6892_v11 }
0x1230   : > { %v6866_v54 = vpop.permute.xlu0 %6865  ;;  %6516 = vmatmul.msk.f32.gmra.mxu0 %vm1469_vm14, %v8707_v22  ;;  %v9037_v22 = vpop.f32.mrf.mxu0 }
0x1231   : > { %4727 = vmatpush.msrb.mxu2 %v6893_v8  ;;  %v6867_v39 = vunpack.i.l.bf16 %v6866_v54  ;;  %6535 = vmatpush.xpose.msk.msrb.mxu1 %vm1469_vm14, %v8853_v26  ;;  %v6868_v42 = vunpack.i.h.bf16 %v6866_v54 }
0x1233   : > { %4728 = vmatpush.msrb.mxu2 %v6872_v62  ;;  %4310 = vmatpush.msra.mxu3 %v6867_v39 }
0x1235   : > { %4729 = vmatpush.msrb.mxu2 %v6873_v46  ;;  %6536 = vmatpush.xpose.msk.msrb.mxu1 %vm1469_vm14, %v8849_v34 }
0x1236   : > { %4311 = vmatpush.msra.mxu3 %v6868_v42 }
0x1238   : > { %4312 = vmatpush.msra.mxu3 %v6877_v48  ;;  %6517 = vmatmul.msk.f32.gmra.mxu0 %vm1469_vm14, %v8715_v0  ;;  %v9045_v34 = vpop.f32.mrf.mxu0 }
0x1239   : > { %6537 = vmatpush.xpose.msk.msrb.mxu1 %vm1469_vm14, %v8801_v21 }
0x123a   : > { %4313 = vmatpush.msra.mxu3 %v6878_v31 }
0x123d   : > { %6538 = vmatpush.xpose.msk.msrb.mxu1 %vm1469_vm14, %v8879_v28 }
0x1240   : > { %6518 = vmatmul.msk.f32.gmra.mxu0 %vm1469_vm14, %v8721_v1  ;;  %v9053_v28 = vpop.f32.mrf.mxu0 }
0x1241   : > { %6539 = vmatpush.xpose.msk.msrb.mxu1 %vm1469_vm14, %v8866_v17 }
0x1245   : > { %6540 = vmatpush.xpose.msk.msrb.mxu1 %vm1469_vm14, %v8851_v36 }
0x1248   : > { %6519 = vmatmul.msk.f32.gmra.mxu0 %vm1469_vm14, %v8729_v60 }
0x1249   : > { %6541 = vmatpush.xpose.msk.msrb.mxu1 %vm1469_vm14, %v8907_v12  ;;  %v9065_v12 = vpop.f32.mrf.mxu0 }
0x124d   : > { %6542 = vmatpush.xpose.msk.msrb.mxu1 %vm1469_vm14, %v8889_v57 }
0x1250   : > { %6520 = vmatmul.msk.f32.gmra.mxu0 %vm1469_vm14, %v8767_v2 }
0x1251   : > { %6543 = vmatpush.xpose.msk.msrb.mxu1 %vm1469_vm14, %v8877_v40  ;;  %v9071_v57 = vpop.f32.mrf.mxu0 }
0x1255   : > { %6544 = vmatpush.xpose.msk.msrb.mxu1 %vm1469_vm14, %v8921_v43 }
0x1258   : > { %6545 = vmatmul.msk.f32.vlgmr.msrb.gmra.mxu1 %vm1469_vm14, %v8912_v32  ;;  %6581 = vmatmul.msk.f32.vlgmr.msra.gmra.mxu0 %vm1469_vm14, %v8927_v59 }
0x1259   : > { %v9077_v32 = vpop.f32.mrf.mxu0 }
0x1260   : > { %6546 = vmatmul.msk.f32.gmra.mxu1 %vm1469_vm14, %v8905_v24  ;;  %6582 = vmatmul.msk.f32.gmra.mxu0 %vm1469_vm14, %v8933_v35 }
0x1268   : > { %6547 = vmatmul.msk.f32.gmra.mxu1 %vm1469_vm14, %v8935_v38  ;;  %6583 = vmatmul.msk.f32.gmra.mxu0 %vm1469_vm14, %v8919_v47 }
0x1270   : > { %6548 = vmatmul.msk.f32.gmra.mxu1 %vm1469_vm14, %v8942_v25  ;;  %6584 = vmatmul.msk.f32.gmra.mxu0 %vm1469_vm14, %v8944_v44 }
0x1275   : > { %v3633_v24 = vpop.f32.mrf.mxu0 }
0x1276   : > { %v9083_v43 = vmul.f32 0.35355338, %v3633_v24 }
0x1278   : > { %6549 = vmatmul.msk.f32.gmra.mxu1 %vm1469_vm14, %v8925_v19  ;;  %6585 = vmatmul.msk.f32.gmra.mxu0 %vm1469_vm14, %v8952_v18  ;;  %v3682_v38 = vsel %vm3681_vm2, %v9083_v43, -inf }
0x1279   : > { %3683 = vmax.xlane.f32.xlu1 %v3682_v38 }
0x127d   : > { %v3636_v40 = vpop.f32.mrf.mxu0 }
0x127e   : > { %v9134_v21 = vmul.f32 0.35355338, %v3636_v40 }
0x1280   : > { %6550 = vmatmul.msk.f32.gmra.mxu1 %vm1469_vm14, %v8954_v61  ;;  %6586 = vmatmul.msk.f32.gmra.mxu0 %vm1469_vm14, %v8931_v58  ;;  %v3685_v17 = vsel %vm3681_vm2, %v9134_v21, -inf }
0x1285   : > { %v3639_v44 = vpop.f32.mrf.mxu0 }
0x1286   : > { %v9095_v25 = vmul.f32 0.35355338, %v3639_v44 }
0x1288   : > { %6551 = vmatmul.msk.f32.gmra.mxu1 %vm1469_vm14, %v8962_v7  ;;  %6587 = vmatmul.msk.f32.gmra.mxu0 %vm1469_vm14, %v8964_v6  ;;  %v3688_v19 = vsel %vm3681_vm2, %v9095_v25, -inf }
0x1289   : > { %3689 = vmax.xlane.f32.xlu0 %v3688_v19 }
0x128d   : > { %v3642_v61 = vpop.f32.mrf.mxu0 }
0x128e   : > { %v9142_v59 = vmul.f32 0.35355338, %v3642_v61 }
0x1290   : > { %6552 = vmatmul.msk.f32.gmra.mxu1 %vm1469_vm14, %v8940_v14  ;;  %6588 = vmatmul.msk.f32.gmra.mxu0 %vm1469_vm14, %v8970_v37  ;;  %v3691_v7 = vsel %vm3681_vm2, %v9142_v59, -inf }
0x1295   : > { %v3645_v37 = vpop.f32.mrf.mxu0 }
0x1296   : > { %v9152_v6 = vmul.f32 0.35355338, %v3645_v37 }
0x1298   : > { %6553 = vmatmul.msk.f32.gmra.mxu1 %vm1469_vm14, %v8972_v9  ;;  %6589 = vmatmul.msk.f32.gmra.mxu0 %vm1469_vm14, %v8950_v51  ;;  %v3962_v9 = vpop.permute.xlu0 %3961  ;;  %v3694_v53 = vsel %vm3681_vm2, %v9152_v6, -inf }
0x129d   : > { %6905 = vrot.lane.b32.xlu0 %v8897_v27, %s10530_s5  ;;  %v3648_v14 = vpop.f32.mrf.mxu0 }
0x129e   : > { %v9168_v16 = vmul.f32 0.35355338, %v3648_v14 }
0x12a0   : > { %6554 = vmatmul.msk.f32.gmra.mxu1 %vm1469_vm14, %v8978_v49  ;;  %6590 = vmatmul.msk.f32.gmra.mxu0 %vm1469_vm14, %v8960_v33  ;;  %v3697_v5 = vsel %vm3681_vm2, %v9168_v16, -inf }
0x12a5   : > { %v9124_v58 = vpop.f32.mrf.mxu0 }
0x12a6   : > { %v9210_v37 = vmul.f32 0.35355338, %v9124_v58 }
0x12a8   : > { %6555 = vmatmul.msk.f32.gmra.mxu1 %vm1469_vm14, %v8984_v3  ;;  %6591 = vmatmul.msk.f32.gmra.mxu0 %vm1469_vm14, %v8992_v15 }
0x12ad   : > { %v9126_v47 = vpop.f32.mrf.mxu0 }
0x12b0   : > { %6556 = vmatmul.msk.f32.gmra.mxu1 %vm1469_vm14, %v3962_v9  ;;  %6592 = vmatmul.msk.f32.gmra.mxu0 %vm1469_vm14, %v9014_v55 }
0x12b5   : > { %v9132_v2 = vpop.f32.mrf.mxu0 }
0x12bd   : > { %v9144_v35 = vpop.f32.mrf.mxu0 }
0x12c5   : > { %v9156_v20 = vpop.f32.mrf.mxu0 }
0x12cd   : > { %v9166_v56 = vpop.f32.mrf.mxu0 }
0x12d5   : > { %v4052_v0 = vpop.f32.mrf.mxu1  ;;  %v4470_v50 = vpop.f32.mrf.mxu0 }
0x12d6   : > { %v9128_v1 = vmul.f32 0.35355338, %v4052_v0  ;;  %v9182_v8 = vmul.f32 0.35355338, %v4470_v50  ;;  %v3700_v0 = vsel %vm3681_vm2, %v9210_v37, -inf }
0x12d8   : > { %v4100_v60 = vsel %vm3681_vm2, %v9128_v1, -inf  ;;  %v4518_v54 = vsel %vm3681_vm2, %v9182_v8, -inf }
0x12d9   : > { %4101 = vmax.xlane.f32.xlu2 %v4100_v60  ;;  %v9217_v60 = vmul.f32 0.35355338, %v9126_v47 }
0x12dd   : > { %v4055_v36 = vpop.f32.mrf.mxu1  ;;  %v4473_v62 = vpop.f32.mrf.mxu0 }
0x12de   : > { %v9136_v26 = vmul.f32 0.35355338, %v4055_v36  ;;  %v9188_v39 = vmul.f32 0.35355338, %v4473_v62  ;;  %v9220_v36 = vmul.f32 0.35355338, %v9132_v2 }
0x12e0   : > { %v4103_v49 = vsel %vm3681_vm2, %v9136_v26, -inf  ;;  %v4521_v42 = vsel %vm3681_vm2, %v9188_v39, -inf  ;;  %v3706_v58 = vsel %vm3681_vm2, %v9220_v36, -inf }
0x12e1   : > { %4104 = vmax.xlane.f32.xlu1 %v4103_v49  ;;  %3686 = vmax.xlane.f32.xlu2 %v3685_v17  ;;  %v3703_v17 = vsel %vm3681_vm2, %v9217_v60, -inf }
0x12e5   : > { %v4058_v51 = vpop.f32.mrf.mxu1  ;;  %v4476_v46 = vpop.f32.mrf.mxu0 }
0x12e6   : > { %v9146_v18 = vmul.f32 0.35355338, %v4058_v51 }
0x12e8   : > { %v4106_v33 = vsel %vm3681_vm2, %v9146_v18, -inf }
0x12e9   : > { %4107 = vmax.xlane.f32.xlu1 %v4106_v33  ;;  %3692 = vmax.xlane.f32.xlu2 %v3691_v7  ;;  %v9227_v33 = vmul.f32 0.35355338, %v9144_v35 }
0x12eb   : > { %v3709_v2 = vsel %vm3681_vm2, %v9227_v33, -inf }
0x12ec   : > { %v3684_v48 = vpop.xlane.xlu1 %3683 }
0x12ed   : > { %v4061_v3 = vpop.f32.mrf.mxu1  ;;  %v3718_v31 = vsub.f32 %v9083_v43, %v3684_v48  ;;  %v4479_v38 = vpop.f32.mrf.mxu0 }
0x12ee   : > { %v9154_v15 = vmul.f32 0.35355338, %v4061_v3  ;;  %v9199_v44 = vmul.f32 0.35355338, %v4479_v38 }
0x12ef   : > { %v3730_v40 = vmul.f32 1.442695, %v3718_v31 }
0x12f0   : > { %v4109_v10 = vsel %vm3681_vm2, %v9154_v15, -inf  ;;  %v4527_v19 = vsel %vm3681_vm2, %v9199_v44, -inf }
0x12f1   : > { %4110 = vmax.xlane.f32.xlu1 %v4109_v10  ;;  %3695 = vmax.xlane.f32.xlu2 %v3694_v53  ;;  %7056 = vpow2.f32 %v3730_v40  ;;  %v9236_v53 = vmul.f32 0.35355338, %v9156_v20  ;;  %v9248_v20 = vmul.f32 0.35355338, %v9166_v56 }
0x12f3   : > { %v3715_v31 = vsel %vm3681_vm2, %v9248_v20, -inf }
0x12f5   : > { %v4064_v55 = vpop.f32.mrf.mxu1  ;;  %v4482_v9 = vpop.f32.mrf.mxu0 }
0x12f6   : > { %v9162_v63 = vmul.f32 0.35355338, %v4064_v55  ;;  %v9207_v43 = vmul.f32 0.35355338, %v4482_v9 }
0x12f7   : > { %v9203_v61 = vpop.eup %7056 }
0x12f8   : > { %v4112_v4 = vsel %vm3681_vm2, %v9162_v63, -inf  ;;  %v4530_v14 = vsel %vm3681_vm2, %v9207_v43, -inf }
0x12f9   : > { %4113 = vmax.xlane.f32.xlu1 %v4112_v4 }
0x12fd   : > { %v4067_v45 = vpop.f32.mrf.mxu1  ;;  %v4485_v49 = vpop.f32.mrf.mxu0 }
0x12fe   : > { %v9170_v13 = vmul.f32 0.35355338, %v4067_v45  ;;  %v3712_v45 = vsel %vm3681_vm2, %v9236_v53, -inf }
0x1300   : > { %v4115_v52 = vsel %vm3681_vm2, %v9170_v13, -inf }
0x1301   : > { %4116 = vmax.xlane.f32.xlu0 %v4115_v52  ;;  %3698 = vmax.xlane.f32.xlu1 %v3697_v5  ;;  %v3690_v52 = vpop.xlane.xlu0 %3689 }
0x1305   : > { %v4070_v30 = vpop.f32.mrf.mxu1  ;;  %v4488_v47 = vpop.f32.mrf.mxu0 }
0x1306   : > { %v9176_v11 = vmul.f32 0.35355338, %v4070_v30  ;;  %v9239_v4 = vmul.f32 0.35355338, %v4488_v47 }
0x1308   : > { %v4118_v29 = vsel %vm3681_vm2, %v9176_v11, -inf  ;;  %v4536_v50 = vsel %vm3681_vm2, %v9239_v4, -inf }
0x1309   : > { %4119 = vmax.xlane.f32.xlu0 %v4118_v29  ;;  %6900 = vrot.lane.b32.xlu2 %v8897_v27, %s10538_s1  ;;  %v9194_v27 = vmul.f32 0.35355338, %v4476_v46 }
0x130b   : > { %v4524_v24 = vsel %vm3681_vm2, %v9194_v27, -inf }
0x130d   : > { %v4073_v51 = vpop.f32.mrf.mxu1  ;;  %v4491_v5 = vpop.f32.mrf.mxu0 }
0x130e   : > { %v9229_v7 = vmul.f32 0.35355338, %v4073_v51  ;;  %v9254_v46 = vmul.f32 0.35355338, %v4491_v5 }
0x130f   : > { %v6906_v51 = vpop.permute.xlu0 %6905 }
0x1310   : > { %v4121_v3 = vsel %vm3681_vm2, %v9229_v7, -inf }
0x1311   : > { %6910 = vrot.lane.b32.xlu2 %v8841_v23, %s10538_s1  ;;  %4519 = vmax.xlane.f32.xlu0 %v4518_v54  ;;  %v3720_v54 = vsub.f32 %v9095_v25, %v3690_v52 }
0x1313   : > { %v3734_v56 = vmul.f32 1.442695, %v3720_v54 }
0x1319   : > { %4522 = vmax.xlane.f32.xlu0 %v4521_v42 }
0x131a   : > { %6895 = vrot.lane.b32.xlu1 %v8883_v41, %s10530_s5  ;;  %v3754_v41 = vsel %vm3681_vm2, %v9203_v61, 0.0 }
0x1321   : > { %4525 = vmax.xlane.f32.xlu0 %v4524_v24  ;;  %v9262_v24 = vmul.f32 0.35355338, %v4485_v49 }
0x1329   : > { %4528 = vmax.xlane.f32.xlu0 %v4527_v19 }
0x1331   : > { %3755 = vadd.xlane.f32.xlu0 %v3754_v41  ;;  %v4533_v41 = vsel %vm3681_vm2, %v9262_v24, -inf }
0x1339   : > { %4531 = vmax.xlane.f32.xlu0 %v4530_v14 }
0x133a   : > { %3701 = vmax.xlane.f32.xlu2 %v3700_v0 }
0x1342   : > { %3704 = vmax.xlane.f32.xlu2 %v3703_v17 }
0x1344   : > { %3707 = vmax.xlane.f32.xlu1 %v3706_v58 }
0x134a   : > { %3710 = vmax.xlane.f32.xlu2 %v3709_v2 }
0x134c   : > { %v4102_v10 = vpop.xlane.xlu2 %4101  ;;  %4122 = vmax.xlane.f32.xlu1 %v4121_v3 }
0x134d   : > { %v4136_v55 = vsub.f32 %v9128_v1, %v4102_v10 }
0x134f   : > { %v4148_v35 = vmul.f32 1.442695, %v4136_v55 }
0x1351   : > { %7058 = vpow2.f32 %v4148_v35 }
0x1352   : > { %3713 = vmax.xlane.f32.xlu2 %v3712_v45 }
0x1354   : > { %v9245_v30 = vpop.xlane.xlu1 %4104  ;;  %v3687_v29 = vpop.xlane.xlu2 %3686  ;;  %4537 = vmax.xlane.f32.xlu1 %v4536_v50 }
0x1355   : > { %v3719_v1 = vsub.f32 %v9134_v21, %v3687_v29  ;;  %v4539_v21 = vsel %vm3681_vm2, %v9254_v46, -inf }
0x1357   : > { %v9251_v62 = vpop.eup %7058  ;;  %v3732_v42 = vmul.f32 1.442695, %v3719_v1 }
0x1358   : > { %v4172_v48 = vsel %vm3681_vm2, %v9251_v62, 0.0 }
0x1359   : > { %4173 = vadd.xlane.f32.xlu0 %v4172_v48  ;;  %7060 = vpow2.f32 %v3732_v42 }
0x135a   : > { %3716 = vmax.xlane.f32.xlu2 %v3715_v31  ;;  %7062 = vpow2.f32 %v3734_v56 }
0x135c   : > { %v9264_v38 = vpop.xlane.xlu1 %4107  ;;  %v3693_v25 = vpop.xlane.xlu2 %3692  ;;  %4540 = vmax.xlane.f32.xlu1 %v4539_v21 }
0x135d   : > { %v3721_v40 = vsub.f32 %v9142_v59, %v3693_v25 }
0x135f   : > { %v9267_v19 = vpop.eup %7060  ;;  %v3736_v14 = vmul.f32 1.442695, %v3721_v40 }
0x1360   : > { %v3757_v9 = vsel %vm3681_vm2, %v9267_v19, 0.0  ;;  %v9275_v17 = vpop.eup %7062 }
0x1361   : > { %4534 = vmax.xlane.f32.xlu0 %v4533_v41  ;;  %7064 = vpow2.f32 %v3736_v14  ;;  %v3760_v59 = vsel %vm3681_vm2, %v9275_v17, 0.0 }
0x1362   : > { %3758 = vadd.xlane.f32.xlu2 %v3757_v9 }
0x1364   : > { %v9273_v0 = vpop.xlane.xlu1 %4110  ;;  %v3696_v49 = vpop.xlane.xlu2 %3695 }
0x1365   : > { %v3722_v58 = vsub.f32 %v9152_v6, %v3696_v49 }
0x1367   : > { %v3738_v47 = vmul.f32 1.442695, %v3722_v58  ;;  %v9282_v10 = vpop.eup %7064 }
0x1368   : > { %v3763_v45 = vsel %vm3681_vm2, %v9282_v10, 0.0 }
0x1369   : > { %3761 = vadd.xlane.f32.xlu0 %v3760_v59  ;;  %7066 = vpow2.f32 %v3738_v47  ;;  %v6907_v59 = vunpack.i.l.bf16 %v6906_v51  ;;  %v4137_v47 = vsub.f32 %v9136_v26, %v9245_v30 }
0x136c   : > { %v9280_v2 = vpop.xlane.xlu1 %4113  ;;  %v6901_v3 = vpop.permute.xlu2 %6900 }
0x136d   : > { %v6902_v55 = vunpack.i.l.bf16 %v6901_v3  ;;  %v6903_v35 = vunpack.i.h.bf16 %v6901_v3  ;;  %v6908_v3 = vunpack.i.h.bf16 %v6906_v51  ;;  %v9318_v51 = vpop.f32.mrf.mxu0 }
0x136f   : > { %4314 = vmatpush.msra.mxu3 %v6902_v55  ;;  %v9288_v5 = vpop.eup %7066  ;;  %v4150_v55 = vmul.f32 1.442695, %v4137_v47 }
0x1370   : > { %v3766_v48 = vsel %vm3681_vm2, %v9288_v5, 0.0 }
0x1371   : > { %4315 = vmatpush.msra.mxu3 %v6903_v35  ;;  %3764 = vadd.xlane.f32.xlu0 %v3763_v45  ;;  %v10557_v35 = vld [vmem:[#allocation20_spill] sm:$0xff] }
0x1374   : > { %v9286_v6 = vpop.xlane.xlu0 %4116  ;;  %v6911_v52 = vpop.permute.xlu2 %6910 }
0x1375   : > { %v6912_v50 = vunpack.i.l.bf16 %v6911_v52  ;;  %v3699_v29 = vpop.xlane.xlu1 %3698  ;;  %v6913_v54 = vunpack.i.h.bf16 %v6911_v52 }
0x1376   : > { %v3723_v1 = vsub.f32 %v9168_v16, %v3699_v29 }
0x1377   : > { %4316 = vmatpush.msra.mxu3 %v6912_v50 }
0x1378   : > { %v3740_v42 = vmul.f32 1.442695, %v3723_v1 }
0x1379   : > { %4317 = vmatpush.msra.mxu3 %v6913_v54  ;;  %3767 = vadd.xlane.f32.xlu0 %v3766_v48 }
0x137a   : > { %7068 = vpow2.f32 %v3740_v42  ;;  %6915 = vrot.lane.b32.xlu2 %v8841_v23, %s10530_s5 }
0x137c   : > { %v9295_v31 = vpop.xlane.xlu0 %4119 }
0x1380   : > { %v9297_v56 = vpop.eup %7068 }
0x1381   : > { %v3769_v21 = vsel %vm3681_vm2, %v9297_v56, 0.0 }
0x1382   : > { %3770 = vadd.xlane.f32.xlu0 %v3769_v21  ;;  %v4497_v21 = vpop.f32.mrf.mxu0 }
0x1384   : > { %v4520_v16 = vpop.xlane.xlu0 %4519 }
0x1385   : > { %v4554_v25 = vsub.f32 %v9182_v8, %v4520_v16 }
0x1387   : > { %v4566_v40 = vmul.f32 1.442695, %v4554_v25 }
0x1389   : > { %7070 = vpow2.f32 %v4566_v40 }
0x138a   : > { %7072 = vpow2.f32 %v4150_v55 }
0x138c   : > { %v6896_v41 = vpop.permute.xlu1 %6895  ;;  %v4523_v9 = vpop.xlane.xlu0 %4522 }
0x138d   : > { %v6897_v14 = vunpack.i.l.bf16 %v6896_v41  ;;  %v6898_v58 = vunpack.i.h.bf16 %v6896_v41 }
0x138f   : > { %v9302_v49 = vpop.eup %7070  ;;  %4730 = vmatpush.msrb.mxu2 %v6897_v14 }
0x1390   : > { %v4590_v23 = vsel %vm3681_vm2, %v9302_v49, 0.0  ;;  %v9312_v52 = vpop.eup %7072 }
0x1391   : > { %4731 = vmatpush.msrb.mxu2 %v6898_v58  ;;  %4591 = vadd.xlane.f32.xlu1 %v4590_v23  ;;  %v4175_v50 = vsel %vm3681_vm2, %v9312_v52, 0.0 }
0x1393   : > { %4732 = vmatpush.msrb.mxu2 %v6907_v59  ;;  %v4555_v59 = vsub.f32 %v9188_v39, %v4523_v9 }
0x1394   : > { %v4526_v8 = vpop.xlane.xlu0 %4525 }
0x1395   : > { %4733 = vmatpush.msrb.mxu2 %v6908_v3  ;;  %v4500_v3 = vpop.f32.mrf.mxu0 }
0x1396   : > { %6920 = vrot.lane.b32.xlu0 %v10557_v35, %s10538_s1  ;;  %s7232_s1 = smov 122  }
0x139c   : > { %v9310_v45 = vpop.xlane.xlu0 %4528 }
0x13a3   : > { %4176 = vadd.xlane.f32.xlu2 %v4175_v50  ;;  %v4568_v50 = vmul.f32 1.442695, %v4555_v59 }
0x13a4   : > { %v3756_v26 = vpop.xlane.xlu0 %3755 }
0x13a5   : > { %7074 = vrcp.f32 %v3756_v26  ;;  %v9339_v26 = vmul.f32 0.35355338, %v4500_v3 }
0x13aa   : > { %6925 = vrot.lane.b32.xlu1 %v10557_v35, %s10530_s5  ;;  %v4076_v35 = vpop.f32.mrf.mxu1 }
0x13ab   : > { %v7075_v30 = vpop.eup %7074 }
0x13ac   : > { %v3802_v29 = vmul.f32 %v7075_v30, %v9203_v61  ;;  %v9341_v30 = vpop.xlane.xlu0 %4531 }
0x13ad   : > { %v3702_v1 = vpop.xlane.xlu2 %3701 }
0x13ae   : > { %v3724_v54 = vsub.f32 %v9210_v37, %v3702_v1  ;;  %6521 = vmatmul.msk.f32.vlgmr.msra.gmra.mxu2 %vm3681_vm2, %v3802_v29  ;;  %v9329_v37 = vmul.f32 0.35355338, %v4497_v21  ;;  %v4556_v1 = vsub.f32 %v9194_v27, %v4526_v8 }
0x13b0   : > { %v3742_v42 = vmul.f32 1.442695, %v3724_v54  ;;  %v4570_v21 = vmul.f32 1.442695, %v4556_v1 }
0x13b2   : > { %7076 = vpow2.f32 %v3742_v42  ;;  %v9357_v27 = vpop.f32.mrf.mxu1 }
0x13b5   : > { %v3705_v48 = vpop.xlane.xlu2 %3704 }
0x13b6   : > { %v3725_v16 = vsub.f32 %v9217_v60, %v3705_v48  ;;  %v4545_v60 = vsel %vm3681_vm2, %v9329_v37, -inf  ;;  %v4140_v48 = vsub.f32 %v9162_v63, %v9280_v2  ;;  %v9365_v63 = vmul.f32 0.35355338, %v4076_v35 }
0x13b7   : > { %v3708_v25 = vpop.xlane.xlu1 %3707 }
0x13b8   : > { %v9324_v40 = vpop.eup %7076  ;;  %v3744_v41 = vmul.f32 1.442695, %v3725_v16  ;;  %v3726_v14 = vsub.f32 %v9220_v36, %v3708_v25 }
0x13b9   : > { %v3772_v61 = vsel %vm3681_vm2, %v9324_v40, 0.0 }
0x13ba   : > { %7078 = vpow2.f32 %v3744_v41  ;;  %3773 = vadd.xlane.f32.xlu2 %v3772_v61  ;;  %v3746_v58 = vmul.f32 1.442695, %v3726_v14 }
0x13bc   : > { %7080 = vpow2.f32 %v3746_v58  ;;  %v4156_v58 = vmul.f32 1.442695, %v4140_v48 }
0x13bd   : > { %v3711_v23 = vpop.xlane.xlu2 %3710  ;;  %7082 = vpow2.f32 %v4568_v50  ;;  %v9380_v50 = vpop.f32.mrf.mxu1 }
0x13be   : > { %v3727_v36 = vsub.f32 %v9227_v33, %v3711_v23  ;;  %v4548_v33 = vsel %vm3681_vm2, %v9339_v26, -inf }
0x13bf   : > { %v9353_v16 = vpop.xlane.xlu1 %4122 }
0x13c0   : > { %v9334_v47 = vpop.eup %7078  ;;  %4546 = vmax.xlane.f32.xlu0 %v4545_v60  ;;  %v3748_v39 = vmul.f32 1.442695, %v3727_v36 }
0x13c1   : > { %v3775_v55 = vsel %vm3681_vm2, %v9334_v47, 0.0 }
0x13c2   : > { %3776 = vadd.xlane.f32.xlu2 %v3775_v55  ;;  %v9343_v29 = vpop.eup %7080  ;;  %7084 = vpow2.f32 %v3748_v39 }
0x13c3   : > { %v3778_v42 = vsel %vm3681_vm2, %v9343_v29, 0.0  ;;  %v9355_v25 = vpop.eup %7082  ;;  %7086 = vpow2.f32 %v4570_v21  ;;  %v4503_v21 = vpop.f32.mrf.mxu0 }
0x13c4   : > { %v4593_v2 = vsel %vm3681_vm2, %v9355_v25, 0.0 }
0x13c5   : > { %v3714_v9 = vpop.xlane.xlu2 %3713 }
0x13c6   : > { %v3728_v54 = vsub.f32 %v9236_v53, %v3714_v9  ;;  %v4557_v53 = vsub.f32 %v9199_v44, %v9310_v45  ;;  %v4124_v44 = vsel %vm3681_vm2, %v9365_v63, -inf }
0x13c7   : > { %v9376_v55 = vpop.xlane.xlu1 %4537 }
0x13c8   : > { %4549 = vmax.xlane.f32.xlu0 %v4548_v33  ;;  %v3750_v8 = vmul.f32 1.442695, %v3728_v54  ;;  %v9363_v61 = vpop.eup %7084  ;;  %v4572_v59 = vmul.f32 1.442695, %v4557_v53  ;;  %v4142_v33 = vsub.f32 %v9176_v11, %v9295_v31  ;;  %v9398_v31 = vmul.f32 0.35355338, %v4503_v21 }
0x13c9   : > { %v3781_v60 = vsel %vm3681_vm2, %v9363_v61, 0.0  ;;  %v9374_v45 = vpop.eup %7086 }
0x13ca   : > { %3779 = vadd.xlane.f32.xlu2 %v3778_v42  ;;  %7088 = vpow2.f32 %v3750_v8  ;;  %v4596_v39 = vsel %vm3681_vm2, %v9374_v45, 0.0 }
0x13cb   : > { %7090 = vpow2.f32 %v4156_v58 }
0x13cc   : > { %v9359_v41 = vpop.xlane.xlu0 %4173  ;;  %7092 = vpow2.f32 %v4572_v59 }
0x13cd   : > { %v3717_v14 = vpop.xlane.xlu2 %3716 }
0x13ce   : > { %v3729_v23 = vsub.f32 %v9248_v20, %v3717_v14 }
0x13cf   : > { %v4541_v59 = vpop.xlane.xlu1 %4540 }
0x13d0   : > { %4594 = vadd.xlane.f32.xlu0 %v4593_v2  ;;  %v3752_v3 = vmul.f32 1.442695, %v3729_v23  ;;  %v9378_v20 = vpop.eup %7088  ;;  %v4160_v2 = vmul.f32 1.442695, %v4142_v33  ;;  %v4551_v33 = vsel %vm3681_vm2, %v9398_v31, -inf }
0x13d1   : > { %v9384_v9 = vpop.eup %7090  ;;  %v3784_v1 = vsel %vm3681_vm2, %v9378_v20, 0.0 }
0x13d2   : > { %3782 = vadd.xlane.f32.xlu2 %v3781_v60  ;;  %v9390_v54 = vpop.eup %7092  ;;  %v4184_v42 = vsel %vm3681_vm2, %v9384_v9, 0.0 }
0x13d3   : > { %v4599_v60 = vsel %vm3681_vm2, %v9390_v54, 0.0 }
0x13d4   : > { %v4535_v36 = vpop.xlane.xlu0 %4534  ;;  %4125 = vmax.xlane.f32.xlu1 %v4124_v44  ;;  %v4085_v44 = vpop.f32.mrf.mxu1 }
0x13d5   : > { %v3759_v35 = vpop.xlane.xlu2 %3758  ;;  %v4559_v23 = vsub.f32 %v9262_v24, %v4535_v36  ;;  %v4561_v24 = vsub.f32 %v9254_v46, %v4541_v59  ;;  %v4143_v46 = vsub.f32 %v9229_v7, %v9353_v16 }
0x13d6   : > { %7094 = vrcp.f32 %v3759_v35 }
0x13d7   : > { %7096 = vpow2.f32 %v3752_v3  ;;  %v4138_v3 = vsub.f32 %v9146_v18, %v9264_v38  ;;  %v4576_v36 = vmul.f32 1.442695, %v4559_v23  ;;  %v4580_v21 = vmul.f32 1.442695, %v4561_v24 }
0x13d8   : > { %4597 = vadd.xlane.f32.xlu0 %v4596_v39 }
0x13da   : > { %3785 = vadd.xlane.f32.xlu2 %v3784_v1  ;;  %v9408_v1 = vmul.f32 0.35355338, %v4085_v44  ;;  %v4139_v44 = vsub.f32 %v9154_v15, %v9273_v0 }
0x13dc   : > { %v7095_v48 = vpop.eup %7094  ;;  %v3762_v8 = vpop.xlane.xlu0 %3761  ;;  %4185 = vadd.xlane.f32.xlu1 %v4184_v42  ;;  %v4152_v42 = vmul.f32 1.442695, %v4138_v3  ;;  %v4154_v24 = vmul.f32 1.442695, %v4139_v44 }
0x13dd   : > { %7098 = vrcp.f32 %v3762_v8  ;;  %v6916_v53 = vpop.permute.xlu2 %6915  ;;  %v3803_v14 = vmul.f32 %v7095_v48, %v9267_v19  ;;  %v9395_v58 = vpop.eup %7096  ;;  %v9414_v48 = vmul.f32 0.35355338, %v9318_v51  ;;  %v4133_v8 = vsel %vm3681_vm2, %v9408_v1, -inf }
0x13de   : > { %v6917_v11 = vunpack.i.l.bf16 %v6916_v53  ;;  %v6918_v35 = vunpack.i.h.bf16 %v6916_v53  ;;  %v3787_v19 = vsel %vm3681_vm2, %v9395_v58, 0.0  ;;  %7100 = vpow2.f32 %v4160_v2 }
0x13df   : > { %6522 = vmatmul.msk.f32.gmra.mxu2 %vm3681_vm2, %v3803_v14  ;;  %v4162_v51 = vmul.f32 1.442695, %v4143_v46 }
0x13e0   : > { %4600 = vadd.xlane.f32.xlu0 %v4599_v60  ;;  %4734 = vmatpush.msrb.mxu2 %v6917_v11 }
0x13e2   : > { %3788 = vadd.xlane.f32.xlu2 %v3787_v19  ;;  %4735 = vmatpush.msrb.mxu2 %v6918_v35 }
0x13e3   : > { %v7099_v39 = vpop.eup %7098 }
0x13e4   : > { %v3765_v18 = vpop.xlane.xlu0 %3764  ;;  %4552 = vmax.xlane.f32.xlu1 %v4551_v33  ;;  %v3804_v38 = vmul.f32 %v7099_v39, %v9275_v17  ;;  %v9421_v53 = vpop.eup %7100  ;;  %v4542_v17 = vsel %vm3681_vm2, %v9414_v48, -inf  ;;  %v9447_v39 = vmul.f32 0.35355338, %v9357_v27  ;;  %v4558_v27 = vsub.f32 %v9207_v43, %v9341_v30 }
0x13e5   : > { %7102 = vrcp.f32 %v3765_v18  ;;  %v4190_v7 = vsel %vm3681_vm2, %v9421_v53, 0.0 }
0x13e6   : > { %7104 = vpow2.f32 %v4576_v36  ;;  %v4127_v0 = vsel %vm3681_vm2, %v9447_v39, -inf  ;;  %v4574_v46 = vmul.f32 1.442695, %v4558_v27 }
0x13e7   : > { %6523 = vmatmul.msk.f32.gmra.mxu2 %vm3681_vm2, %v3804_v38  ;;  %7106 = vpow2.f32 %v4152_v42 }
0x13e8   : > { %4134 = vmax.xlane.f32.xlu0 %v4133_v8  ;;  %7108 = vpow2.f32 %v4580_v21  ;;  %v9464_v21 = vmul.f32 0.35355338, %v9380_v50 }
0x13ea   : > { %4543 = vmax.xlane.f32.xlu2 %v4542_v17  ;;  %v4130_v43 = vsel %vm3681_vm2, %v9464_v21, -inf }
0x13eb   : > { %v7103_v14 = vpop.eup %7102 }
0x13ec   : > { %v9427_v16 = vpop.eup %7104  ;;  %v3768_v2 = vpop.xlane.xlu0 %3767  ;;  %4191 = vadd.xlane.f32.xlu1 %v4190_v7  ;;  %v3805_v23 = vmul.f32 %v7103_v14, %v9282_v10 }
0x13ed   : > { %7110 = vrcp.f32 %v3768_v2  ;;  %v9430_v11 = vpop.eup %7106  ;;  %v4605_v59 = vsel %vm3681_vm2, %v9427_v16, 0.0 }
0x13ee   : > { %7112 = vpow2.f32 %v4162_v51  ;;  %v9435_v60 = vpop.eup %7108  ;;  %v4178_v3 = vsel %vm3681_vm2, %v9430_v11, 0.0 }
0x13ef   : > { %6524 = vmatmul.msk.f32.gmra.mxu2 %vm3681_vm2, %v3805_v23  ;;  %v4611_v35 = vsel %vm3681_vm2, %v9435_v60, 0.0 }
0x13f0   : > { %4606 = vadd.xlane.f32.xlu0 %v4605_v59 }
0x13f2   : > { %4179 = vadd.xlane.f32.xlu2 %v4178_v3 }
0x13f3   : > { %v7111_v10 = vpop.eup %7110 }
0x13f4   : > { %v9443_v19 = vpop.eup %7112  ;;  %4612 = vadd.xlane.f32.xlu1 %v4611_v35  ;;  %v3806_v36 = vmul.f32 %v7111_v10, %v9288_v5 }
0x13f5   : > { %v3771_v33 = vpop.xlane.xlu0 %3770  ;;  %v4193_v15 = vsel %vm3681_vm2, %v9443_v19, 0.0 }
0x13f6   : > { %7114 = vrcp.f32 %v3771_v33  ;;  %v9505_v33 = vld [vmem:[%s10432_s17 + $0x18] sm:$0xff] }
0x13f7   : > { %6525 = vmatmul.msk.f32.gmra.mxu2 %vm3681_vm2, %v3806_v36  ;;  %7116 = vpow2.f32 %v4154_v24  ;;  %v9493_v36 = vld [vmem:[%s10432_s17 + $0x28] sm:$0xff] }
0x13f8   : > { %4194 = vadd.xlane.f32.xlu0 %v4193_v15  ;;  %7118 = vrcp.f32 %v9359_v41  ;;  %v9511_v15 = vld [vmem:[%s10432_s17 + $0x10] sm:$0xff] }
0x13f9   : > { %7120 = vpow2.f32 %v4574_v46 }
0x13fa   : > { %4128 = vmax.xlane.f32.xlu2 %v4127_v0  ;;  %v9517_v0 = vld [vmem:[%s10432_s17 + $0x8] sm:$0xff] }
0x13fc   : > { %v7115_v42 = vpop.eup %7114 }
0x13fd   : > { %v3807_v18 = vmul.f32 %v7115_v42, %v9297_v56  ;;  %v9455_v5 = vpop.eup %7116  ;;  %v4141_v56 = vsub.f32 %v9170_v13, %v9286_v6  ;;  %v4560_v13 = vsub.f32 %v9239_v4, %v9376_v55  ;;  %v9523_v42 = vld [vmem:[%s10432_s17] sm:$0xff] }
0x13fe   : > { %v4181_v38 = vsel %vm3681_vm2, %v9455_v5, 0.0  ;;  %v7119_v17 = vpop.eup %7118 }
0x13ff   : > { %6526 = vmatmul.msk.f32.gmra.mxu2 %vm3681_vm2, %v3807_v18  ;;  %v4158_v14 = vmul.f32 1.442695, %v4141_v56  ;;  %v4220_v41 = vmul.f32 %v7119_v17, %v9251_v62  ;;  %v9471_v7 = vpop.eup %7120  ;;  %v4578_v50 = vmul.f32 1.442695, %v4560_v13 }
0x1400   : > { %v4602_v6 = vsel %vm3681_vm2, %v9471_v7, 0.0 }
0x1401   : > { %7122 = vpow2.f32 %v4158_v14 }
0x1402   : > { %4182 = vadd.xlane.f32.xlu2 %v4181_v38 }
0x1404   : > { %v9478_v2 = vpop.xlane.xlu1 %4591 }
0x1407   : > { %v9480_v23 = vpop.eup %7122 }
0x1408   : > { %v6921_v8 = vpop.permute.xlu0 %6920  ;;  %v4187_v62 = vsel %vm3681_vm2, %v9480_v23, 0.0 }
0x1409   : > { %v6922_v51 = vunpack.i.l.bf16 %v6921_v8  ;;  %v6923_v30 = vunpack.i.h.bf16 %v6921_v8 }
0x140a   : > { %4131 = vmax.xlane.f32.xlu2 %v4130_v43 }
0x140b   : > { %4318 = vmatpush.msra.mxu3 %v6922_v51 }
0x140d   : > { %4319 = vmatpush.msra.mxu3 %v6923_v30 }
0x140e   : > { %6557 = vmatmul.msk.f32.vlgmr.msra.gmra.mxu3 %vm3681_vm2, %v4220_v41 }
0x1412   : > { %4603 = vadd.xlane.f32.xlu2 %v4602_v6 }
0x1416   : > { %v4177_v59 = vpop.xlane.xlu2 %4176 }
0x1417   : > { %7124 = vrcp.f32 %v4177_v59 }
0x1418   : > { %7126 = vpow2.f32 %v4578_v50 }
0x141a   : > { %4188 = vadd.xlane.f32.xlu2 %v4187_v62 }
0x141c   : > { %v6926_v44 = vpop.permute.xlu1 %6925 }
0x141d   : > { %v7125_v3 = vpop.eup %7124  ;;  %v6927_v10 = vunpack.i.l.bf16 %v6926_v44  ;;  %v6928_v35 = vunpack.i.h.bf16 %v6926_v44 }
0x141e   : > { %v9484_v4 = vpop.eup %7126  ;;  %v4221_v55 = vmul.f32 %v7125_v3, %v9312_v52  ;;  %v9499_v52 = vld [vmem:[%s10432_s17 + $0x20] sm:$0xff] }
0x141f   : > { %4736 = vmatpush.msrb.mxu2 %v6927_v10  ;;  %v4608_v24 = vsel %vm3681_vm2, %v9484_v4, 0.0 }
0x1420   : > { %6558 = vmatmul.msk.f32.gmra.mxu3 %vm3681_vm2, %v4221_v55 }
0x1421   : > { %4737 = vmatpush.msrb.mxu2 %v6928_v35 }
0x1422   : > { %4609 = vadd.xlane.f32.xlu2 %v4608_v24 }
0x1423   : > { %5276 = vmatpush.msra.mxu2 %v9493_v36 }
0x1425   : > { %5277 = vmatpush.msra.mxu2 %v9499_v52 }
0x1427   : > { %5278 = vmatpush.msra.mxu2 %v9505_v33 }
0x1429   : > { %5279 = vmatpush.msra.mxu2 %v9511_v15 }
0x142b   : > { %5280 = vmatpush.msra.mxu2 %v9517_v0 }
0x142d   : > { %5281 = vmatpush.msra.mxu2 %v9523_v42  ;;  %v3774_v18 = vpop.xlane.xlu2 %3773 }
0x142e   : > { %7128 = vrcp.f32 %v3774_v18 }
0x1433   : > { %v4547_v27 = vpop.xlane.xlu0 %4546 }
0x1434   : > { %v7129_v38 = vpop.eup %7128  ;;  %v4563_v50 = vsub.f32 %v9329_v37, %v4547_v27 }
0x1435   : > { %v3777_v46 = vpop.xlane.xlu2 %3776  ;;  %v3808_v56 = vmul.f32 %v7129_v38, %v9324_v40 }
0x1436   : > { %7130 = vrcp.f32 %v3777_v46  ;;  %v4584_v10 = vmul.f32 1.442695, %v4563_v50 }
0x1437   : > { %6527 = vmatmul.msk.f32.gmra.mxu2 %vm3681_vm2, %v3808_v56 }
0x143b   : > { %v9528_v8 = vpop.xlane.xlu0 %4549 }
0x143c   : > { %v7131_v17 = vpop.eup %7130 }
0x143d   : > { %v3780_v51 = vpop.xlane.xlu2 %3779  ;;  %v3809_v43 = vmul.f32 %v7131_v17, %v9334_v47 }
0x143e   : > { %7132 = vrcp.f32 %v3780_v51 }
0x143f   : > { %6528 = vmatmul.msk.f32.gmra.mxu2 %vm3681_vm2, %v3809_v43 }
0x1443   : > { %v4595_v30 = vpop.xlane.xlu0 %4594 }
0x1444   : > { %v7133_v14 = vpop.eup %7132 }
0x1445   : > { %v3783_v41 = vpop.xlane.xlu2 %3782  ;;  %v3810_v13 = vmul.f32 %v7133_v14, %v9343_v29 }
0x1446   : > { %7134 = vrcp.f32 %v3783_v41 }
0x1447   : > { %v4126_v6 = vpop.xlane.xlu1 %4125  ;;  %6529 = vmatmul.msk.f32.gmra.mxu2 %vm3681_vm2, %v3810_v13 }
0x1448   : > { %v4144_v40 = vsub.f32 %v9365_v63, %v4126_v6 }
0x144a   : > { %v4164_v59 = vmul.f32 1.442695, %v4144_v40 }
0x144b   : > { %v4598_v62 = vpop.xlane.xlu0 %4597 }
0x144c   : > { %v7135_v44 = vpop.eup %7134  ;;  %7136 = vpow2.f32 %v4164_v59 }
0x144d   : > { %v3786_v47 = vpop.xlane.xlu2 %3785  ;;  %v3811_v3 = vmul.f32 %v7135_v44, %v9363_v61  ;;  %v4564_v44 = vsub.f32 %v9339_v26, %v9528_v8 }
0x144e   : > { %7138 = vrcp.f32 %v3786_v47 }
0x144f   : > { %6530 = vmatmul.msk.f32.gmra.mxu2 %vm3681_vm2, %v3811_v3  ;;  %7140 = vpow2.f32 %v4584_v10 }
0x1452   : > { %v9538_v29 = vpop.eup %7136 }
0x1453   : > { %v4601_v55 = vpop.xlane.xlu0 %4600  ;;  %v4196_v63 = vsel %vm3681_vm2, %v9538_v29, 0.0 }
0x1454   : > { %v7139_v35 = vpop.eup %7138  ;;  %4197 = vadd.xlane.f32.xlu2 %v4196_v63 }
0x1455   : > { %v3789_v37 = vpop.xlane.xlu2 %3788  ;;  %v3812_v24 = vmul.f32 %v7139_v35, %v9378_v20  ;;  %v9544_v61 = vpop.eup %7140 }
0x1456   : > { %7142 = vrcp.f32 %v3789_v37  ;;  %v4617_v27 = vsel %vm3681_vm2, %v9544_v61, 0.0 }
0x1457   : > { %6531 = vmatmul.msk.f32.gmra.mxu2 %vm3681_vm2, %v3812_v24  ;;  %7144 = vrcp.f32 %v9478_v2 }
0x145b   : > { %v4135_v18 = vpop.xlane.xlu0 %4134 }
0x145c   : > { %v7143_v38 = vpop.eup %7142  ;;  %v4147_v46 = vsub.f32 %v9408_v1, %v4135_v18  ;;  %4618 = vadd.xlane.f32.xlu2 %v4617_v27 }
0x145d   : > { %v4544_v56 = vpop.xlane.xlu2 %4543  ;;  %v3813_v17 = vmul.f32 %v7143_v38, %v9395_v58  ;;  %v7145_v14 = vpop.eup %7144 }
0x145e   : > { %v4170_v51 = vmul.f32 1.442695, %v4147_v46  ;;  %v4562_v20 = vsub.f32 %v9414_v48, %v4544_v56  ;;  %v4638_v41 = vmul.f32 %v7145_v14, %v9302_v49 }
0x145f   : > { %6532 = vmatmul.msk.f32.gmra.mxu2 %vm3681_vm2, %v3813_v17  ;;  %v9592_v17 = vpop.f32.mrf.mxu2 }
0x1460   : > { %7146 = vpow2.f32 %v4170_v51  ;;  %v4582_v43 = vmul.f32 1.442695, %v4562_v20 }
0x1462   : > { %7148 = vpow2.f32 %v4582_v43 }
0x1463   : > { %7150 = vrcp.f32 %v4595_v30 }
0x1465   : > { %v4180_v13 = vpop.xlane.xlu2 %4179 }
0x1466   : > { %v9554_v2 = vpop.eup %7146  ;;  %7152 = vrcp.f32 %v4180_v13 }
0x1467   : > { %v4205_v1 = vsel %vm3681_vm2, %v9554_v2, 0.0  ;;  %6593 = vmatmul.msk.f32.vlgmr.msrb.gmra.mxu2 %vm3681_vm2, %v4638_v41  ;;  %7154 = vrcp.f32 %v4598_v62  ;;  %v9600_v43 = vpop.f32.mrf.mxu2 }
0x1468   : > { %v9559_v58 = vpop.eup %7148  ;;  %4206 = vadd.xlane.f32.xlu2 %v4205_v1  ;;  %6022 = vmatpush.msrb.mxu2 %v9493_v36 }
0x1469   : > { %v4614_v48 = vsel %vm3681_vm2, %v9559_v58, 0.0  ;;  %v7151_v30 = vpop.eup %7150 }
0x146a   : > { %4615 = vadd.xlane.f32.xlu0 %v4614_v48  ;;  %6023 = vmatpush.msrb.mxu2 %v9499_v52  ;;  %v4639_v50 = vmul.f32 %v7151_v30, %v9355_v25  ;;  %v4586_v25 = vmul.f32 1.442695, %v4564_v44 }
0x146c   : > { %v7153_v49 = vpop.eup %7152  ;;  %6024 = vmatpush.msrb.mxu2 %v9505_v33 }
0x146d   : > { %v4129_v6 = vpop.xlane.xlu2 %4128  ;;  %v4222_v40 = vmul.f32 %v7153_v49, %v9430_v11  ;;  %v7155_v62 = vpop.eup %7154 }
0x146e   : > { %v4145_v59 = vsub.f32 %v9447_v39, %v4129_v6  ;;  %6025 = vmatpush.msrb.mxu2 %v9511_v15  ;;  %v4186_v11 = vpop.xlane.xlu1 %4185  ;;  %v4640_v3 = vmul.f32 %v7155_v62, %v9374_v45 }
0x146f   : > { %6559 = vmatmul.msk.f32.gmra.mxu3 %vm3681_vm2, %v4222_v40  ;;  %6594 = vmatmul.msk.f32.gmra.mxu2 %vm3681_vm2, %v4639_v50  ;;  %v9608_v6 = vpop.f32.mrf.mxu2 }
0x1470   : > { %v4166_v47 = vmul.f32 1.442695, %v4145_v59  ;;  %6026 = vmatpush.msrb.mxu2 %v9517_v0 }
0x1472   : > { %7156 = vpow2.f32 %v4166_v47  ;;  %6027 = vmatpush.msrb.mxu2 %v9523_v42 }
0x1473   : > { %7158 = vrcp.f32 %v4601_v55 }
0x1475   : > { %v4183_v39 = vpop.xlane.xlu2 %4182 }
0x1476   : > { %7160 = vrcp.f32 %v4183_v39  ;;  %v4553_v35 = vpop.xlane.xlu1 %4552 }
0x1477   : > { %6595 = vmatmul.msk.f32.gmra.mxu2 %vm3681_vm2, %v4640_v3  ;;  %7162 = vpow2.f32 %v4586_v25  ;;  %v4565_v27 = vsub.f32 %v9398_v31, %v4553_v35  ;;  %v4607_v31 = vpop.xlane.xlu0 %4606  ;;  %v9617_v39 = vpop.f32.mrf.mxu2 }
0x1478   : > { %v9578_v10 = vpop.eup %7156  ;;  %7164 = vrcp.f32 %v4186_v11 }
0x1479   : > { %v4199_v26 = vsel %vm3681_vm2, %v9578_v10, 0.0  ;;  %v7159_v8 = vpop.eup %7158 }
0x147a   : > { %4200 = vadd.xlane.f32.xlu1 %v4199_v26  ;;  %v4641_v24 = vmul.f32 %v7159_v8, %v9390_v54  ;;  %v4588_v54 = vmul.f32 1.442695, %v4565_v27 }
0x147c   : > { %v7161_v63 = vpop.eup %7160 }
0x147d   : > { %v4132_v37 = vpop.xlane.xlu2 %4131  ;;  %v4223_v55 = vmul.f32 %v7161_v63, %v9455_v5  ;;  %v9584_v45 = vpop.eup %7162 }
0x147e   : > { %v4146_v18 = vsub.f32 %v9464_v21, %v4132_v37  ;;  %v4620_v46 = vsel %vm3681_vm2, %v9584_v45, 0.0  ;;  %v7165_v56 = vpop.eup %7164 }
0x147f   : > { %6560 = vmatmul.msk.f32.gmra.mxu3 %vm3681_vm2, %v4223_v55  ;;  %6596 = vmatmul.msk.f32.gmra.mxu2 %vm3681_vm2, %v4641_v24  ;;  %v4224_v51 = vmul.f32 %v7165_v56, %v9384_v9  ;;  %v4192_v9 = vpop.xlane.xlu1 %4191  ;;  %v4195_v44 = vpop.xlane.xlu0 %4194 }
0x1480   : > { %v4168_v38 = vmul.f32 1.442695, %v4146_v18 }
0x1482   : > { %7166 = vpow2.f32 %v4168_v38  ;;  %4621 = vadd.xlane.f32.xlu1 %v4620_v46 }
0x1485   : > { %v4604_v5 = vpop.xlane.xlu2 %4603 }
0x1486   : > { %7168 = vrcp.f32 %v4604_v5 }
0x1487   : > { %6561 = vmatmul.msk.f32.gmra.mxu3 %vm3681_vm2, %v4224_v51  ;;  %7170 = vpow2.f32 %v4588_v54  ;;  %v4613_v59 = vpop.xlane.xlu1 %4612 }
0x1488   : > { %v9596_v21 = vpop.eup %7166  ;;  %7172 = vrcp.f32 %v4607_v31 }
0x1489   : > { %v4202_v20 = vsel %vm3681_vm2, %v9596_v21, 0.0 }
0x148a   : > { %4203 = vadd.xlane.f32.xlu0 %v4202_v20 }
0x148c   : > { %v7169_v14 = vpop.eup %7168 }
0x148d   : > { %v4189_v41 = vpop.xlane.xlu2 %4188  ;;  %v4642_v13 = vmul.f32 %v7169_v14, %v9471_v7  ;;  %v9603_v1 = vpop.eup %7170 }
0x148e   : > { %7174 = vrcp.f32 %v4189_v41  ;;  %v4623_v48 = vsel %vm3681_vm2, %v9603_v1, 0.0  ;;  %v7173_v30 = vpop.eup %7172 }
0x148f   : > { %6597 = vmatmul.msk.f32.gmra.mxu2 %vm3681_vm2, %v4642_v13  ;;  %7176 = vrcp.f32 %v4192_v9  ;;  %v4643_v7 = vmul.f32 %v7173_v30, %v9427_v16 }
0x1491   : > { %v4321_v62 = vpop.f32.mrf.mxu3 }
0x1492   : > { %4624 = vadd.xlane.f32.xlu0 %v4623_v48 }
0x1494   : > { %v7175_v49 = vpop.eup %7174 }
0x1495   : > { %v4610_v40 = vpop.xlane.xlu2 %4609  ;;  %v4225_v50 = vmul.f32 %v7175_v49, %v9480_v23  ;;  %v7177_v47 = vpop.eup %7176 }
0x1496   : > { %7178 = vrcp.f32 %v4610_v40  ;;  %v4226_v25 = vmul.f32 %v7177_v47, %v9421_v53  ;;  %v9626_v53 = vpop.f32.mrf.mxu2 }
0x1497   : > { %6562 = vmatmul.msk.f32.gmra.mxu3 %vm3681_vm2, %v4225_v50  ;;  %6598 = vmatmul.msk.f32.gmra.mxu2 %vm3681_vm2, %v4643_v7  ;;  %7180 = vrcp.f32 %v4613_v59 }
0x1498   : > { %7182 = vrcp.f32 %v4195_v44 }
0x149b   : > { %4787 = vrot.lane.b32.xlu1 %v4321_v62, %s10542_s23  ;;  %v6607_v62 = vld [vmem:[%s10426_s11 + $0x40] sm:$0xff] }
0x149c   : > { %v7179_v11 = vpop.eup %7178  ;;  %4948 = vmatpush.msra.mxu1 %v6607_v62  ;;  %v5379_v62 = vld [vmem:[%s10435_s20 + $0x58] sm:$0xff] }
0x149d   : > { %v4644_v23 = vmul.f32 %v7179_v11, %v9484_v4  ;;  %v7181_v16 = vpop.eup %7180  ;;  %v6606_v11 = vld [vmem:[%s10426_s11 + $0x38] sm:$0xff] }
0x149e   : > { %v7183_v3 = vpop.eup %7182  ;;  %v4645_v63 = vmul.f32 %v7181_v16, %v9435_v60  ;;  %v9628_v4 = vpop.f32.mrf.mxu2  ;;  %4949 = vmatpush.msra.mxu1 %v6606_v11 }
0x149f   : > { %6563 = vmatmul.msk.f32.gmra.mxu3 %vm3681_vm2, %v4226_v25  ;;  %6599 = vmatmul.msk.f32.gmra.mxu2 %vm3681_vm2, %v4644_v23  ;;  %v4227_v8 = vmul.f32 %v7183_v3, %v9443_v19 }
0x14a3   : > { %v4324_v26 = vpop.f32.mrf.mxu3 }
0x14a6   : > { %4789 = vrot.lane.b32.xlu0 %v4324_v26, %s10542_s23 }
0x14a7   : > { %6564 = vmatmul.msk.f32.gmra.mxu3 %vm3681_vm2, %v4227_v8  ;;  %6600 = vmatmul.msk.f32.gmra.mxu2 %vm3681_vm2, %v4645_v63 }
0x14ba   : > { %v9630_v35 = vpop.f32.mrf.mxu2 }
0x14c2   : > { %v9632_v37 = vpop.f32.mrf.mxu2 }
0x14c7   : > { %v4198_v55 = vpop.xlane.xlu2 %4197 }
0x14c8   : > { %7184 = vrcp.f32 %v4198_v55 }
0x14ca   : > { %v9634_v24 = vpop.f32.mrf.mxu2 }
0x14ce   : > { %v7185_v19 = vpop.eup %7184 }
0x14cf   : > { %v4228_v60 = vmul.f32 %v7185_v19, %v9538_v29  ;;  %v4619_v46 = vpop.xlane.xlu2 %4618 }
0x14d1   : > { %6565 = vmatmul.msk.f32.gmra.mxu3 %vm3681_vm2, %v4228_v60 }
0x14d2   : > { %v9638_v18 = vpop.f32.mrf.mxu2 }
0x14da   : > { %v9640_v27 = vpop.f32.mrf.mxu2 }
0x14db   : > { %v4207_v40 = vpop.xlane.xlu2 %4206 }
0x14dd   : > { %v4616_v38 = vpop.xlane.xlu0 %4615 }
0x14de   : > { %7186 = vrcp.f32 %v4616_v38 }
0x14df   : > { %7188 = vrcp.f32 %v4619_v46 }
0x14e2   : > { %v9642_v56 = vpop.f32.mrf.mxu2 }
0x14e4   : > { %v7187_v54 = vpop.eup %7186 }
0x14e5   : > { %v4646_v5 = vmul.f32 %v7187_v54, %v9559_v58  ;;  %v7189_v51 = vpop.eup %7188 }
0x14e6   : > { %v4647_v20 = vmul.f32 %v7189_v51, %v9544_v61 }
0x14e7   : > { %6601 = vmatmul.msk.f32.gmra.mxu2 %vm3681_vm2, %v4646_v5 }
0x14ea   : > { %v4739_v31 = vpop.f32.mrf.mxu2 }
0x14eb   : > { %4835 = vrot.lane.b32.xlu2 %v4739_v31, %s10531_s2 }
0x14ed   : > { %v4201_v29 = vpop.xlane.xlu1 %4200 }
0x14ee   : > { %7190 = vrcp.f32 %v4201_v29 }
0x14ef   : > { %6602 = vmatmul.msk.f32.gmra.mxu2 %vm3681_vm2, %v4647_v20 }
0x14f2   : > { %v4327_v14 = vpop.f32.mrf.mxu3  ;;  %v4742_v41 = vpop.f32.mrf.mxu2 }
0x14f3   : > { %4791 = vrot.lane.b32.xlu0 %v4327_v14, %s10542_s23  ;;  %4837 = vrot.lane.b32.xlu1 %v4742_v41, %s10531_s2  ;;  %v7228_v14 = vmov 0  }
0x14f4   : > { %v7191_v13 = vpop.eup %7190  ;;  %6929 = vset.pattern.permute.xlu1 %v7228_v14  ;;  %6931 = vset.pattern.permute.xlu2 %v7228_v14 }
0x14f5   : > { %v4622_v58 = vpop.xlane.xlu1 %4621  ;;  %v4229_v9 = vmul.f32 %v7191_v13, %v9578_v10  ;;  %6930 = vset.pattern.permute.xlu0 %v7228_v14  ;;  %v9799_v14 = vld [vmem:[%s10427_s12 + $0x2] ss:$0 sm:$0xff] }
0x14f6   : > { %7192 = vrcp.f32 %v4622_v58 }
0x14f7   : > { %6566 = vmatmul.msk.f32.gmra.mxu3 %vm3681_vm2, %v4229_v9 }
0x14fa   : > { %v4745_v48 = vpop.f32.mrf.mxu2 }
0x14fb   : > { %4839 = vrot.lane.b32.xlu2 %v4745_v48, %s10531_s2 }
0x14fc   : > { %v7193_v61 = vpop.eup %7192 }
0x14fd   : > { %v4204_v30 = vpop.xlane.xlu0 %4203  ;;  %v4648_v49 = vmul.f32 %v7193_v61, %v9584_v45 }
0x14fe   : > { %7194 = vrcp.f32 %v4204_v30 }
0x14ff   : > { %6603 = vmatmul.msk.f32.gmra.mxu2 %vm3681_vm2, %v4648_v49  ;;  %7196 = vrcp.f32 %v4207_v40 }
0x1502   : > { %v4330_v50 = vpop.f32.mrf.mxu3  ;;  %v4748_v7 = vpop.f32.mrf.mxu2 }
0x1503   : > { %4793 = vrot.lane.b32.xlu1 %v4330_v50, %s10542_s23  ;;  %4841 = vrot.lane.b32.xlu0 %v4748_v7, %s10531_s2 }
0x1504   : > { %v7195_v10 = vpop.eup %7194 }
0x1505   : > { %v4625_v59 = vpop.xlane.xlu0 %4624  ;;  %v4230_v44 = vmul.f32 %v7195_v10, %v9596_v21  ;;  %v7197_v47 = vpop.eup %7196 }
0x1506   : > { %7198 = vrcp.f32 %v4625_v59  ;;  %v4231_v23 = vmul.f32 %v7197_v47, %v9554_v2  ;;  %v6605_v2 = vld [vmem:[%s10426_s11 + $0x30] sm:$0xff] }
0x1507   : > { %6567 = vmatmul.msk.f32.gmra.mxu3 %vm3681_vm2, %v4230_v44  ;;  %4950 = vmatpush.msra.mxu1 %v6605_v2 }
0x150a   : > { %v4333_v45 = vpop.f32.mrf.mxu3 }
0x150b   : > { %4795 = vrot.lane.b32.xlu2 %v4333_v45, %s10542_s23 }
0x150c   : > { %v7199_v25 = vpop.eup %7198 }
0x150d   : > { %v4649_v21 = vmul.f32 %v7199_v25, %v9603_v1  ;;  %v4788_v19 = vpop.permute.xlu1 %4787 }
0x150e   : > { %v4871_v60 = vsel %vm1469_vm14, %v9592_v17, %v4788_v19  ;;  %v5374_v19 = vld [vmem:[%s10435_s20 + $0x30] sm:$0xff] }
0x150f   : > { %6568 = vmatmul.msk.f32.gmra.mxu3 %vm3681_vm2, %v4231_v23  ;;  %6604 = vmatmul.msk.f32.gmra.mxu2 %vm3681_vm2, %v4649_v21 }
0x1512   : > { %v4751_v16 = vpop.f32.mrf.mxu2 }
0x1513   : > { %4843 = vrot.lane.b32.xlu1 %v4751_v16, %s10531_s2 }
0x1518   : > { %v4790_v5 = vpop.permute.xlu0 %4789 }
0x1519   : > { %v4872_v51 = vsel %vm1469_vm14, %v9600_v43, %v4790_v5  ;;  %v6621_v5 = vld [vmem:[%s10428_s13 + $0x30] sm:$0xff] }
0x151a   : > { %v4336_v3 = vpop.f32.mrf.mxu3  ;;  %v4754_v26 = vpop.f32.mrf.mxu2 }
0x151b   : > { %4797 = vrot.lane.b32.xlu0 %v4336_v3, %s10542_s23  ;;  %4845 = vrot.lane.b32.xlu2 %v4754_v26, %s10531_s2  ;;  %v5381_v3 = vld [vmem:[%s10435_s20 + $0x68] sm:$0xff] }
0x151c   : > { %v5377_v26 = vld [vmem:[%s10435_s20 + $0x48] sm:$0xff] }
0x1522   : > { %v4339_v8 = vpop.f32.mrf.mxu3  ;;  %v4757_v63 = vpop.f32.mrf.mxu2 }
0x1523   : > { %4799 = vrot.lane.b32.xlu1 %v4339_v8, %s10542_s23  ;;  %4847 = vrot.lane.b32.xlu0 %v4757_v63, %s10531_s2  ;;  %v5380_v8 = vld [vmem:[%s10435_s20 + $0x60] sm:$0xff] }
0x152a   : > { %v4342_v1 = vpop.f32.mrf.mxu3  ;;  %v4760_v55 = vpop.f32.mrf.mxu2 }
0x152b   : > { %4801 = vrot.lane.b32.xlu2 %v4342_v1, %s10542_s23  ;;  %4849 = vrot.lane.b32.xlu1 %v4760_v55, %s10531_s2  ;;  %v5376_v55 = vld [vmem:[%s10435_s20 + $0x40] sm:$0xff] }
0x1545   : > { %v4836_v38 = vpop.permute.xlu2 %4835 }
0x1546   : > { %v4883_v46 = vsel %vm1112_vm9, %v4871_v60, %v4836_v38  ;;  %v5378_v60 = vld [vmem:[%s10435_s20 + $0x50] sm:$0xff]  ;;  %v6622_v38 = vld [vmem:[%s10428_s13 + $0x38] sm:$0xff] }
0x1547   : > { %6608 = vmatmul.msk.f32.vlgmr.msra.gmra.mxu1 %vm1383_vm13, %v4883_v46  ;;  %v5373_v46 = vld [vmem:[%s10435_s20 + $0x28] sm:$0xff] }
0x1554   : > { %v4345_v54 = vpop.f32.mrf.mxu3 }
0x1555   : > { %4803 = vrot.lane.b32.xlu0 %v4345_v54, %s10542_s23  ;;  %v4840_v13 = vpop.permute.xlu2 %4839  ;;  %v5371_v54 = vld [vmem:[%s10435_s20 + $0x18] sm:$0xff] }
0x1565   : > { %v4838_v31 = vpop.permute.xlu1 %4837  ;;  %v4792_v20 = vpop.permute.xlu0 %4791 }
0x1566   : > { %v4884_v29 = vsel %vm1112_vm9, %v4872_v51, %v4838_v31  ;;  %v4873_v41 = vsel %vm1469_vm14, %v9608_v6, %v4792_v20  ;;  %v4796_v49 = vpop.permute.xlu2 %4795  ;;  %v5375_v51 = vld [vmem:[%s10435_s20 + $0x38] sm:$0xff]  ;;  %v5370_v31 = vld [vmem:[%s10435_s20 + $0x10] sm:$0xff]  ;;  %v5372_v20 = vld [vmem:[%s10435_s20 + $0x20] sm:$0xff] }
0x1567   : > { %6609 = vmatmul.msk.f32.gmra.mxu1 %vm1383_vm13, %v4884_v29  ;;  %v4885_v58 = vsel %vm1112_vm9, %v4873_v41, %v4840_v13  ;;  %v4875_v50 = vsel %vm1469_vm14, %v9626_v53, %v4796_v49  ;;  %v5368_v29 = vld [vmem:[%s10435_s20] sm:$0xff] }
0x1568   : > { %v10558_v41 = vld [vmem:[#allocation8_spill] sm:$0xff] }
0x1569   : > { %v10559_v13 = vmax.f32 %v10558_v41, 0.0 }
0x156a   : > { %v4763_v17 = vpop.f32.mrf.mxu2 }
0x156b   : > { %4851 = vrot.lane.b32.xlu2 %v4763_v17, %s10531_s2 }
0x156f   : > { %6610 = vmatmul.msk.f32.gmra.mxu1 %vm1383_vm13, %v4885_v58 }
0x1572   : > { %v4766_v43 = vpop.f32.mrf.mxu2 }
0x1573   : > { %4853 = vrot.lane.b32.xlu0 %v4766_v43, %s10531_s2 }
0x1575   : > { %v4794_v9 = vpop.permute.xlu1 %4793  ;;  %v4842_v48 = vpop.permute.xlu0 %4841 }
0x1576   : > { %v4874_v61 = vsel %vm1469_vm14, %v9617_v39, %v4794_v9  ;;  %v5382_v39 = vld [vmem:[%s10435_s20 + $0x70] sm:$0xff]  ;;  %v4846_v47 = vpop.permute.xlu2 %4845 }
0x1577   : > { %v4886_v30 = vsel %vm1112_vm9, %v4874_v61, %v4842_v48 }
0x1578   : > { %6611 = vmatmul.msk.f32.gmra.mxu1 %vm1383_vm13, %v4886_v30  ;;  %v5730_v30 = vld [vmem:[%s10437_s22 + $0x30] sm:$0xff] }
0x157a   : > { %v4348_v6 = vpop.f32.mrf.mxu3 }
0x157b   : > { %4805 = vrot.lane.b32.xlu1 %v4348_v6, %s10542_s23  ;;  %v5732_v6 = vld [vmem:[%s10437_s22 + $0x40] sm:$0xff] }
0x1582   : > { %v4769_v40 = vpop.f32.mrf.mxu2 }
0x1583   : > { %4855 = vrot.lane.b32.xlu1 %v4769_v40, %s10531_s2  ;;  %v5728_v40 = vld [vmem:[%s10437_s22 + $0x20] sm:$0xff] }
0x1585   : > { %v4844_v7 = vpop.permute.xlu1 %4843  ;;  %v4802_v63 = vpop.permute.xlu2 %4801 }
0x1586   : > { %v4887_v10 = vsel %vm1112_vm9, %v4875_v50, %v4844_v7  ;;  %v5735_v50 = vld [vmem:[%s10437_s22 + $0x58] sm:$0xff] }
0x1587   : > { %6612 = vmatmul.msk.f32.gmra.mxu1 %vm1383_vm13, %v4887_v10  ;;  %v5731_v7 = vld [vmem:[%s10437_s22 + $0x38] sm:$0xff]  ;;  %v5736_v10 = vld [vmem:[%s10437_s22 + $0x60] sm:$0xff] }
0x158a   : > { %v4351_v59 = vpop.f32.mrf.mxu3 }
0x158b   : > { %4807 = vrot.lane.b32.xlu2 %v4351_v59, %s10542_s23  ;;  %5455 = vperm.xlu1 %6929, %v5382_v39   ;;  %v5738_v39 = vld [vmem:[%s10437_s22 + $0x70] sm:$0xff] }
0x158c   : > { %v5734_v59 = vld [vmem:[%s10437_s22 + $0x50] sm:$0xff] }
0x158d   : > { %v4798_v44 = vpop.permute.xlu0 %4797 }
0x158e   : > { %v4876_v45 = vsel %vm1469_vm14, %v9628_v4, %v4798_v44  ;;  %v5739_v44 = vld [vmem:[%s10437_s22 + $0x78] sm:$0xff] }
0x158f   : > { %v4888_v53 = vsel %vm1112_vm9, %v4876_v45, %v4846_v47  ;;  %v5741_v47 = vld [vmem:[%s10437_s22 + $0x88] sm:$0xff] }
0x1590   : > { %6613 = vmatmul.msk.f32.gmra.mxu1 %vm1383_vm13, %v4888_v53  ;;  %v5737_v45 = vld [vmem:[%s10437_s22 + $0x68] sm:$0xff] }
0x1592   : > { %v4354_v11 = vpop.f32.mrf.mxu3  ;;  %v4772_v25 = vpop.f32.mrf.mxu2 }
0x1593   : > { %4809 = vrot.lane.b32.xlu0 %v4354_v11, %s10542_s23  ;;  %5440 = vperm.xlu1 %6929, %v5379_v62   ;;  %v10560_v62 = vld [vmem:[#allocation9_spill] sm:$0xff]  ;;  %s7236_s23 = smov 107  }
0x1594   : > { %4857 = vrot.lane.b32.xlu2 %v4772_v25, %s10531_s2  ;;  %v10561_v11 = vmax.f32 %v10560_v62, 0.0  ;;  %s7238_s2 = smov 110  }
0x1595   : > { %v4800_v23 = vpop.permute.xlu1 %4799  ;;  %v4848_v21 = vpop.permute.xlu0 %4847 }
0x1596   : > { %v4877_v4 = vsel %vm1469_vm14, %v9630_v35, %v4800_v23  ;;  %v4878_v35 = vsel %vm1469_vm14, %v9632_v37, %v4802_v63  ;;  %v6623_v37 = vld [vmem:[%s10428_s13 + $0x40] sm:$0xff]  ;;  %v10563_v63 = vld [vmem:[#allocation10_spill] sm:$0xff] }
0x1597   : > { %v4889_v16 = vsel %vm1112_vm9, %v4877_v4, %v4848_v21  ;;  %5075 = vmatpush.msrb.mxu3 %v6623_v37  ;;  %v10562_v4 = vld [vmem:[#allocation4_spill] sm:$0xff] }
0x1598   : > { %6614 = vmatmul.msk.f32.gmra.mxu1 %vm1383_vm13, %v4889_v16  ;;  %v1238_v16 = vrot.slane %v10562_v4, 7 }
0x1599   : > { %5076 = vmatpush.msrb.mxu3 %v6622_v38 }
0x159b   : > { %5450 = vperm.xlu0 %6930, %v5381_v3   ;;  %5430 = vperm.xlu1 %6929, %v5377_v26   ;;  %v1246_v3 = vrot.slane %v10562_v4, 5  ;;  %v5740_v26 = vld [vmem:[%s10437_s22 + $0x80] sm:$0xff] }
0x159c   : > { %5445 = vperm.xlu2 %6931, %v5380_v8   ;;  %5077 = vmatpush.msrb.mxu3 %v6621_v5 }
0x159d   : > { %v4850_v2 = vpop.permute.xlu1 %4849 }
0x159e   : > { %v4890_v1 = vsel %vm1112_vm9, %v4878_v35, %v4850_v2  ;;  %5620 = vmatpush.msra.mxu3 %v9493_v36  ;;  %v5724_v36 = vld [vmem:[%s10437_s22] sm:$0xff]  ;;  %v10564_v35 = vmax.f32 %v10563_v63, 0.0 }
0x15a0   : > { %6615 = vmatmul.msk.f32.gmra.mxu1 %vm1383_vm13, %v4890_v1  ;;  %5621 = vmatpush.msra.mxu3 %v9499_v52  ;;  %v5726_v52 = vld [vmem:[%s10437_s22 + $0x10] sm:$0xff] }
0x15a2   : > { %5622 = vmatpush.msra.mxu3 %v9505_v33  ;;  %v5369_v33 = vld [vmem:[%s10435_s20 + $0x8] sm:$0xff] }
0x15a3   : > { %5425 = vperm.xlu0 %6930, %v5376_v55   ;;  %5415 = vperm.xlu1 %6929, %v5374_v19  }
0x15a4   : > { %5435 = vperm.xlu2 %6931, %v5378_v60   ;;  %5623 = vmatpush.msra.mxu3 %v9511_v15  ;;  %v5727_v15 = vld [vmem:[%s10437_s22 + $0x18] sm:$0xff] }
0x15a6   : > { %5624 = vmatpush.msra.mxu3 %v9517_v0  ;;  %v5729_v0 = vld [vmem:[%s10437_s22 + $0x28] sm:$0xff] }
0x15a8   : > { %5625 = vmatpush.msra.mxu3 %v9523_v42  ;;  %v5725_v42 = vld [vmem:[%s10437_s22 + $0x8] sm:$0xff] }
0x15ab   : > { %5410 = vperm.xlu0 %6930, %v5373_v46   ;;  %5400 = vperm.xlu1 %6929, %v5371_v54   ;;  %v1250_v46 = vrot.slane %v10562_v4, 4  ;;  %v1242_v54 = vrot.slane %v10562_v4, 6 }
0x15ac   : > { %5420 = vperm.xlu2 %6931, %v5375_v51  }
0x15b3   : > { %5395 = vperm.xlu0 %6930, %v5370_v31   ;;  %5385 = vperm.xlu1 %6929, %v5368_v29   ;;  %v10565_v31 = vld [vmem:[#allocation11_spill] sm:$0xff] }
0x15b4   : > { %5405 = vperm.xlu2 %6931, %v5372_v20   ;;  %v10566_v29 = vmax.f32 %v10565_v31, 0.0 }
0x15bb   : > { %5744 = vperm.xlu0 %6930, %v5724_v36   ;;  %5754 = vperm.xlu1 %6929, %v5726_v52  }
0x15bc   : > { %5390 = vperm.xlu2 %6931, %v5369_v33  }
0x15c3   : > { %5759 = vperm.xlu0 %6930, %v5727_v15   ;;  %5769 = vperm.xlu1 %6929, %v5729_v0   ;;  %v1254_v15 = vrot.slane %v10562_v4, 3 }
0x15c4   : > { %5749 = vperm.xlu2 %6931, %v5725_v42   ;;  %v4952_v17 = vpop.f32.mrf.mxu1  ;;  %v1262_v42 = vrot.slane %v10562_v4, 1 }
0x15c5   : > { %v4988_v58 = vadd.f32 %v4952_v17, %v10559_v13  ;;  %v4852_v48 = vpop.permute.xlu2 %4851  ;;  %v1258_v17 = vrot.slane %v10562_v4, 2  ;;  %v10567_v13 = vld [vmem:[#allocation12_spill] sm:$0xff] }
0x15c7   : > { %v5005_v43 = vadd.f32 %v9799_v14, %v4988_v58  ;;  %v4804_v9 = vpop.permute.xlu0 %4803  ;;  %v10568_v58 = vmax.f32 %v10567_v13, 0.0 }
0x15c8   : > { %v4879_v61 = vsel %vm1469_vm14, %v9634_v24, %v4804_v9  ;;  %v5733_v24 = vld [vmem:[%s10437_s22 + $0x48] sm:$0xff] }
0x15c9   : > { %6625 = vmatmul.msk.f32.vlgmr.msrb.gmra.mxu3 %vm1383_vm13, %v5005_v43  ;;  %v4891_v49 = vsel %vm1112_vm9, %v4879_v61, %v4852_v48 }
0x15ca   : > { %6616 = vmatmul.msk.f32.gmra.mxu1 %vm1383_vm13, %v4891_v49 }
0x15cb   : > { %5774 = vperm.xlu0 %6930, %v5730_v30   ;;  %5784 = vperm.xlu1 %6929, %v5732_v6  }
0x15cc   : > { %5764 = vperm.xlu2 %6931, %v5728_v40  }
0x15d3   : > { %5789 = vperm.xlu0 %6930, %v5733_v24   ;;  %5799 = vperm.xlu1 %6929, %v5735_v50   ;;  %v10569_v50 = vld [vmem:[#allocation13_spill] sm:$0xff] }
0x15d4   : > { %5779 = vperm.xlu2 %6931, %v5731_v7   ;;  %v10570_v7 = vmax.f32 %v10569_v50, 0.0 }
0x15db   : > { %5804 = vperm.xlu0 %6930, %v5736_v10   ;;  %5814 = vperm.xlu1 %6929, %v5738_v39  }
0x15dc   : > { %5794 = vperm.xlu2 %6931, %v5734_v59  }
0x15e3   : > { %5819 = vperm.xlu0 %6930, %v5739_v44   ;;  %5829 = vperm.xlu1 %6929, %v5741_v47  }
0x15e4   : > { %5809 = vperm.xlu2 %6931, %v5737_v45   ;;  %v4955_v53 = vpop.f32.mrf.mxu1  ;;  %v10571_v45 = vld [vmem:[#allocation14_spill] sm:$0xff] }
0x15e5   : > { %v4989_v25 = vadd.f32 %v4955_v53, %v10561_v11  ;;  %v4808_v23 = vpop.permute.xlu2 %4807  ;;  %v4854_v55 = vpop.permute.xlu0 %4853  ;;  %v10572_v53 = vmax.f32 %v10571_v45, 0.0 }
0x15e7   : > { %v5006_v21 = vadd.f32 %v9799_v14, %v4989_v25 }
0x15e9   : > { %6626 = vmatmul.msk.f32.gmra.mxu3 %vm1383_vm13, %v5006_v21 }
0x15eb   : > { %1239 = vrot.lane.b32.xlu0 %v1238_v16, %s7229_s7  ;;  %1247 = vrot.lane.b32.xlu1 %v1246_v3, %s7230_s6  ;;  %s10587_s7 = sld [smem:[#allocation31_spill]] }
0x15ec   : > { %5824 = vperm.xlu2 %6931, %v5740_v26   ;;  %v4958_v8 = vpop.f32.mrf.mxu1 }
0x15ed   : > { %v4990_v2 = vadd.f32 %v4958_v8, %v10564_v35  ;;  %v4806_v1 = vpop.permute.xlu1 %4805 }
0x15ee   : > { %v4880_v19 = vsel %vm1469_vm14, %v9638_v18, %v4806_v1  ;;  %v4858_v60 = vpop.permute.xlu2 %4857  ;;  %v4881_v18 = vsel %vm1469_vm14, %v9640_v27, %v4808_v23  ;;  %v6644_v1 = vld [vmem:[%s10430_s15 + $0xb8] sm:$0xff] }
0x15ef   : > { %v5007_v37 = vadd.f32 %v9799_v14, %v4990_v2  ;;  %v4892_v38 = vsel %vm1112_vm9, %v4880_v19, %v4854_v55  ;;  %v6643_v55 = vld [vmem:[%s10430_s15 + $0xb0] sm:$0xff]  ;;  %5185 = vmatpush.msrb.mxu0 %v6644_v1 }
0x15f0   : > { %6617 = vmatmul.msk.f32.gmra.mxu1 %vm1383_vm13, %v4892_v38  ;;  %v6642_v38 = vld [vmem:[%s10430_s15 + $0xa8] sm:$0xff] }
0x15f1   : > { %6627 = vmatmul.msk.f32.gmra.mxu3 %vm1383_vm13, %v5007_v37  ;;  %5186 = vmatpush.msrb.mxu0 %v6643_v55 }
0x15f3   : > { %1251 = vrot.lane.b32.xlu0 %v1250_v46, %s7231_s0  ;;  %1266 = vrot.lane.b32.xlu1 %v10562_v4, %s10534_s4  ;;  %s7233_s4 = smov 101  }
0x15f4   : > { %1243 = vrot.lane.b32.xlu2 %v1242_v54, %s7232_s1  ;;  %5187 = vmatpush.msrb.mxu0 %v6642_v38 }
0x15f5   : > { %v4961_v5 = vpop.f32.mrf.mxu1  ;;  %v4856_v51 = vpop.permute.xlu1 %4855 }
0x15f6   : > { %v4991_v20 = vadd.f32 %v4961_v5, %v10566_v29  ;;  %v4893_v36 = vsel %vm1112_vm9, %v4881_v18, %v4856_v51  ;;  %v9871_v52 = vpop.permute.xlu2 %5445  ;;  %v6639_v5 = vld [vmem:[%s10430_s15 + $0x90] sm:$0xff]  ;;  %v6638_v29 = vld [vmem:[%s10430_s15 + $0x88] sm:$0xff] }
0x15f8   : > { %v5008_v33 = vadd.f32 %v9799_v14, %v4991_v20  ;;  %6618 = vmatmul.msk.f32.gmra.mxu1 %vm1383_vm13, %v4893_v36  ;;  %v6637_v20 = vld [vmem:[%s10430_s15 + $0x80] sm:$0xff] }
0x15f9   : > { %v9964_v36 = vld [vmem:[%s10433_s18] ss:$0 sm:$0xff] }
0x15fa   : > { %6628 = vmatmul.msk.f32.gmra.mxu3 %vm1383_vm13, %v5008_v33  ;;  %v3231_v13 = vadd.f32 %v9964_v36, %v9045_v34  ;;  %v9993_v34 = vld [vmem:[%s10429_s14 + $0x2] ss:$0 sm:$0xff]  ;;  %v3237_v45 = vadd.f32 %v9964_v36, %v9065_v12 }
0x15fb   : > { %1269 = vrot.lane.b32.xlu0 %v1238_v16, %s7233_s4  ;;  %1272 = vrot.lane.b32.xlu1 %v1242_v54, %s7234_s28  ;;  %v6640_v54 = vld [vmem:[%s10430_s15 + $0x98] sm:$0xff] }
0x15fc   : > { %1255 = vrot.lane.b32.xlu2 %v1254_v15, %s7235_s24  ;;  %s10591_s24 = sld [smem:[#allocation33_spill]] }
0x15fd   : > { %v9877_v27 = vpop.permute.xlu1 %5455 }
0x15fe   : > { %v9879_v0 = vpop.permute.xlu2 %5435 }
0x1603   : > { %1263 = vrot.lane.b32.xlu0 %v1262_v42, %s7236_s23  ;;  %1278 = vrot.lane.b32.xlu1 %v1250_v46, %s7237_s26  ;;  %v6641_v46 = vld [vmem:[%s10430_s15 + $0xa0] sm:$0xff] }
0x1604   : > { %1259 = vrot.lane.b32.xlu2 %v1258_v17, %s7238_s2  ;;  %v4964_v41 = vpop.f32.mrf.mxu1  ;;  %5188 = vmatpush.msrb.mxu0 %v6641_v46 }
0x1605   : > { %v4992_v43 = vadd.f32 %v4964_v41, %v10568_v58  ;;  %v4810_v9 = vpop.permute.xlu0 %4809  ;;  %v9885_v48 = vpop.permute.xlu1 %5440 }
0x1606   : > { %v4882_v61 = vsel %vm1469_vm14, %v9642_v56, %v4810_v9  ;;  %v9889_v30 = vpop.permute.xlu2 %5420  ;;  %5189 = vmatpush.msrb.mxu0 %v6640_v54 }
0x1607   : > { %v5009_v6 = vadd.f32 %v9799_v14, %v4992_v43  ;;  %v4894_v49 = vsel %vm1112_vm9, %v4882_v61, %v4858_v60 }
0x1608   : > { %6619 = vmatmul.msk.f32.gmra.mxu1 %vm1383_vm13, %v4894_v49  ;;  %5190 = vmatpush.msrb.mxu0 %v6639_v5  ;;  %v10575_v49 = vld [vmem:[#allocation16_spill] sm:$0xff] }
0x1609   : > { %6629 = vmatmul.msk.f32.gmra.mxu3 %vm1383_vm13, %v5009_v6 }
0x160a   : > { %5191 = vmatpush.msrb.mxu0 %v6638_v29 }
0x160b   : > { %1281 = vrot.lane.b32.xlu0 %v1254_v15, %s7239_s21  ;;  %v3228_v15 = vadd.f32 %v9964_v36, %v9037_v22  ;;  %v3234_v22 = vadd.f32 %v9964_v36, %v9053_v28 }
0x160c   : > { %1275 = vrot.lane.b32.xlu2 %v1246_v3, %s7240_s30  ;;  %v10573_v3 = vld [vmem:[#allocation15_spill] sm:$0xff]  ;;  %5192 = vmatpush.msrb.mxu0 %v6637_v20 }
0x160d   : > { %v4967_v40 = vpop.f32.mrf.mxu1  ;;  %v9895_v24 = vpop.permute.xlu0 %5450  ;;  %v10574_v26 = vmax.f32 %v10573_v3, 0.0 }
0x160e   : > { %v4993_v56 = vadd.f32 %v4967_v40, %v10570_v7  ;;  %v9899_v10 = vpop.permute.xlu1 %5430  ;;  %v9901_v39 = vpop.permute.xlu2 %5405  ;;  %v10576_v40 = vmax.f32 %v10575_v49, 0.0 }
0x1610   : > { %v5010_v59 = vadd.f32 %v9799_v14, %v4993_v56 }
0x1612   : > { %6630 = vmatmul.msk.f32.gmra.mxu3 %vm1383_vm13, %v5010_v59 }
0x1614   : > { %1284 = vrot.lane.b32.xlu2 %v1258_v17, %s7241_s3  ;;  %s10589_s3 = sld [smem:[#allocation3_spill]] }
0x1615   : > { %v4970_v44 = vpop.f32.mrf.mxu1  ;;  %v9905_v47 = vpop.permute.xlu0 %5425 }
0x1616   : > { %v4994_v62 = vadd.f32 %v4970_v44, %v10572_v53  ;;  %v9909_v11 = vpop.permute.xlu1 %5415  ;;  %v9911_v25 = vpop.permute.xlu2 %5390 }
0x1618   : > { %v5011_v23 = vadd.f32 %v9799_v14, %v4994_v62 }
0x161a   : > { %6631 = vmatmul.msk.f32.gmra.mxu3 %vm1383_vm13, %v5011_v23  ;;  %s6742_s21 = smul.u32 144, %s10589_s3 }
0x161b   : > { %s6741_s1 = smul.u32 28, %s10589_s3 }
0x161d   : > { %v4973_v21 = vpop.f32.mrf.mxu1  ;;  %v9915_v16 = vpop.permute.xlu0 %5410  ;;  %s10394_s23 = scalar_lea.vmem %s10591_s24, %s6741_s1 }
0x161e   : > { %v4995_v8 = vadd.f32 %v4973_v21, %v10574_v26  ;;  %v9919_v63 = vpop.permute.xlu1 %5400  ;;  %v9921_v35 = vpop.permute.xlu2 %5749  ;;  %v3240_v21 = vadd.f32 %v9964_v36, %v9071_v57 }
0x1620   : > { %v5012_v2 = vadd.f32 %v9799_v14, %v4995_v8 }
0x1622   : > { %6632 = vmatmul.msk.f32.gmra.mxu3 %vm1383_vm13, %v5012_v2  ;;  %v3243_v2 = vadd.f32 %v9964_v36, %v9077_v32 }
0x1625   : > { %v9931_v19 = vpop.permute.xlu0 %5395 }
0x1626   : > { %v9933_v60 = vpop.permute.xlu1 %5385  ;;  %v9935_v37 = vpop.permute.xlu2 %5764 }
0x162d   : > { %v9946_v18 = vpop.permute.xlu0 %5744 }
0x162e   : > { %v9951_v51 = vpop.permute.xlu1 %5754  ;;  %v9953_v31 = vpop.permute.xlu2 %5779 }
0x1635   : > { %v9966_v33 = vpop.permute.xlu0 %5759 }
0x1636   : > { %v9970_v42 = vpop.permute.xlu1 %5769  ;;  %v9972_v17 = vpop.permute.xlu2 %5794 }
0x1638   : > { %3245 = vxpose.xlu1.b32.start [1/6] (short) (narrow) %v3228_v15, 8 }
0x163d   : > { %v9974_v41 = vpop.permute.xlu0 %5774 }
0x163e   : > { %v9978_v58 = vpop.permute.xlu1 %5784  ;;  %v9980_v43 = vpop.permute.xlu2 %5809 }
0x1640   : > { %3246 = vxpose.xlu1.b32.cont [2/6] (short) (narrow) %v3231_v13, 8 }
0x1645   : > { %v9982_v9 = vpop.permute.xlu0 %5789 }
0x1646   : > { %v9986_v61 = vpop.permute.xlu1 %5799  ;;  %v9996_v56 = vpop.permute.xlu2 %5824 }
0x1647   : > { %v4976_v6 = vpop.f32.mrf.mxu1 }
0x1648   : > { %v4996_v50 = vadd.f32 %v4976_v6, %v10576_v40  ;;  %3247 = vxpose.xlu1.b32.cont [3/6] (short) (narrow) %v3234_v22, 8  ;;  %v10577_v22 = vld [vmem:[#allocation17_spill] sm:$0xff] }
0x1649   : > { %v10578_v32 = vmax.f32 %v10577_v22, 0.0 }
0x164a   : > { %v5013_v7 = vadd.f32 %v9799_v14, %v4996_v50 }
0x164c   : > { %v5079_v59 = vpop.f32.mrf.mxu3  ;;  %6633 = vmatmul.msk.f32.gmra.mxu3 %vm1383_vm13, %v5013_v7 }
0x164d   : > { %v5080_v28 = vadd.f32 %v9993_v34, %v5079_v59  ;;  %v10000_v44 = vpop.permute.xlu0 %5804 }
0x164e   : > { %v10004_v53 = vpop.permute.xlu1 %5814  ;;  %v1244_v3 = vpop.permute.xlu2 %1243 }
0x164f   : > { %v5115_v62 = vmax.f32 %v5080_v28, 0.0 }
0x1650   : > { %3248 = vxpose.xlu1.b32.cont [4/6] (short) (narrow) %v3237_v45, 8 }
0x1651   : > { %6646 = vmatmul.msk.f32.vlgmr.msrb.gmra.mxu0 %vm1983_vm15, %v5115_v62 }
0x1655   : > { %v10007_v23 = vpop.permute.xlu0 %5819 }
0x1656   : > { %v10011_v26 = vpop.permute.xlu1 %5829  ;;  %v1256_v1 = vpop.permute.xlu2 %1255 }
0x1658   : > { %3249 = vxpose.xlu1.b32.cont [5/6] (short) (narrow) %v3240_v21, 8 }
0x165d   : > { %v1240_v8 = vpop.permute.xlu0 %1239 }
0x165e   : > { %v1248_v12 = vpop.permute.xlu1 %1247  ;;  %v1287_v46 = vsel %vm1162_vm6, %v10562_v4, %v1240_v8  ;;  %v1260_v54 = vpop.permute.xlu2 %1259 }
0x165f   : > { %v1288_v5 = vsel %vm1164_vm7, %v1287_v46, %v1244_v3 }
0x1660   : > { %3250 = vxpose.xlu1.b32.end [6/6] (short) (narrow) %v3243_v2, 8  ;;  %v1289_v13 = vsel %vm770_vm0, %v1288_v5, %v1248_v12  ;;  %v10579_v12 = vld [vmem:[#allocation18_spill] sm:$0xff] }
0x1665   : > { %v1252_v55 = vpop.permute.xlu0 %1251 }
0x1666   : > { %v1267_v38 = vpop.permute.xlu1 %1266  ;;  %v1290_v49 = vsel %vm1167_vm8, %v1289_v13, %v1252_v55  ;;  %v1276_v59 = vpop.permute.xlu2 %1275  ;;  %v10580_v55 = vmax.f32 %v10579_v12, 0.0 }
0x1667   : > { %v1291_v4 = vsel %vm874_vm1, %v1290_v49, %v1256_v1 }
0x1668   : > { %v1292_v21 = vsel %vm1170_vm10, %v1291_v4, %v1260_v54  ;;  %v10582_v4 = vld [vmem:[#allocation19_spill] sm:$0xff] }
0x166c   : > { %v5082_v57 = vpop.f32.mrf.mxu3 }
0x166d   : > { %v5083_v29 = vadd.f32 %v9993_v34, %v5082_v57  ;;  %v4979_v20 = vpop.f32.mrf.mxu1  ;;  %v1270_v15 = vpop.permute.xlu0 %1269 }
0x166e   : > { %v4997_v6 = vadd.f32 %v4979_v20, %v10578_v32  ;;  %v1273_v7 = vpop.permute.xlu1 %1272  ;;  %v1294_v8 = vsel %vm1162_vm6, %v1267_v38, %v1270_v15  ;;  %v1285_v13 = vpop.permute.xlu2 %1284  ;;  %vm5351_vm6 = vcmask 780288  }
0x166f   : > { %v5116_v40 = vmax.f32 %v5083_v29, 0.0  ;;  %v1295_v57 = vsel %vm1164_vm7, %v1294_v8, %v1273_v7  ;;  %vm6152_vm7 = vcmask 129028  }
0x1670   : > { %v5014_v50 = vadd.f32 %v9799_v14, %v4997_v6  ;;  %v1296_v54 = vsel %vm770_vm0, %v1295_v57, %v1276_v59  ;;  %v10583_v59 = vmax.f32 %v10582_v4, 0.0  ;;  %vm6153_vm9 = vmor %vm6152_vm7, %vm770_vm0 }
0x1671   : > { %6647 = vmatmul.msk.f32.gmra.mxu0 %vm1983_vm15, %v5116_v40 }
0x1672   : > { %6634 = vmatmul.msk.f32.gmra.mxu3 %vm1383_vm13, %v5014_v50  ;;  %v10581_v50 = vld [vmem:[#allocation5_spill] sm:$0xff] }
0x1673   : > { %v2049_v7 = vadd.f32 %v9964_v36, %v10581_v50 }
0x1674   : > { %v5085_v28 = vpop.f32.mrf.mxu3 }
0x1675   : > { %v5086_v45 = vadd.f32 %v9993_v34, %v5085_v28  ;;  %v1264_v62 = vpop.permute.xlu0 %1263  ;;  %v4982_v3 = vpop.f32.mrf.mxu1 }
0x1676   : > { %v1293_v2 = vsel %vm1172_vm11, %v1292_v21, %v1264_v62  ;;  %v4998_v46 = vadd.f32 %v4982_v3, %v10580_v55  ;;  %v1279_v29 = vpop.permute.xlu1 %1278  ;;  %v10584_v3 = vld [vmem:[#allocation6_spill] sm:$0xff]  ;;  %v10585_v55 = vld [vmem:[#allocation7_spill] sm:$0xff] }
0x1677   : > { %v5117_v5 = vmax.f32 %v5086_v45, 0.0  ;;  %1300 = vxpose.xlu2.b32.start [1/2] (short) (narrow) %v1293_v2, 8  ;;  %v1297_v38 = vsel %vm1167_vm8, %v1296_v54, %v1279_v29  ;;  %v2052_v8 = vadd.f32 %v9964_v36, %v10584_v3 }
0x1678   : > { %v5015_v1 = vadd.f32 %v9799_v14, %v4998_v46  ;;  %v2055_v46 = vadd.f32 %v9964_v36, %v10585_v55 }
0x1679   : > { %6648 = vmatmul.msk.f32.gmra.mxu0 %vm1983_vm15, %v5117_v5 }
0x167a   : > { %6635 = vmatmul.msk.f32.gmra.mxu3 %vm1383_vm13, %v5015_v1 }
0x167d   : > { %v5088_v20 = vpop.f32.mrf.mxu3  ;;  %v1282_v15 = vpop.permute.xlu0 %1281 }
0x167e   : > { %v5089_v22 = vadd.f32 %v9993_v34, %v5088_v20  ;;  %v1298_v32 = vsel %vm874_vm1, %v1297_v38, %v1282_v15  ;;  %v10064_v15 = vld [vmem:[%s10586_s27 + $0x2] ss:$0 sm:$0xff]  ;;  %vm5832_vm1 = vcmask 982016   ;;  %s10280_s27 = scalar_lea.vmem %s10590_s16, %s6742_s21 }
0x167f   : > { %v1299_v6 = vsel %vm1170_vm10, %v1298_v32, %v1285_v13  ;;  %vm5704_vm10 = vcmask 976896  }
0x1680   : > { %v5118_v49 = vmax.f32 %v5089_v22, 0.0  ;;  %1301 = vxpose.xlu2.b32.end [2/2] (short) (narrow) %v1299_v6, 8 }
0x1682   : > { %6649 = vmatmul.msk.f32.gmra.mxu0 %vm1983_vm15, %v5118_v49 }
0x1685   : > { %v4985_v40 = vpop.f32.mrf.mxu1 }
0x1686   : > { %v4999_v28 = vadd.f32 %v4985_v40, %v10583_v59 }
0x1688   : > { %v5016_v45 = vadd.f32 %v9799_v14, %v4999_v28  ;;  %2057 = vxpose.xlu2.b32.start [1/3] (short) (narrow) %v2049_v7, 8 }
0x168a   : > { %6636 = vmatmul.msk.f32.gmra.mxu3 %vm1383_vm13, %v5016_v45 }
0x168c   : > { %v5091_v62 = vpop.f32.mrf.mxu3 }
0x168d   : > { %v5092_v21 = vadd.f32 %v9993_v34, %v5091_v62 }
0x168f   : > { %v5119_v2 = vmax.f32 %v5092_v21, 0.0 }
0x1690   : > { %2058 = vxpose.xlu2.b32.cont [2/3] (short) (narrow) %v2052_v8, 8 }
0x1691   : > { %6650 = vmatmul.msk.f32.gmra.mxu0 %vm1983_vm15, %v5119_v2 }
0x1695   : > { %v5094_v12 = vpop.f32.mrf.mxu3 }
0x1696   : > { %v5095_v5 = vadd.f32 %v9993_v34, %v5094_v12 }
0x1698   : > { %v5120_v14 = vmax.f32 %v5095_v5, 0.0  ;;  %2059 = vxpose.xlu2.b32.end [3/3] (short) (narrow) %v2055_v46, 8 }
0x169a   : > { %6651 = vmatmul.msk.f32.gmra.mxu0 %vm1983_vm15, %v5120_v14 }
0x169d   : > { %v5097_v1 = vpop.f32.mrf.mxu3 }
0x169e   : > { %v5098_v57 = vadd.f32 %v9993_v34, %v5097_v1 }
0x16a0   : > { %v5121_v29 = vmax.f32 %v5098_v57, 0.0 }
0x16a2   : > { %6652 = vmatmul.msk.f32.gmra.mxu0 %vm1983_vm15, %v5121_v29 }
0x16a5   : > { %v5100_v54 = vpop.f32.mrf.mxu3 }
0x16a6   : > { %v5101_v38 = vadd.f32 %v9993_v34, %v5100_v54 }
0x16a8   : > { %v5122_v20 = vmax.f32 %v5101_v38, 0.0 }
0x16aa   : > { %6653 = vmatmul.msk.f32.gmra.mxu0 %vm1983_vm15, %v5122_v20 }
0x16ce   : > { %v5194_v13 = vpop.f32.mrf.mxu0 }
0x16cf   : > { %v10067_v22 = vadd.f32 %v10064_v15, %v5194_v13  ;;  %v5103_v32 = vpop.f32.mrf.mxu3 }
0x16d0   : > { %v5104_v6 = vadd.f32 %v9993_v34, %v5103_v32 }
0x16d1   : > { %6658 = vmatmul.msk.f32.vlgmr.msra.gmra.mxu2 %vm1343_vm12, %v10067_v22 }
0x16d2   : > { %v5123_v49 = vmax.f32 %v5104_v6, 0.0 }
0x16d4   : > { %6654 = vmatmul.msk.f32.gmra.mxu0 %vm1983_vm15, %v5123_v49 }
0x16ee   : > { %v5197_v40 = vpop.f32.mrf.mxu0 }
0x16ef   : > { %v10074_v50 = vadd.f32 %v10064_v15, %v5197_v40 }
0x16f1   : > { %6659 = vmatmul.msk.f32.gmra.mxu2 %vm1343_vm12, %v10074_v50 }
0x16f5   : > { %v5106_v7 = vpop.f32.mrf.mxu3 }
0x16f6   : > { %v5107_v4 = vadd.f32 %v9993_v34, %v5106_v7  ;;  %v5200_v59 = vpop.f32.mrf.mxu0 }
0x16f7   : > { %v10080_v28 = vadd.f32 %v10064_v15, %v5200_v59 }
0x16f8   : > { %v5124_v45 = vmax.f32 %v5107_v4, 0.0 }
0x16f9   : > { %6660 = vmatmul.msk.f32.gmra.mxu2 %vm1343_vm12, %v10080_v28 }
0x16fa   : > { %6655 = vmatmul.msk.f32.gmra.mxu0 %vm1983_vm15, %v5124_v45 }
0x16fd   : > { %v5109_v62 = vpop.f32.mrf.mxu3 }
0x16fe   : > { %v5110_v21 = vadd.f32 %v9993_v34, %v5109_v62 }
0x16ff   : > { %v5203_v3 = vpop.f32.mrf.mxu0 }
0x1700   : > { %v5125_v8 = vmax.f32 %v5110_v21, 0.0  ;;  %v5204_v2 = vadd.f32 %v10064_v15, %v5203_v3 }
0x1702   : > { %6656 = vmatmul.msk.f32.gmra.mxu0 %vm1983_vm15, %v5125_v8  ;;  %6661 = vmatmul.msk.f32.gmra.mxu2 %vm1343_vm12, %v5204_v2 }
0x170d   : > { %v5112_v12 = vpop.f32.mrf.mxu3 }
0x170e   : > { %v5113_v55 = vadd.f32 %v9993_v34, %v5112_v12  ;;  %v5206_v46 = vpop.f32.mrf.mxu0 }
0x170f   : > { %v5207_v5 = vadd.f32 %v10064_v15, %v5206_v46 }
0x1710   : > { %v5126_v14 = vmax.f32 %v5113_v55, 0.0 }
0x1711   : > { %6662 = vmatmul.msk.f32.gmra.mxu2 %vm1343_vm12, %v5207_v5 }
0x1712   : > { %6657 = vmatmul.msk.f32.gmra.mxu0 %vm1983_vm15, %v5126_v14 }
0x1717   : > { %v5209_v1 = vpop.f32.mrf.mxu0 }
0x1718   : > { %v5210_v57 = vadd.f32 %v10064_v15, %v5209_v1 }
0x171a   : > { %6663 = vmatmul.msk.f32.gmra.mxu2 %vm1343_vm12, %v5210_v57 }
0x171f   : > { %v5212_v29 = vpop.f32.mrf.mxu0 }
0x1720   : > { %v5213_v54 = vadd.f32 %v10064_v15, %v5212_v29 }
0x1722   : > { %6664 = vmatmul.msk.f32.gmra.mxu2 %vm1343_vm12, %v5213_v54 }
0x1727   : > { %v5215_v38 = vpop.f32.mrf.mxu0 }
0x1728   : > { %v5216_v34 = vadd.f32 %v10064_v15, %v5215_v38 }
0x172a   : > { %6665 = vmatmul.msk.f32.gmra.mxu2 %vm1343_vm12, %v5216_v34 }
0x1751   : > { %v5218_v20 = vpop.f32.mrf.mxu0 }
0x1752   : > { %v5219_v13 = vadd.f32 %v10064_v15, %v5218_v20  ;;  %v5353_v20 = vld [vmem:[%s10587_s7] sm:$0xff] }
0x1754   : > { %v5283_v32 = vpop.f32.mrf.mxu2  ;;  %6666 = vmatmul.msk.f32.gmra.mxu2 %vm1343_vm12, %v5219_v13 }
0x1755   : > { %v5284_v6 = vadd.f32 %v9964_v36, %v5283_v32 }
0x1757   : > { %5319 = vxpose.xlu2.b32.start [1/12] (short) (narrow) %v5284_v6, 8  ;;  %v5360_v6 = vld [vmem:[%s10587_s7 + $0x38] sm:$0xff] }
0x1774   : > { %v5286_v49 = vpop.f32.mrf.mxu2 }
0x1775   : > { %v5287_v40 = vadd.f32 %v9964_v36, %v5286_v49  ;;  %v5361_v49 = vld [vmem:[%s10587_s7 + $0x40] sm:$0xff] }
0x1777   : > { %v5221_v7 = vpop.f32.mrf.mxu0  ;;  %5320 = vxpose.xlu2.b32.cont [2/12] (short) (narrow) %v5287_v40, 8  ;;  %v5362_v40 = vld [vmem:[%s10587_s7 + $0x48] sm:$0xff] }
0x1778   : > { %v5222_v4 = vadd.f32 %v10064_v15, %v5221_v7  ;;  %v5363_v7 = vld [vmem:[%s10587_s7 + $0x50] sm:$0xff] }
0x177a   : > { %6667 = vmatmul.msk.f32.gmra.mxu2 %vm1343_vm12, %v5222_v4 }
0x177c   : > { %v5289_v59 = vpop.f32.mrf.mxu2 }
0x177d   : > { %v5290_v45 = vadd.f32 %v9964_v36, %v5289_v59 }
0x177f   : > { %v5224_v62 = vpop.f32.mrf.mxu0  ;;  %5321 = vxpose.xlu2.b32.cont [3/12] (short) (narrow) %v5290_v45, 8  ;;  %v5364_v45 = vld [vmem:[%s10587_s7 + $0x58] sm:$0xff] }
0x1780   : > { %v5225_v21 = vadd.f32 %v10064_v15, %v5224_v62 }
0x1782   : > { %6668 = vmatmul.msk.f32.gmra.mxu2 %vm1343_vm12, %v5225_v21 }
0x1785   : > { %v5292_v3 = vpop.f32.mrf.mxu2 }
0x1786   : > { %v5293_v8 = vadd.f32 %v9964_v36, %v5292_v3  ;;  %v5365_v3 = vld [vmem:[%s10587_s7 + $0x60] sm:$0xff] }
0x1788   : > { %5322 = vxpose.xlu2.b32.cont [4/12] (short) (narrow) %v5293_v8, 8  ;;  %v5366_v8 = vld [vmem:[%s10587_s7 + $0x68] sm:$0xff] }
0x178f   : > { %v5227_v12 = vpop.f32.mrf.mxu0 }
0x1790   : > { %v5228_v55 = vadd.f32 %v10064_v15, %v5227_v12 }
0x1792   : > { %6669 = vmatmul.msk.f32.gmra.mxu2 %vm1343_vm12, %v5228_v55  ;;  %5507 = vmatpush.msrb.mxu1 %v5228_v55 }
0x1794   : > { %v5295_v46 = vpop.f32.mrf.mxu2  ;;  %5508 = vmatpush.msrb.mxu1 %v5225_v21 }
0x1795   : > { %v5296_v14 = vadd.f32 %v9964_v36, %v5295_v46  ;;  %v5367_v46 = vld [vmem:[%s10587_s7 + $0x70] sm:$0xff] }
0x1796   : > { %5509 = vmatpush.msrb.mxu1 %v5222_v4 }
0x1797   : > { %5323 = vxpose.xlu2.b32.cont [5/12] (short) (narrow) %v5296_v14, 8 }
0x1798   : > { %5510 = vmatpush.msrb.mxu1 %v5219_v13 }
0x179a   : > { %5511 = vmatpush.msrb.mxu1 %v5216_v34  ;;  %v5359_v34 = vld [vmem:[%s10587_s7 + $0x30] sm:$0xff] }
0x179c   : > { %5512 = vmatpush.msrb.mxu1 %v5213_v54  ;;  %v5358_v54 = vld [vmem:[%s10587_s7 + $0x28] sm:$0xff] }
0x179d   : > { %v5298_v1 = vpop.f32.mrf.mxu2 }
0x179e   : > { %v5299_v29 = vadd.f32 %v9964_v36, %v5298_v1  ;;  %5513 = vmatpush.msrb.mxu1 %v5210_v57 }
0x17a0   : > { %5514 = vmatpush.msrb.mxu1 %v5207_v5  ;;  %5324 = vxpose.xlu2.b32.cont [6/12] (short) (narrow) %v5299_v29, 8 }
0x17a2   : > { %5515 = vmatpush.msrb.mxu1 %v5204_v2  ;;  %v5357_v2 = vld [vmem:[%s10587_s7 + $0x20] sm:$0xff] }
0x17a4   : > { %5516 = vmatpush.msrb.mxu1 %v10080_v28  ;;  %v5354_v28 = vld [vmem:[%s10587_s7 + $0x8] sm:$0xff] }
0x17a5   : > { %v5301_v15 = vpop.f32.mrf.mxu2 }
0x17a6   : > { %v5302_v38 = vadd.f32 %v9964_v36, %v5301_v15  ;;  %5517 = vmatpush.msrb.mxu1 %v10074_v50  ;;  %v5355_v50 = vld [vmem:[%s10587_s7 + $0x10] sm:$0xff] }
0x17a8   : > { %5518 = vmatpush.msrb.mxu1 %v10067_v22  ;;  %5325 = vxpose.xlu2.b32.cont [7/12] (short) (narrow) %v5302_v38, 8  ;;  %v5356_v22 = vld [vmem:[%s10587_s7 + $0x18] sm:$0xff] }
0x17a9   : > { %6670 = vmatmul.msk.f32.vlgmr.msrb.gmra.mxu1 %vm3681_vm2, %v5353_v20 }
0x17ad   : > { %v5304_v57 = vpop.f32.mrf.mxu2 }
0x17ae   : > { %v5305_v5 = vadd.f32 %v9964_v36, %v5304_v57 }
0x17b0   : > { %5326 = vxpose.xlu2.b32.cont [8/12] (short) (narrow) %v5305_v5, 8 }
0x17b1   : > { %6671 = vmatmul.msk.f32.gmra.mxu1 %vm3681_vm2, %v5354_v28 }
0x17b9   : > { %6672 = vmatmul.msk.f32.gmra.mxu1 %vm3681_vm2, %v5355_v50 }
0x17c1   : > { %6673 = vmatmul.msk.f32.gmra.mxu1 %vm3681_vm2, %v5356_v22 }
0x17c9   : > { %6674 = vmatmul.msk.f32.gmra.mxu1 %vm3681_vm2, %v5357_v2 }
0x17d1   : > { %6675 = vmatmul.msk.f32.gmra.mxu1 %vm3681_vm2, %v5358_v54 }
0x17d7   : > { %v5307_v13 = vpop.f32.mrf.mxu2 }
0x17d8   : > { %v5308_v32 = vadd.f32 %v9964_v36, %v5307_v13 }
0x17d9   : > { %6676 = vmatmul.msk.f32.gmra.mxu1 %vm3681_vm2, %v5359_v34 }
0x17da   : > { %5327 = vxpose.xlu2.b32.cont [9/12] (short) (narrow) %v5308_v32, 8 }
0x17e1   : > { %6677 = vmatmul.msk.f32.gmra.mxu1 %vm3681_vm2, %v5360_v6 }
0x17e9   : > { %6678 = vmatmul.msk.f32.gmra.mxu1 %vm3681_vm2, %v5361_v49 }
0x17f1   : > { %6679 = vmatmul.msk.f32.gmra.mxu1 %vm3681_vm2, %v5362_v40 }
0x17f9   : > { %6680 = vmatmul.msk.f32.gmra.mxu1 %vm3681_vm2, %v5363_v7  ;;  %v5710_v7 = vld [vmem:[%s10588_s8 + $0x20] sm:$0xff] }
0x17fd   : > { %v5310_v4 = vpop.f32.mrf.mxu2 }
0x17fe   : > { %v5311_v59 = vadd.f32 %v9964_v36, %v5310_v4  ;;  %v5711_v4 = vld [vmem:[%s10588_s8 + $0x28] sm:$0xff] }
0x1800   : > { %5328 = vxpose.xlu2.b32.cont [10/12] (short) (narrow) %v5311_v59, 8  ;;  %v5712_v59 = vld [vmem:[%s10588_s8 + $0x30] sm:$0xff] }
0x1801   : > { %6681 = vmatmul.msk.f32.gmra.mxu1 %vm3681_vm2, %v5364_v45  ;;  %v5713_v45 = vld [vmem:[%s10588_s8 + $0x38] sm:$0xff] }
0x1805   : > { %v5313_v62 = vpop.f32.mrf.mxu2 }
0x1806   : > { %v5314_v21 = vadd.f32 %v9964_v36, %v5313_v62  ;;  %v5714_v62 = vld [vmem:[%s10588_s8 + $0x40] sm:$0xff] }
0x1808   : > { %5329 = vxpose.xlu2.b32.cont [11/12] (short) (narrow) %v5314_v21, 8  ;;  %v5715_v21 = vld [vmem:[%s10588_s8 + $0x48] sm:$0xff] }
0x1809   : > { %6682 = vmatmul.msk.f32.gmra.mxu1 %vm3681_vm2, %v5365_v3  ;;  %v5716_v3 = vld [vmem:[%s10588_s8 + $0x50] sm:$0xff] }
0x1811   : > { %6683 = vmatmul.msk.f32.gmra.mxu1 %vm3681_vm2, %v5366_v8  ;;  %v5717_v8 = vld [vmem:[%s10588_s8 + $0x58] sm:$0xff] }
0x1815   : > { %v5316_v12 = vpop.f32.mrf.mxu2 }
0x1816   : > { %v5317_v55 = vadd.f32 %v9964_v36, %v5316_v12  ;;  %v5718_v12 = vld [vmem:[%s10588_s8 + $0x60] sm:$0xff] }
0x1818   : > { %5330 = vxpose.xlu2.b32.end [12/12] (short) (narrow) %v5317_v55, 8  ;;  %v5719_v55 = vld [vmem:[%s10588_s8 + $0x68] sm:$0xff] }
0x1819   : > { %6684 = vmatmul.msk.f32.gmra.mxu1 %vm3681_vm2, %v5367_v46  ;;  %v5720_v46 = vld [vmem:[%s10588_s8 + $0x70] sm:$0xff] }
0x1826   : > { %v5520_v14 = vpop.f32.mrf.mxu1 }
0x1827   : > { %v5521_v1 = vadd.f32 %v5520_v14, %v9933_v60  ;;  %v5721_v14 = vld [vmem:[%s10588_s8 + $0x78] sm:$0xff] }
0x1829   : > { %6685 = vmatmul.msk.f32.vlgmr.msra.gmra.mxu3 %vm1343_vm12, %v5521_v1 }
0x182e   : > { %v5523_v29 = vpop.f32.mrf.mxu1 }
0x182f   : > { %v5524_v15 = vadd.f32 %v5523_v29, %v9911_v25  ;;  %v5722_v29 = vld [vmem:[%s10588_s8 + $0x80] sm:$0xff] }
0x1831   : > { %6686 = vmatmul.msk.f32.gmra.mxu3 %vm1343_vm12, %v5524_v15 }
0x1836   : > { %v5526_v38 = vpop.f32.mrf.mxu1 }
0x1837   : > { %v5527_v20 = vadd.f32 %v5526_v38, %v9931_v19 }
0x1839   : > { %6687 = vmatmul.msk.f32.gmra.mxu3 %vm1343_vm12, %v5527_v20 }
0x183e   : > { %v5529_v57 = vpop.f32.mrf.mxu1 }
0x183f   : > { %v5530_v5 = vadd.f32 %v5529_v57, %v9919_v63 }
0x1841   : > { %6688 = vmatmul.msk.f32.gmra.mxu3 %vm1343_vm12, %v5530_v5 }
0x1846   : > { %v5532_v28 = vpop.f32.mrf.mxu1 }
0x1847   : > { %v5533_v60 = vadd.f32 %v5532_v28, %v9901_v39 }
0x1849   : > { %6689 = vmatmul.msk.f32.gmra.mxu3 %vm1343_vm12, %v5533_v60 }
0x184e   : > { %v5535_v50 = vpop.f32.mrf.mxu1 }
0x184f   : > { %v5536_v25 = vadd.f32 %v5535_v50, %v9915_v16 }
0x1851   : > { %6690 = vmatmul.msk.f32.gmra.mxu3 %vm1343_vm12, %v5536_v25 }
0x1856   : > { %v5538_v22 = vpop.f32.mrf.mxu1 }
0x1857   : > { %v5539_v19 = vadd.f32 %v5538_v22, %v9909_v11 }
0x1859   : > { %6691 = vmatmul.msk.f32.gmra.mxu3 %vm1343_vm12, %v5539_v19 }
0x185e   : > { %v5541_v2 = vpop.f32.mrf.mxu1 }
0x185f   : > { %v5542_v63 = vadd.f32 %v5541_v2, %v9889_v30 }
0x1861   : > { %6692 = vmatmul.msk.f32.gmra.mxu3 %vm1343_vm12, %v5542_v63 }
0x1866   : > { %v5544_v54 = vpop.f32.mrf.mxu1 }
0x1867   : > { %v5545_v39 = vadd.f32 %v5544_v54, %v9905_v47 }
0x1869   : > { %6693 = vmatmul.msk.f32.gmra.mxu3 %vm1343_vm12, %v5545_v39 }
0x186e   : > { %v5547_v34 = vpop.f32.mrf.mxu1 }
0x186f   : > { %v5548_v16 = vadd.f32 %v5547_v34, %v9899_v10 }
0x1871   : > { %6694 = vmatmul.msk.f32.gmra.mxu3 %vm1343_vm12, %v5548_v16 }
0x1876   : > { %v5550_v13 = vpop.f32.mrf.mxu1 }
0x1877   : > { %v5551_v11 = vadd.f32 %v5550_v13, %v9879_v0 }
0x1879   : > { %6695 = vmatmul.msk.f32.gmra.mxu3 %vm1343_vm12, %v5551_v11 }
0x187e   : > { %v5553_v32 = vpop.f32.mrf.mxu1 }
0x187f   : > { %v5554_v30 = vadd.f32 %v5553_v32, %v9885_v48  ;;  %v5708_v48 = vld [vmem:[%s10588_s8 + $0x10] sm:$0xff] }
0x1881   : > { %6696 = vmatmul.msk.f32.gmra.mxu3 %vm1343_vm12, %v5554_v30 }
0x1886   : > { %v5556_v6 = vpop.f32.mrf.mxu1 }
0x1887   : > { %v5557_v47 = vadd.f32 %v5556_v6, %v9871_v52  ;;  %v5706_v52 = vld [vmem:[%s10588_s8] sm:$0xff] }
0x1889   : > { %6697 = vmatmul.msk.f32.gmra.mxu3 %vm1343_vm12, %v5557_v47 }
0x188e   : > { %v5559_v49 = vpop.f32.mrf.mxu1 }
0x188f   : > { %v5560_v10 = vadd.f32 %v5559_v49, %v9895_v24  ;;  %v5709_v24 = vld [vmem:[%s10588_s8 + $0x18] sm:$0xff] }
0x1891   : > { %6698 = vmatmul.msk.f32.gmra.mxu3 %vm1343_vm12, %v5560_v10 }
0x1896   : > { %v5562_v40 = vpop.f32.mrf.mxu1 }
0x1897   : > { %v5563_v0 = vadd.f32 %v5562_v40, %v9877_v27  ;;  %v5707_v27 = vld [vmem:[%s10588_s8 + $0x8] sm:$0xff] }
0x1899   : > { %5888 = vmatpush.msra.mxu0 %v5563_v0  ;;  %6699 = vmatmul.msk.f32.gmra.mxu3 %vm1343_vm12, %v5563_v0 }
0x189b   : > { %5889 = vmatpush.msra.mxu0 %v5560_v10 }
0x189d   : > { %5890 = vmatpush.msra.mxu0 %v5557_v47 }
0x189f   : > { %5891 = vmatpush.msra.mxu0 %v5554_v30 }
0x18a1   : > { %5892 = vmatpush.msra.mxu0 %v5551_v11 }
0x18a3   : > { %5893 = vmatpush.msra.mxu0 %v5548_v16 }
0x18a5   : > { %5894 = vmatpush.msra.mxu0 %v5545_v39 }
0x18a7   : > { %5895 = vmatpush.msra.mxu0 %v5542_v63 }
0x18a9   : > { %5896 = vmatpush.msra.mxu0 %v5539_v19 }
0x18ab   : > { %5897 = vmatpush.msra.mxu0 %v5536_v25 }
0x18ad   : > { %5898 = vmatpush.msra.mxu0 %v5533_v60 }
0x18af   : > { %5899 = vmatpush.msra.mxu0 %v5530_v5 }
0x18b1   : > { %5900 = vmatpush.msra.mxu0 %v5527_v20  ;;  %v5723_v20 = vld [vmem:[%s10588_s8 + $0x88] sm:$0xff] }
0x18b3   : > { %5901 = vmatpush.msra.mxu0 %v5524_v15 }
0x18b5   : > { %5902 = vmatpush.msra.mxu0 %v5521_v1 }
0x18b6   : > { %6700 = vmatmul.msk.f32.vlgmr.msra.gmra.mxu0 %vm5832_vm1, %v5706_v52 }
0x18be   : > { %6701 = vmatmul.msk.f32.gmra.mxu0 %vm5832_vm1, %v5707_v27 }
0x18c6   : > { %6702 = vmatmul.msk.f32.gmra.mxu0 %vm5832_vm1, %v5708_v48 }
0x18ce   : > { %6703 = vmatmul.msk.f32.gmra.mxu0 %vm5832_vm1, %v5709_v24 }
0x18d6   : > { %6704 = vmatmul.msk.f32.gmra.mxu0 %vm5832_vm1, %v5710_v7 }
0x18de   : > { %6705 = vmatmul.msk.f32.gmra.mxu0 %vm5832_vm1, %v5711_v4 }
0x18e6   : > { %6706 = vmatmul.msk.f32.gmra.mxu0 %vm5832_vm1, %v5712_v59 }
0x18ee   : > { %6707 = vmatmul.msk.f32.gmra.mxu0 %vm5832_vm1, %v5713_v45 }
0x18f6   : > { %6708 = vmatmul.msk.f32.gmra.mxu0 %vm5832_vm1, %v5714_v62 }
0x18fe   : > { %6709 = vmatmul.msk.f32.gmra.mxu0 %vm5832_vm1, %v5715_v21 }
0x1906   : > { %6710 = vmatmul.msk.f32.gmra.mxu0 %vm5832_vm1, %v5716_v3 }
0x190e   : > { %6711 = vmatmul.msk.f32.gmra.mxu0 %vm5832_vm1, %v5717_v8 }
0x1916   : > { %6712 = vmatmul.msk.f32.gmra.mxu0 %vm5832_vm1, %v5718_v12 }
0x191e   : > { %6713 = vmatmul.msk.f32.gmra.mxu0 %vm5832_vm1, %v5719_v55 }
0x1926   : > { %6714 = vmatmul.msk.f32.gmra.mxu0 %vm5832_vm1, %v5720_v46 }
0x192e   : > { %6715 = vmatmul.msk.f32.gmra.mxu0 %vm5832_vm1, %v5721_v14 }
0x1933   : > { %v5904_v1 = vpop.f32.mrf.mxu0 }
0x1934   : > { %v5905_v15 = vadd.f32 %v5904_v1, %v9946_v18 }
0x1936   : > { %6155 = vst.msk [vmem:[%s10280_s27] sm:$0xff] %vm1343_vm12, %v5905_v15  ;;  %6716 = vmatmul.msk.f32.gmra.mxu0 %vm5832_vm1, %v5722_v29  ;;  %6718 = vmatmul.msk.f32.vlgmr.msrb.gmra.mxu2 %vm1343_vm12, %v5905_v15 }
0x193b   : > { %v5907_v38 = vpop.f32.mrf.mxu0 }
0x193c   : > { %v5908_v57 = vadd.f32 %v5907_v38, %v9921_v35 }
0x193e   : > { %6156 = vst.msk [vmem:[%s10280_s27 + $0x8] sm:$0xff] %vm1343_vm12, %v5908_v57  ;;  %6717 = vmatmul.msk.f32.gmra.mxu0 %vm5832_vm1, %v5723_v20  ;;  %6719 = vmatmul.msk.f32.gmra.mxu2 %vm1343_vm12, %v5908_v57  ;;  %v5627_v57 = vpop.f32.mrf.mxu3 }
0x1943   : > { %v5910_v18 = vpop.f32.mrf.mxu0 }
0x1944   : > { %v5911_v5 = vadd.f32 %v5910_v18, %v9951_v51 }
0x1946   : > { %6157 = vst.msk [vmem:[%s10280_s27 + $0x10] sm:$0xff] %vm1343_vm12, %v5911_v5  ;;  %6720 = vmatmul.msk.f32.gmra.mxu2 %vm1343_vm12, %v5911_v5 }
0x194b   : > { %v5913_v28 = vpop.f32.mrf.mxu0 }
0x194c   : > { %v5914_v60 = vadd.f32 %v5913_v28, %v9966_v33  ;;  %v5630_v28 = vpop.f32.mrf.mxu3 }
0x194e   : > { %6158 = vst.msk [vmem:[%s10280_s27 + $0x18] sm:$0xff] %vm1343_vm12, %v5914_v60  ;;  %6721 = vmatmul.msk.f32.gmra.mxu2 %vm1343_vm12, %v5914_v60 }
0x1953   : > { %v5916_v35 = vpop.f32.mrf.mxu0 }
0x1954   : > { %v5917_v50 = vadd.f32 %v5916_v35, %v9935_v37 }
0x1956   : > { %6159 = vst.msk [vmem:[%s10280_s27 + $0x20] sm:$0xff] %vm1343_vm12, %v5917_v50  ;;  %6722 = vmatmul.msk.f32.gmra.mxu2 %vm1343_vm12, %v5917_v50  ;;  %v5633_v50 = vpop.f32.mrf.mxu3 }
0x195b   : > { %v5919_v51 = vpop.f32.mrf.mxu0 }
0x195c   : > { %v5920_v25 = vadd.f32 %v5919_v51, %v9970_v42 }
0x195e   : > { %6160 = vst.msk [vmem:[%s10280_s27 + $0x28] sm:$0xff] %vm1343_vm12, %v5920_v25  ;;  %6723 = vmatmul.msk.f32.gmra.mxu2 %vm1343_vm12, %v5920_v25 }
0x1963   : > { %v5922_v33 = vpop.f32.mrf.mxu0 }
0x1964   : > { %v5923_v22 = vadd.f32 %v5922_v33, %v9974_v41  ;;  %v5636_v33 = vpop.f32.mrf.mxu3 }
0x1966   : > { %6161 = vst.msk [vmem:[%s10280_s27 + $0x30] sm:$0xff] %vm1343_vm12, %v5923_v22  ;;  %6724 = vmatmul.msk.f32.gmra.mxu2 %vm1343_vm12, %v5923_v22  ;;  %v5628_v22 = vadd.f32 %v9964_v36, %v5627_v57 }
0x196b   : > { %v5925_v37 = vpop.f32.mrf.mxu0 }
0x196c   : > { %v5926_v19 = vadd.f32 %v5925_v37, %v9953_v31  ;;  %v5631_v37 = vadd.f32 %v9964_v36, %v5630_v28 }
0x196e   : > { %6162 = vst.msk [vmem:[%s10280_s27 + $0x38] sm:$0xff] %vm1343_vm12, %v5926_v19  ;;  %6725 = vmatmul.msk.f32.gmra.mxu2 %vm1343_vm12, %v5926_v19  ;;  %v5639_v19 = vpop.f32.mrf.mxu3 }
0x1973   : > { %v5928_v42 = vpop.f32.mrf.mxu0 }
0x1974   : > { %v5929_v2 = vadd.f32 %v5928_v42, %v9978_v58  ;;  %v5634_v42 = vadd.f32 %v9964_v36, %v5633_v50 }
0x1976   : > { %6163 = vst.msk [vmem:[%s10280_s27 + $0x40] sm:$0xff] %vm1343_vm12, %v5929_v2  ;;  %6726 = vmatmul.msk.f32.gmra.mxu2 %vm1343_vm12, %v5929_v2  ;;  %v5642_v2 = vpop.f32.mrf.mxu3 }
0x197b   : > { %v5931_v41 = vpop.f32.mrf.mxu0 }
0x197c   : > { %v5932_v63 = vadd.f32 %v5931_v41, %v9982_v9  ;;  %v5637_v41 = vadd.f32 %v9964_v36, %v5636_v33 }
0x197e   : > { %6164 = vst.msk [vmem:[%s10280_s27 + $0x48] sm:$0xff] %vm1343_vm12, %v5932_v63  ;;  %6727 = vmatmul.msk.f32.gmra.mxu2 %vm1343_vm12, %v5932_v63  ;;  %v5645_v63 = vpop.f32.mrf.mxu3 }
0x1983   : > { %v5934_v31 = vpop.f32.mrf.mxu0 }
0x1984   : > { %v5935_v54 = vadd.f32 %v5934_v31, %v9972_v17  ;;  %v5640_v31 = vadd.f32 %v9964_v36, %v5639_v19 }
0x1986   : > { %6165 = vst.msk [vmem:[%s10280_s27 + $0x50] sm:$0xff] %vm1343_vm12, %v5935_v54  ;;  %6728 = vmatmul.msk.f32.gmra.mxu2 %vm1343_vm12, %v5935_v54  ;;  %v5648_v54 = vpop.f32.mrf.mxu3 }
0x198b   : > { %v5937_v58 = vpop.f32.mrf.mxu0 }
0x198c   : > { %v5938_v39 = vadd.f32 %v5937_v58, %v9986_v61  ;;  %v5643_v58 = vadd.f32 %v9964_v36, %v5642_v2 }
0x198e   : > { %6166 = vst.msk [vmem:[%s10280_s27 + $0x58] sm:$0xff] %vm1343_vm12, %v5938_v39  ;;  %6729 = vmatmul.msk.f32.gmra.mxu2 %vm1343_vm12, %v5938_v39  ;;  %v5646_v39 = vadd.f32 %v9964_v36, %v5645_v63 }
0x1993   : > { %v5940_v9 = vpop.f32.mrf.mxu0 }
0x1994   : > { %v5941_v34 = vadd.f32 %v5940_v9, %v10000_v44  ;;  %v5651_v9 = vpop.f32.mrf.mxu3 }
0x1996   : > { %6167 = vst.msk [vmem:[%s10280_s27 + $0x60] sm:$0xff] %vm1343_vm12, %v5941_v34  ;;  %6730 = vmatmul.msk.f32.gmra.mxu2 %vm1343_vm12, %v5941_v34  ;;  %v5649_v34 = vadd.f32 %v9964_v36, %v5648_v54 }
0x199b   : > { %v5943_v17 = vpop.f32.mrf.mxu0 }
0x199c   : > { %v5944_v16 = vadd.f32 %v5943_v17, %v9980_v43  ;;  %v5654_v17 = vpop.f32.mrf.mxu3 }
0x199e   : > { %6168 = vst.msk [vmem:[%s10280_s27 + $0x68] sm:$0xff] %vm1343_vm12, %v5944_v16  ;;  %6731 = vmatmul.msk.f32.gmra.mxu2 %vm1343_vm12, %v5944_v16  ;;  %v5652_v16 = vadd.f32 %v9964_v36, %v5651_v9 }
0x19a3   : > { %v5946_v61 = vpop.f32.mrf.mxu0 }
0x19a4   : > { %v5947_v13 = vadd.f32 %v5946_v61, %v10004_v53  ;;  %v5657_v61 = vpop.f32.mrf.mxu3 }
0x19a6   : > { %6169 = vst.msk [vmem:[%s10280_s27 + $0x70] sm:$0xff] %vm1343_vm12, %v5947_v13  ;;  %6732 = vmatmul.msk.f32.gmra.mxu2 %vm1343_vm12, %v5947_v13  ;;  %v5655_v13 = vadd.f32 %v9964_v36, %v5654_v17 }
0x19ab   : > { %v5949_v44 = vpop.f32.mrf.mxu0 }
0x19ac   : > { %v5950_v11 = vadd.f32 %v5949_v44, %v10007_v23  ;;  %v5660_v44 = vpop.f32.mrf.mxu3 }
0x19ae   : > { %6170 = vst.msk [vmem:[%s10280_s27 + $0x78] sm:$0xff] %vm1343_vm12, %v5950_v11  ;;  %6733 = vmatmul.msk.f32.gmra.mxu2 %vm1343_vm12, %v5950_v11  ;;  %v5658_v11 = vadd.f32 %v9964_v36, %v5657_v61 }
0x19b3   : > { %v5952_v43 = vpop.f32.mrf.mxu0 }
0x19b4   : > { %v5953_v32 = vadd.f32 %v5952_v43, %v9996_v56  ;;  %v1316_v43 = vpop.trf.xlu2 }
0x19b6   : > { %6171 = vst.msk [vmem:[%s10280_s27 + $0x80] sm:$0xff] %vm1343_vm12, %v5953_v32  ;;  %6734 = vmatmul.msk.f32.gmra.mxu2 %vm1343_vm12, %v5953_v32  ;;  %v7242_v32 = vmov 0.0  }
0x19b7   : > { %1234 = vst [vmem:[%s10394_s23] sm:$0x77] %v7242_v32 }
0x19b8   : > { %1237 = vst [vmem:[%s10394_s23 + $0x18] sm:$0x7] %v7242_v32 }
0x19b9   : > { %v6029_v53 = vpop.f32.mrf.mxu2  ;;  %1333 = vst.msk [vmem:[%s10394_s23] sm:$0x7] %vm1332_vm3, %v1316_v43 }
0x19ba   : > { %v6030_v30 = vadd.f32 %v9964_v36, %v6029_v53  ;;  %v3261_v53 = vpop.trf.xlu1  ;;  %1235 = vst [vmem:[%s10394_s23 + $0x8] sm:$0x77] %v7242_v32 }
0x19bb   : > { %v5955_v6 = vpop.f32.mrf.mxu0  ;;  %1236 = vst [vmem:[%s10394_s23 + $0x10] sm:$0x77] %v7242_v32 }
0x19bc   : > { %v5956_v47 = vadd.f32 %v5955_v6, %v10011_v26  ;;  %6083 = vxpose.xlu0.b32.start [1/16] (narrow) %v6030_v30, 8  ;;  %v7206_v30 = vld [vmem:[%s10433_s18] ss:$0 sm:$0xff]  ;;  %3278 = vst.msk [vmem:[%s10394_s23 + $0x8] sm:$0x7] %vm3277_vm4, %v3261_v53 }
0x19bd   : > { %v5661_v6 = vadd.f32 %v7206_v30, %v5660_v44 }
0x19be   : > { %6172 = vst.msk [vmem:[%s10280_s27 + $0x88] sm:$0xff] %vm1343_vm12, %v5956_v47  ;;  %6735 = vmatmul.msk.f32.gmra.mxu2 %vm1343_vm12, %v5956_v47 }
0x19c1   : > { %v6032_v23 = vpop.f32.mrf.mxu2 }
0x19c2   : > { %v6033_v49 = vadd.f32 %v9964_v36, %v6032_v23 }
0x19c4   : > { %6084 = vxpose.xlu0.b32.cont [2/16] (narrow) %v6033_v49, 8 }
0x19c9   : > { %v6035_v56 = vpop.f32.mrf.mxu2 }
0x19ca   : > { %v6036_v10 = vadd.f32 %v9964_v36, %v6035_v56 }
0x19cc   : > { %6085 = vxpose.xlu0.b32.cont [3/16] (narrow) %v6036_v10, 8 }
0x19d1   : > { %v6038_v40 = vpop.f32.mrf.mxu2 }
0x19d2   : > { %v6039_v0 = vadd.f32 %v9964_v36, %v6038_v40  ;;  %v2073_v40 = vpop.trf.xlu2 }
0x19d3   : > { %2090 = vst.msk [vmem:[%s10394_s23 + $0x4] sm:$0x7] %vm2089_vm5, %v2073_v40 }
0x19d4   : > { %6086 = vxpose.xlu0.b32.cont [4/16] (narrow) %v6039_v0, 8 }
0x19d9   : > { %v6041_v52 = vpop.f32.mrf.mxu2 }
0x19da   : > { %v6042_v26 = vadd.f32 %v9964_v36, %v6041_v52  ;;  %v5335_v0 = vpop.trf.xlu2 }
0x19db   : > { %5352 = vst.msk [vmem:[%s10394_s23 + $0xc] sm:$0x7] %vm5351_vm6, %v5335_v0 }
0x19dc   : > { %6087 = vxpose.xlu0.b32.cont [5/16] (narrow) %v6042_v26, 8 }
0x19e1   : > { %v6044_v27 = vpop.f32.mrf.mxu2 }
0x19e2   : > { %v6045_v48 = vadd.f32 %v9964_v36, %v6044_v27 }
0x19e4   : > { %6088 = vxpose.xlu0.b32.cont [6/16] (narrow) %v6045_v48, 8 }
0x19e9   : > { %v6047_v24 = vpop.f32.mrf.mxu2 }
0x19ea   : > { %v6048_v7 = vadd.f32 %v9964_v36, %v6047_v24 }
0x19ec   : > { %6089 = vxpose.xlu0.b32.cont [7/16] (narrow) %v6048_v7, 8 }
0x19f1   : > { %v6050_v4 = vpop.f32.mrf.mxu2 }
0x19f2   : > { %v6051_v59 = vadd.f32 %v9964_v36, %v6050_v4 }
0x19f4   : > { %6090 = vxpose.xlu0.b32.cont [8/16] (narrow) %v6051_v59, 8 }
0x19f9   : > { %v6053_v45 = vpop.f32.mrf.mxu2 }
0x19fa   : > { %v6054_v62 = vadd.f32 %v9964_v36, %v6053_v45 }
0x19fc   : > { %6091 = vxpose.xlu0.b32.cont [9/16] (narrow) %v6054_v62, 8 }
0x1a01   : > { %v6056_v21 = vpop.f32.mrf.mxu2 }
0x1a02   : > { %v6057_v3 = vadd.f32 %v9964_v36, %v6056_v21 }
0x1a04   : > { %6092 = vxpose.xlu0.b32.cont [10/16] (narrow) %v6057_v3, 8 }
0x1a09   : > { %v6059_v8 = vpop.f32.mrf.mxu2 }
0x1a0a   : > { %v6060_v12 = vadd.f32 %v9964_v36, %v6059_v8 }
0x1a0c   : > { %6093 = vxpose.xlu0.b32.cont [11/16] (narrow) %v6060_v12, 8 }
0x1a11   : > { %v6062_v55 = vpop.f32.mrf.mxu2 }
0x1a12   : > { %v6063_v46 = vadd.f32 %v9964_v36, %v6062_v55 }
0x1a14   : > { %6094 = vxpose.xlu0.b32.cont [12/16] (narrow) %v6063_v46, 8 }
0x1a19   : > { %v6065_v14 = vpop.f32.mrf.mxu2 }
0x1a1a   : > { %v6066_v1 = vadd.f32 %v9964_v36, %v6065_v14 }
0x1a1c   : > { %6095 = vxpose.xlu0.b32.cont [13/16] (narrow) %v6066_v1, 8 }
0x1a21   : > { %v6068_v29 = vpop.f32.mrf.mxu2 }
0x1a22   : > { %v6069_v15 = vadd.f32 %v9964_v36, %v6068_v29 }
0x1a24   : > { %6096 = vxpose.xlu0.b32.cont [14/16] (narrow) %v6069_v15, 8 }
0x1a29   : > { %v6071_v38 = vpop.f32.mrf.mxu2 }
0x1a2a   : > { %v6072_v20 = vadd.f32 %v9964_v36, %v6071_v38 }
0x1a2c   : > { %6097 = vxpose.xlu0.b32.cont [15/16] (narrow) %v6072_v20, 8 }
0x1a31   : > { %v6074_v18 = vpop.f32.mrf.mxu2 }
0x1a32   : > { %v6075_v5 = vadd.f32 %v9964_v36, %v6074_v18 }
0x1a34   : > { %6098 = vxpose.xlu0.b32.end [16/16] (narrow) %v6075_v5, 8 }
0x1a39   : > { %v6077_v60 = vpop.f32.mrf.mxu2 }
0x1a3a   : > { %v6078_v35 = vadd.f32 %v9964_v36, %v6077_v60 }
0x1a3c   : > { %6115 = vxpose.xlu1.b32.start [1/2] (short) (narrow) %v6078_v35, 8 }
0x1a41   : > { %v6080_v51 = vpop.f32.mrf.mxu2 }
0x1a42   : > { %v6081_v25 = vadd.f32 %v9964_v36, %v6080_v51  ;;  %v5663_v36 = vpop.f32.mrf.mxu3 }
0x1a43   : > { %v5664_v47 = vadd.f32 %v7206_v30, %v5663_v36 }
0x1a44   : > { %6116 = vxpose.xlu1.b32.end [2/2] (short) (narrow) %v6081_v25, 8 }
0x1a4a   : > { %v5666_v23 = vpop.f32.mrf.mxu3 }
0x1a4b   : > { %v5667_v49 = vadd.f32 %v7206_v30, %v5666_v23 }
0x1a4c   : > { %5672 = vxpose.xlu1.b32.start [1/15] (short) (narrow) %v5628_v22, 8 }
0x1a52   : > { %v5669_v56 = vpop.f32.mrf.mxu3 }
0x1a53   : > { %v5670_v10 = vadd.f32 %v7206_v30, %v5669_v56 }
0x1a54   : > { %5673 = vxpose.xlu1.b32.cont [2/15] (short) (narrow) %v5631_v37, 8 }
0x1a5c   : > { %5674 = vxpose.xlu1.b32.cont [3/15] (short) (narrow) %v5634_v42, 8 }
0x1a60   : > { %v6099_v26 = vpop.trf.xlu0 }
0x1a64   : > { %5675 = vxpose.xlu1.b32.cont [4/15] (short) (narrow) %v5637_v41, 8 }
0x1a6c   : > { %5676 = vxpose.xlu1.b32.cont [5/15] (short) (narrow) %v5640_v31, 8 }
0x1a74   : > { %5677 = vxpose.xlu1.b32.cont [6/15] (short) (narrow) %v5643_v58, 8 }
0x1a7c   : > { %5678 = vxpose.xlu1.b32.cont [7/15] (short) (narrow) %v5646_v39, 8 }
0x1a84   : > { %5679 = vxpose.xlu1.b32.cont [8/15] (short) (narrow) %v5649_v34, 8 }
0x1a8c   : > { %5680 = vxpose.xlu1.b32.cont [9/15] (short) (narrow) %v5652_v16, 8 }
0x1a94   : > { %5681 = vxpose.xlu1.b32.cont [10/15] (short) (narrow) %v5655_v13, 8 }
0x1a9c   : > { %5682 = vxpose.xlu1.b32.cont [11/15] (short) (narrow) %v5658_v11, 8 }
0x1aa4   : > { %5683 = vxpose.xlu1.b32.cont [12/15] (short) (narrow) %v5661_v6, 8 }
0x1aac   : > { %5684 = vxpose.xlu1.b32.cont [13/15] (short) (narrow) %v5664_v47, 8 }
0x1ab4   : > { %5685 = vxpose.xlu1.b32.cont [14/15] (short) (narrow) %v5667_v49, 8 }
0x1abc   : > { %5686 = vxpose.xlu1.b32.end [15/15] (short) (narrow) %v5670_v10, 8 }
0x1ae0   : > { %v6131_v52 = vpop.trf.xlu1 }
0x1ae1   : > { %v6149_v27 = vrot.slane %v6131_v52, 4 }
0x1ae3   : > { %v6150_v48 = vsel %vm1167_vm8, %v6099_v26, %v6149_v27 }
0x1ae4   : > { %6154 = vst.msk [vmem:[%s10394_s23 + $0x14] sm:$0x77] %vm6153_vm9, %v6150_v48 }
0x1af0   : > { %v5688_v24 = vpop.trf.xlu1 }
0x1af1   : > { %5705 = vst.msk [vmem:[%s10394_s23 + $0x10] sm:$0x7] %vm5704_vm10, %v5688_v24 }
0x1af2 PF: > { %s10592_s2 = sld [smem:[#allocation2_spill]] }
0x1af8   : > { %s35_s5 = sadd.s32 1, %s10592_s2  }
0x1af9   : > { %p32_p4 = scmp.ge.s32.totalorder %s35_s5, 4  }
0x1afb   :  { %34 = sbr.rel (!%p32_p4) target bundleno = 15 (0xf), region = 172 }

</bundles_post_ra>
